<compile_context>
chip_gen: v7x
topology: tpu7x:2x2x1
jax: 0.10.0
libtpu: 0.0.40
codegen_flags: <defaults>
</compile_context>

<pallas_src>
import functools

import jax
import jax.numpy as jnp
from jax.experimental import pallas as pl
from jax.experimental.pallas import tpu as pltpu


# ---------------------------------------------------------------------------
# In-kernel helpers
# ---------------------------------------------------------------------------
def _conv3x3(xpad_ref, w_ref, scale, shift, Ho, Wo, relu):
    """3x3 'same' conv over a zero-padded VMEM scratch, fused scale/shift/ReLU.

    xpad_ref: (Ho+2, Wo+2, Cin) f32 scratch (borders are the zero padding)
    w_ref:    (9, Cin, Cout)    bf16 tap-major weights
    scale:    (1, Cout) f32 value or None
    shift:    (1, Cout) f32 value
    returns:  (Ho*Wo, Cout) f32
    """
    Cin = xpad_ref.shape[-1]
    Cout = w_ref.shape[-1]
    acc = jnp.zeros((Ho * Wo, Cout), jnp.float32)
    for kh in range(3):
        for kw in range(3):
            patch = xpad_ref[kh:kh + Ho, kw:kw + Wo, :].reshape(Ho * Wo, Cin)
            acc = acc + jnp.dot(patch.astype(jnp.bfloat16), w_ref[kh * 3 + kw],
                                preferred_element_type=jnp.float32)
    y = acc if scale is None else acc * scale
    y = y + shift
    if relu:
        y = jnp.maximum(y, 0.0)
    return y


# ---------------------------------------------------------------------------
# Fused forward kernel (whole network, one grid step per batch element)
# ---------------------------------------------------------------------------
def _locnet_kernel(
    # inputs
    x_ref,
    w11_ref, s11_ref, t11_ref,
    w12_ref, s12_ref, t12_ref,
    w21_ref, s21_ref, t21_ref,
    w22_ref, s22_ref, t22_ref,
    wde_ref, tde_ref,
    wd12_ref, sd12_ref, td12_ref,
    wd11_ref, td11_ref,
    # outputs
    o_ref,
    # VMEM scratch (padded activation buffers; borders give conv zero-padding)
    xpad, a11p, poolp, e21p, e22p, decp, d12p,
    *, H, W, cn,
):
    H1, W1 = H // 2, W // 2
    C2 = 2 * cn
    out_chn = o_ref.shape[-1]

    # Zero the padded scratch buffers every grid step (grid axis is 'parallel',
    # so no program_id==0 init tricks; the zeroed borders implement padding=1).
    for buf in (xpad, a11p, poolp, e21p, e22p, decp, d12p):
        buf[...] = jnp.zeros_like(buf)

    # Stage the input tile into its padded VMEM buffer (replaces jnp.pad).
    xpad[1:H + 1, 1:W + 1, :] = x_ref[0]

    # --- ConvEn11 + BN + ReLU ------------------------------------------------
    y = _conv3x3(xpad, w11_ref, s11_ref[...], t11_ref[...], H, W, relu=True)
    a11p[1:H + 1, 1:W + 1, :] = y.reshape(H, W, cn)

    # --- ConvEn12 + BN + ReLU, fused 2x2 / stride-2 max-pool ------------------
    y = _conv3x3(a11p, w12_ref, s12_ref[...], t12_ref[...], H, W, relu=True)
    y = y.reshape(H, W, cn)
    bi = jax.lax.broadcasted_iota(jnp.int32, (W1, W), 0)
    wi = jax.lax.broadcasted_iota(jnp.int32, (W1, W), 1)
    sel_e = (wi == 2 * bi).astype(jnp.float32)        # picks even columns
    sel_o = (wi == 2 * bi + 1).astype(jnp.float32)    # picks odd columns
    for a in range(H1):
        rmax = jnp.maximum(y[2 * a], y[2 * a + 1])                     # (W, cn)
        pooled = jnp.maximum(
            jnp.dot(sel_e, rmax, preferred_element_type=jnp.float32),
            jnp.dot(sel_o, rmax, preferred_element_type=jnp.float32))  # (W1, cn)
        poolp[1 + a, 1:W1 + 1, :] = pooled
    # NOTE: MaxPool2d(return_indices=True) indices are unused downstream.

    # --- ConvEn21 / ConvEn22 + BN + ReLU --------------------------------------
    y = _conv3x3(poolp, w21_ref, s21_ref[...], t21_ref[...], H1, W1, relu=True)
    e21p[1:H1 + 1, 1:W1 + 1, :] = y.reshape(H1, W1, C2)
    y = _conv3x3(e21p, w22_ref, s22_ref[...], t22_ref[...], H1, W1, relu=True)
    e22p[1:H1 + 1, 1:W1 + 1, :] = y.reshape(H1, W1, C2)

    # --- MaxDe: ConvTranspose2d(4x4, stride 2) then [1:-1, 1:-1] crop ----------
    # Sub-pixel form: cropped output pixel (2a+pr, 2b+ps) only touches the 2x2
    # weight subset of matching parity, reading the 1-padded undilated input:
    #   pr=0 -> rows (dh=0,kh=3),(dh=1,kh=1);  pr=1 -> (dh=1,kh=2),(dh=2,kh=0)
    # (same for columns with ps/kw).  No weight flip (direct transposed-conv taps).
    row_taps = (((0, 3), (1, 1)), ((1, 2), (2, 0)))
    col_taps = (((0, 3), (1, 1)), ((1, 2), (2, 0)))
    bias_de = tde_ref[...]                             # (1, C2)

    # Lane-preserving interleave matrices (W, W1): even / odd column placement.
    ri = jax.lax.broadcasted_iota(jnp.int32, (W, W1), 0)
    ci = jax.lax.broadcasted_iota(jnp.int32, (W, W1), 1)
    put_e = (ri == 2 * ci).astype(jnp.float32)
    put_o = (ri == 2 * ci + 1).astype(jnp.float32)

    for pr in range(2):
        planes = []
        for ps in range(2):
            acc = jnp.zeros((H1 * W1, C2), jnp.float32)
            for dh, kh in row_taps[pr]:
                for dw, kw in col_taps[ps]:
                    patch = e22p[dh:dh + H1, dw:dw + W1, :].reshape(H1 * W1, C2)
                    acc = acc + jnp.dot(patch.astype(jnp.bfloat16), wde_ref[kh, kw],
                                        preferred_element_type=jnp.float32)
            planes.append((acc + bias_de).reshape(H1, W1, C2))
        # Interleave the two column-parity planes of this row parity into the
        # full-resolution padded buffer feeding ConvDe12.
        for a in range(H1):
            row = (jnp.dot(put_e, planes[0][a], preferred_element_type=jnp.float32) +
                   jnp.dot(put_o, planes[1][a], preferred_element_type=jnp.float32))
            decp[1 + 2 * a + pr, 1:W + 1, :] = row                     # (W, C2)

    # --- ConvDe12 + BN + ReLU ---------------------------------------------------
    y = _conv3x3(decp, wd12_ref, sd12_ref[...], td12_ref[...], H, W, relu=True)
    d12p[1:H + 1, 1:W + 1, :] = y.reshape(H, W, cn)

    # --- ConvDe11 (bias only; BNDe11 is defined but unused in forward) ----------
    y = _conv3x3(d12p, wd11_ref, None, td11_ref[...], H, W, relu=False)
    o_ref[0] = y.reshape(H, W, out_chn).astype(o_ref.dtype)


# ---------------------------------------------------------------------------
# Parameters (deterministic, PyTorch-like uniform init; BN at default stats)
# ---------------------------------------------------------------------------
def init_params(key, in_chn, out_chn, cn=32, eps=1e-5):
    keys = iter(jax.random.split(key, 16))

    def conv_wb(cout, cin, k):
        bound = 1.0 / ((cin * k * k) ** 0.5)
        w = jax.random.uniform(next(keys), (cout, cin, k, k), jnp.float32, -bound, bound)
        b = jax.random.uniform(next(keys), (cout,), jnp.float32, -bound, bound)
        return w, b

    def taps3(w):  # (Cout, Cin, 3, 3) -> (9, Cin, Cout) bf16 (MXU input dtype)
        return (jnp.transpose(w, (2, 3, 1, 0))
                .reshape(9, w.shape[1], w.shape[0]).astype(jnp.bfloat16))

    def fold_bn(bias, cout):
        gamma = jnp.ones((cout,), jnp.float32)
        beta = jnp.zeros((cout,), jnp.float32)
        mean = jnp.zeros((cout,), jnp.float32)
        var = jnp.ones((cout,), jnp.float32)
        scale = gamma / jnp.sqrt(var + eps)
        shift = beta + (bias - mean) * scale
        return scale[None, :], shift[None, :]

    params = {}
    for name, (cout, cin) in [("ConvEn11", (cn, in_chn)),
                              ("ConvEn12", (cn, cn)),
                              ("ConvEn21", (2 * cn, cn)),
                              ("ConvEn22", (2 * cn, 2 * cn)),
                              ("ConvDe12", (cn, 2 * cn))]:
        w, b = conv_wb(cout, cin, 3)
        params[name] = (taps3(w), *fold_bn(b, cout))

    # ConvDe11: BNDe11 exists in __init__ but is NOT applied in forward -> conv + bias.
    w, b = conv_wb(out_chn, cn, 3)
    params["ConvDe11"] = (taps3(w), b[None, :])

    # MaxDe: ConvTranspose2d(2*cn -> 2*cn, 4x4, stride 2); weight (Cin, Cout, 4, 4).
    cin = cout = 2 * cn
    bound = 1.0 / ((cin * 16) ** 0.5)
    wt = jax.random.uniform(next(keys), (cin, cout, 4, 4), jnp.float32, -bound, bound)
    bt = jax.random.uniform(next(keys), (cout,), jnp.float32, -bound, bound)
    # Tap-major (kh, kw, Cin, Cout); sub-pixel decomposition uses taps directly (no flip).
    params["MaxDe"] = (jnp.transpose(wt, (2, 3, 0, 1)).astype(jnp.bfloat16), bt[None, :])
    return params


# ---------------------------------------------------------------------------
# Forward pass wrapper (single fused pallas_call)
# ---------------------------------------------------------------------------
def localization_net_forward(x_nchw, params, cn=32):
    x = jnp.transpose(x_nchw, (0, 2, 3, 1)).astype(jnp.float32)   # NCHW -> NHWC
    N, H, W, in_chn = x.shape
    H1, W1 = H // 2, W // 2
    C2 = 2 * cn

    w11, s11, t11 = params["ConvEn11"]
    w12, s12, t12 = params["ConvEn12"]
    w21, s21, t21 = params["ConvEn21"]
    w22, s22, t22 = params["ConvEn22"]
    wde, tde = params["MaxDe"]
    wd12, sd12, td12 = params["ConvDe12"]
    wd11, td11 = params["ConvDe11"]
    out_chn = wd11.shape[-1]

    weight_args = (w11, s11, t11, w12, s12, t12, w21, s21, t21, w22, s22, t22,
                   wde, tde, wd12, sd12, td12, wd11, td11)

    def rep(arr):  # grid-invariant full-block spec (weights / scale / shift)
        nd = arr.ndim
        return pl.BlockSpec(arr.shape, lambda n, _nd=nd: (0,) * _nd)

    kernel = functools.partial(_locnet_kernel, H=H, W=W, cn=cn)

    out = pl.pallas_call(
        kernel,
        out_shape=jax.ShapeDtypeStruct((N, H, W, out_chn), jnp.float32),
        grid=(N,),
        in_specs=[pl.BlockSpec((1, H, W, in_chn), lambda n: (n, 0, 0, 0))]
                 + [rep(a) for a in weight_args],
        out_specs=pl.BlockSpec((1, H, W, out_chn), lambda n: (n, 0, 0, 0)),
        scratch_shapes=[
            pltpu.VMEM((H + 2, W + 2, in_chn), jnp.float32),   # padded input
            pltpu.VMEM((H + 2, W + 2, cn), jnp.float32),       # padded ConvEn11 out
            pltpu.VMEM((H1 + 2, W1 + 2, cn), jnp.float32),     # padded pooled
            pltpu.VMEM((H1 + 2, W1 + 2, C2), jnp.float32),     # padded ConvEn21 out
            pltpu.VMEM((H1 + 2, W1 + 2, C2), jnp.float32),     # padded ConvEn22 out
            pltpu.VMEM((H + 2, W + 2, C2), jnp.float32),       # padded MaxDe out
            pltpu.VMEM((H + 2, W + 2, cn), jnp.float32),       # padded ConvDe12 out
        ],
        compiler_params=pltpu.CompilerParams(
            dimension_semantics=("parallel",),      # batch -> both v7x TensorCores
            vmem_limit_bytes=32 * 1024 * 1024,      # safe on v5e/v6e/v7x; usage ~1 MiB
        ),
    )(x, *weight_args)
    return jnp.transpose(out, (0, 3, 1, 2))   # NHWC -> NCHW


# ---------------------------------------------------------------------------
if __name__ == "__main__":
    key = jax.random.PRNGKey(0)
    kx, kp = jax.random.split(key)

    N, in_chn, out_chn, H, W = 2, 4, 4, 16, 16
    x = jax.random.normal(kx, (N, in_chn, H, W), jnp.float32)      # NCHW like PyTorch
    params = init_params(kp, in_chn, out_chn)

    fwd = jax.jit(functools.partial(localization_net_forward, params=params))
    out = fwd(x)
    jax.block_until_ready(out)

    assert out.shape == (N, out_chn, H, W), out.shape
    assert bool(jnp.all(jnp.isfinite(out)))
    print("KERNEL_OK")
</pallas_src>

<mosaic_0001>
module attributes {stable_mosaic.version = 11 : i64} {
  func.func @_locnet_kernel(%arg0: i32, %arg1: memref<1x16x16x4xf32, #tpu.memory_space<vmem>>, %arg2: memref<9x4x32xbf16, #tpu.memory_space<vmem>>, %arg3: memref<1x32xf32, #tpu.memory_space<vmem>>, %arg4: memref<1x32xf32, #tpu.memory_space<vmem>>, %arg5: memref<9x32x32xbf16, #tpu.memory_space<vmem>>, %arg6: memref<1x32xf32, #tpu.memory_space<vmem>>, %arg7: memref<1x32xf32, #tpu.memory_space<vmem>>, %arg8: memref<9x32x64xbf16, #tpu.memory_space<vmem>>, %arg9: memref<1x64xf32, #tpu.memory_space<vmem>>, %arg10: memref<1x64xf32, #tpu.memory_space<vmem>>, %arg11: memref<9x64x64xbf16, #tpu.memory_space<vmem>>, %arg12: memref<1x64xf32, #tpu.memory_space<vmem>>, %arg13: memref<1x64xf32, #tpu.memory_space<vmem>>, %arg14: memref<4x4x64x64xbf16, #tpu.memory_space<vmem>>, %arg15: memref<1x64xf32, #tpu.memory_space<vmem>>, %arg16: memref<9x64x32xbf16, #tpu.memory_space<vmem>>, %arg17: memref<1x32xf32, #tpu.memory_space<vmem>>, %arg18: memref<1x32xf32, #tpu.memory_space<vmem>>, %arg19: memref<9x32x4xbf16, #tpu.memory_space<vmem>>, %arg20: memref<1x4xf32, #tpu.memory_space<vmem>>, %arg21: memref<1x16x16x4xf32, #tpu.memory_space<vmem>>, %arg22: memref<18x18x4xf32, #tpu.memory_space<vmem>>, %arg23: memref<18x18x32xf32, #tpu.memory_space<vmem>>, %arg24: memref<10x10x32xf32, #tpu.memory_space<vmem>>, %arg25: memref<10x10x64xf32, #tpu.memory_space<vmem>>, %arg26: memref<10x10x64xf32, #tpu.memory_space<vmem>>, %arg27: memref<18x18x64xf32, #tpu.memory_space<vmem>>, %arg28: memref<18x18x32xf32, #tpu.memory_space<vmem>>) attributes {dimension_semantics = [#tpu.dimension_semantics<parallel>], iteration_bounds = array<i64: 2>, scalar_prefetch = 0 : i64, scratch_operands = 7 : i64, tpu.core_type = #tpu.core_type<tc>, window_params = [{transform_indices = @transform_0, window_bounds = array<i64: 1, 16, 16, 4>}, {pipeline_mode = #tpu.pipeline_mode<synchronous>, transform_indices = @transform_1, window_bounds = array<i64: 9, 4, 32>}, {pipeline_mode = #tpu.pipeline_mode<synchronous>, transform_indices = @transform_2, window_bounds = array<i64: 1, 32>}, {pipeline_mode = #tpu.pipeline_mode<synchronous>, transform_indices = @transform_3, window_bounds = array<i64: 1, 32>}, {pipeline_mode = #tpu.pipeline_mode<synchronous>, transform_indices = @transform_4, window_bounds = array<i64: 9, 32, 32>}, {pipeline_mode = #tpu.pipeline_mode<synchronous>, transform_indices = @transform_5, window_bounds = array<i64: 1, 32>}, {pipeline_mode = #tpu.pipeline_mode<synchronous>, transform_indices = @transform_6, window_bounds = array<i64: 1, 32>}, {pipeline_mode = #tpu.pipeline_mode<synchronous>, transform_indices = @transform_7, window_bounds = array<i64: 9, 32, 64>}, {pipeline_mode = #tpu.pipeline_mode<synchronous>, transform_indices = @transform_8, window_bounds = array<i64: 1, 64>}, {pipeline_mode = #tpu.pipeline_mode<synchronous>, transform_indices = @transform_9, window_bounds = array<i64: 1, 64>}, {pipeline_mode = #tpu.pipeline_mode<synchronous>, transform_indices = @transform_10, window_bounds = array<i64: 9, 64, 64>}, {pipeline_mode = #tpu.pipeline_mode<synchronous>, transform_indices = @transform_11, window_bounds = array<i64: 1, 64>}, {pipeline_mode = #tpu.pipeline_mode<synchronous>, transform_indices = @transform_12, window_bounds = array<i64: 1, 64>}, {pipeline_mode = #tpu.pipeline_mode<synchronous>, transform_indices = @transform_13, window_bounds = array<i64: 4, 4, 64, 64>}, {pipeline_mode = #tpu.pipeline_mode<synchronous>, transform_indices = @transform_14, window_bounds = array<i64: 1, 64>}, {pipeline_mode = #tpu.pipeline_mode<synchronous>, transform_indices = @transform_15, window_bounds = array<i64: 9, 64, 32>}, {pipeline_mode = #tpu.pipeline_mode<synchronous>, transform_indices = @transform_16, window_bounds = array<i64: 1, 32>}, {pipeline_mode = #tpu.pipeline_mode<synchronous>, transform_indices = @transform_17, window_bounds = array<i64: 1, 32>}, {pipeline_mode = #tpu.pipeline_mode<synchronous>, transform_indices = @transform_18, window_bounds = array<i64: 9, 32, 4>}, {pipeline_mode = #tpu.pipeline_mode<synchronous>, transform_indices = @transform_19, window_bounds = array<i64: 1, 4>}, {transform_indices = @transform_20, window_bounds = array<i64: 1, 16, 16, 4>}]} {
    %cst = arith.constant 0.000000e+00 : f32
    %0 = vector.broadcast %cst : f32 to vector<18x18x4xf32>
    %c0 = arith.constant 0 : index
    %c0_0 = arith.constant 0 : index
    %c0_1 = arith.constant 0 : index
    %1 = vector.load %arg22[%c0, %c0_0, %c0_1] : memref<18x18x4xf32, #tpu.memory_space<vmem>>, vector<18x18x4xf32>
    tpu.vector_store %arg22[%c0, %c0_0, %c0_1], %0 {strides = array<i32>} : memref<18x18x4xf32, #tpu.memory_space<vmem>>, vector<18x18x4xf32>,
    %cst_2 = arith.constant 0.000000e+00 : f32
    %2 = vector.broadcast %cst_2 : f32 to vector<18x18x32xf32>
    %c0_3 = arith.constant 0 : index
    %c0_4 = arith.constant 0 : index
    %c0_5 = arith.constant 0 : index
    %3 = vector.load %arg23[%c0_3, %c0_4, %c0_5] : memref<18x18x32xf32, #tpu.memory_space<vmem>>, vector<18x18x32xf32>
    tpu.vector_store %arg23[%c0_3, %c0_4, %c0_5], %2 {strides = array<i32>} : memref<18x18x32xf32, #tpu.memory_space<vmem>>, vector<18x18x32xf32>,
    %cst_6 = arith.constant 0.000000e+00 : f32
    %4 = vector.broadcast %cst_6 : f32 to vector<10x10x32xf32>
    %c0_7 = arith.constant 0 : index
    %c0_8 = arith.constant 0 : index
    %c0_9 = arith.constant 0 : index
    %5 = vector.load %arg24[%c0_7, %c0_8, %c0_9] : memref<10x10x32xf32, #tpu.memory_space<vmem>>, vector<10x10x32xf32>
    tpu.vector_store %arg24[%c0_7, %c0_8, %c0_9], %4 {strides = array<i32>} : memref<10x10x32xf32, #tpu.memory_space<vmem>>, vector<10x10x32xf32>,
    %cst_10 = arith.constant 0.000000e+00 : f32
    %6 = vector.broadcast %cst_10 : f32 to vector<10x10x64xf32>
    %c0_11 = arith.constant 0 : index
    %c0_12 = arith.constant 0 : index
    %c0_13 = arith.constant 0 : index
    %7 = vector.load %arg25[%c0_11, %c0_12, %c0_13] : memref<10x10x64xf32, #tpu.memory_space<vmem>>, vector<10x10x64xf32>
    tpu.vector_store %arg25[%c0_11, %c0_12, %c0_13], %6 {strides = array<i32>} : memref<10x10x64xf32, #tpu.memory_space<vmem>>, vector<10x10x64xf32>,
    %cst_14 = arith.constant 0.000000e+00 : f32
    %8 = vector.broadcast %cst_14 : f32 to vector<10x10x64xf32>
    %c0_15 = arith.constant 0 : index
    %c0_16 = arith.constant 0 : index
    %c0_17 = arith.constant 0 : index
    %9 = vector.load %arg26[%c0_15, %c0_16, %c0_17] : memref<10x10x64xf32, #tpu.memory_space<vmem>>, vector<10x10x64xf32>
    tpu.vector_store %arg26[%c0_15, %c0_16, %c0_17], %8 {strides = array<i32>} : memref<10x10x64xf32, #tpu.memory_space<vmem>>, vector<10x10x64xf32>,
    %cst_18 = arith.constant 0.000000e+00 : f32
    %10 = vector.broadcast %cst_18 : f32 to vector<18x18x64xf32>
    %c0_19 = arith.constant 0 : index
    %c0_20 = arith.constant 0 : index
    %c0_21 = arith.constant 0 : index
    %11 = vector.load %arg27[%c0_19, %c0_20, %c0_21] : memref<18x18x64xf32, #tpu.memory_space<vmem>>, vector<18x18x64xf32>
    tpu.vector_store %arg27[%c0_19, %c0_20, %c0_21], %10 {strides = array<i32>} : memref<18x18x64xf32, #tpu.memory_space<vmem>>, vector<18x18x64xf32>,
    %cst_22 = arith.constant 0.000000e+00 : f32
    %12 = vector.broadcast %cst_22 : f32 to vector<18x18x32xf32>
    %c0_23 = arith.constant 0 : index
    %c0_24 = arith.constant 0 : index
    %c0_25 = arith.constant 0 : index
    %13 = vector.load %arg28[%c0_23, %c0_24, %c0_25] : memref<18x18x32xf32, #tpu.memory_space<vmem>>, vector<18x18x32xf32>
    tpu.vector_store %arg28[%c0_23, %c0_24, %c0_25], %12 {strides = array<i32>} : memref<18x18x32xf32, #tpu.memory_space<vmem>>, vector<18x18x32xf32>,
    %c0_26 = arith.constant 0 : index
    %c0_27 = arith.constant 0 : index
    %c0_28 = arith.constant 0 : index
    %c0_29 = arith.constant 0 : index
    %14 = vector.load %arg1[%c0_26, %c0_27, %c0_28, %c0_29] : memref<1x16x16x4xf32, #tpu.memory_space<vmem>>, vector<1x16x16x4xf32>
    %15 = vector.shape_cast %14 : vector<1x16x16x4xf32> to vector<16x16x4xf32>
    %c1 = arith.constant 1 : index
    %c1_30 = arith.constant 1 : index
    %c0_31 = arith.constant 0 : index
    %16 = vector.load %arg22[%c1, %c1_30, %c0_31] : memref<18x18x4xf32, #tpu.memory_space<vmem>>, vector<16x16x4xf32>
    tpu.vector_store %arg22[%c1, %c1_30, %c0_31], %15 {strides = array<i32>} : memref<18x18x4xf32, #tpu.memory_space<vmem>>, vector<16x16x4xf32>,
    %c0_32 = arith.constant 0 : index
    %c0_33 = arith.constant 0 : index
    %17 = vector.load %arg3[%c0_32, %c0_33] : memref<1x32xf32, #tpu.memory_space<vmem>>, vector<1x32xf32>
    %c0_34 = arith.constant 0 : index
    %c0_35 = arith.constant 0 : index
    %18 = vector.load %arg4[%c0_34, %c0_35] : memref<1x32xf32, #tpu.memory_space<vmem>>, vector<1x32xf32>
    %cst_36 = arith.constant 0.000000e+00 : f32
    %19 = vector.broadcast %cst_36 : f32 to vector<256x32xf32>
    %c0_37 = arith.constant 0 : index
    %c0_38 = arith.constant 0 : index
    %c0_39 = arith.constant 0 : index
    %20 = vector.load %arg22[%c0_37, %c0_38, %c0_39] : memref<18x18x4xf32, #tpu.memory_space<vmem>>, vector<16x16x4xf32>
    %21 = vector.shape_cast %20 : vector<16x16x4xf32> to vector<256x4xf32>
    %22 = arith.truncf %21 : vector<256x4xf32> to vector<256x4xbf16>
    %c0_40 = arith.constant 0 : index
    %c0_41 = arith.constant 0 : index
    %c0_42 = arith.constant 0 : index
    %23 = vector.load %arg2[%c0_40, %c0_41, %c0_42] : memref<9x4x32xbf16, #tpu.memory_space<vmem>>, vector<1x4x32xbf16>
    %24 = vector.shape_cast %23 : vector<1x4x32xbf16> to vector<4x32xbf16>
    %cst_43 = arith.constant dense<0.000000e+00> : vector<256x32xf32>
    %25 = tpu.matmul %22, %24, %cst_43 {dimension_numbers = #tpu.dot_dimension_numbers<[1], [0], [0], [1], [0, 0, 1, 1], [], []>} : vector<256x4xbf16>, vector<4x32xbf16>, vector<256x32xf32> -> vector<256x32xf32>
    %26 = arith.addf %19, %25 : vector<256x32xf32>
    %c0_44 = arith.constant 0 : index
    %c1_45 = arith.constant 1 : index
    %c0_46 = arith.constant 0 : index
    %27 = vector.load %arg22[%c0_44, %c1_45, %c0_46] : memref<18x18x4xf32, #tpu.memory_space<vmem>>, vector<16x16x4xf32>
    %28 = vector.shape_cast %27 : vector<16x16x4xf32> to vector<256x4xf32>
    %29 = arith.truncf %28 : vector<256x4xf32> to vector<256x4xbf16>
    %c1_47 = arith.constant 1 : index
    %c0_48 = arith.constant 0 : index
    %c0_49 = arith.constant 0 : index
    %30 = vector.load %arg2[%c1_47, %c0_48, %c0_49] : memref<9x4x32xbf16, #tpu.memory_space<vmem>>, vector<1x4x32xbf16>
    %31 = vector.shape_cast %30 : vector<1x4x32xbf16> to vector<4x32xbf16>
    %cst_50 = arith.constant dense<0.000000e+00> : vector<256x32xf32>
    %32 = tpu.matmul %29, %31, %cst_50 {dimension_numbers = #tpu.dot_dimension_numbers<[1], [0], [0], [1], [0, 0, 1, 1], [], []>} : vector<256x4xbf16>, vector<4x32xbf16>, vector<256x32xf32> -> vector<256x32xf32>
    %33 = arith.addf %26, %32 : vector<256x32xf32>
    %c0_51 = arith.constant 0 : index
    %c2 = arith.constant 2 : index
    %c0_52 = arith.constant 0 : index
    %34 = vector.load %arg22[%c0_51, %c2, %c0_52] : memref<18x18x4xf32, #tpu.memory_space<vmem>>, vector<16x16x4xf32>
    %35 = vector.shape_cast %34 : vector<16x16x4xf32> to vector<256x4xf32>
    %36 = arith.truncf %35 : vector<256x4xf32> to vector<256x4xbf16>
    %c2_53 = arith.constant 2 : index
    %c0_54 = arith.constant 0 : index
    %c0_55 = arith.constant 0 : index
    %37 = vector.load %arg2[%c2_53, %c0_54, %c0_55] : memref<9x4x32xbf16, #tpu.memory_space<vmem>>, vector<1x4x32xbf16>
    %38 = vector.shape_cast %37 : vector<1x4x32xbf16> to vector<4x32xbf16>
    %cst_56 = arith.constant dense<0.000000e+00> : vector<256x32xf32>
    %39 = tpu.matmul %36, %38, %cst_56 {dimension_numbers = #tpu.dot_dimension_numbers<[1], [0], [0], [1], [0, 0, 1, 1], [], []>} : vector<256x4xbf16>, vector<4x32xbf16>, vector<256x32xf32> -> vector<256x32xf32>
    %40 = arith.addf %33, %39 : vector<256x32xf32>
    %c1_57 = arith.constant 1 : index
    %c0_58 = arith.constant 0 : index
    %c0_59 = arith.constant 0 : index
    %41 = vector.load %arg22[%c1_57, %c0_58, %c0_59] : memref<18x18x4xf32, #tpu.memory_space<vmem>>, vector<16x16x4xf32>
    %42 = vector.shape_cast %41 : vector<16x16x4xf32> to vector<256x4xf32>
    %43 = arith.truncf %42 : vector<256x4xf32> to vector<256x4xbf16>
    %c3 = arith.constant 3 : index
    %c0_60 = arith.constant 0 : index
    %c0_61 = arith.constant 0 : index
    %44 = vector.load %arg2[%c3, %c0_60, %c0_61] : memref<9x4x32xbf16, #tpu.memory_space<vmem>>, vector<1x4x32xbf16>
    %45 = vector.shape_cast %44 : vector<1x4x32xbf16> to vector<4x32xbf16>
    %cst_62 = arith.constant dense<0.000000e+00> : vector<256x32xf32>
    %46 = tpu.matmul %43, %45, %cst_62 {dimension_numbers = #tpu.dot_dimension_numbers<[1], [0], [0], [1], [0, 0, 1, 1], [], []>} : vector<256x4xbf16>, vector<4x32xbf16>, vector<256x32xf32> -> vector<256x32xf32>
    %47 = arith.addf %40, %46 : vector<256x32xf32>
    %c1_63 = arith.constant 1 : index
    %c1_64 = arith.constant 1 : index
    %c0_65 = arith.constant 0 : index
    %48 = vector.load %arg22[%c1_63, %c1_64, %c0_65] : memref<18x18x4xf32, #tpu.memory_space<vmem>>, vector<16x16x4xf32>
    %49 = vector.shape_cast %48 : vector<16x16x4xf32> to vector<256x4xf32>
    %50 = arith.truncf %49 : vector<256x4xf32> to vector<256x4xbf16>
    %c4 = arith.constant 4 : index
    %c0_66 = arith.constant 0 : index
    %c0_67 = arith.constant 0 : index
    %51 = vector.load %arg2[%c4, %c0_66, %c0_67] : memref<9x4x32xbf16, #tpu.memory_space<vmem>>, vector<1x4x32xbf16>
    %52 = vector.shape_cast %51 : vector<1x4x32xbf16> to vector<4x32xbf16>
    %cst_68 = arith.constant dense<0.000000e+00> : vector<256x32xf32>
    %53 = tpu.matmul %50, %52, %cst_68 {dimension_numbers = #tpu.dot_dimension_numbers<[1], [0], [0], [1], [0, 0, 1, 1], [], []>} : vector<256x4xbf16>, vector<4x32xbf16>, vector<256x32xf32> -> vector<256x32xf32>
    %54 = arith.addf %47, %53 : vector<256x32xf32>
    %c1_69 = arith.constant 1 : index
    %c2_70 = arith.constant 2 : index
    %c0_71 = arith.constant 0 : index
    %55 = vector.load %arg22[%c1_69, %c2_70, %c0_71] : memref<18x18x4xf32, #tpu.memory_space<vmem>>, vector<16x16x4xf32>
    %56 = vector.shape_cast %55 : vector<16x16x4xf32> to vector<256x4xf32>
    %57 = arith.truncf %56 : vector<256x4xf32> to vector<256x4xbf16>
    %c5 = arith.constant 5 : index
    %c0_72 = arith.constant 0 : index
    %c0_73 = arith.constant 0 : index
    %58 = vector.load %arg2[%c5, %c0_72, %c0_73] : memref<9x4x32xbf16, #tpu.memory_space<vmem>>, vector<1x4x32xbf16>
    %59 = vector.shape_cast %58 : vector<1x4x32xbf16> to vector<4x32xbf16>
    %cst_74 = arith.constant dense<0.000000e+00> : vector<256x32xf32>
    %60 = tpu.matmul %57, %59, %cst_74 {dimension_numbers = #tpu.dot_dimension_numbers<[1], [0], [0], [1], [0, 0, 1, 1], [], []>} : vector<256x4xbf16>, vector<4x32xbf16>, vector<256x32xf32> -> vector<256x32xf32>
    %61 = arith.addf %54, %60 : vector<256x32xf32>
    %c2_75 = arith.constant 2 : index
    %c0_76 = arith.constant 0 : index
    %c0_77 = arith.constant 0 : index
    %62 = vector.load %arg22[%c2_75, %c0_76, %c0_77] : memref<18x18x4xf32, #tpu.memory_space<vmem>>, vector<16x16x4xf32>
    %63 = vector.shape_cast %62 : vector<16x16x4xf32> to vector<256x4xf32>
    %64 = arith.truncf %63 : vector<256x4xf32> to vector<256x4xbf16>
    %c6 = arith.constant 6 : index
    %c0_78 = arith.constant 0 : index
    %c0_79 = arith.constant 0 : index
    %65 = vector.load %arg2[%c6, %c0_78, %c0_79] : memref<9x4x32xbf16, #tpu.memory_space<vmem>>, vector<1x4x32xbf16>
    %66 = vector.shape_cast %65 : vector<1x4x32xbf16> to vector<4x32xbf16>
    %cst_80 = arith.constant dense<0.000000e+00> : vector<256x32xf32>
    %67 = tpu.matmul %64, %66, %cst_80 {dimension_numbers = #tpu.dot_dimension_numbers<[1], [0], [0], [1], [0, 0, 1, 1], [], []>} : vector<256x4xbf16>, vector<4x32xbf16>, vector<256x32xf32> -> vector<256x32xf32>
    %68 = arith.addf %61, %67 : vector<256x32xf32>
    %c2_81 = arith.constant 2 : index
    %c1_82 = arith.constant 1 : index
    %c0_83 = arith.constant 0 : index
    %69 = vector.load %arg22[%c2_81, %c1_82, %c0_83] : memref<18x18x4xf32, #tpu.memory_space<vmem>>, vector<16x16x4xf32>
    %70 = vector.shape_cast %69 : vector<16x16x4xf32> to vector<256x4xf32>
    %71 = arith.truncf %70 : vector<256x4xf32> to vector<256x4xbf16>
    %c7 = arith.constant 7 : index
    %c0_84 = arith.constant 0 : index
    %c0_85 = arith.constant 0 : index
    %72 = vector.load %arg2[%c7, %c0_84, %c0_85] : memref<9x4x32xbf16, #tpu.memory_space<vmem>>, vector<1x4x32xbf16>
    %73 = vector.shape_cast %72 : vector<1x4x32xbf16> to vector<4x32xbf16>
    %cst_86 = arith.constant dense<0.000000e+00> : vector<256x32xf32>
    %74 = tpu.matmul %71, %73, %cst_86 {dimension_numbers = #tpu.dot_dimension_numbers<[1], [0], [0], [1], [0, 0, 1, 1], [], []>} : vector<256x4xbf16>, vector<4x32xbf16>, vector<256x32xf32> -> vector<256x32xf32>
    %75 = arith.addf %68, %74 : vector<256x32xf32>
    %c2_87 = arith.constant 2 : index
    %c2_88 = arith.constant 2 : index
    %c0_89 = arith.constant 0 : index
    %76 = vector.load %arg22[%c2_87, %c2_88, %c0_89] : memref<18x18x4xf32, #tpu.memory_space<vmem>>, vector<16x16x4xf32>
    %77 = vector.shape_cast %76 : vector<16x16x4xf32> to vector<256x4xf32>
    %78 = arith.truncf %77 : vector<256x4xf32> to vector<256x4xbf16>
    %c8 = arith.constant 8 : index
    %c0_90 = arith.constant 0 : index
    %c0_91 = arith.constant 0 : index
    %79 = vector.load %arg2[%c8, %c0_90, %c0_91] : memref<9x4x32xbf16, #tpu.memory_space<vmem>>, vector<1x4x32xbf16>
    %80 = vector.shape_cast %79 : vector<1x4x32xbf16> to vector<4x32xbf16>
    %cst_92 = arith.constant dense<0.000000e+00> : vector<256x32xf32>
    %81 = tpu.matmul %78, %80, %cst_92 {dimension_numbers = #tpu.dot_dimension_numbers<[1], [0], [0], [1], [0, 0, 1, 1], [], []>} : vector<256x4xbf16>, vector<4x32xbf16>, vector<256x32xf32> -> vector<256x32xf32>
    %82 = arith.addf %75, %81 : vector<256x32xf32>
    %83 = vector.broadcast %17 : vector<1x32xf32> to vector<256x32xf32>
    %84 = arith.mulf %82, %83 : vector<256x32xf32>
    %85 = vector.broadcast %18 : vector<1x32xf32> to vector<256x32xf32>
    %86 = arith.addf %84, %85 : vector<256x32xf32>
    %cst_93 = arith.constant 0.000000e+00 : f32
    %87 = vector.broadcast %cst_93 : f32 to vector<256x32xf32>
    %88 = arith.maximumf %86, %87 : vector<256x32xf32>
    %89 = vector.shape_cast %88 : vector<256x32xf32> to vector<16x16x32xf32>
    %c1_94 = arith.constant 1 : index
    %c1_95 = arith.constant 1 : index
    %c0_96 = arith.constant 0 : index
    %90 = vector.load %arg23[%c1_94, %c1_95, %c0_96] : memref<18x18x32xf32, #tpu.memory_space<vmem>>, vector<16x16x32xf32>
    tpu.vector_store %arg23[%c1_94, %c1_95, %c0_96], %89 {strides = array<i32>} : memref<18x18x32xf32, #tpu.memory_space<vmem>>, vector<16x16x32xf32>,
    %c0_97 = arith.constant 0 : index
    %c0_98 = arith.constant 0 : index
    %91 = vector.load %arg6[%c0_97, %c0_98] : memref<1x32xf32, #tpu.memory_space<vmem>>, vector<1x32xf32>
    %c0_99 = arith.constant 0 : index
    %c0_100 = arith.constant 0 : index
    %92 = vector.load %arg7[%c0_99, %c0_100] : memref<1x32xf32, #tpu.memory_space<vmem>>, vector<1x32xf32>
    %cst_101 = arith.constant 0.000000e+00 : f32
    %93 = vector.broadcast %cst_101 : f32 to vector<256x32xf32>
    %c0_102 = arith.constant 0 : index
    %c0_103 = arith.constant 0 : index
    %c0_104 = arith.constant 0 : index
    %94 = vector.load %arg23[%c0_102, %c0_103, %c0_104] : memref<18x18x32xf32, #tpu.memory_space<vmem>>, vector<16x16x32xf32>
    %95 = vector.shape_cast %94 : vector<16x16x32xf32> to vector<256x32xf32>
    %96 = arith.truncf %95 : vector<256x32xf32> to vector<256x32xbf16>
    %c0_105 = arith.constant 0 : index
    %c0_106 = arith.constant 0 : index
    %c0_107 = arith.constant 0 : index
    %97 = vector.load %arg5[%c0_105, %c0_106, %c0_107] : memref<9x32x32xbf16, #tpu.memory_space<vmem>>, vector<1x32x32xbf16>
    %98 = vector.shape_cast %97 : vector<1x32x32xbf16> to vector<32x32xbf16>
    %cst_108 = arith.constant dense<0.000000e+00> : vector<256x32xf32>
    %99 = tpu.matmul %96, %98, %cst_108 {dimension_numbers = #tpu.dot_dimension_numbers<[1], [0], [0], [1], [0, 0, 1, 1], [], []>} : vector<256x32xbf16>, vector<32x32xbf16>, vector<256x32xf32> -> vector<256x32xf32>
    %100 = arith.addf %93, %99 : vector<256x32xf32>
    %c0_109 = arith.constant 0 : index
    %c1_110 = arith.constant 1 : index
    %c0_111 = arith.constant 0 : index
    %101 = vector.load %arg23[%c0_109, %c1_110, %c0_111] : memref<18x18x32xf32, #tpu.memory_space<vmem>>, vector<16x16x32xf32>
    %102 = vector.shape_cast %101 : vector<16x16x32xf32> to vector<256x32xf32>
    %103 = arith.truncf %102 : vector<256x32xf32> to vector<256x32xbf16>
    %c1_112 = arith.constant 1 : index
    %c0_113 = arith.constant 0 : index
    %c0_114 = arith.constant 0 : index
    %104 = vector.load %arg5[%c1_112, %c0_113, %c0_114] : memref<9x32x32xbf16, #tpu.memory_space<vmem>>, vector<1x32x32xbf16>
    %105 = vector.shape_cast %104 : vector<1x32x32xbf16> to vector<32x32xbf16>
    %cst_115 = arith.constant dense<0.000000e+00> : vector<256x32xf32>
    %106 = tpu.matmul %103, %105, %cst_115 {dimension_numbers = #tpu.dot_dimension_numbers<[1], [0], [0], [1], [0, 0, 1, 1], [], []>} : vector<256x32xbf16>, vector<32x32xbf16>, vector<256x32xf32> -> vector<256x32xf32>
    %107 = arith.addf %100, %106 : vector<256x32xf32>
    %c0_116 = arith.constant 0 : index
    %c2_117 = arith.constant 2 : index
    %c0_118 = arith.constant 0 : index
    %108 = vector.load %arg23[%c0_116, %c2_117, %c0_118] : memref<18x18x32xf32, #tpu.memory_space<vmem>>, vector<16x16x32xf32>
    %109 = vector.shape_cast %108 : vector<16x16x32xf32> to vector<256x32xf32>
    %110 = arith.truncf %109 : vector<256x32xf32> to vector<256x32xbf16>
    %c2_119 = arith.constant 2 : index
    %c0_120 = arith.constant 0 : index
    %c0_121 = arith.constant 0 : index
    %111 = vector.load %arg5[%c2_119, %c0_120, %c0_121] : memref<9x32x32xbf16, #tpu.memory_space<vmem>>, vector<1x32x32xbf16>
    %112 = vector.shape_cast %111 : vector<1x32x32xbf16> to vector<32x32xbf16>
    %cst_122 = arith.constant dense<0.000000e+00> : vector<256x32xf32>
    %113 = tpu.matmul %110, %112, %cst_122 {dimension_numbers = #tpu.dot_dimension_numbers<[1], [0], [0], [1], [0, 0, 1, 1], [], []>} : vector<256x32xbf16>, vector<32x32xbf16>, vector<256x32xf32> -> vector<256x32xf32>
    %114 = arith.addf %107, %113 : vector<256x32xf32>
    %c1_123 = arith.constant 1 : index
    %c0_124 = arith.constant 0 : index
    %c0_125 = arith.constant 0 : index
    %115 = vector.load %arg23[%c1_123, %c0_124, %c0_125] : memref<18x18x32xf32, #tpu.memory_space<vmem>>, vector<16x16x32xf32>
    %116 = vector.shape_cast %115 : vector<16x16x32xf32> to vector<256x32xf32>
    %117 = arith.truncf %116 : vector<256x32xf32> to vector<256x32xbf16>
    %c3_126 = arith.constant 3 : index
    %c0_127 = arith.constant 0 : index
    %c0_128 = arith.constant 0 : index
    %118 = vector.load %arg5[%c3_126, %c0_127, %c0_128] : memref<9x32x32xbf16, #tpu.memory_space<vmem>>, vector<1x32x32xbf16>
    %119 = vector.shape_cast %118 : vector<1x32x32xbf16> to vector<32x32xbf16>
    %cst_129 = arith.constant dense<0.000000e+00> : vector<256x32xf32>
    %120 = tpu.matmul %117, %119, %cst_129 {dimension_numbers = #tpu.dot_dimension_numbers<[1], [0], [0], [1], [0, 0, 1, 1], [], []>} : vector<256x32xbf16>, vector<32x32xbf16>, vector<256x32xf32> -> vector<256x32xf32>
    %121 = arith.addf %114, %120 : vector<256x32xf32>
    %c1_130 = arith.constant 1 : index
    %c1_131 = arith.constant 1 : index
    %c0_132 = arith.constant 0 : index
    %122 = vector.load %arg23[%c1_130, %c1_131, %c0_132] : memref<18x18x32xf32, #tpu.memory_space<vmem>>, vector<16x16x32xf32>
    %123 = vector.shape_cast %122 : vector<16x16x32xf32> to vector<256x32xf32>
    %124 = arith.truncf %123 : vector<256x32xf32> to vector<256x32xbf16>
    %c4_133 = arith.constant 4 : index
    %c0_134 = arith.constant 0 : index
    %c0_135 = arith.constant 0 : index
    %125 = vector.load %arg5[%c4_133, %c0_134, %c0_135] : memref<9x32x32xbf16, #tpu.memory_space<vmem>>, vector<1x32x32xbf16>
    %126 = vector.shape_cast %125 : vector<1x32x32xbf16> to vector<32x32xbf16>
    %cst_136 = arith.constant dense<0.000000e+00> : vector<256x32xf32>
    %127 = tpu.matmul %124, %126, %cst_136 {dimension_numbers = #tpu.dot_dimension_numbers<[1], [0], [0], [1], [0, 0, 1, 1], [], []>} : vector<256x32xbf16>, vector<32x32xbf16>, vector<256x32xf32> -> vector<256x32xf32>
    %128 = arith.addf %121, %127 : vector<256x32xf32>
    %c1_137 = arith.constant 1 : index
    %c2_138 = arith.constant 2 : index
    %c0_139 = arith.constant 0 : index
    %129 = vector.load %arg23[%c1_137, %c2_138, %c0_139] : memref<18x18x32xf32, #tpu.memory_space<vmem>>, vector<16x16x32xf32>
    %130 = vector.shape_cast %129 : vector<16x16x32xf32> to vector<256x32xf32>
    %131 = arith.truncf %130 : vector<256x32xf32> to vector<256x32xbf16>
    %c5_140 = arith.constant 5 : index
    %c0_141 = arith.constant 0 : index
    %c0_142 = arith.constant 0 : index
    %132 = vector.load %arg5[%c5_140, %c0_141, %c0_142] : memref<9x32x32xbf16, #tpu.memory_space<vmem>>, vector<1x32x32xbf16>
    %133 = vector.shape_cast %132 : vector<1x32x32xbf16> to vector<32x32xbf16>
    %cst_143 = arith.constant dense<0.000000e+00> : vector<256x32xf32>
    %134 = tpu.matmul %131, %133, %cst_143 {dimension_numbers = #tpu.dot_dimension_numbers<[1], [0], [0], [1], [0, 0, 1, 1], [], []>} : vector<256x32xbf16>, vector<32x32xbf16>, vector<256x32xf32> -> vector<256x32xf32>
    %135 = arith.addf %128, %134 : vector<256x32xf32>
    %c2_144 = arith.constant 2 : index
    %c0_145 = arith.constant 0 : index
    %c0_146 = arith.constant 0 : index
    %136 = vector.load %arg23[%c2_144, %c0_145, %c0_146] : memref<18x18x32xf32, #tpu.memory_space<vmem>>, vector<16x16x32xf32>
    %137 = vector.shape_cast %136 : vector<16x16x32xf32> to vector<256x32xf32>
    %138 = arith.truncf %137 : vector<256x32xf32> to vector<256x32xbf16>
    %c6_147 = arith.constant 6 : index
    %c0_148 = arith.constant 0 : index
    %c0_149 = arith.constant 0 : index
    %139 = vector.load %arg5[%c6_147, %c0_148, %c0_149] : memref<9x32x32xbf16, #tpu.memory_space<vmem>>, vector<1x32x32xbf16>
    %140 = vector.shape_cast %139 : vector<1x32x32xbf16> to vector<32x32xbf16>
    %cst_150 = arith.constant dense<0.000000e+00> : vector<256x32xf32>
    %141 = tpu.matmul %138, %140, %cst_150 {dimension_numbers = #tpu.dot_dimension_numbers<[1], [0], [0], [1], [0, 0, 1, 1], [], []>} : vector<256x32xbf16>, vector<32x32xbf16>, vector<256x32xf32> -> vector<256x32xf32>
    %142 = arith.addf %135, %141 : vector<256x32xf32>
    %c2_151 = arith.constant 2 : index
    %c1_152 = arith.constant 1 : index
    %c0_153 = arith.constant 0 : index
    %143 = vector.load %arg23[%c2_151, %c1_152, %c0_153] : memref<18x18x32xf32, #tpu.memory_space<vmem>>, vector<16x16x32xf32>
    %144 = vector.shape_cast %143 : vector<16x16x32xf32> to vector<256x32xf32>
    %145 = arith.truncf %144 : vector<256x32xf32> to vector<256x32xbf16>
    %c7_154 = arith.constant 7 : index
    %c0_155 = arith.constant 0 : index
    %c0_156 = arith.constant 0 : index
    %146 = vector.load %arg5[%c7_154, %c0_155, %c0_156] : memref<9x32x32xbf16, #tpu.memory_space<vmem>>, vector<1x32x32xbf16>
    %147 = vector.shape_cast %146 : vector<1x32x32xbf16> to vector<32x32xbf16>
    %cst_157 = arith.constant dense<0.000000e+00> : vector<256x32xf32>
    %148 = tpu.matmul %145, %147, %cst_157 {dimension_numbers = #tpu.dot_dimension_numbers<[1], [0], [0], [1], [0, 0, 1, 1], [], []>} : vector<256x32xbf16>, vector<32x32xbf16>, vector<256x32xf32> -> vector<256x32xf32>
    %149 = arith.addf %142, %148 : vector<256x32xf32>
    %c2_158 = arith.constant 2 : index
    %c2_159 = arith.constant 2 : index
    %c0_160 = arith.constant 0 : index
    %150 = vector.load %arg23[%c2_158, %c2_159, %c0_160] : memref<18x18x32xf32, #tpu.memory_space<vmem>>, vector<16x16x32xf32>
    %151 = vector.shape_cast %150 : vector<16x16x32xf32> to vector<256x32xf32>
    %152 = arith.truncf %151 : vector<256x32xf32> to vector<256x32xbf16>
    %c8_161 = arith.constant 8 : index
    %c0_162 = arith.constant 0 : index
    %c0_163 = arith.constant 0 : index
    %153 = vector.load %arg5[%c8_161, %c0_162, %c0_163] : memref<9x32x32xbf16, #tpu.memory_space<vmem>>, vector<1x32x32xbf16>
    %154 = vector.shape_cast %153 : vector<1x32x32xbf16> to vector<32x32xbf16>
    %cst_164 = arith.constant dense<0.000000e+00> : vector<256x32xf32>
    %155 = tpu.matmul %152, %154, %cst_164 {dimension_numbers = #tpu.dot_dimension_numbers<[1], [0], [0], [1], [0, 0, 1, 1], [], []>} : vector<256x32xbf16>, vector<32x32xbf16>, vector<256x32xf32> -> vector<256x32xf32>
    %156 = arith.addf %149, %155 : vector<256x32xf32>
    %157 = vector.broadcast %91 : vector<1x32xf32> to vector<256x32xf32>
    %158 = arith.mulf %156, %157 : vector<256x32xf32>
    %159 = vector.broadcast %92 : vector<1x32xf32> to vector<256x32xf32>
    %160 = arith.addf %158, %159 : vector<256x32xf32>
    %cst_165 = arith.constant 0.000000e+00 : f32
    %161 = vector.broadcast %cst_165 : f32 to vector<256x32xf32>
    %162 = arith.maximumf %160, %161 : vector<256x32xf32>
    %163 = vector.shape_cast %162 : vector<256x32xf32> to vector<16x16x32xf32>
    %164 = tpu.iota {dimensions = array<i32: 0>} : vector<8x16xi32>
    %165 = tpu.iota {dimensions = array<i32: 1>} : vector<8x16xi32>
    %c2_i32 = arith.constant 2 : i32
    %166 = vector.broadcast %c2_i32 : i32 to vector<8x16xi32>
    %167 = arith.muli %166, %164 : vector<8x16xi32>
    %168 = arith.cmpi eq, %165, %167 : vector<8x16xi32>
    %169 = arith.extui %168 : vector<8x16xi1> to vector<8x16xi32>
    %170 = arith.sitofp %169 : vector<8x16xi32> to vector<8x16xf32>
    %c2_i32_166 = arith.constant 2 : i32
    %171 = vector.broadcast %c2_i32_166 : i32 to vector<8x16xi32>
    %172 = arith.muli %171, %164 : vector<8x16xi32>
    %c1_i32 = arith.constant 1 : i32
    %173 = vector.broadcast %c1_i32 : i32 to vector<8x16xi32>
    %174 = arith.addi %172, %173 : vector<8x16xi32>
    %175 = arith.cmpi eq, %165, %174 : vector<8x16xi32>
    %176 = arith.extui %175 : vector<8x16xi1> to vector<8x16xi32>
    %177 = arith.sitofp %176 : vector<8x16xi32> to vector<8x16xf32>
    %178 = vector.extract_strided_slice %163 {offsets = [0, 0, 0], sizes = [1, 16, 32], strides = [1, 1, 1]} : vector<16x16x32xf32> to vector<1x16x32xf32>
    %179 = vector.shape_cast %178 : vector<1x16x32xf32> to vector<16x32xf32>
    %180 = vector.extract_strided_slice %163 {offsets = [1, 0, 0], sizes = [1, 16, 32], strides = [1, 1, 1]} : vector<16x16x32xf32> to vector<1x16x32xf32>
    %181 = vector.shape_cast %180 : vector<1x16x32xf32> to vector<16x32xf32>
    %182 = arith.maximumf %179, %181 : vector<16x32xf32>
    %cst_167 = arith.constant dense<0.000000e+00> : vector<8x32xf32>
    %183 = tpu.matmul %170, %182, %cst_167 {dimension_numbers = #tpu.dot_dimension_numbers<[1], [0], [0], [1], [0, 0, 1, 1], [], []>} : vector<8x16xf32>, vector<16x32xf32>, vector<8x32xf32> -> vector<8x32xf32>
    %cst_168 = arith.constant dense<0.000000e+00> : vector<8x32xf32>
    %184 = tpu.matmul %177, %182, %cst_168 {dimension_numbers = #tpu.dot_dimension_numbers<[1], [0], [0], [1], [0, 0, 1, 1], [], []>} : vector<8x16xf32>, vector<16x32xf32>, vector<8x32xf32> -> vector<8x32xf32>
    %185 = arith.maximumf %183, %184 : vector<8x32xf32>
    %c1_169 = arith.constant 1 : index
    %c1_170 = arith.constant 1 : index
    %c0_171 = arith.constant 0 : index
    %186 = vector.load %arg24[%c1_169, %c1_170, %c0_171] : memref<10x10x32xf32, #tpu.memory_space<vmem>>, vector<1x8x32xf32>
    %187 = vector.shape_cast %186 : vector<1x8x32xf32> to vector<8x32xf32>
    %188 = vector.shape_cast %185 : vector<8x32xf32> to vector<1x8x32xf32>
    tpu.vector_store %arg24[%c1_169, %c1_170, %c0_171], %188 {strides = array<i32>} : memref<10x10x32xf32, #tpu.memory_space<vmem>>, vector<1x8x32xf32>,
    %189 = vector.extract_strided_slice %163 {offsets = [2, 0, 0], sizes = [1, 16, 32], strides = [1, 1, 1]} : vector<16x16x32xf32> to vector<1x16x32xf32>
    %190 = vector.shape_cast %189 : vector<1x16x32xf32> to vector<16x32xf32>
    %191 = vector.extract_strided_slice %163 {offsets = [3, 0, 0], sizes = [1, 16, 32], strides = [1, 1, 1]} : vector<16x16x32xf32> to vector<1x16x32xf32>
    %192 = vector.shape_cast %191 : vector<1x16x32xf32> to vector<16x32xf32>
    %193 = arith.maximumf %190, %192 : vector<16x32xf32>
    %cst_172 = arith.constant dense<0.000000e+00> : vector<8x32xf32>
    %194 = tpu.matmul %170, %193, %cst_172 {dimension_numbers = #tpu.dot_dimension_numbers<[1], [0], [0], [1], [0, 0, 1, 1], [], []>} : vector<8x16xf32>, vector<16x32xf32>, vector<8x32xf32> -> vector<8x32xf32>
    %cst_173 = arith.constant dense<0.000000e+00> : vector<8x32xf32>
    %195 = tpu.matmul %177, %193, %cst_173 {dimension_numbers = #tpu.dot_dimension_numbers<[1], [0], [0], [1], [0, 0, 1, 1], [], []>} : vector<8x16xf32>, vector<16x32xf32>, vector<8x32xf32> -> vector<8x32xf32>
    %196 = arith.maximumf %194, %195 : vector<8x32xf32>
    %c2_174 = arith.constant 2 : index
    %c1_175 = arith.constant 1 : index
    %c0_176 = arith.constant 0 : index
    %197 = vector.load %arg24[%c2_174, %c1_175, %c0_176] : memref<10x10x32xf32, #tpu.memory_space<vmem>>, vector<1x8x32xf32>
    %198 = vector.shape_cast %197 : vector<1x8x32xf32> to vector<8x32xf32>
    %199 = vector.shape_cast %196 : vector<8x32xf32> to vector<1x8x32xf32>
    tpu.vector_store %arg24[%c2_174, %c1_175, %c0_176], %199 {strides = array<i32>} : memref<10x10x32xf32, #tpu.memory_space<vmem>>, vector<1x8x32xf32>,
    %200 = vector.extract_strided_slice %163 {offsets = [4, 0, 0], sizes = [1, 16, 32], strides = [1, 1, 1]} : vector<16x16x32xf32> to vector<1x16x32xf32>
    %201 = vector.shape_cast %200 : vector<1x16x32xf32> to vector<16x32xf32>
    %202 = vector.extract_strided_slice %163 {offsets = [5, 0, 0], sizes = [1, 16, 32], strides = [1, 1, 1]} : vector<16x16x32xf32> to vector<1x16x32xf32>
    %203 = vector.shape_cast %202 : vector<1x16x32xf32> to vector<16x32xf32>
    %204 = arith.maximumf %201, %203 : vector<16x32xf32>
    %cst_177 = arith.constant dense<0.000000e+00> : vector<8x32xf32>
    %205 = tpu.matmul %170, %204, %cst_177 {dimension_numbers = #tpu.dot_dimension_numbers<[1], [0], [0], [1], [0, 0, 1, 1], [], []>} : vector<8x16xf32>, vector<16x32xf32>, vector<8x32xf32> -> vector<8x32xf32>
    %cst_178 = arith.constant dense<0.000000e+00> : vector<8x32xf32>
    %206 = tpu.matmul %177, %204, %cst_178 {dimension_numbers = #tpu.dot_dimension_numbers<[1], [0], [0], [1], [0, 0, 1, 1], [], []>} : vector<8x16xf32>, vector<16x32xf32>, vector<8x32xf32> -> vector<8x32xf32>
    %207 = arith.maximumf %205, %206 : vector<8x32xf32>
    %c3_179 = arith.constant 3 : index
    %c1_180 = arith.constant 1 : index
    %c0_181 = arith.constant 0 : index
    %208 = vector.load %arg24[%c3_179, %c1_180, %c0_181] : memref<10x10x32xf32, #tpu.memory_space<vmem>>, vector<1x8x32xf32>
    %209 = vector.shape_cast %208 : vector<1x8x32xf32> to vector<8x32xf32>
    %210 = vector.shape_cast %207 : vector<8x32xf32> to vector<1x8x32xf32>
    tpu.vector_store %arg24[%c3_179, %c1_180, %c0_181], %210 {strides = array<i32>} : memref<10x10x32xf32, #tpu.memory_space<vmem>>, vector<1x8x32xf32>,
    %211 = vector.extract_strided_slice %163 {offsets = [6, 0, 0], sizes = [1, 16, 32], strides = [1, 1, 1]} : vector<16x16x32xf32> to vector<1x16x32xf32>
    %212 = vector.shape_cast %211 : vector<1x16x32xf32> to vector<16x32xf32>
    %213 = vector.extract_strided_slice %163 {offsets = [7, 0, 0], sizes = [1, 16, 32], strides = [1, 1, 1]} : vector<16x16x32xf32> to vector<1x16x32xf32>
    %214 = vector.shape_cast %213 : vector<1x16x32xf32> to vector<16x32xf32>
    %215 = arith.maximumf %212, %214 : vector<16x32xf32>
    %cst_182 = arith.constant dense<0.000000e+00> : vector<8x32xf32>
    %216 = tpu.matmul %170, %215, %cst_182 {dimension_numbers = #tpu.dot_dimension_numbers<[1], [0], [0], [1], [0, 0, 1, 1], [], []>} : vector<8x16xf32>, vector<16x32xf32>, vector<8x32xf32> -> vector<8x32xf32>
    %cst_183 = arith.constant dense<0.000000e+00> : vector<8x32xf32>
    %217 = tpu.matmul %177, %215, %cst_183 {dimension_numbers = #tpu.dot_dimension_numbers<[1], [0], [0], [1], [0, 0, 1, 1], [], []>} : vector<8x16xf32>, vector<16x32xf32>, vector<8x32xf32> -> vector<8x32xf32>
    %218 = arith.maximumf %216, %217 : vector<8x32xf32>
    %c4_184 = arith.constant 4 : index
    %c1_185 = arith.constant 1 : index
    %c0_186 = arith.constant 0 : index
    %219 = vector.load %arg24[%c4_184, %c1_185, %c0_186] : memref<10x10x32xf32, #tpu.memory_space<vmem>>, vector<1x8x32xf32>
    %220 = vector.shape_cast %219 : vector<1x8x32xf32> to vector<8x32xf32>
    %221 = vector.shape_cast %218 : vector<8x32xf32> to vector<1x8x32xf32>
    tpu.vector_store %arg24[%c4_184, %c1_185, %c0_186], %221 {strides = array<i32>} : memref<10x10x32xf32, #tpu.memory_space<vmem>>, vector<1x8x32xf32>,
    %222 = vector.extract_strided_slice %163 {offsets = [8, 0, 0], sizes = [1, 16, 32], strides = [1, 1, 1]} : vector<16x16x32xf32> to vector<1x16x32xf32>
    %223 = vector.shape_cast %222 : vector<1x16x32xf32> to vector<16x32xf32>
    %224 = vector.extract_strided_slice %163 {offsets = [9, 0, 0], sizes = [1, 16, 32], strides = [1, 1, 1]} : vector<16x16x32xf32> to vector<1x16x32xf32>
    %225 = vector.shape_cast %224 : vector<1x16x32xf32> to vector<16x32xf32>
    %226 = arith.maximumf %223, %225 : vector<16x32xf32>
    %cst_187 = arith.constant dense<0.000000e+00> : vector<8x32xf32>
    %227 = tpu.matmul %170, %226, %cst_187 {dimension_numbers = #tpu.dot_dimension_numbers<[1], [0], [0], [1], [0, 0, 1, 1], [], []>} : vector<8x16xf32>, vector<16x32xf32>, vector<8x32xf32> -> vector<8x32xf32>
    %cst_188 = arith.constant dense<0.000000e+00> : vector<8x32xf32>
    %228 = tpu.matmul %177, %226, %cst_188 {dimension_numbers = #tpu.dot_dimension_numbers<[1], [0], [0], [1], [0, 0, 1, 1], [], []>} : vector<8x16xf32>, vector<16x32xf32>, vector<8x32xf32> -> vector<8x32xf32>
    %229 = arith.maximumf %227, %228 : vector<8x32xf32>
    %c5_189 = arith.constant 5 : index
    %c1_190 = arith.constant 1 : index
    %c0_191 = arith.constant 0 : index
    %230 = vector.load %arg24[%c5_189, %c1_190, %c0_191] : memref<10x10x32xf32, #tpu.memory_space<vmem>>, vector<1x8x32xf32>
    %231 = vector.shape_cast %230 : vector<1x8x32xf32> to vector<8x32xf32>
    %232 = vector.shape_cast %229 : vector<8x32xf32> to vector<1x8x32xf32>
    tpu.vector_store %arg24[%c5_189, %c1_190, %c0_191], %232 {strides = array<i32>} : memref<10x10x32xf32, #tpu.memory_space<vmem>>, vector<1x8x32xf32>,
    %233 = vector.extract_strided_slice %163 {offsets = [10, 0, 0], sizes = [1, 16, 32], strides = [1, 1, 1]} : vector<16x16x32xf32> to vector<1x16x32xf32>
    %234 = vector.shape_cast %233 : vector<1x16x32xf32> to vector<16x32xf32>
    %235 = vector.extract_strided_slice %163 {offsets = [11, 0, 0], sizes = [1, 16, 32], strides = [1, 1, 1]} : vector<16x16x32xf32> to vector<1x16x32xf32>
    %236 = vector.shape_cast %235 : vector<1x16x32xf32> to vector<16x32xf32>
    %237 = arith.maximumf %234, %236 : vector<16x32xf32>
    %cst_192 = arith.constant dense<0.000000e+00> : vector<8x32xf32>
    %238 = tpu.matmul %170, %237, %cst_192 {dimension_numbers = #tpu.dot_dimension_numbers<[1], [0], [0], [1], [0, 0, 1, 1], [], []>} : vector<8x16xf32>, vector<16x32xf32>, vector<8x32xf32> -> vector<8x32xf32>
    %cst_193 = arith.constant dense<0.000000e+00> : vector<8x32xf32>
    %239 = tpu.matmul %177, %237, %cst_193 {dimension_numbers = #tpu.dot_dimension_numbers<[1], [0], [0], [1], [0, 0, 1, 1], [], []>} : vector<8x16xf32>, vector<16x32xf32>, vector<8x32xf32> -> vector<8x32xf32>
    %240 = arith.maximumf %238, %239 : vector<8x32xf32>
    %c6_194 = arith.constant 6 : index
    %c1_195 = arith.constant 1 : index
    %c0_196 = arith.constant 0 : index
    %241 = vector.load %arg24[%c6_194, %c1_195, %c0_196] : memref<10x10x32xf32, #tpu.memory_space<vmem>>, vector<1x8x32xf32>
    %242 = vector.shape_cast %241 : vector<1x8x32xf32> to vector<8x32xf32>
    %243 = vector.shape_cast %240 : vector<8x32xf32> to vector<1x8x32xf32>
    tpu.vector_store %arg24[%c6_194, %c1_195, %c0_196], %243 {strides = array<i32>} : memref<10x10x32xf32, #tpu.memory_space<vmem>>, vector<1x8x32xf32>,
    %244 = vector.extract_strided_slice %163 {offsets = [12, 0, 0], sizes = [1, 16, 32], strides = [1, 1, 1]} : vector<16x16x32xf32> to vector<1x16x32xf32>
    %245 = vector.shape_cast %244 : vector<1x16x32xf32> to vector<16x32xf32>
    %246 = vector.extract_strided_slice %163 {offsets = [13, 0, 0], sizes = [1, 16, 32], strides = [1, 1, 1]} : vector<16x16x32xf32> to vector<1x16x32xf32>
    %247 = vector.shape_cast %246 : vector<1x16x32xf32> to vector<16x32xf32>
    %248 = arith.maximumf %245, %247 : vector<16x32xf32>
    %cst_197 = arith.constant dense<0.000000e+00> : vector<8x32xf32>
    %249 = tpu.matmul %170, %248, %cst_197 {dimension_numbers = #tpu.dot_dimension_numbers<[1], [0], [0], [1], [0, 0, 1, 1], [], []>} : vector<8x16xf32>, vector<16x32xf32>, vector<8x32xf32> -> vector<8x32xf32>
    %cst_198 = arith.constant dense<0.000000e+00> : vector<8x32xf32>
    %250 = tpu.matmul %177, %248, %cst_198 {dimension_numbers = #tpu.dot_dimension_numbers<[1], [0], [0], [1], [0, 0, 1, 1], [], []>} : vector<8x16xf32>, vector<16x32xf32>, vector<8x32xf32> -> vector<8x32xf32>
    %251 = arith.maximumf %249, %250 : vector<8x32xf32>
    %c7_199 = arith.constant 7 : index
    %c1_200 = arith.constant 1 : index
    %c0_201 = arith.constant 0 : index
    %252 = vector.load %arg24[%c7_199, %c1_200, %c0_201] : memref<10x10x32xf32, #tpu.memory_space<vmem>>, vector<1x8x32xf32>
    %253 = vector.shape_cast %252 : vector<1x8x32xf32> to vector<8x32xf32>
    %254 = vector.shape_cast %251 : vector<8x32xf32> to vector<1x8x32xf32>
    tpu.vector_store %arg24[%c7_199, %c1_200, %c0_201], %254 {strides = array<i32>} : memref<10x10x32xf32, #tpu.memory_space<vmem>>, vector<1x8x32xf32>,
    %255 = vector.extract_strided_slice %163 {offsets = [14, 0, 0], sizes = [1, 16, 32], strides = [1, 1, 1]} : vector<16x16x32xf32> to vector<1x16x32xf32>
    %256 = vector.shape_cast %255 : vector<1x16x32xf32> to vector<16x32xf32>
    %257 = vector.extract_strided_slice %163 {offsets = [15, 0, 0], sizes = [1, 16, 32], strides = [1, 1, 1]} : vector<16x16x32xf32> to vector<1x16x32xf32>
    %258 = vector.shape_cast %257 : vector<1x16x32xf32> to vector<16x32xf32>
    %259 = arith.maximumf %256, %258 : vector<16x32xf32>
    %cst_202 = arith.constant dense<0.000000e+00> : vector<8x32xf32>
    %260 = tpu.matmul %170, %259, %cst_202 {dimension_numbers = #tpu.dot_dimension_numbers<[1], [0], [0], [1], [0, 0, 1, 1], [], []>} : vector<8x16xf32>, vector<16x32xf32>, vector<8x32xf32> -> vector<8x32xf32>
    %cst_203 = arith.constant dense<0.000000e+00> : vector<8x32xf32>
    %261 = tpu.matmul %177, %259, %cst_203 {dimension_numbers = #tpu.dot_dimension_numbers<[1], [0], [0], [1], [0, 0, 1, 1], [], []>} : vector<8x16xf32>, vector<16x32xf32>, vector<8x32xf32> -> vector<8x32xf32>
    %262 = arith.maximumf %260, %261 : vector<8x32xf32>
    %c8_204 = arith.constant 8 : index
    %c1_205 = arith.constant 1 : index
    %c0_206 = arith.constant 0 : index
    %263 = vector.load %arg24[%c8_204, %c1_205, %c0_206] : memref<10x10x32xf32, #tpu.memory_space<vmem>>, vector<1x8x32xf32>
    %264 = vector.shape_cast %263 : vector<1x8x32xf32> to vector<8x32xf32>
    %265 = vector.shape_cast %262 : vector<8x32xf32> to vector<1x8x32xf32>
    tpu.vector_store %arg24[%c8_204, %c1_205, %c0_206], %265 {strides = array<i32>} : memref<10x10x32xf32, #tpu.memory_space<vmem>>, vector<1x8x32xf32>,
    %c0_207 = arith.constant 0 : index
    %c0_208 = arith.constant 0 : index
    %266 = vector.load %arg9[%c0_207, %c0_208] : memref<1x64xf32, #tpu.memory_space<vmem>>, vector<1x64xf32>
    %c0_209 = arith.constant 0 : index
    %c0_210 = arith.constant 0 : index
    %267 = vector.load %arg10[%c0_209, %c0_210] : memref<1x64xf32, #tpu.memory_space<vmem>>, vector<1x64xf32>
    %cst_211 = arith.constant 0.000000e+00 : f32
    %268 = vector.broadcast %cst_211 : f32 to vector<64x64xf32>
    %c0_212 = arith.constant 0 : index
    %c0_213 = arith.constant 0 : index
    %c0_214 = arith.constant 0 : index
    %269 = vector.load %arg24[%c0_212, %c0_213, %c0_214] : memref<10x10x32xf32, #tpu.memory_space<vmem>>, vector<8x8x32xf32>
    %270 = vector.shape_cast %269 : vector<8x8x32xf32> to vector<64x32xf32>
    %271 = arith.truncf %270 : vector<64x32xf32> to vector<64x32xbf16>
    %c0_215 = arith.constant 0 : index
    %c0_216 = arith.constant 0 : index
    %c0_217 = arith.constant 0 : index
    %272 = vector.load %arg8[%c0_215, %c0_216, %c0_217] : memref<9x32x64xbf16, #tpu.memory_space<vmem>>, vector<1x32x64xbf16>
    %273 = vector.shape_cast %272 : vector<1x32x64xbf16> to vector<32x64xbf16>
    %cst_218 = arith.constant dense<0.000000e+00> : vector<64x64xf32>
    %274 = tpu.matmul %271, %273, %cst_218 {dimension_numbers = #tpu.dot_dimension_numbers<[1], [0], [0], [1], [0, 0, 1, 1], [], []>} : vector<64x32xbf16>, vector<32x64xbf16>, vector<64x64xf32> -> vector<64x64xf32>
    %275 = arith.addf %268, %274 : vector<64x64xf32>
    %c0_219 = arith.constant 0 : index
    %c1_220 = arith.constant 1 : index
    %c0_221 = arith.constant 0 : index
    %276 = vector.load %arg24[%c0_219, %c1_220, %c0_221] : memref<10x10x32xf32, #tpu.memory_space<vmem>>, vector<8x8x32xf32>
    %277 = vector.shape_cast %276 : vector<8x8x32xf32> to vector<64x32xf32>
    %278 = arith.truncf %277 : vector<64x32xf32> to vector<64x32xbf16>
    %c1_222 = arith.constant 1 : index
    %c0_223 = arith.constant 0 : index
    %c0_224 = arith.constant 0 : index
    %279 = vector.load %arg8[%c1_222, %c0_223, %c0_224] : memref<9x32x64xbf16, #tpu.memory_space<vmem>>, vector<1x32x64xbf16>
    %280 = vector.shape_cast %279 : vector<1x32x64xbf16> to vector<32x64xbf16>
    %cst_225 = arith.constant dense<0.000000e+00> : vector<64x64xf32>
    %281 = tpu.matmul %278, %280, %cst_225 {dimension_numbers = #tpu.dot_dimension_numbers<[1], [0], [0], [1], [0, 0, 1, 1], [], []>} : vector<64x32xbf16>, vector<32x64xbf16>, vector<64x64xf32> -> vector<64x64xf32>
    %282 = arith.addf %275, %281 : vector<64x64xf32>
    %c0_226 = arith.constant 0 : index
    %c2_227 = arith.constant 2 : index
    %c0_228 = arith.constant 0 : index
    %283 = vector.load %arg24[%c0_226, %c2_227, %c0_228] : memref<10x10x32xf32, #tpu.memory_space<vmem>>, vector<8x8x32xf32>
    %284 = vector.shape_cast %283 : vector<8x8x32xf32> to vector<64x32xf32>
    %285 = arith.truncf %284 : vector<64x32xf32> to vector<64x32xbf16>
    %c2_229 = arith.constant 2 : index
    %c0_230 = arith.constant 0 : index
    %c0_231 = arith.constant 0 : index
    %286 = vector.load %arg8[%c2_229, %c0_230, %c0_231] : memref<9x32x64xbf16, #tpu.memory_space<vmem>>, vector<1x32x64xbf16>
    %287 = vector.shape_cast %286 : vector<1x32x64xbf16> to vector<32x64xbf16>
    %cst_232 = arith.constant dense<0.000000e+00> : vector<64x64xf32>
    %288 = tpu.matmul %285, %287, %cst_232 {dimension_numbers = #tpu.dot_dimension_numbers<[1], [0], [0], [1], [0, 0, 1, 1], [], []>} : vector<64x32xbf16>, vector<32x64xbf16>, vector<64x64xf32> -> vector<64x64xf32>
    %289 = arith.addf %282, %288 : vector<64x64xf32>
    %c1_233 = arith.constant 1 : index
    %c0_234 = arith.constant 0 : index
    %c0_235 = arith.constant 0 : index
    %290 = vector.load %arg24[%c1_233, %c0_234, %c0_235] : memref<10x10x32xf32, #tpu.memory_space<vmem>>, vector<8x8x32xf32>
    %291 = vector.shape_cast %290 : vector<8x8x32xf32> to vector<64x32xf32>
    %292 = arith.truncf %291 : vector<64x32xf32> to vector<64x32xbf16>
    %c3_236 = arith.constant 3 : index
    %c0_237 = arith.constant 0 : index
    %c0_238 = arith.constant 0 : index
    %293 = vector.load %arg8[%c3_236, %c0_237, %c0_238] : memref<9x32x64xbf16, #tpu.memory_space<vmem>>, vector<1x32x64xbf16>
    %294 = vector.shape_cast %293 : vector<1x32x64xbf16> to vector<32x64xbf16>
    %cst_239 = arith.constant dense<0.000000e+00> : vector<64x64xf32>
    %295 = tpu.matmul %292, %294, %cst_239 {dimension_numbers = #tpu.dot_dimension_numbers<[1], [0], [0], [1], [0, 0, 1, 1], [], []>} : vector<64x32xbf16>, vector<32x64xbf16>, vector<64x64xf32> -> vector<64x64xf32>
    %296 = arith.addf %289, %295 : vector<64x64xf32>
    %c1_240 = arith.constant 1 : index
    %c1_241 = arith.constant 1 : index
    %c0_242 = arith.constant 0 : index
    %297 = vector.load %arg24[%c1_240, %c1_241, %c0_242] : memref<10x10x32xf32, #tpu.memory_space<vmem>>, vector<8x8x32xf32>
    %298 = vector.shape_cast %297 : vector<8x8x32xf32> to vector<64x32xf32>
    %299 = arith.truncf %298 : vector<64x32xf32> to vector<64x32xbf16>
    %c4_243 = arith.constant 4 : index
    %c0_244 = arith.constant 0 : index
    %c0_245 = arith.constant 0 : index
    %300 = vector.load %arg8[%c4_243, %c0_244, %c0_245] : memref<9x32x64xbf16, #tpu.memory_space<vmem>>, vector<1x32x64xbf16>
    %301 = vector.shape_cast %300 : vector<1x32x64xbf16> to vector<32x64xbf16>
    %cst_246 = arith.constant dense<0.000000e+00> : vector<64x64xf32>
    %302 = tpu.matmul %299, %301, %cst_246 {dimension_numbers = #tpu.dot_dimension_numbers<[1], [0], [0], [1], [0, 0, 1, 1], [], []>} : vector<64x32xbf16>, vector<32x64xbf16>, vector<64x64xf32> -> vector<64x64xf32>
    %303 = arith.addf %296, %302 : vector<64x64xf32>
    %c1_247 = arith.constant 1 : index
    %c2_248 = arith.constant 2 : index
    %c0_249 = arith.constant 0 : index
    %304 = vector.load %arg24[%c1_247, %c2_248, %c0_249] : memref<10x10x32xf32, #tpu.memory_space<vmem>>, vector<8x8x32xf32>
    %305 = vector.shape_cast %304 : vector<8x8x32xf32> to vector<64x32xf32>
    %306 = arith.truncf %305 : vector<64x32xf32> to vector<64x32xbf16>
    %c5_250 = arith.constant 5 : index
    %c0_251 = arith.constant 0 : index
    %c0_252 = arith.constant 0 : index
    %307 = vector.load %arg8[%c5_250, %c0_251, %c0_252] : memref<9x32x64xbf16, #tpu.memory_space<vmem>>, vector<1x32x64xbf16>
    %308 = vector.shape_cast %307 : vector<1x32x64xbf16> to vector<32x64xbf16>
    %cst_253 = arith.constant dense<0.000000e+00> : vector<64x64xf32>
    %309 = tpu.matmul %306, %308, %cst_253 {dimension_numbers = #tpu.dot_dimension_numbers<[1], [0], [0], [1], [0, 0, 1, 1], [], []>} : vector<64x32xbf16>, vector<32x64xbf16>, vector<64x64xf32> -> vector<64x64xf32>
    %310 = arith.addf %303, %309 : vector<64x64xf32>
    %c2_254 = arith.constant 2 : index
    %c0_255 = arith.constant 0 : index
    %c0_256 = arith.constant 0 : index
    %311 = vector.load %arg24[%c2_254, %c0_255, %c0_256] : memref<10x10x32xf32, #tpu.memory_space<vmem>>, vector<8x8x32xf32>
    %312 = vector.shape_cast %311 : vector<8x8x32xf32> to vector<64x32xf32>
    %313 = arith.truncf %312 : vector<64x32xf32> to vector<64x32xbf16>
    %c6_257 = arith.constant 6 : index
    %c0_258 = arith.constant 0 : index
    %c0_259 = arith.constant 0 : index
    %314 = vector.load %arg8[%c6_257, %c0_258, %c0_259] : memref<9x32x64xbf16, #tpu.memory_space<vmem>>, vector<1x32x64xbf16>
    %315 = vector.shape_cast %314 : vector<1x32x64xbf16> to vector<32x64xbf16>
    %cst_260 = arith.constant dense<0.000000e+00> : vector<64x64xf32>
    %316 = tpu.matmul %313, %315, %cst_260 {dimension_numbers = #tpu.dot_dimension_numbers<[1], [0], [0], [1], [0, 0, 1, 1], [], []>} : vector<64x32xbf16>, vector<32x64xbf16>, vector<64x64xf32> -> vector<64x64xf32>
    %317 = arith.addf %310, %316 : vector<64x64xf32>
    %c2_261 = arith.constant 2 : index
    %c1_262 = arith.constant 1 : index
    %c0_263 = arith.constant 0 : index
    %318 = vector.load %arg24[%c2_261, %c1_262, %c0_263] : memref<10x10x32xf32, #tpu.memory_space<vmem>>, vector<8x8x32xf32>
    %319 = vector.shape_cast %318 : vector<8x8x32xf32> to vector<64x32xf32>
    %320 = arith.truncf %319 : vector<64x32xf32> to vector<64x32xbf16>
    %c7_264 = arith.constant 7 : index
    %c0_265 = arith.constant 0 : index
    %c0_266 = arith.constant 0 : index
    %321 = vector.load %arg8[%c7_264, %c0_265, %c0_266] : memref<9x32x64xbf16, #tpu.memory_space<vmem>>, vector<1x32x64xbf16>
    %322 = vector.shape_cast %321 : vector<1x32x64xbf16> to vector<32x64xbf16>
    %cst_267 = arith.constant dense<0.000000e+00> : vector<64x64xf32>
    %323 = tpu.matmul %320, %322, %cst_267 {dimension_numbers = #tpu.dot_dimension_numbers<[1], [0], [0], [1], [0, 0, 1, 1], [], []>} : vector<64x32xbf16>, vector<32x64xbf16>, vector<64x64xf32> -> vector<64x64xf32>
    %324 = arith.addf %317, %323 : vector<64x64xf32>
    %c2_268 = arith.constant 2 : index
    %c2_269 = arith.constant 2 : index
    %c0_270 = arith.constant 0 : index
    %325 = vector.load %arg24[%c2_268, %c2_269, %c0_270] : memref<10x10x32xf32, #tpu.memory_space<vmem>>, vector<8x8x32xf32>
    %326 = vector.shape_cast %325 : vector<8x8x32xf32> to vector<64x32xf32>
    %327 = arith.truncf %326 : vector<64x32xf32> to vector<64x32xbf16>
    %c8_271 = arith.constant 8 : index
    %c0_272 = arith.constant 0 : index
    %c0_273 = arith.constant 0 : index
    %328 = vector.load %arg8[%c8_271, %c0_272, %c0_273] : memref<9x32x64xbf16, #tpu.memory_space<vmem>>, vector<1x32x64xbf16>
    %329 = vector.shape_cast %328 : vector<1x32x64xbf16> to vector<32x64xbf16>
    %cst_274 = arith.constant dense<0.000000e+00> : vector<64x64xf32>
    %330 = tpu.matmul %327, %329, %cst_274 {dimension_numbers = #tpu.dot_dimension_numbers<[1], [0], [0], [1], [0, 0, 1, 1], [], []>} : vector<64x32xbf16>, vector<32x64xbf16>, vector<64x64xf32> -> vector<64x64xf32>
    %331 = arith.addf %324, %330 : vector<64x64xf32>
    %332 = vector.broadcast %266 : vector<1x64xf32> to vector<64x64xf32>
    %333 = arith.mulf %331, %332 : vector<64x64xf32>
    %334 = vector.broadcast %267 : vector<1x64xf32> to vector<64x64xf32>
    %335 = arith.addf %333, %334 : vector<64x64xf32>
    %cst_275 = arith.constant 0.000000e+00 : f32
    %336 = vector.broadcast %cst_275 : f32 to vector<64x64xf32>
    %337 = arith.maximumf %335, %336 : vector<64x64xf32>
    %338 = vector.shape_cast %337 : vector<64x64xf32> to vector<8x8x64xf32>
    %c1_276 = arith.constant 1 : index
    %c1_277 = arith.constant 1 : index
    %c0_278 = arith.constant 0 : index
    %339 = vector.load %arg25[%c1_276, %c1_277, %c0_278] : memref<10x10x64xf32, #tpu.memory_space<vmem>>, vector<8x8x64xf32>
    tpu.vector_store %arg25[%c1_276, %c1_277, %c0_278], %338 {strides = array<i32>} : memref<10x10x64xf32, #tpu.memory_space<vmem>>, vector<8x8x64xf32>,
    %c0_279 = arith.constant 0 : index
    %c0_280 = arith.constant 0 : index
    %340 = vector.load %arg12[%c0_279, %c0_280] : memref<1x64xf32, #tpu.memory_space<vmem>>, vector<1x64xf32>
    %c0_281 = arith.constant 0 : index
    %c0_282 = arith.constant 0 : index
    %341 = vector.load %arg13[%c0_281, %c0_282] : memref<1x64xf32, #tpu.memory_space<vmem>>, vector<1x64xf32>
    %cst_283 = arith.constant 0.000000e+00 : f32
    %342 = vector.broadcast %cst_283 : f32 to vector<64x64xf32>
    %c0_284 = arith.constant 0 : index
    %c0_285 = arith.constant 0 : index
    %c0_286 = arith.constant 0 : index
    %343 = vector.load %arg25[%c0_284, %c0_285, %c0_286] : memref<10x10x64xf32, #tpu.memory_space<vmem>>, vector<8x8x64xf32>
    %344 = vector.shape_cast %343 : vector<8x8x64xf32> to vector<64x64xf32>
    %345 = arith.truncf %344 : vector<64x64xf32> to vector<64x64xbf16>
    %c0_287 = arith.constant 0 : index
    %c0_288 = arith.constant 0 : index
    %c0_289 = arith.constant 0 : index
    %346 = vector.load %arg11[%c0_287, %c0_288, %c0_289] : memref<9x64x64xbf16, #tpu.memory_space<vmem>>, vector<1x64x64xbf16>
    %347 = vector.shape_cast %346 : vector<1x64x64xbf16> to vector<64x64xbf16>
    %cst_290 = arith.constant dense<0.000000e+00> : vector<64x64xf32>
    %348 = tpu.matmul %345, %347, %cst_290 {dimension_numbers = #tpu.dot_dimension_numbers<[1], [0], [0], [1], [0, 0, 1, 1], [], []>} : vector<64x64xbf16>, vector<64x64xbf16>, vector<64x64xf32> -> vector<64x64xf32>
    %349 = arith.addf %342, %348 : vector<64x64xf32>
    %c0_291 = arith.constant 0 : index
    %c1_292 = arith.constant 1 : index
    %c0_293 = arith.constant 0 : index
    %350 = vector.load %arg25[%c0_291, %c1_292, %c0_293] : memref<10x10x64xf32, #tpu.memory_space<vmem>>, vector<8x8x64xf32>
    %351 = vector.shape_cast %350 : vector<8x8x64xf32> to vector<64x64xf32>
    %352 = arith.truncf %351 : vector<64x64xf32> to vector<64x64xbf16>
    %c1_294 = arith.constant 1 : index
    %c0_295 = arith.constant 0 : index
    %c0_296 = arith.constant 0 : index
    %353 = vector.load %arg11[%c1_294, %c0_295, %c0_296] : memref<9x64x64xbf16, #tpu.memory_space<vmem>>, vector<1x64x64xbf16>
    %354 = vector.shape_cast %353 : vector<1x64x64xbf16> to vector<64x64xbf16>
    %cst_297 = arith.constant dense<0.000000e+00> : vector<64x64xf32>
    %355 = tpu.matmul %352, %354, %cst_297 {dimension_numbers = #tpu.dot_dimension_numbers<[1], [0], [0], [1], [0, 0, 1, 1], [], []>} : vector<64x64xbf16>, vector<64x64xbf16>, vector<64x64xf32> -> vector<64x64xf32>
    %356 = arith.addf %349, %355 : vector<64x64xf32>
    %c0_298 = arith.constant 0 : index
    %c2_299 = arith.constant 2 : index
    %c0_300 = arith.constant 0 : index
    %357 = vector.load %arg25[%c0_298, %c2_299, %c0_300] : memref<10x10x64xf32, #tpu.memory_space<vmem>>, vector<8x8x64xf32>
    %358 = vector.shape_cast %357 : vector<8x8x64xf32> to vector<64x64xf32>
    %359 = arith.truncf %358 : vector<64x64xf32> to vector<64x64xbf16>
    %c2_301 = arith.constant 2 : index
    %c0_302 = arith.constant 0 : index
    %c0_303 = arith.constant 0 : index
    %360 = vector.load %arg11[%c2_301, %c0_302, %c0_303] : memref<9x64x64xbf16, #tpu.memory_space<vmem>>, vector<1x64x64xbf16>
    %361 = vector.shape_cast %360 : vector<1x64x64xbf16> to vector<64x64xbf16>
    %cst_304 = arith.constant dense<0.000000e+00> : vector<64x64xf32>
    %362 = tpu.matmul %359, %361, %cst_304 {dimension_numbers = #tpu.dot_dimension_numbers<[1], [0], [0], [1], [0, 0, 1, 1], [], []>} : vector<64x64xbf16>, vector<64x64xbf16>, vector<64x64xf32> -> vector<64x64xf32>
    %363 = arith.addf %356, %362 : vector<64x64xf32>
    %c1_305 = arith.constant 1 : index
    %c0_306 = arith.constant 0 : index
    %c0_307 = arith.constant 0 : index
    %364 = vector.load %arg25[%c1_305, %c0_306, %c0_307] : memref<10x10x64xf32, #tpu.memory_space<vmem>>, vector<8x8x64xf32>
    %365 = vector.shape_cast %364 : vector<8x8x64xf32> to vector<64x64xf32>
    %366 = arith.truncf %365 : vector<64x64xf32> to vector<64x64xbf16>
    %c3_308 = arith.constant 3 : index
    %c0_309 = arith.constant 0 : index
    %c0_310 = arith.constant 0 : index
    %367 = vector.load %arg11[%c3_308, %c0_309, %c0_310] : memref<9x64x64xbf16, #tpu.memory_space<vmem>>, vector<1x64x64xbf16>
    %368 = vector.shape_cast %367 : vector<1x64x64xbf16> to vector<64x64xbf16>
    %cst_311 = arith.constant dense<0.000000e+00> : vector<64x64xf32>
    %369 = tpu.matmul %366, %368, %cst_311 {dimension_numbers = #tpu.dot_dimension_numbers<[1], [0], [0], [1], [0, 0, 1, 1], [], []>} : vector<64x64xbf16>, vector<64x64xbf16>, vector<64x64xf32> -> vector<64x64xf32>
    %370 = arith.addf %363, %369 : vector<64x64xf32>
    %c1_312 = arith.constant 1 : index
    %c1_313 = arith.constant 1 : index
    %c0_314 = arith.constant 0 : index
    %371 = vector.load %arg25[%c1_312, %c1_313, %c0_314] : memref<10x10x64xf32, #tpu.memory_space<vmem>>, vector<8x8x64xf32>
    %372 = vector.shape_cast %371 : vector<8x8x64xf32> to vector<64x64xf32>
    %373 = arith.truncf %372 : vector<64x64xf32> to vector<64x64xbf16>
    %c4_315 = arith.constant 4 : index
    %c0_316 = arith.constant 0 : index
    %c0_317 = arith.constant 0 : index
    %374 = vector.load %arg11[%c4_315, %c0_316, %c0_317] : memref<9x64x64xbf16, #tpu.memory_space<vmem>>, vector<1x64x64xbf16>
    %375 = vector.shape_cast %374 : vector<1x64x64xbf16> to vector<64x64xbf16>
    %cst_318 = arith.constant dense<0.000000e+00> : vector<64x64xf32>
    %376 = tpu.matmul %373, %375, %cst_318 {dimension_numbers = #tpu.dot_dimension_numbers<[1], [0], [0], [1], [0, 0, 1, 1], [], []>} : vector<64x64xbf16>, vector<64x64xbf16>, vector<64x64xf32> -> vector<64x64xf32>
    %377 = arith.addf %370, %376 : vector<64x64xf32>
    %c1_319 = arith.constant 1 : index
    %c2_320 = arith.constant 2 : index
    %c0_321 = arith.constant 0 : index
    %378 = vector.load %arg25[%c1_319, %c2_320, %c0_321] : memref<10x10x64xf32, #tpu.memory_space<vmem>>, vector<8x8x64xf32>
    %379 = vector.shape_cast %378 : vector<8x8x64xf32> to vector<64x64xf32>
    %380 = arith.truncf %379 : vector<64x64xf32> to vector<64x64xbf16>
    %c5_322 = arith.constant 5 : index
    %c0_323 = arith.constant 0 : index
    %c0_324 = arith.constant 0 : index
    %381 = vector.load %arg11[%c5_322, %c0_323, %c0_324] : memref<9x64x64xbf16, #tpu.memory_space<vmem>>, vector<1x64x64xbf16>
    %382 = vector.shape_cast %381 : vector<1x64x64xbf16> to vector<64x64xbf16>
    %cst_325 = arith.constant dense<0.000000e+00> : vector<64x64xf32>
    %383 = tpu.matmul %380, %382, %cst_325 {dimension_numbers = #tpu.dot_dimension_numbers<[1], [0], [0], [1], [0, 0, 1, 1], [], []>} : vector<64x64xbf16>, vector<64x64xbf16>, vector<64x64xf32> -> vector<64x64xf32>
    %384 = arith.addf %377, %383 : vector<64x64xf32>
    %c2_326 = arith.constant 2 : index
    %c0_327 = arith.constant 0 : index
    %c0_328 = arith.constant 0 : index
    %385 = vector.load %arg25[%c2_326, %c0_327, %c0_328] : memref<10x10x64xf32, #tpu.memory_space<vmem>>, vector<8x8x64xf32>
    %386 = vector.shape_cast %385 : vector<8x8x64xf32> to vector<64x64xf32>
    %387 = arith.truncf %386 : vector<64x64xf32> to vector<64x64xbf16>
    %c6_329 = arith.constant 6 : index
    %c0_330 = arith.constant 0 : index
    %c0_331 = arith.constant 0 : index
    %388 = vector.load %arg11[%c6_329, %c0_330, %c0_331] : memref<9x64x64xbf16, #tpu.memory_space<vmem>>, vector<1x64x64xbf16>
    %389 = vector.shape_cast %388 : vector<1x64x64xbf16> to vector<64x64xbf16>
    %cst_332 = arith.constant dense<0.000000e+00> : vector<64x64xf32>
    %390 = tpu.matmul %387, %389, %cst_332 {dimension_numbers = #tpu.dot_dimension_numbers<[1], [0], [0], [1], [0, 0, 1, 1], [], []>} : vector<64x64xbf16>, vector<64x64xbf16>, vector<64x64xf32> -> vector<64x64xf32>
    %391 = arith.addf %384, %390 : vector<64x64xf32>
    %c2_333 = arith.constant 2 : index
    %c1_334 = arith.constant 1 : index
    %c0_335 = arith.constant 0 : index
    %392 = vector.load %arg25[%c2_333, %c1_334, %c0_335] : memref<10x10x64xf32, #tpu.memory_space<vmem>>, vector<8x8x64xf32>
    %393 = vector.shape_cast %392 : vector<8x8x64xf32> to vector<64x64xf32>
    %394 = arith.truncf %393 : vector<64x64xf32> to vector<64x64xbf16>
    %c7_336 = arith.constant 7 : index
    %c0_337 = arith.constant 0 : index
    %c0_338 = arith.constant 0 : index
    %395 = vector.load %arg11[%c7_336, %c0_337, %c0_338] : memref<9x64x64xbf16, #tpu.memory_space<vmem>>, vector<1x64x64xbf16>
    %396 = vector.shape_cast %395 : vector<1x64x64xbf16> to vector<64x64xbf16>
    %cst_339 = arith.constant dense<0.000000e+00> : vector<64x64xf32>
    %397 = tpu.matmul %394, %396, %cst_339 {dimension_numbers = #tpu.dot_dimension_numbers<[1], [0], [0], [1], [0, 0, 1, 1], [], []>} : vector<64x64xbf16>, vector<64x64xbf16>, vector<64x64xf32> -> vector<64x64xf32>
    %398 = arith.addf %391, %397 : vector<64x64xf32>
    %c2_340 = arith.constant 2 : index
    %c2_341 = arith.constant 2 : index
    %c0_342 = arith.constant 0 : index
    %399 = vector.load %arg25[%c2_340, %c2_341, %c0_342] : memref<10x10x64xf32, #tpu.memory_space<vmem>>, vector<8x8x64xf32>
    %400 = vector.shape_cast %399 : vector<8x8x64xf32> to vector<64x64xf32>
    %401 = arith.truncf %400 : vector<64x64xf32> to vector<64x64xbf16>
    %c8_343 = arith.constant 8 : index
    %c0_344 = arith.constant 0 : index
    %c0_345 = arith.constant 0 : index
    %402 = vector.load %arg11[%c8_343, %c0_344, %c0_345] : memref<9x64x64xbf16, #tpu.memory_space<vmem>>, vector<1x64x64xbf16>
    %403 = vector.shape_cast %402 : vector<1x64x64xbf16> to vector<64x64xbf16>
    %cst_346 = arith.constant dense<0.000000e+00> : vector<64x64xf32>
    %404 = tpu.matmul %401, %403, %cst_346 {dimension_numbers = #tpu.dot_dimension_numbers<[1], [0], [0], [1], [0, 0, 1, 1], [], []>} : vector<64x64xbf16>, vector<64x64xbf16>, vector<64x64xf32> -> vector<64x64xf32>
    %405 = arith.addf %398, %404 : vector<64x64xf32>
    %406 = vector.broadcast %340 : vector<1x64xf32> to vector<64x64xf32>
    %407 = arith.mulf %405, %406 : vector<64x64xf32>
    %408 = vector.broadcast %341 : vector<1x64xf32> to vector<64x64xf32>
    %409 = arith.addf %407, %408 : vector<64x64xf32>
    %cst_347 = arith.constant 0.000000e+00 : f32
    %410 = vector.broadcast %cst_347 : f32 to vector<64x64xf32>
    %411 = arith.maximumf %409, %410 : vector<64x64xf32>
    %412 = vector.shape_cast %411 : vector<64x64xf32> to vector<8x8x64xf32>
    %c1_348 = arith.constant 1 : index
    %c1_349 = arith.constant 1 : index
    %c0_350 = arith.constant 0 : index
    %413 = vector.load %arg26[%c1_348, %c1_349, %c0_350] : memref<10x10x64xf32, #tpu.memory_space<vmem>>, vector<8x8x64xf32>
    tpu.vector_store %arg26[%c1_348, %c1_349, %c0_350], %412 {strides = array<i32>} : memref<10x10x64xf32, #tpu.memory_space<vmem>>, vector<8x8x64xf32>,
    %c0_351 = arith.constant 0 : index
    %c0_352 = arith.constant 0 : index
    %414 = vector.load %arg15[%c0_351, %c0_352] : memref<1x64xf32, #tpu.memory_space<vmem>>, vector<1x64xf32>
    %415 = tpu.iota {dimensions = array<i32: 0>} : vector<16x8xi32>
    %416 = tpu.iota {dimensions = array<i32: 1>} : vector<16x8xi32>
    %c2_i32_353 = arith.constant 2 : i32
    %417 = vector.broadcast %c2_i32_353 : i32 to vector<16x8xi32>
    %418 = arith.muli %417, %416 : vector<16x8xi32>
    %419 = arith.cmpi eq, %415, %418 : vector<16x8xi32>
    %420 = arith.extui %419 : vector<16x8xi1> to vector<16x8xi32>
    %421 = arith.sitofp %420 : vector<16x8xi32> to vector<16x8xf32>
    %c2_i32_354 = arith.constant 2 : i32
    %422 = vector.broadcast %c2_i32_354 : i32 to vector<16x8xi32>
    %423 = arith.muli %422, %416 : vector<16x8xi32>
    %c1_i32_355 = arith.constant 1 : i32
    %424 = vector.broadcast %c1_i32_355 : i32 to vector<16x8xi32>
    %425 = arith.addi %423, %424 : vector<16x8xi32>
    %426 = arith.cmpi eq, %415, %425 : vector<16x8xi32>
    %427 = arith.extui %426 : vector<16x8xi1> to vector<16x8xi32>
    %428 = arith.sitofp %427 : vector<16x8xi32> to vector<16x8xf32>
    %cst_356 = arith.constant 0.000000e+00 : f32
    %429 = vector.broadcast %cst_356 : f32 to vector<64x64xf32>
    %c0_357 = arith.constant 0 : index
    %c0_358 = arith.constant 0 : index
    %c0_359 = arith.constant 0 : index
    %430 = vector.load %arg26[%c0_357, %c0_358, %c0_359] : memref<10x10x64xf32, #tpu.memory_space<vmem>>, vector<8x8x64xf32>
    %431 = vector.shape_cast %430 : vector<8x8x64xf32> to vector<64x64xf32>
    %432 = arith.truncf %431 : vector<64x64xf32> to vector<64x64xbf16>
    %c3_360 = arith.constant 3 : index
    %c3_361 = arith.constant 3 : index
    %c0_362 = arith.constant 0 : index
    %c0_363 = arith.constant 0 : index
    %433 = vector.load %arg14[%c3_360, %c3_361, %c0_362, %c0_363] : memref<4x4x64x64xbf16, #tpu.memory_space<vmem>>, vector<1x1x64x64xbf16>
    %434 = vector.shape_cast %433 : vector<1x1x64x64xbf16> to vector<64x64xbf16>
    %cst_364 = arith.constant dense<0.000000e+00> : vector<64x64xf32>
    %435 = tpu.matmul %432, %434, %cst_364 {dimension_numbers = #tpu.dot_dimension_numbers<[1], [0], [0], [1], [0, 0, 1, 1], [], []>} : vector<64x64xbf16>, vector<64x64xbf16>, vector<64x64xf32> -> vector<64x64xf32>
    %436 = arith.addf %429, %435 : vector<64x64xf32>
    %c0_365 = arith.constant 0 : index
    %c1_366 = arith.constant 1 : index
    %c0_367 = arith.constant 0 : index
    %437 = vector.load %arg26[%c0_365, %c1_366, %c0_367] : memref<10x10x64xf32, #tpu.memory_space<vmem>>, vector<8x8x64xf32>
    %438 = vector.shape_cast %437 : vector<8x8x64xf32> to vector<64x64xf32>
    %439 = arith.truncf %438 : vector<64x64xf32> to vector<64x64xbf16>
    %c3_368 = arith.constant 3 : index
    %c1_369 = arith.constant 1 : index
    %c0_370 = arith.constant 0 : index
    %c0_371 = arith.constant 0 : index
    %440 = vector.load %arg14[%c3_368, %c1_369, %c0_370, %c0_371] : memref<4x4x64x64xbf16, #tpu.memory_space<vmem>>, vector<1x1x64x64xbf16>
    %441 = vector.shape_cast %440 : vector<1x1x64x64xbf16> to vector<64x64xbf16>
    %cst_372 = arith.constant dense<0.000000e+00> : vector<64x64xf32>
    %442 = tpu.matmul %439, %441, %cst_372 {dimension_numbers = #tpu.dot_dimension_numbers<[1], [0], [0], [1], [0, 0, 1, 1], [], []>} : vector<64x64xbf16>, vector<64x64xbf16>, vector<64x64xf32> -> vector<64x64xf32>
    %443 = arith.addf %436, %442 : vector<64x64xf32>
    %c1_373 = arith.constant 1 : index
    %c0_374 = arith.constant 0 : index
    %c0_375 = arith.constant 0 : index
    %444 = vector.load %arg26[%c1_373, %c0_374, %c0_375] : memref<10x10x64xf32, #tpu.memory_space<vmem>>, vector<8x8x64xf32>
    %445 = vector.shape_cast %444 : vector<8x8x64xf32> to vector<64x64xf32>
    %446 = arith.truncf %445 : vector<64x64xf32> to vector<64x64xbf16>
    %c1_376 = arith.constant 1 : index
    %c3_377 = arith.constant 3 : index
    %c0_378 = arith.constant 0 : index
    %c0_379 = arith.constant 0 : index
    %447 = vector.load %arg14[%c1_376, %c3_377, %c0_378, %c0_379] : memref<4x4x64x64xbf16, #tpu.memory_space<vmem>>, vector<1x1x64x64xbf16>
    %448 = vector.shape_cast %447 : vector<1x1x64x64xbf16> to vector<64x64xbf16>
    %cst_380 = arith.constant dense<0.000000e+00> : vector<64x64xf32>
    %449 = tpu.matmul %446, %448, %cst_380 {dimension_numbers = #tpu.dot_dimension_numbers<[1], [0], [0], [1], [0, 0, 1, 1], [], []>} : vector<64x64xbf16>, vector<64x64xbf16>, vector<64x64xf32> -> vector<64x64xf32>
    %450 = arith.addf %443, %449 : vector<64x64xf32>
    %c1_381 = arith.constant 1 : index
    %c1_382 = arith.constant 1 : index
    %c0_383 = arith.constant 0 : index
    %451 = vector.load %arg26[%c1_381, %c1_382, %c0_383] : memref<10x10x64xf32, #tpu.memory_space<vmem>>, vector<8x8x64xf32>
    %452 = vector.shape_cast %451 : vector<8x8x64xf32> to vector<64x64xf32>
    %453 = arith.truncf %452 : vector<64x64xf32> to vector<64x64xbf16>
    %c1_384 = arith.constant 1 : index
    %c1_385 = arith.constant 1 : index
    %c0_386 = arith.constant 0 : index
    %c0_387 = arith.constant 0 : index
    %454 = vector.load %arg14[%c1_384, %c1_385, %c0_386, %c0_387] : memref<4x4x64x64xbf16, #tpu.memory_space<vmem>>, vector<1x1x64x64xbf16>
    %455 = vector.shape_cast %454 : vector<1x1x64x64xbf16> to vector<64x64xbf16>
    %cst_388 = arith.constant dense<0.000000e+00> : vector<64x64xf32>
    %456 = tpu.matmul %453, %455, %cst_388 {dimension_numbers = #tpu.dot_dimension_numbers<[1], [0], [0], [1], [0, 0, 1, 1], [], []>} : vector<64x64xbf16>, vector<64x64xbf16>, vector<64x64xf32> -> vector<64x64xf32>
    %457 = arith.addf %450, %456 : vector<64x64xf32>
    %458 = vector.broadcast %414 : vector<1x64xf32> to vector<64x64xf32>
    %459 = arith.addf %457, %458 : vector<64x64xf32>
    %460 = vector.shape_cast %459 : vector<64x64xf32> to vector<8x8x64xf32>
    %cst_389 = arith.constant 0.000000e+00 : f32
    %461 = vector.broadcast %cst_389 : f32 to vector<64x64xf32>
    %c0_390 = arith.constant 0 : index
    %c1_391 = arith.constant 1 : index
    %c0_392 = arith.constant 0 : index
    %462 = vector.load %arg26[%c0_390, %c1_391, %c0_392] : memref<10x10x64xf32, #tpu.memory_space<vmem>>, vector<8x8x64xf32>
    %463 = vector.shape_cast %462 : vector<8x8x64xf32> to vector<64x64xf32>
    %464 = arith.truncf %463 : vector<64x64xf32> to vector<64x64xbf16>
    %c3_393 = arith.constant 3 : index
    %c2_394 = arith.constant 2 : index
    %c0_395 = arith.constant 0 : index
    %c0_396 = arith.constant 0 : index
    %465 = vector.load %arg14[%c3_393, %c2_394, %c0_395, %c0_396] : memref<4x4x64x64xbf16, #tpu.memory_space<vmem>>, vector<1x1x64x64xbf16>
    %466 = vector.shape_cast %465 : vector<1x1x64x64xbf16> to vector<64x64xbf16>
    %cst_397 = arith.constant dense<0.000000e+00> : vector<64x64xf32>
    %467 = tpu.matmul %464, %466, %cst_397 {dimension_numbers = #tpu.dot_dimension_numbers<[1], [0], [0], [1], [0, 0, 1, 1], [], []>} : vector<64x64xbf16>, vector<64x64xbf16>, vector<64x64xf32> -> vector<64x64xf32>
    %468 = arith.addf %461, %467 : vector<64x64xf32>
    %c0_398 = arith.constant 0 : index
    %c2_399 = arith.constant 2 : index
    %c0_400 = arith.constant 0 : index
    %469 = vector.load %arg26[%c0_398, %c2_399, %c0_400] : memref<10x10x64xf32, #tpu.memory_space<vmem>>, vector<8x8x64xf32>
    %470 = vector.shape_cast %469 : vector<8x8x64xf32> to vector<64x64xf32>
    %471 = arith.truncf %470 : vector<64x64xf32> to vector<64x64xbf16>
    %c3_401 = arith.constant 3 : index
    %c0_402 = arith.constant 0 : index
    %c0_403 = arith.constant 0 : index
    %c0_404 = arith.constant 0 : index
    %472 = vector.load %arg14[%c3_401, %c0_402, %c0_403, %c0_404] : memref<4x4x64x64xbf16, #tpu.memory_space<vmem>>, vector<1x1x64x64xbf16>
    %473 = vector.shape_cast %472 : vector<1x1x64x64xbf16> to vector<64x64xbf16>
    %cst_405 = arith.constant dense<0.000000e+00> : vector<64x64xf32>
    %474 = tpu.matmul %471, %473, %cst_405 {dimension_numbers = #tpu.dot_dimension_numbers<[1], [0], [0], [1], [0, 0, 1, 1], [], []>} : vector<64x64xbf16>, vector<64x64xbf16>, vector<64x64xf32> -> vector<64x64xf32>
    %475 = arith.addf %468, %474 : vector<64x64xf32>
    %c1_406 = arith.constant 1 : index
    %c1_407 = arith.constant 1 : index
    %c0_408 = arith.constant 0 : index
    %476 = vector.load %arg26[%c1_406, %c1_407, %c0_408] : memref<10x10x64xf32, #tpu.memory_space<vmem>>, vector<8x8x64xf32>
    %477 = vector.shape_cast %476 : vector<8x8x64xf32> to vector<64x64xf32>
    %478 = arith.truncf %477 : vector<64x64xf32> to vector<64x64xbf16>
    %c1_409 = arith.constant 1 : index
    %c2_410 = arith.constant 2 : index
    %c0_411 = arith.constant 0 : index
    %c0_412 = arith.constant 0 : index
    %479 = vector.load %arg14[%c1_409, %c2_410, %c0_411, %c0_412] : memref<4x4x64x64xbf16, #tpu.memory_space<vmem>>, vector<1x1x64x64xbf16>
    %480 = vector.shape_cast %479 : vector<1x1x64x64xbf16> to vector<64x64xbf16>
    %cst_413 = arith.constant dense<0.000000e+00> : vector<64x64xf32>
    %481 = tpu.matmul %478, %480, %cst_413 {dimension_numbers = #tpu.dot_dimension_numbers<[1], [0], [0], [1], [0, 0, 1, 1], [], []>} : vector<64x64xbf16>, vector<64x64xbf16>, vector<64x64xf32> -> vector<64x64xf32>
    %482 = arith.addf %475, %481 : vector<64x64xf32>
    %c1_414 = arith.constant 1 : index
    %c2_415 = arith.constant 2 : index
    %c0_416 = arith.constant 0 : index
    %483 = vector.load %arg26[%c1_414, %c2_415, %c0_416] : memref<10x10x64xf32, #tpu.memory_space<vmem>>, vector<8x8x64xf32>
    %484 = vector.shape_cast %483 : vector<8x8x64xf32> to vector<64x64xf32>
    %485 = arith.truncf %484 : vector<64x64xf32> to vector<64x64xbf16>
    %c1_417 = arith.constant 1 : index
    %c0_418 = arith.constant 0 : index
    %c0_419 = arith.constant 0 : index
    %c0_420 = arith.constant 0 : index
    %486 = vector.load %arg14[%c1_417, %c0_418, %c0_419, %c0_420] : memref<4x4x64x64xbf16, #tpu.memory_space<vmem>>, vector<1x1x64x64xbf16>
    %487 = vector.shape_cast %486 : vector<1x1x64x64xbf16> to vector<64x64xbf16>
    %cst_421 = arith.constant dense<0.000000e+00> : vector<64x64xf32>
    %488 = tpu.matmul %485, %487, %cst_421 {dimension_numbers = #tpu.dot_dimension_numbers<[1], [0], [0], [1], [0, 0, 1, 1], [], []>} : vector<64x64xbf16>, vector<64x64xbf16>, vector<64x64xf32> -> vector<64x64xf32>
    %489 = arith.addf %482, %488 : vector<64x64xf32>
    %490 = vector.broadcast %414 : vector<1x64xf32> to vector<64x64xf32>
    %491 = arith.addf %489, %490 : vector<64x64xf32>
    %492 = vector.shape_cast %491 : vector<64x64xf32> to vector<8x8x64xf32>
    %493 = vector.extract_strided_slice %460 {offsets = [0, 0, 0], sizes = [1, 8, 64], strides = [1, 1, 1]} : vector<8x8x64xf32> to vector<1x8x64xf32>
    %494 = vector.shape_cast %493 : vector<1x8x64xf32> to vector<8x64xf32>
    %cst_422 = arith.constant dense<0.000000e+00> : vector<16x64xf32>
    %495 = tpu.matmul %421, %494, %cst_422 {dimension_numbers = #tpu.dot_dimension_numbers<[1], [0], [0], [1], [0, 0, 1, 1], [], []>} : vector<16x8xf32>, vector<8x64xf32>, vector<16x64xf32> -> vector<16x64xf32>
    %496 = vector.extract_strided_slice %492 {offsets = [0, 0, 0], sizes = [1, 8, 64], strides = [1, 1, 1]} : vector<8x8x64xf32> to vector<1x8x64xf32>
    %497 = vector.shape_cast %496 : vector<1x8x64xf32> to vector<8x64xf32>
    %cst_423 = arith.constant dense<0.000000e+00> : vector<16x64xf32>
    %498 = tpu.matmul %428, %497, %cst_423 {dimension_numbers = #tpu.dot_dimension_numbers<[1], [0], [0], [1], [0, 0, 1, 1], [], []>} : vector<16x8xf32>, vector<8x64xf32>, vector<16x64xf32> -> vector<16x64xf32>
    %499 = arith.addf %495, %498 : vector<16x64xf32>
    %c1_424 = arith.constant 1 : index
    %c1_425 = arith.constant 1 : index
    %c0_426 = arith.constant 0 : index
    %500 = vector.load %arg27[%c1_424, %c1_425, %c0_426] : memref<18x18x64xf32, #tpu.memory_space<vmem>>, vector<1x16x64xf32>
    %501 = vector.shape_cast %500 : vector<1x16x64xf32> to vector<16x64xf32>
    %502 = vector.shape_cast %499 : vector<16x64xf32> to vector<1x16x64xf32>
    tpu.vector_store %arg27[%c1_424, %c1_425, %c0_426], %502 {strides = array<i32>} : memref<18x18x64xf32, #tpu.memory_space<vmem>>, vector<1x16x64xf32>,
    %503 = vector.extract_strided_slice %460 {offsets = [1, 0, 0], sizes = [1, 8, 64], strides = [1, 1, 1]} : vector<8x8x64xf32> to vector<1x8x64xf32>
    %504 = vector.shape_cast %503 : vector<1x8x64xf32> to vector<8x64xf32>
    %cst_427 = arith.constant dense<0.000000e+00> : vector<16x64xf32>
    %505 = tpu.matmul %421, %504, %cst_427 {dimension_numbers = #tpu.dot_dimension_numbers<[1], [0], [0], [1], [0, 0, 1, 1], [], []>} : vector<16x8xf32>, vector<8x64xf32>, vector<16x64xf32> -> vector<16x64xf32>
    %506 = vector.extract_strided_slice %492 {offsets = [1, 0, 0], sizes = [1, 8, 64], strides = [1, 1, 1]} : vector<8x8x64xf32> to vector<1x8x64xf32>
    %507 = vector.shape_cast %506 : vector<1x8x64xf32> to vector<8x64xf32>
    %cst_428 = arith.constant dense<0.000000e+00> : vector<16x64xf32>
    %508 = tpu.matmul %428, %507, %cst_428 {dimension_numbers = #tpu.dot_dimension_numbers<[1], [0], [0], [1], [0, 0, 1, 1], [], []>} : vector<16x8xf32>, vector<8x64xf32>, vector<16x64xf32> -> vector<16x64xf32>
    %509 = arith.addf %505, %508 : vector<16x64xf32>
    %c3_429 = arith.constant 3 : index
    %c1_430 = arith.constant 1 : index
    %c0_431 = arith.constant 0 : index
    %510 = vector.load %arg27[%c3_429, %c1_430, %c0_431] : memref<18x18x64xf32, #tpu.memory_space<vmem>>, vector<1x16x64xf32>
    %511 = vector.shape_cast %510 : vector<1x16x64xf32> to vector<16x64xf32>
    %512 = vector.shape_cast %509 : vector<16x64xf32> to vector<1x16x64xf32>
    tpu.vector_store %arg27[%c3_429, %c1_430, %c0_431], %512 {strides = array<i32>} : memref<18x18x64xf32, #tpu.memory_space<vmem>>, vector<1x16x64xf32>,
    %513 = vector.extract_strided_slice %460 {offsets = [2, 0, 0], sizes = [1, 8, 64], strides = [1, 1, 1]} : vector<8x8x64xf32> to vector<1x8x64xf32>
    %514 = vector.shape_cast %513 : vector<1x8x64xf32> to vector<8x64xf32>
    %cst_432 = arith.constant dense<0.000000e+00> : vector<16x64xf32>
    %515 = tpu.matmul %421, %514, %cst_432 {dimension_numbers = #tpu.dot_dimension_numbers<[1], [0], [0], [1], [0, 0, 1, 1], [], []>} : vector<16x8xf32>, vector<8x64xf32>, vector<16x64xf32> -> vector<16x64xf32>
    %516 = vector.extract_strided_slice %492 {offsets = [2, 0, 0], sizes = [1, 8, 64], strides = [1, 1, 1]} : vector<8x8x64xf32> to vector<1x8x64xf32>
    %517 = vector.shape_cast %516 : vector<1x8x64xf32> to vector<8x64xf32>
    %cst_433 = arith.constant dense<0.000000e+00> : vector<16x64xf32>
    %518 = tpu.matmul %428, %517, %cst_433 {dimension_numbers = #tpu.dot_dimension_numbers<[1], [0], [0], [1], [0, 0, 1, 1], [], []>} : vector<16x8xf32>, vector<8x64xf32>, vector<16x64xf32> -> vector<16x64xf32>
    %519 = arith.addf %515, %518 : vector<16x64xf32>
    %c5_434 = arith.constant 5 : index
    %c1_435 = arith.constant 1 : index
    %c0_436 = arith.constant 0 : index
    %520 = vector.load %arg27[%c5_434, %c1_435, %c0_436] : memref<18x18x64xf32, #tpu.memory_space<vmem>>, vector<1x16x64xf32>
    %521 = vector.shape_cast %520 : vector<1x16x64xf32> to vector<16x64xf32>
    %522 = vector.shape_cast %519 : vector<16x64xf32> to vector<1x16x64xf32>
    tpu.vector_store %arg27[%c5_434, %c1_435, %c0_436], %522 {strides = array<i32>} : memref<18x18x64xf32, #tpu.memory_space<vmem>>, vector<1x16x64xf32>,
    %523 = vector.extract_strided_slice %460 {offsets = [3, 0, 0], sizes = [1, 8, 64], strides = [1, 1, 1]} : vector<8x8x64xf32> to vector<1x8x64xf32>
    %524 = vector.shape_cast %523 : vector<1x8x64xf32> to vector<8x64xf32>
    %cst_437 = arith.constant dense<0.000000e+00> : vector<16x64xf32>
    %525 = tpu.matmul %421, %524, %cst_437 {dimension_numbers = #tpu.dot_dimension_numbers<[1], [0], [0], [1], [0, 0, 1, 1], [], []>} : vector<16x8xf32>, vector<8x64xf32>, vector<16x64xf32> -> vector<16x64xf32>
    %526 = vector.extract_strided_slice %492 {offsets = [3, 0, 0], sizes = [1, 8, 64], strides = [1, 1, 1]} : vector<8x8x64xf32> to vector<1x8x64xf32>
    %527 = vector.shape_cast %526 : vector<1x8x64xf32> to vector<8x64xf32>
    %cst_438 = arith.constant dense<0.000000e+00> : vector<16x64xf32>
    %528 = tpu.matmul %428, %527, %cst_438 {dimension_numbers = #tpu.dot_dimension_numbers<[1], [0], [0], [1], [0, 0, 1, 1], [], []>} : vector<16x8xf32>, vector<8x64xf32>, vector<16x64xf32> -> vector<16x64xf32>
    %529 = arith.addf %525, %528 : vector<16x64xf32>
    %c7_439 = arith.constant 7 : index
    %c1_440 = arith.constant 1 : index
    %c0_441 = arith.constant 0 : index
    %530 = vector.load %arg27[%c7_439, %c1_440, %c0_441] : memref<18x18x64xf32, #tpu.memory_space<vmem>>, vector<1x16x64xf32>
    %531 = vector.shape_cast %530 : vector<1x16x64xf32> to vector<16x64xf32>
    %532 = vector.shape_cast %529 : vector<16x64xf32> to vector<1x16x64xf32>
    tpu.vector_store %arg27[%c7_439, %c1_440, %c0_441], %532 {strides = array<i32>} : memref<18x18x64xf32, #tpu.memory_space<vmem>>, vector<1x16x64xf32>,
    %533 = vector.extract_strided_slice %460 {offsets = [4, 0, 0], sizes = [1, 8, 64], strides = [1, 1, 1]} : vector<8x8x64xf32> to vector<1x8x64xf32>
    %534 = vector.shape_cast %533 : vector<1x8x64xf32> to vector<8x64xf32>
    %cst_442 = arith.constant dense<0.000000e+00> : vector<16x64xf32>
    %535 = tpu.matmul %421, %534, %cst_442 {dimension_numbers = #tpu.dot_dimension_numbers<[1], [0], [0], [1], [0, 0, 1, 1], [], []>} : vector<16x8xf32>, vector<8x64xf32>, vector<16x64xf32> -> vector<16x64xf32>
    %536 = vector.extract_strided_slice %492 {offsets = [4, 0, 0], sizes = [1, 8, 64], strides = [1, 1, 1]} : vector<8x8x64xf32> to vector<1x8x64xf32>
    %537 = vector.shape_cast %536 : vector<1x8x64xf32> to vector<8x64xf32>
    %cst_443 = arith.constant dense<0.000000e+00> : vector<16x64xf32>
    %538 = tpu.matmul %428, %537, %cst_443 {dimension_numbers = #tpu.dot_dimension_numbers<[1], [0], [0], [1], [0, 0, 1, 1], [], []>} : vector<16x8xf32>, vector<8x64xf32>, vector<16x64xf32> -> vector<16x64xf32>
    %539 = arith.addf %535, %538 : vector<16x64xf32>
    %c9 = arith.constant 9 : index
    %c1_444 = arith.constant 1 : index
    %c0_445 = arith.constant 0 : index
    %540 = vector.load %arg27[%c9, %c1_444, %c0_445] : memref<18x18x64xf32, #tpu.memory_space<vmem>>, vector<1x16x64xf32>
    %541 = vector.shape_cast %540 : vector<1x16x64xf32> to vector<16x64xf32>
    %542 = vector.shape_cast %539 : vector<16x64xf32> to vector<1x16x64xf32>
    tpu.vector_store %arg27[%c9, %c1_444, %c0_445], %542 {strides = array<i32>} : memref<18x18x64xf32, #tpu.memory_space<vmem>>, vector<1x16x64xf32>,
    %543 = vector.extract_strided_slice %460 {offsets = [5, 0, 0], sizes = [1, 8, 64], strides = [1, 1, 1]} : vector<8x8x64xf32> to vector<1x8x64xf32>
    %544 = vector.shape_cast %543 : vector<1x8x64xf32> to vector<8x64xf32>
    %cst_446 = arith.constant dense<0.000000e+00> : vector<16x64xf32>
    %545 = tpu.matmul %421, %544, %cst_446 {dimension_numbers = #tpu.dot_dimension_numbers<[1], [0], [0], [1], [0, 0, 1, 1], [], []>} : vector<16x8xf32>, vector<8x64xf32>, vector<16x64xf32> -> vector<16x64xf32>
    %546 = vector.extract_strided_slice %492 {offsets = [5, 0, 0], sizes = [1, 8, 64], strides = [1, 1, 1]} : vector<8x8x64xf32> to vector<1x8x64xf32>
    %547 = vector.shape_cast %546 : vector<1x8x64xf32> to vector<8x64xf32>
    %cst_447 = arith.constant dense<0.000000e+00> : vector<16x64xf32>
    %548 = tpu.matmul %428, %547, %cst_447 {dimension_numbers = #tpu.dot_dimension_numbers<[1], [0], [0], [1], [0, 0, 1, 1], [], []>} : vector<16x8xf32>, vector<8x64xf32>, vector<16x64xf32> -> vector<16x64xf32>
    %549 = arith.addf %545, %548 : vector<16x64xf32>
    %c11 = arith.constant 11 : index
    %c1_448 = arith.constant 1 : index
    %c0_449 = arith.constant 0 : index
    %550 = vector.load %arg27[%c11, %c1_448, %c0_449] : memref<18x18x64xf32, #tpu.memory_space<vmem>>, vector<1x16x64xf32>
    %551 = vector.shape_cast %550 : vector<1x16x64xf32> to vector<16x64xf32>
    %552 = vector.shape_cast %549 : vector<16x64xf32> to vector<1x16x64xf32>
    tpu.vector_store %arg27[%c11, %c1_448, %c0_449], %552 {strides = array<i32>} : memref<18x18x64xf32, #tpu.memory_space<vmem>>, vector<1x16x64xf32>,
    %553 = vector.extract_strided_slice %460 {offsets = [6, 0, 0], sizes = [1, 8, 64], strides = [1, 1, 1]} : vector<8x8x64xf32> to vector<1x8x64xf32>
    %554 = vector.shape_cast %553 : vector<1x8x64xf32> to vector<8x64xf32>
    %cst_450 = arith.constant dense<0.000000e+00> : vector<16x64xf32>
    %555 = tpu.matmul %421, %554, %cst_450 {dimension_numbers = #tpu.dot_dimension_numbers<[1], [0], [0], [1], [0, 0, 1, 1], [], []>} : vector<16x8xf32>, vector<8x64xf32>, vector<16x64xf32> -> vector<16x64xf32>
    %556 = vector.extract_strided_slice %492 {offsets = [6, 0, 0], sizes = [1, 8, 64], strides = [1, 1, 1]} : vector<8x8x64xf32> to vector<1x8x64xf32>
    %557 = vector.shape_cast %556 : vector<1x8x64xf32> to vector<8x64xf32>
    %cst_451 = arith.constant dense<0.000000e+00> : vector<16x64xf32>
    %558 = tpu.matmul %428, %557, %cst_451 {dimension_numbers = #tpu.dot_dimension_numbers<[1], [0], [0], [1], [0, 0, 1, 1], [], []>} : vector<16x8xf32>, vector<8x64xf32>, vector<16x64xf32> -> vector<16x64xf32>
    %559 = arith.addf %555, %558 : vector<16x64xf32>
    %c13 = arith.constant 13 : index
    %c1_452 = arith.constant 1 : index
    %c0_453 = arith.constant 0 : index
    %560 = vector.load %arg27[%c13, %c1_452, %c0_453] : memref<18x18x64xf32, #tpu.memory_space<vmem>>, vector<1x16x64xf32>
    %561 = vector.shape_cast %560 : vector<1x16x64xf32> to vector<16x64xf32>
    %562 = vector.shape_cast %559 : vector<16x64xf32> to vector<1x16x64xf32>
    tpu.vector_store %arg27[%c13, %c1_452, %c0_453], %562 {strides = array<i32>} : memref<18x18x64xf32, #tpu.memory_space<vmem>>, vector<1x16x64xf32>,
    %563 = vector.extract_strided_slice %460 {offsets = [7, 0, 0], sizes = [1, 8, 64], strides = [1, 1, 1]} : vector<8x8x64xf32> to vector<1x8x64xf32>
    %564 = vector.shape_cast %563 : vector<1x8x64xf32> to vector<8x64xf32>
    %cst_454 = arith.constant dense<0.000000e+00> : vector<16x64xf32>
    %565 = tpu.matmul %421, %564, %cst_454 {dimension_numbers = #tpu.dot_dimension_numbers<[1], [0], [0], [1], [0, 0, 1, 1], [], []>} : vector<16x8xf32>, vector<8x64xf32>, vector<16x64xf32> -> vector<16x64xf32>
    %566 = vector.extract_strided_slice %492 {offsets = [7, 0, 0], sizes = [1, 8, 64], strides = [1, 1, 1]} : vector<8x8x64xf32> to vector<1x8x64xf32>
    %567 = vector.shape_cast %566 : vector<1x8x64xf32> to vector<8x64xf32>
    %cst_455 = arith.constant dense<0.000000e+00> : vector<16x64xf32>
    %568 = tpu.matmul %428, %567, %cst_455 {dimension_numbers = #tpu.dot_dimension_numbers<[1], [0], [0], [1], [0, 0, 1, 1], [], []>} : vector<16x8xf32>, vector<8x64xf32>, vector<16x64xf32> -> vector<16x64xf32>
    %569 = arith.addf %565, %568 : vector<16x64xf32>
    %c15 = arith.constant 15 : index
    %c1_456 = arith.constant 1 : index
    %c0_457 = arith.constant 0 : index
    %570 = vector.load %arg27[%c15, %c1_456, %c0_457] : memref<18x18x64xf32, #tpu.memory_space<vmem>>, vector<1x16x64xf32>
    %571 = vector.shape_cast %570 : vector<1x16x64xf32> to vector<16x64xf32>
    %572 = vector.shape_cast %569 : vector<16x64xf32> to vector<1x16x64xf32>
    tpu.vector_store %arg27[%c15, %c1_456, %c0_457], %572 {strides = array<i32>} : memref<18x18x64xf32, #tpu.memory_space<vmem>>, vector<1x16x64xf32>,
    %cst_458 = arith.constant 0.000000e+00 : f32
    %573 = vector.broadcast %cst_458 : f32 to vector<64x64xf32>
    %c1_459 = arith.constant 1 : index
    %c0_460 = arith.constant 0 : index
    %c0_461 = arith.constant 0 : index
    %574 = vector.load %arg26[%c1_459, %c0_460, %c0_461] : memref<10x10x64xf32, #tpu.memory_space<vmem>>, vector<8x8x64xf32>
    %575 = vector.shape_cast %574 : vector<8x8x64xf32> to vector<64x64xf32>
    %576 = arith.truncf %575 : vector<64x64xf32> to vector<64x64xbf16>
    %c2_462 = arith.constant 2 : index
    %c3_463 = arith.constant 3 : index
    %c0_464 = arith.constant 0 : index
    %c0_465 = arith.constant 0 : index
    %577 = vector.load %arg14[%c2_462, %c3_463, %c0_464, %c0_465] : memref<4x4x64x64xbf16, #tpu.memory_space<vmem>>, vector<1x1x64x64xbf16>
    %578 = vector.shape_cast %577 : vector<1x1x64x64xbf16> to vector<64x64xbf16>
    %cst_466 = arith.constant dense<0.000000e+00> : vector<64x64xf32>
    %579 = tpu.matmul %576, %578, %cst_466 {dimension_numbers = #tpu.dot_dimension_numbers<[1], [0], [0], [1], [0, 0, 1, 1], [], []>} : vector<64x64xbf16>, vector<64x64xbf16>, vector<64x64xf32> -> vector<64x64xf32>
    %580 = arith.addf %573, %579 : vector<64x64xf32>
    %c1_467 = arith.constant 1 : index
    %c1_468 = arith.constant 1 : index
    %c0_469 = arith.constant 0 : index
    %581 = vector.load %arg26[%c1_467, %c1_468, %c0_469] : memref<10x10x64xf32, #tpu.memory_space<vmem>>, vector<8x8x64xf32>
    %582 = vector.shape_cast %581 : vector<8x8x64xf32> to vector<64x64xf32>
    %583 = arith.truncf %582 : vector<64x64xf32> to vector<64x64xbf16>
    %c2_470 = arith.constant 2 : index
    %c1_471 = arith.constant 1 : index
    %c0_472 = arith.constant 0 : index
    %c0_473 = arith.constant 0 : index
    %584 = vector.load %arg14[%c2_470, %c1_471, %c0_472, %c0_473] : memref<4x4x64x64xbf16, #tpu.memory_space<vmem>>, vector<1x1x64x64xbf16>
    %585 = vector.shape_cast %584 : vector<1x1x64x64xbf16> to vector<64x64xbf16>
    %cst_474 = arith.constant dense<0.000000e+00> : vector<64x64xf32>
    %586 = tpu.matmul %583, %585, %cst_474 {dimension_numbers = #tpu.dot_dimension_numbers<[1], [0], [0], [1], [0, 0, 1, 1], [], []>} : vector<64x64xbf16>, vector<64x64xbf16>, vector<64x64xf32> -> vector<64x64xf32>
    %587 = arith.addf %580, %586 : vector<64x64xf32>
    %c2_475 = arith.constant 2 : index
    %c0_476 = arith.constant 0 : index
    %c0_477 = arith.constant 0 : index
    %588 = vector.load %arg26[%c2_475, %c0_476, %c0_477] : memref<10x10x64xf32, #tpu.memory_space<vmem>>, vector<8x8x64xf32>
    %589 = vector.shape_cast %588 : vector<8x8x64xf32> to vector<64x64xf32>
    %590 = arith.truncf %589 : vector<64x64xf32> to vector<64x64xbf16>
    %c0_478 = arith.constant 0 : index
    %c3_479 = arith.constant 3 : index
    %c0_480 = arith.constant 0 : index
    %c0_481 = arith.constant 0 : index
    %591 = vector.load %arg14[%c0_478, %c3_479, %c0_480, %c0_481] : memref<4x4x64x64xbf16, #tpu.memory_space<vmem>>, vector<1x1x64x64xbf16>
    %592 = vector.shape_cast %591 : vector<1x1x64x64xbf16> to vector<64x64xbf16>
    %cst_482 = arith.constant dense<0.000000e+00> : vector<64x64xf32>
    %593 = tpu.matmul %590, %592, %cst_482 {dimension_numbers = #tpu.dot_dimension_numbers<[1], [0], [0], [1], [0, 0, 1, 1], [], []>} : vector<64x64xbf16>, vector<64x64xbf16>, vector<64x64xf32> -> vector<64x64xf32>
    %594 = arith.addf %587, %593 : vector<64x64xf32>
    %c2_483 = arith.constant 2 : index
    %c1_484 = arith.constant 1 : index
    %c0_485 = arith.constant 0 : index
    %595 = vector.load %arg26[%c2_483, %c1_484, %c0_485] : memref<10x10x64xf32, #tpu.memory_space<vmem>>, vector<8x8x64xf32>
    %596 = vector.shape_cast %595 : vector<8x8x64xf32> to vector<64x64xf32>
    %597 = arith.truncf %596 : vector<64x64xf32> to vector<64x64xbf16>
    %c0_486 = arith.constant 0 : index
    %c1_487 = arith.constant 1 : index
    %c0_488 = arith.constant 0 : index
    %c0_489 = arith.constant 0 : index
    %598 = vector.load %arg14[%c0_486, %c1_487, %c0_488, %c0_489] : memref<4x4x64x64xbf16, #tpu.memory_space<vmem>>, vector<1x1x64x64xbf16>
    %599 = vector.shape_cast %598 : vector<1x1x64x64xbf16> to vector<64x64xbf16>
    %cst_490 = arith.constant dense<0.000000e+00> : vector<64x64xf32>
    %600 = tpu.matmul %597, %599, %cst_490 {dimension_numbers = #tpu.dot_dimension_numbers<[1], [0], [0], [1], [0, 0, 1, 1], [], []>} : vector<64x64xbf16>, vector<64x64xbf16>, vector<64x64xf32> -> vector<64x64xf32>
    %601 = arith.addf %594, %600 : vector<64x64xf32>
    %602 = vector.broadcast %414 : vector<1x64xf32> to vector<64x64xf32>
    %603 = arith.addf %601, %602 : vector<64x64xf32>
    %604 = vector.shape_cast %603 : vector<64x64xf32> to vector<8x8x64xf32>
    %cst_491 = arith.constant 0.000000e+00 : f32
    %605 = vector.broadcast %cst_491 : f32 to vector<64x64xf32>
    %c1_492 = arith.constant 1 : index
    %c1_493 = arith.constant 1 : index
    %c0_494 = arith.constant 0 : index
    %606 = vector.load %arg26[%c1_492, %c1_493, %c0_494] : memref<10x10x64xf32, #tpu.memory_space<vmem>>, vector<8x8x64xf32>
    %607 = vector.shape_cast %606 : vector<8x8x64xf32> to vector<64x64xf32>
    %608 = arith.truncf %607 : vector<64x64xf32> to vector<64x64xbf16>
    %c2_495 = arith.constant 2 : index
    %c2_496 = arith.constant 2 : index
    %c0_497 = arith.constant 0 : index
    %c0_498 = arith.constant 0 : index
    %609 = vector.load %arg14[%c2_495, %c2_496, %c0_497, %c0_498] : memref<4x4x64x64xbf16, #tpu.memory_space<vmem>>, vector<1x1x64x64xbf16>
    %610 = vector.shape_cast %609 : vector<1x1x64x64xbf16> to vector<64x64xbf16>
    %cst_499 = arith.constant dense<0.000000e+00> : vector<64x64xf32>
    %611 = tpu.matmul %608, %610, %cst_499 {dimension_numbers = #tpu.dot_dimension_numbers<[1], [0], [0], [1], [0, 0, 1, 1], [], []>} : vector<64x64xbf16>, vector<64x64xbf16>, vector<64x64xf32> -> vector<64x64xf32>
    %612 = arith.addf %605, %611 : vector<64x64xf32>
    %c1_500 = arith.constant 1 : index
    %c2_501 = arith.constant 2 : index
    %c0_502 = arith.constant 0 : index
    %613 = vector.load %arg26[%c1_500, %c2_501, %c0_502] : memref<10x10x64xf32, #tpu.memory_space<vmem>>, vector<8x8x64xf32>
    %614 = vector.shape_cast %613 : vector<8x8x64xf32> to vector<64x64xf32>
    %615 = arith.truncf %614 : vector<64x64xf32> to vector<64x64xbf16>
    %c2_503 = arith.constant 2 : index
    %c0_504 = arith.constant 0 : index
    %c0_505 = arith.constant 0 : index
    %c0_506 = arith.constant 0 : index
    %616 = vector.load %arg14[%c2_503, %c0_504, %c0_505, %c0_506] : memref<4x4x64x64xbf16, #tpu.memory_space<vmem>>, vector<1x1x64x64xbf16>
    %617 = vector.shape_cast %616 : vector<1x1x64x64xbf16> to vector<64x64xbf16>
    %cst_507 = arith.constant dense<0.000000e+00> : vector<64x64xf32>
    %618 = tpu.matmul %615, %617, %cst_507 {dimension_numbers = #tpu.dot_dimension_numbers<[1], [0], [0], [1], [0, 0, 1, 1], [], []>} : vector<64x64xbf16>, vector<64x64xbf16>, vector<64x64xf32> -> vector<64x64xf32>
    %619 = arith.addf %612, %618 : vector<64x64xf32>
    %c2_508 = arith.constant 2 : index
    %c1_509 = arith.constant 1 : index
    %c0_510 = arith.constant 0 : index
    %620 = vector.load %arg26[%c2_508, %c1_509, %c0_510] : memref<10x10x64xf32, #tpu.memory_space<vmem>>, vector<8x8x64xf32>
    %621 = vector.shape_cast %620 : vector<8x8x64xf32> to vector<64x64xf32>
    %622 = arith.truncf %621 : vector<64x64xf32> to vector<64x64xbf16>
    %c0_511 = arith.constant 0 : index
    %c2_512 = arith.constant 2 : index
    %c0_513 = arith.constant 0 : index
    %c0_514 = arith.constant 0 : index
    %623 = vector.load %arg14[%c0_511, %c2_512, %c0_513, %c0_514] : memref<4x4x64x64xbf16, #tpu.memory_space<vmem>>, vector<1x1x64x64xbf16>
    %624 = vector.shape_cast %623 : vector<1x1x64x64xbf16> to vector<64x64xbf16>
    %cst_515 = arith.constant dense<0.000000e+00> : vector<64x64xf32>
    %625 = tpu.matmul %622, %624, %cst_515 {dimension_numbers = #tpu.dot_dimension_numbers<[1], [0], [0], [1], [0, 0, 1, 1], [], []>} : vector<64x64xbf16>, vector<64x64xbf16>, vector<64x64xf32> -> vector<64x64xf32>
    %626 = arith.addf %619, %625 : vector<64x64xf32>
    %c2_516 = arith.constant 2 : index
    %c2_517 = arith.constant 2 : index
    %c0_518 = arith.constant 0 : index
    %627 = vector.load %arg26[%c2_516, %c2_517, %c0_518] : memref<10x10x64xf32, #tpu.memory_space<vmem>>, vector<8x8x64xf32>
    %628 = vector.shape_cast %627 : vector<8x8x64xf32> to vector<64x64xf32>
    %629 = arith.truncf %628 : vector<64x64xf32> to vector<64x64xbf16>
    %c0_519 = arith.constant 0 : index
    %c0_520 = arith.constant 0 : index
    %c0_521 = arith.constant 0 : index
    %c0_522 = arith.constant 0 : index
    %630 = vector.load %arg14[%c0_519, %c0_520, %c0_521, %c0_522] : memref<4x4x64x64xbf16, #tpu.memory_space<vmem>>, vector<1x1x64x64xbf16>
    %631 = vector.shape_cast %630 : vector<1x1x64x64xbf16> to vector<64x64xbf16>
    %cst_523 = arith.constant dense<0.000000e+00> : vector<64x64xf32>
    %632 = tpu.matmul %629, %631, %cst_523 {dimension_numbers = #tpu.dot_dimension_numbers<[1], [0], [0], [1], [0, 0, 1, 1], [], []>} : vector<64x64xbf16>, vector<64x64xbf16>, vector<64x64xf32> -> vector<64x64xf32>
    %633 = arith.addf %626, %632 : vector<64x64xf32>
    %634 = vector.broadcast %414 : vector<1x64xf32> to vector<64x64xf32>
    %635 = arith.addf %633, %634 : vector<64x64xf32>
    %636 = vector.shape_cast %635 : vector<64x64xf32> to vector<8x8x64xf32>
    %637 = vector.extract_strided_slice %604 {offsets = [0, 0, 0], sizes = [1, 8, 64], strides = [1, 1, 1]} : vector<8x8x64xf32> to vector<1x8x64xf32>
    %638 = vector.shape_cast %637 : vector<1x8x64xf32> to vector<8x64xf32>
    %cst_524 = arith.constant dense<0.000000e+00> : vector<16x64xf32>
    %639 = tpu.matmul %421, %638, %cst_524 {dimension_numbers = #tpu.dot_dimension_numbers<[1], [0], [0], [1], [0, 0, 1, 1], [], []>} : vector<16x8xf32>, vector<8x64xf32>, vector<16x64xf32> -> vector<16x64xf32>
    %640 = vector.extract_strided_slice %636 {offsets = [0, 0, 0], sizes = [1, 8, 64], strides = [1, 1, 1]} : vector<8x8x64xf32> to vector<1x8x64xf32>
    %641 = vector.shape_cast %640 : vector<1x8x64xf32> to vector<8x64xf32>
    %cst_525 = arith.constant dense<0.000000e+00> : vector<16x64xf32>
    %642 = tpu.matmul %428, %641, %cst_525 {dimension_numbers = #tpu.dot_dimension_numbers<[1], [0], [0], [1], [0, 0, 1, 1], [], []>} : vector<16x8xf32>, vector<8x64xf32>, vector<16x64xf32> -> vector<16x64xf32>
    %643 = arith.addf %639, %642 : vector<16x64xf32>
    %c2_526 = arith.constant 2 : index
    %c1_527 = arith.constant 1 : index
    %c0_528 = arith.constant 0 : index
    %644 = vector.load %arg27[%c2_526, %c1_527, %c0_528] : memref<18x18x64xf32, #tpu.memory_space<vmem>>, vector<1x16x64xf32>
    %645 = vector.shape_cast %644 : vector<1x16x64xf32> to vector<16x64xf32>
    %646 = vector.shape_cast %643 : vector<16x64xf32> to vector<1x16x64xf32>
    tpu.vector_store %arg27[%c2_526, %c1_527, %c0_528], %646 {strides = array<i32>} : memref<18x18x64xf32, #tpu.memory_space<vmem>>, vector<1x16x64xf32>,
    %647 = vector.extract_strided_slice %604 {offsets = [1, 0, 0], sizes = [1, 8, 64], strides = [1, 1, 1]} : vector<8x8x64xf32> to vector<1x8x64xf32>
    %648 = vector.shape_cast %647 : vector<1x8x64xf32> to vector<8x64xf32>
    %cst_529 = arith.constant dense<0.000000e+00> : vector<16x64xf32>
    %649 = tpu.matmul %421, %648, %cst_529 {dimension_numbers = #tpu.dot_dimension_numbers<[1], [0], [0], [1], [0, 0, 1, 1], [], []>} : vector<16x8xf32>, vector<8x64xf32>, vector<16x64xf32> -> vector<16x64xf32>
    %650 = vector.extract_strided_slice %636 {offsets = [1, 0, 0], sizes = [1, 8, 64], strides = [1, 1, 1]} : vector<8x8x64xf32> to vector<1x8x64xf32>
    %651 = vector.shape_cast %650 : vector<1x8x64xf32> to vector<8x64xf32>
    %cst_530 = arith.constant dense<0.000000e+00> : vector<16x64xf32>
    %652 = tpu.matmul %428, %651, %cst_530 {dimension_numbers = #tpu.dot_dimension_numbers<[1], [0], [0], [1], [0, 0, 1, 1], [], []>} : vector<16x8xf32>, vector<8x64xf32>, vector<16x64xf32> -> vector<16x64xf32>
    %653 = arith.addf %649, %652 : vector<16x64xf32>
    %c4_531 = arith.constant 4 : index
    %c1_532 = arith.constant 1 : index
    %c0_533 = arith.constant 0 : index
    %654 = vector.load %arg27[%c4_531, %c1_532, %c0_533] : memref<18x18x64xf32, #tpu.memory_space<vmem>>, vector<1x16x64xf32>
    %655 = vector.shape_cast %654 : vector<1x16x64xf32> to vector<16x64xf32>
    %656 = vector.shape_cast %653 : vector<16x64xf32> to vector<1x16x64xf32>
    tpu.vector_store %arg27[%c4_531, %c1_532, %c0_533], %656 {strides = array<i32>} : memref<18x18x64xf32, #tpu.memory_space<vmem>>, vector<1x16x64xf32>,
    %657 = vector.extract_strided_slice %604 {offsets = [2, 0, 0], sizes = [1, 8, 64], strides = [1, 1, 1]} : vector<8x8x64xf32> to vector<1x8x64xf32>
    %658 = vector.shape_cast %657 : vector<1x8x64xf32> to vector<8x64xf32>
    %cst_534 = arith.constant dense<0.000000e+00> : vector<16x64xf32>
    %659 = tpu.matmul %421, %658, %cst_534 {dimension_numbers = #tpu.dot_dimension_numbers<[1], [0], [0], [1], [0, 0, 1, 1], [], []>} : vector<16x8xf32>, vector<8x64xf32>, vector<16x64xf32> -> vector<16x64xf32>
    %660 = vector.extract_strided_slice %636 {offsets = [2, 0, 0], sizes = [1, 8, 64], strides = [1, 1, 1]} : vector<8x8x64xf32> to vector<1x8x64xf32>
    %661 = vector.shape_cast %660 : vector<1x8x64xf32> to vector<8x64xf32>
    %cst_535 = arith.constant dense<0.000000e+00> : vector<16x64xf32>
    %662 = tpu.matmul %428, %661, %cst_535 {dimension_numbers = #tpu.dot_dimension_numbers<[1], [0], [0], [1], [0, 0, 1, 1], [], []>} : vector<16x8xf32>, vector<8x64xf32>, vector<16x64xf32> -> vector<16x64xf32>
    %663 = arith.addf %659, %662 : vector<16x64xf32>
    %c6_536 = arith.constant 6 : index
    %c1_537 = arith.constant 1 : index
    %c0_538 = arith.constant 0 : index
    %664 = vector.load %arg27[%c6_536, %c1_537, %c0_538] : memref<18x18x64xf32, #tpu.memory_space<vmem>>, vector<1x16x64xf32>
    %665 = vector.shape_cast %664 : vector<1x16x64xf32> to vector<16x64xf32>
    %666 = vector.shape_cast %663 : vector<16x64xf32> to vector<1x16x64xf32>
    tpu.vector_store %arg27[%c6_536, %c1_537, %c0_538], %666 {strides = array<i32>} : memref<18x18x64xf32, #tpu.memory_space<vmem>>, vector<1x16x64xf32>,
    %667 = vector.extract_strided_slice %604 {offsets = [3, 0, 0], sizes = [1, 8, 64], strides = [1, 1, 1]} : vector<8x8x64xf32> to vector<1x8x64xf32>
    %668 = vector.shape_cast %667 : vector<1x8x64xf32> to vector<8x64xf32>
    %cst_539 = arith.constant dense<0.000000e+00> : vector<16x64xf32>
    %669 = tpu.matmul %421, %668, %cst_539 {dimension_numbers = #tpu.dot_dimension_numbers<[1], [0], [0], [1], [0, 0, 1, 1], [], []>} : vector<16x8xf32>, vector<8x64xf32>, vector<16x64xf32> -> vector<16x64xf32>
    %670 = vector.extract_strided_slice %636 {offsets = [3, 0, 0], sizes = [1, 8, 64], strides = [1, 1, 1]} : vector<8x8x64xf32> to vector<1x8x64xf32>
    %671 = vector.shape_cast %670 : vector<1x8x64xf32> to vector<8x64xf32>
    %cst_540 = arith.constant dense<0.000000e+00> : vector<16x64xf32>
    %672 = tpu.matmul %428, %671, %cst_540 {dimension_numbers = #tpu.dot_dimension_numbers<[1], [0], [0], [1], [0, 0, 1, 1], [], []>} : vector<16x8xf32>, vector<8x64xf32>, vector<16x64xf32> -> vector<16x64xf32>
    %673 = arith.addf %669, %672 : vector<16x64xf32>
    %c8_541 = arith.constant 8 : index
    %c1_542 = arith.constant 1 : index
    %c0_543 = arith.constant 0 : index
    %674 = vector.load %arg27[%c8_541, %c1_542, %c0_543] : memref<18x18x64xf32, #tpu.memory_space<vmem>>, vector<1x16x64xf32>
    %675 = vector.shape_cast %674 : vector<1x16x64xf32> to vector<16x64xf32>
    %676 = vector.shape_cast %673 : vector<16x64xf32> to vector<1x16x64xf32>
    tpu.vector_store %arg27[%c8_541, %c1_542, %c0_543], %676 {strides = array<i32>} : memref<18x18x64xf32, #tpu.memory_space<vmem>>, vector<1x16x64xf32>,
    %677 = vector.extract_strided_slice %604 {offsets = [4, 0, 0], sizes = [1, 8, 64], strides = [1, 1, 1]} : vector<8x8x64xf32> to vector<1x8x64xf32>
    %678 = vector.shape_cast %677 : vector<1x8x64xf32> to vector<8x64xf32>
    %cst_544 = arith.constant dense<0.000000e+00> : vector<16x64xf32>
    %679 = tpu.matmul %421, %678, %cst_544 {dimension_numbers = #tpu.dot_dimension_numbers<[1], [0], [0], [1], [0, 0, 1, 1], [], []>} : vector<16x8xf32>, vector<8x64xf32>, vector<16x64xf32> -> vector<16x64xf32>
    %680 = vector.extract_strided_slice %636 {offsets = [4, 0, 0], sizes = [1, 8, 64], strides = [1, 1, 1]} : vector<8x8x64xf32> to vector<1x8x64xf32>
    %681 = vector.shape_cast %680 : vector<1x8x64xf32> to vector<8x64xf32>
    %cst_545 = arith.constant dense<0.000000e+00> : vector<16x64xf32>
    %682 = tpu.matmul %428, %681, %cst_545 {dimension_numbers = #tpu.dot_dimension_numbers<[1], [0], [0], [1], [0, 0, 1, 1], [], []>} : vector<16x8xf32>, vector<8x64xf32>, vector<16x64xf32> -> vector<16x64xf32>
    %683 = arith.addf %679, %682 : vector<16x64xf32>
    %c10 = arith.constant 10 : index
    %c1_546 = arith.constant 1 : index
    %c0_547 = arith.constant 0 : index
    %684 = vector.load %arg27[%c10, %c1_546, %c0_547] : memref<18x18x64xf32, #tpu.memory_space<vmem>>, vector<1x16x64xf32>
    %685 = vector.shape_cast %684 : vector<1x16x64xf32> to vector<16x64xf32>
    %686 = vector.shape_cast %683 : vector<16x64xf32> to vector<1x16x64xf32>
    tpu.vector_store %arg27[%c10, %c1_546, %c0_547], %686 {strides = array<i32>} : memref<18x18x64xf32, #tpu.memory_space<vmem>>, vector<1x16x64xf32>,
    %687 = vector.extract_strided_slice %604 {offsets = [5, 0, 0], sizes = [1, 8, 64], strides = [1, 1, 1]} : vector<8x8x64xf32> to vector<1x8x64xf32>
    %688 = vector.shape_cast %687 : vector<1x8x64xf32> to vector<8x64xf32>
    %cst_548 = arith.constant dense<0.000000e+00> : vector<16x64xf32>
    %689 = tpu.matmul %421, %688, %cst_548 {dimension_numbers = #tpu.dot_dimension_numbers<[1], [0], [0], [1], [0, 0, 1, 1], [], []>} : vector<16x8xf32>, vector<8x64xf32>, vector<16x64xf32> -> vector<16x64xf32>
    %690 = vector.extract_strided_slice %636 {offsets = [5, 0, 0], sizes = [1, 8, 64], strides = [1, 1, 1]} : vector<8x8x64xf32> to vector<1x8x64xf32>
    %691 = vector.shape_cast %690 : vector<1x8x64xf32> to vector<8x64xf32>
    %cst_549 = arith.constant dense<0.000000e+00> : vector<16x64xf32>
    %692 = tpu.matmul %428, %691, %cst_549 {dimension_numbers = #tpu.dot_dimension_numbers<[1], [0], [0], [1], [0, 0, 1, 1], [], []>} : vector<16x8xf32>, vector<8x64xf32>, vector<16x64xf32> -> vector<16x64xf32>
    %693 = arith.addf %689, %692 : vector<16x64xf32>
    %c12 = arith.constant 12 : index
    %c1_550 = arith.constant 1 : index
    %c0_551 = arith.constant 0 : index
    %694 = vector.load %arg27[%c12, %c1_550, %c0_551] : memref<18x18x64xf32, #tpu.memory_space<vmem>>, vector<1x16x64xf32>
    %695 = vector.shape_cast %694 : vector<1x16x64xf32> to vector<16x64xf32>
    %696 = vector.shape_cast %693 : vector<16x64xf32> to vector<1x16x64xf32>
    tpu.vector_store %arg27[%c12, %c1_550, %c0_551], %696 {strides = array<i32>} : memref<18x18x64xf32, #tpu.memory_space<vmem>>, vector<1x16x64xf32>,
    %697 = vector.extract_strided_slice %604 {offsets = [6, 0, 0], sizes = [1, 8, 64], strides = [1, 1, 1]} : vector<8x8x64xf32> to vector<1x8x64xf32>
    %698 = vector.shape_cast %697 : vector<1x8x64xf32> to vector<8x64xf32>
    %cst_552 = arith.constant dense<0.000000e+00> : vector<16x64xf32>
    %699 = tpu.matmul %421, %698, %cst_552 {dimension_numbers = #tpu.dot_dimension_numbers<[1], [0], [0], [1], [0, 0, 1, 1], [], []>} : vector<16x8xf32>, vector<8x64xf32>, vector<16x64xf32> -> vector<16x64xf32>
    %700 = vector.extract_strided_slice %636 {offsets = [6, 0, 0], sizes = [1, 8, 64], strides = [1, 1, 1]} : vector<8x8x64xf32> to vector<1x8x64xf32>
    %701 = vector.shape_cast %700 : vector<1x8x64xf32> to vector<8x64xf32>
    %cst_553 = arith.constant dense<0.000000e+00> : vector<16x64xf32>
    %702 = tpu.matmul %428, %701, %cst_553 {dimension_numbers = #tpu.dot_dimension_numbers<[1], [0], [0], [1], [0, 0, 1, 1], [], []>} : vector<16x8xf32>, vector<8x64xf32>, vector<16x64xf32> -> vector<16x64xf32>
    %703 = arith.addf %699, %702 : vector<16x64xf32>
    %c14 = arith.constant 14 : index
    %c1_554 = arith.constant 1 : index
    %c0_555 = arith.constant 0 : index
    %704 = vector.load %arg27[%c14, %c1_554, %c0_555] : memref<18x18x64xf32, #tpu.memory_space<vmem>>, vector<1x16x64xf32>
    %705 = vector.shape_cast %704 : vector<1x16x64xf32> to vector<16x64xf32>
    %706 = vector.shape_cast %703 : vector<16x64xf32> to vector<1x16x64xf32>
    tpu.vector_store %arg27[%c14, %c1_554, %c0_555], %706 {strides = array<i32>} : memref<18x18x64xf32, #tpu.memory_space<vmem>>, vector<1x16x64xf32>,
    %707 = vector.extract_strided_slice %604 {offsets = [7, 0, 0], sizes = [1, 8, 64], strides = [1, 1, 1]} : vector<8x8x64xf32> to vector<1x8x64xf32>
    %708 = vector.shape_cast %707 : vector<1x8x64xf32> to vector<8x64xf32>
    %cst_556 = arith.constant dense<0.000000e+00> : vector<16x64xf32>
    %709 = tpu.matmul %421, %708, %cst_556 {dimension_numbers = #tpu.dot_dimension_numbers<[1], [0], [0], [1], [0, 0, 1, 1], [], []>} : vector<16x8xf32>, vector<8x64xf32>, vector<16x64xf32> -> vector<16x64xf32>
    %710 = vector.extract_strided_slice %636 {offsets = [7, 0, 0], sizes = [1, 8, 64], strides = [1, 1, 1]} : vector<8x8x64xf32> to vector<1x8x64xf32>
    %711 = vector.shape_cast %710 : vector<1x8x64xf32> to vector<8x64xf32>
    %cst_557 = arith.constant dense<0.000000e+00> : vector<16x64xf32>
    %712 = tpu.matmul %428, %711, %cst_557 {dimension_numbers = #tpu.dot_dimension_numbers<[1], [0], [0], [1], [0, 0, 1, 1], [], []>} : vector<16x8xf32>, vector<8x64xf32>, vector<16x64xf32> -> vector<16x64xf32>
    %713 = arith.addf %709, %712 : vector<16x64xf32>
    %c16 = arith.constant 16 : index
    %c1_558 = arith.constant 1 : index
    %c0_559 = arith.constant 0 : index
    %714 = vector.load %arg27[%c16, %c1_558, %c0_559] : memref<18x18x64xf32, #tpu.memory_space<vmem>>, vector<1x16x64xf32>
    %715 = vector.shape_cast %714 : vector<1x16x64xf32> to vector<16x64xf32>
    %716 = vector.shape_cast %713 : vector<16x64xf32> to vector<1x16x64xf32>
    tpu.vector_store %arg27[%c16, %c1_558, %c0_559], %716 {strides = array<i32>} : memref<18x18x64xf32, #tpu.memory_space<vmem>>, vector<1x16x64xf32>,
    %c0_560 = arith.constant 0 : index
    %c0_561 = arith.constant 0 : index
    %717 = vector.load %arg17[%c0_560, %c0_561] : memref<1x32xf32, #tpu.memory_space<vmem>>, vector<1x32xf32>
    %c0_562 = arith.constant 0 : index
    %c0_563 = arith.constant 0 : index
    %718 = vector.load %arg18[%c0_562, %c0_563] : memref<1x32xf32, #tpu.memory_space<vmem>>, vector<1x32xf32>
    %cst_564 = arith.constant 0.000000e+00 : f32
    %719 = vector.broadcast %cst_564 : f32 to vector<256x32xf32>
    %c0_565 = arith.constant 0 : index
    %c0_566 = arith.constant 0 : index
    %c0_567 = arith.constant 0 : index
    %720 = vector.load %arg27[%c0_565, %c0_566, %c0_567] : memref<18x18x64xf32, #tpu.memory_space<vmem>>, vector<16x16x64xf32>
    %721 = vector.shape_cast %720 : vector<16x16x64xf32> to vector<256x64xf32>
    %722 = arith.truncf %721 : vector<256x64xf32> to vector<256x64xbf16>
    %c0_568 = arith.constant 0 : index
    %c0_569 = arith.constant 0 : index
    %c0_570 = arith.constant 0 : index
    %723 = vector.load %arg16[%c0_568, %c0_569, %c0_570] : memref<9x64x32xbf16, #tpu.memory_space<vmem>>, vector<1x64x32xbf16>
    %724 = vector.shape_cast %723 : vector<1x64x32xbf16> to vector<64x32xbf16>
    %cst_571 = arith.constant dense<0.000000e+00> : vector<256x32xf32>
    %725 = tpu.matmul %722, %724, %cst_571 {dimension_numbers = #tpu.dot_dimension_numbers<[1], [0], [0], [1], [0, 0, 1, 1], [], []>} : vector<256x64xbf16>, vector<64x32xbf16>, vector<256x32xf32> -> vector<256x32xf32>
    %726 = arith.addf %719, %725 : vector<256x32xf32>
    %c0_572 = arith.constant 0 : index
    %c1_573 = arith.constant 1 : index
    %c0_574 = arith.constant 0 : index
    %727 = vector.load %arg27[%c0_572, %c1_573, %c0_574] : memref<18x18x64xf32, #tpu.memory_space<vmem>>, vector<16x16x64xf32>
    %728 = vector.shape_cast %727 : vector<16x16x64xf32> to vector<256x64xf32>
    %729 = arith.truncf %728 : vector<256x64xf32> to vector<256x64xbf16>
    %c1_575 = arith.constant 1 : index
    %c0_576 = arith.constant 0 : index
    %c0_577 = arith.constant 0 : index
    %730 = vector.load %arg16[%c1_575, %c0_576, %c0_577] : memref<9x64x32xbf16, #tpu.memory_space<vmem>>, vector<1x64x32xbf16>
    %731 = vector.shape_cast %730 : vector<1x64x32xbf16> to vector<64x32xbf16>
    %cst_578 = arith.constant dense<0.000000e+00> : vector<256x32xf32>
    %732 = tpu.matmul %729, %731, %cst_578 {dimension_numbers = #tpu.dot_dimension_numbers<[1], [0], [0], [1], [0, 0, 1, 1], [], []>} : vector<256x64xbf16>, vector<64x32xbf16>, vector<256x32xf32> -> vector<256x32xf32>
    %733 = arith.addf %726, %732 : vector<256x32xf32>
    %c0_579 = arith.constant 0 : index
    %c2_580 = arith.constant 2 : index
    %c0_581 = arith.constant 0 : index
    %734 = vector.load %arg27[%c0_579, %c2_580, %c0_581] : memref<18x18x64xf32, #tpu.memory_space<vmem>>, vector<16x16x64xf32>
    %735 = vector.shape_cast %734 : vector<16x16x64xf32> to vector<256x64xf32>
    %736 = arith.truncf %735 : vector<256x64xf32> to vector<256x64xbf16>
    %c2_582 = arith.constant 2 : index
    %c0_583 = arith.constant 0 : index
    %c0_584 = arith.constant 0 : index
    %737 = vector.load %arg16[%c2_582, %c0_583, %c0_584] : memref<9x64x32xbf16, #tpu.memory_space<vmem>>, vector<1x64x32xbf16>
    %738 = vector.shape_cast %737 : vector<1x64x32xbf16> to vector<64x32xbf16>
    %cst_585 = arith.constant dense<0.000000e+00> : vector<256x32xf32>
    %739 = tpu.matmul %736, %738, %cst_585 {dimension_numbers = #tpu.dot_dimension_numbers<[1], [0], [0], [1], [0, 0, 1, 1], [], []>} : vector<256x64xbf16>, vector<64x32xbf16>, vector<256x32xf32> -> vector<256x32xf32>
    %740 = arith.addf %733, %739 : vector<256x32xf32>
    %c1_586 = arith.constant 1 : index
    %c0_587 = arith.constant 0 : index
    %c0_588 = arith.constant 0 : index
    %741 = vector.load %arg27[%c1_586, %c0_587, %c0_588] : memref<18x18x64xf32, #tpu.memory_space<vmem>>, vector<16x16x64xf32>
    %742 = vector.shape_cast %741 : vector<16x16x64xf32> to vector<256x64xf32>
    %743 = arith.truncf %742 : vector<256x64xf32> to vector<256x64xbf16>
    %c3_589 = arith.constant 3 : index
    %c0_590 = arith.constant 0 : index
    %c0_591 = arith.constant 0 : index
    %744 = vector.load %arg16[%c3_589, %c0_590, %c0_591] : memref<9x64x32xbf16, #tpu.memory_space<vmem>>, vector<1x64x32xbf16>
    %745 = vector.shape_cast %744 : vector<1x64x32xbf16> to vector<64x32xbf16>
    %cst_592 = arith.constant dense<0.000000e+00> : vector<256x32xf32>
    %746 = tpu.matmul %743, %745, %cst_592 {dimension_numbers = #tpu.dot_dimension_numbers<[1], [0], [0], [1], [0, 0, 1, 1], [], []>} : vector<256x64xbf16>, vector<64x32xbf16>, vector<256x32xf32> -> vector<256x32xf32>
    %747 = arith.addf %740, %746 : vector<256x32xf32>
    %c1_593 = arith.constant 1 : index
    %c1_594 = arith.constant 1 : index
    %c0_595 = arith.constant 0 : index
    %748 = vector.load %arg27[%c1_593, %c1_594, %c0_595] : memref<18x18x64xf32, #tpu.memory_space<vmem>>, vector<16x16x64xf32>
    %749 = vector.shape_cast %748 : vector<16x16x64xf32> to vector<256x64xf32>
    %750 = arith.truncf %749 : vector<256x64xf32> to vector<256x64xbf16>
    %c4_596 = arith.constant 4 : index
    %c0_597 = arith.constant 0 : index
    %c0_598 = arith.constant 0 : index
    %751 = vector.load %arg16[%c4_596, %c0_597, %c0_598] : memref<9x64x32xbf16, #tpu.memory_space<vmem>>, vector<1x64x32xbf16>
    %752 = vector.shape_cast %751 : vector<1x64x32xbf16> to vector<64x32xbf16>
    %cst_599 = arith.constant dense<0.000000e+00> : vector<256x32xf32>
    %753 = tpu.matmul %750, %752, %cst_599 {dimension_numbers = #tpu.dot_dimension_numbers<[1], [0], [0], [1], [0, 0, 1, 1], [], []>} : vector<256x64xbf16>, vector<64x32xbf16>, vector<256x32xf32> -> vector<256x32xf32>
    %754 = arith.addf %747, %753 : vector<256x32xf32>
    %c1_600 = arith.constant 1 : index
    %c2_601 = arith.constant 2 : index
    %c0_602 = arith.constant 0 : index
    %755 = vector.load %arg27[%c1_600, %c2_601, %c0_602] : memref<18x18x64xf32, #tpu.memory_space<vmem>>, vector<16x16x64xf32>
    %756 = vector.shape_cast %755 : vector<16x16x64xf32> to vector<256x64xf32>
    %757 = arith.truncf %756 : vector<256x64xf32> to vector<256x64xbf16>
    %c5_603 = arith.constant 5 : index
    %c0_604 = arith.constant 0 : index
    %c0_605 = arith.constant 0 : index
    %758 = vector.load %arg16[%c5_603, %c0_604, %c0_605] : memref<9x64x32xbf16, #tpu.memory_space<vmem>>, vector<1x64x32xbf16>
    %759 = vector.shape_cast %758 : vector<1x64x32xbf16> to vector<64x32xbf16>
    %cst_606 = arith.constant dense<0.000000e+00> : vector<256x32xf32>
    %760 = tpu.matmul %757, %759, %cst_606 {dimension_numbers = #tpu.dot_dimension_numbers<[1], [0], [0], [1], [0, 0, 1, 1], [], []>} : vector<256x64xbf16>, vector<64x32xbf16>, vector<256x32xf32> -> vector<256x32xf32>
    %761 = arith.addf %754, %760 : vector<256x32xf32>
    %c2_607 = arith.constant 2 : index
    %c0_608 = arith.constant 0 : index
    %c0_609 = arith.constant 0 : index
    %762 = vector.load %arg27[%c2_607, %c0_608, %c0_609] : memref<18x18x64xf32, #tpu.memory_space<vmem>>, vector<16x16x64xf32>
    %763 = vector.shape_cast %762 : vector<16x16x64xf32> to vector<256x64xf32>
    %764 = arith.truncf %763 : vector<256x64xf32> to vector<256x64xbf16>
    %c6_610 = arith.constant 6 : index
    %c0_611 = arith.constant 0 : index
    %c0_612 = arith.constant 0 : index
    %765 = vector.load %arg16[%c6_610, %c0_611, %c0_612] : memref<9x64x32xbf16, #tpu.memory_space<vmem>>, vector<1x64x32xbf16>
    %766 = vector.shape_cast %765 : vector<1x64x32xbf16> to vector<64x32xbf16>
    %cst_613 = arith.constant dense<0.000000e+00> : vector<256x32xf32>
    %767 = tpu.matmul %764, %766, %cst_613 {dimension_numbers = #tpu.dot_dimension_numbers<[1], [0], [0], [1], [0, 0, 1, 1], [], []>} : vector<256x64xbf16>, vector<64x32xbf16>, vector<256x32xf32> -> vector<256x32xf32>
    %768 = arith.addf %761, %767 : vector<256x32xf32>
    %c2_614 = arith.constant 2 : index
    %c1_615 = arith.constant 1 : index
    %c0_616 = arith.constant 0 : index
    %769 = vector.load %arg27[%c2_614, %c1_615, %c0_616] : memref<18x18x64xf32, #tpu.memory_space<vmem>>, vector<16x16x64xf32>
    %770 = vector.shape_cast %769 : vector<16x16x64xf32> to vector<256x64xf32>
    %771 = arith.truncf %770 : vector<256x64xf32> to vector<256x64xbf16>
    %c7_617 = arith.constant 7 : index
    %c0_618 = arith.constant 0 : index
    %c0_619 = arith.constant 0 : index
    %772 = vector.load %arg16[%c7_617, %c0_618, %c0_619] : memref<9x64x32xbf16, #tpu.memory_space<vmem>>, vector<1x64x32xbf16>
    %773 = vector.shape_cast %772 : vector<1x64x32xbf16> to vector<64x32xbf16>
    %cst_620 = arith.constant dense<0.000000e+00> : vector<256x32xf32>
    %774 = tpu.matmul %771, %773, %cst_620 {dimension_numbers = #tpu.dot_dimension_numbers<[1], [0], [0], [1], [0, 0, 1, 1], [], []>} : vector<256x64xbf16>, vector<64x32xbf16>, vector<256x32xf32> -> vector<256x32xf32>
    %775 = arith.addf %768, %774 : vector<256x32xf32>
    %c2_621 = arith.constant 2 : index
    %c2_622 = arith.constant 2 : index
    %c0_623 = arith.constant 0 : index
    %776 = vector.load %arg27[%c2_621, %c2_622, %c0_623] : memref<18x18x64xf32, #tpu.memory_space<vmem>>, vector<16x16x64xf32>
    %777 = vector.shape_cast %776 : vector<16x16x64xf32> to vector<256x64xf32>
    %778 = arith.truncf %777 : vector<256x64xf32> to vector<256x64xbf16>
    %c8_624 = arith.constant 8 : index
    %c0_625 = arith.constant 0 : index
    %c0_626 = arith.constant 0 : index
    %779 = vector.load %arg16[%c8_624, %c0_625, %c0_626] : memref<9x64x32xbf16, #tpu.memory_space<vmem>>, vector<1x64x32xbf16>
    %780 = vector.shape_cast %779 : vector<1x64x32xbf16> to vector<64x32xbf16>
    %cst_627 = arith.constant dense<0.000000e+00> : vector<256x32xf32>
    %781 = tpu.matmul %778, %780, %cst_627 {dimension_numbers = #tpu.dot_dimension_numbers<[1], [0], [0], [1], [0, 0, 1, 1], [], []>} : vector<256x64xbf16>, vector<64x32xbf16>, vector<256x32xf32> -> vector<256x32xf32>
    %782 = arith.addf %775, %781 : vector<256x32xf32>
    %783 = vector.broadcast %717 : vector<1x32xf32> to vector<256x32xf32>
    %784 = arith.mulf %782, %783 : vector<256x32xf32>
    %785 = vector.broadcast %718 : vector<1x32xf32> to vector<256x32xf32>
    %786 = arith.addf %784, %785 : vector<256x32xf32>
    %cst_628 = arith.constant 0.000000e+00 : f32
    %787 = vector.broadcast %cst_628 : f32 to vector<256x32xf32>
    %788 = arith.maximumf %786, %787 : vector<256x32xf32>
    %789 = vector.shape_cast %788 : vector<256x32xf32> to vector<16x16x32xf32>
    %c1_629 = arith.constant 1 : index
    %c1_630 = arith.constant 1 : index
    %c0_631 = arith.constant 0 : index
    %790 = vector.load %arg28[%c1_629, %c1_630, %c0_631] : memref<18x18x32xf32, #tpu.memory_space<vmem>>, vector<16x16x32xf32>
    tpu.vector_store %arg28[%c1_629, %c1_630, %c0_631], %789 {strides = array<i32>} : memref<18x18x32xf32, #tpu.memory_space<vmem>>, vector<16x16x32xf32>,
    %c0_632 = arith.constant 0 : index
    %c0_633 = arith.constant 0 : index
    %791 = vector.load %arg20[%c0_632, %c0_633] : memref<1x4xf32, #tpu.memory_space<vmem>>, vector<1x4xf32>
    %cst_634 = arith.constant 0.000000e+00 : f32
    %792 = vector.broadcast %cst_634 : f32 to vector<256x4xf32>
    %c0_635 = arith.constant 0 : index
    %c0_636 = arith.constant 0 : index
    %c0_637 = arith.constant 0 : index
    %793 = vector.load %arg28[%c0_635, %c0_636, %c0_637] : memref<18x18x32xf32, #tpu.memory_space<vmem>>, vector<16x16x32xf32>
    %794 = vector.shape_cast %793 : vector<16x16x32xf32> to vector<256x32xf32>
    %795 = arith.truncf %794 : vector<256x32xf32> to vector<256x32xbf16>
    %c0_638 = arith.constant 0 : index
    %c0_639 = arith.constant 0 : index
    %c0_640 = arith.constant 0 : index
    %796 = vector.load %arg19[%c0_638, %c0_639, %c0_640] : memref<9x32x4xbf16, #tpu.memory_space<vmem>>, vector<1x32x4xbf16>
    %797 = vector.shape_cast %796 : vector<1x32x4xbf16> to vector<32x4xbf16>
    %cst_641 = arith.constant dense<0.000000e+00> : vector<256x4xf32>
    %798 = tpu.matmul %795, %797, %cst_641 {dimension_numbers = #tpu.dot_dimension_numbers<[1], [0], [0], [1], [0, 0, 1, 1], [], []>} : vector<256x32xbf16>, vector<32x4xbf16>, vector<256x4xf32> -> vector<256x4xf32>
    %799 = arith.addf %792, %798 : vector<256x4xf32>
    %c0_642 = arith.constant 0 : index
    %c1_643 = arith.constant 1 : index
    %c0_644 = arith.constant 0 : index
    %800 = vector.load %arg28[%c0_642, %c1_643, %c0_644] : memref<18x18x32xf32, #tpu.memory_space<vmem>>, vector<16x16x32xf32>
    %801 = vector.shape_cast %800 : vector<16x16x32xf32> to vector<256x32xf32>
    %802 = arith.truncf %801 : vector<256x32xf32> to vector<256x32xbf16>
    %c1_645 = arith.constant 1 : index
    %c0_646 = arith.constant 0 : index
    %c0_647 = arith.constant 0 : index
    %803 = vector.load %arg19[%c1_645, %c0_646, %c0_647] : memref<9x32x4xbf16, #tpu.memory_space<vmem>>, vector<1x32x4xbf16>
    %804 = vector.shape_cast %803 : vector<1x32x4xbf16> to vector<32x4xbf16>
    %cst_648 = arith.constant dense<0.000000e+00> : vector<256x4xf32>
    %805 = tpu.matmul %802, %804, %cst_648 {dimension_numbers = #tpu.dot_dimension_numbers<[1], [0], [0], [1], [0, 0, 1, 1], [], []>} : vector<256x32xbf16>, vector<32x4xbf16>, vector<256x4xf32> -> vector<256x4xf32>
    %806 = arith.addf %799, %805 : vector<256x4xf32>
    %c0_649 = arith.constant 0 : index
    %c2_650 = arith.constant 2 : index
    %c0_651 = arith.constant 0 : index
    %807 = vector.load %arg28[%c0_649, %c2_650, %c0_651] : memref<18x18x32xf32, #tpu.memory_space<vmem>>, vector<16x16x32xf32>
    %808 = vector.shape_cast %807 : vector<16x16x32xf32> to vector<256x32xf32>
    %809 = arith.truncf %808 : vector<256x32xf32> to vector<256x32xbf16>
    %c2_652 = arith.constant 2 : index
    %c0_653 = arith.constant 0 : index
    %c0_654 = arith.constant 0 : index
    %810 = vector.load %arg19[%c2_652, %c0_653, %c0_654] : memref<9x32x4xbf16, #tpu.memory_space<vmem>>, vector<1x32x4xbf16>
    %811 = vector.shape_cast %810 : vector<1x32x4xbf16> to vector<32x4xbf16>
    %cst_655 = arith.constant dense<0.000000e+00> : vector<256x4xf32>
    %812 = tpu.matmul %809, %811, %cst_655 {dimension_numbers = #tpu.dot_dimension_numbers<[1], [0], [0], [1], [0, 0, 1, 1], [], []>} : vector<256x32xbf16>, vector<32x4xbf16>, vector<256x4xf32> -> vector<256x4xf32>
    %813 = arith.addf %806, %812 : vector<256x4xf32>
    %c1_656 = arith.constant 1 : index
    %c0_657 = arith.constant 0 : index
    %c0_658 = arith.constant 0 : index
    %814 = vector.load %arg28[%c1_656, %c0_657, %c0_658] : memref<18x18x32xf32, #tpu.memory_space<vmem>>, vector<16x16x32xf32>
    %815 = vector.shape_cast %814 : vector<16x16x32xf32> to vector<256x32xf32>
    %816 = arith.truncf %815 : vector<256x32xf32> to vector<256x32xbf16>
    %c3_659 = arith.constant 3 : index
    %c0_660 = arith.constant 0 : index
    %c0_661 = arith.constant 0 : index
    %817 = vector.load %arg19[%c3_659, %c0_660, %c0_661] : memref<9x32x4xbf16, #tpu.memory_space<vmem>>, vector<1x32x4xbf16>
    %818 = vector.shape_cast %817 : vector<1x32x4xbf16> to vector<32x4xbf16>
    %cst_662 = arith.constant dense<0.000000e+00> : vector<256x4xf32>
    %819 = tpu.matmul %816, %818, %cst_662 {dimension_numbers = #tpu.dot_dimension_numbers<[1], [0], [0], [1], [0, 0, 1, 1], [], []>} : vector<256x32xbf16>, vector<32x4xbf16>, vector<256x4xf32> -> vector<256x4xf32>
    %820 = arith.addf %813, %819 : vector<256x4xf32>
    %c1_663 = arith.constant 1 : index
    %c1_664 = arith.constant 1 : index
    %c0_665 = arith.constant 0 : index
    %821 = vector.load %arg28[%c1_663, %c1_664, %c0_665] : memref<18x18x32xf32, #tpu.memory_space<vmem>>, vector<16x16x32xf32>
    %822 = vector.shape_cast %821 : vector<16x16x32xf32> to vector<256x32xf32>
    %823 = arith.truncf %822 : vector<256x32xf32> to vector<256x32xbf16>
    %c4_666 = arith.constant 4 : index
    %c0_667 = arith.constant 0 : index
    %c0_668 = arith.constant 0 : index
    %824 = vector.load %arg19[%c4_666, %c0_667, %c0_668] : memref<9x32x4xbf16, #tpu.memory_space<vmem>>, vector<1x32x4xbf16>
    %825 = vector.shape_cast %824 : vector<1x32x4xbf16> to vector<32x4xbf16>
    %cst_669 = arith.constant dense<0.000000e+00> : vector<256x4xf32>
    %826 = tpu.matmul %823, %825, %cst_669 {dimension_numbers = #tpu.dot_dimension_numbers<[1], [0], [0], [1], [0, 0, 1, 1], [], []>} : vector<256x32xbf16>, vector<32x4xbf16>, vector<256x4xf32> -> vector<256x4xf32>
    %827 = arith.addf %820, %826 : vector<256x4xf32>
    %c1_670 = arith.constant 1 : index
    %c2_671 = arith.constant 2 : index
    %c0_672 = arith.constant 0 : index
    %828 = vector.load %arg28[%c1_670, %c2_671, %c0_672] : memref<18x18x32xf32, #tpu.memory_space<vmem>>, vector<16x16x32xf32>
    %829 = vector.shape_cast %828 : vector<16x16x32xf32> to vector<256x32xf32>
    %830 = arith.truncf %829 : vector<256x32xf32> to vector<256x32xbf16>
    %c5_673 = arith.constant 5 : index
    %c0_674 = arith.constant 0 : index
    %c0_675 = arith.constant 0 : index
    %831 = vector.load %arg19[%c5_673, %c0_674, %c0_675] : memref<9x32x4xbf16, #tpu.memory_space<vmem>>, vector<1x32x4xbf16>
    %832 = vector.shape_cast %831 : vector<1x32x4xbf16> to vector<32x4xbf16>
    %cst_676 = arith.constant dense<0.000000e+00> : vector<256x4xf32>
    %833 = tpu.matmul %830, %832, %cst_676 {dimension_numbers = #tpu.dot_dimension_numbers<[1], [0], [0], [1], [0, 0, 1, 1], [], []>} : vector<256x32xbf16>, vector<32x4xbf16>, vector<256x4xf32> -> vector<256x4xf32>
    %834 = arith.addf %827, %833 : vector<256x4xf32>
    %c2_677 = arith.constant 2 : index
    %c0_678 = arith.constant 0 : index
    %c0_679 = arith.constant 0 : index
    %835 = vector.load %arg28[%c2_677, %c0_678, %c0_679] : memref<18x18x32xf32, #tpu.memory_space<vmem>>, vector<16x16x32xf32>
    %836 = vector.shape_cast %835 : vector<16x16x32xf32> to vector<256x32xf32>
    %837 = arith.truncf %836 : vector<256x32xf32> to vector<256x32xbf16>
    %c6_680 = arith.constant 6 : index
    %c0_681 = arith.constant 0 : index
    %c0_682 = arith.constant 0 : index
    %838 = vector.load %arg19[%c6_680, %c0_681, %c0_682] : memref<9x32x4xbf16, #tpu.memory_space<vmem>>, vector<1x32x4xbf16>
    %839 = vector.shape_cast %838 : vector<1x32x4xbf16> to vector<32x4xbf16>
    %cst_683 = arith.constant dense<0.000000e+00> : vector<256x4xf32>
    %840 = tpu.matmul %837, %839, %cst_683 {dimension_numbers = #tpu.dot_dimension_numbers<[1], [0], [0], [1], [0, 0, 1, 1], [], []>} : vector<256x32xbf16>, vector<32x4xbf16>, vector<256x4xf32> -> vector<256x4xf32>
    %841 = arith.addf %834, %840 : vector<256x4xf32>
    %c2_684 = arith.constant 2 : index
    %c1_685 = arith.constant 1 : index
    %c0_686 = arith.constant 0 : index
    %842 = vector.load %arg28[%c2_684, %c1_685, %c0_686] : memref<18x18x32xf32, #tpu.memory_space<vmem>>, vector<16x16x32xf32>
    %843 = vector.shape_cast %842 : vector<16x16x32xf32> to vector<256x32xf32>
    %844 = arith.truncf %843 : vector<256x32xf32> to vector<256x32xbf16>
    %c7_687 = arith.constant 7 : index
    %c0_688 = arith.constant 0 : index
    %c0_689 = arith.constant 0 : index
    %845 = vector.load %arg19[%c7_687, %c0_688, %c0_689] : memref<9x32x4xbf16, #tpu.memory_space<vmem>>, vector<1x32x4xbf16>
    %846 = vector.shape_cast %845 : vector<1x32x4xbf16> to vector<32x4xbf16>
    %cst_690 = arith.constant dense<0.000000e+00> : vector<256x4xf32>
    %847 = tpu.matmul %844, %846, %cst_690 {dimension_numbers = #tpu.dot_dimension_numbers<[1], [0], [0], [1], [0, 0, 1, 1], [], []>} : vector<256x32xbf16>, vector<32x4xbf16>, vector<256x4xf32> -> vector<256x4xf32>
    %848 = arith.addf %841, %847 : vector<256x4xf32>
    %c2_691 = arith.constant 2 : index
    %c2_692 = arith.constant 2 : index
    %c0_693 = arith.constant 0 : index
    %849 = vector.load %arg28[%c2_691, %c2_692, %c0_693] : memref<18x18x32xf32, #tpu.memory_space<vmem>>, vector<16x16x32xf32>
    %850 = vector.shape_cast %849 : vector<16x16x32xf32> to vector<256x32xf32>
    %851 = arith.truncf %850 : vector<256x32xf32> to vector<256x32xbf16>
    %c8_694 = arith.constant 8 : index
    %c0_695 = arith.constant 0 : index
    %c0_696 = arith.constant 0 : index
    %852 = vector.load %arg19[%c8_694, %c0_695, %c0_696] : memref<9x32x4xbf16, #tpu.memory_space<vmem>>, vector<1x32x4xbf16>
    %853 = vector.shape_cast %852 : vector<1x32x4xbf16> to vector<32x4xbf16>
    %cst_697 = arith.constant dense<0.000000e+00> : vector<256x4xf32>
    %854 = tpu.matmul %851, %853, %cst_697 {dimension_numbers = #tpu.dot_dimension_numbers<[1], [0], [0], [1], [0, 0, 1, 1], [], []>} : vector<256x32xbf16>, vector<32x4xbf16>, vector<256x4xf32> -> vector<256x4xf32>
    %855 = arith.addf %848, %854 : vector<256x4xf32>
    %856 = vector.broadcast %791 : vector<1x4xf32> to vector<256x4xf32>
    %857 = arith.addf %855, %856 : vector<256x4xf32>
    %858 = vector.shape_cast %857 : vector<256x4xf32> to vector<16x16x4xf32>
    %c0_698 = arith.constant 0 : index
    %c0_699 = arith.constant 0 : index
    %c0_700 = arith.constant 0 : index
    %c0_701 = arith.constant 0 : index
    %859 = vector.load %arg21[%c0_698, %c0_699, %c0_700, %c0_701] : memref<1x16x16x4xf32, #tpu.memory_space<vmem>>, vector<1x16x16x4xf32>
    %860 = vector.shape_cast %859 : vector<1x16x16x4xf32> to vector<16x16x4xf32>
    %861 = vector.shape_cast %858 : vector<16x16x4xf32> to vector<1x16x16x4xf32>
    tpu.vector_store %arg21[%c0_698, %c0_699, %c0_700, %c0_701], %861 {strides = array<i32>} : memref<1x16x16x4xf32, #tpu.memory_space<vmem>>, vector<1x16x16x4xf32>,
    return
  }
  func.func @transform_0(%arg0: i32) -> (i32, i32, i32, i32) {
    %c0_i32 = arith.constant 0 : i32
    %c0_i32_0 = arith.constant 0 : i32
    %c0_i32_1 = arith.constant 0 : i32
    %c0_i32_2 = arith.constant 0 : i32
    return %arg0, %c0_i32, %c0_i32_0, %c0_i32_1 : i32, i32, i32, i32
  }
  func.func @transform_1(%arg0: i32) -> (i32, i32, i32) {
    %c0_i32 = arith.constant 0 : i32
    %c0_i32_0 = arith.constant 0 : i32
    %c0_i32_1 = arith.constant 0 : i32
    %c0_i32_2 = arith.constant 0 : i32
    return %c0_i32, %c0_i32_0, %c0_i32_1 : i32, i32, i32
  }
  func.func @transform_2(%arg0: i32) -> (i32, i32) {
    %c0_i32 = arith.constant 0 : i32
    %c0_i32_0 = arith.constant 0 : i32
    %c0_i32_1 = arith.constant 0 : i32
    return %c0_i32, %c0_i32_0 : i32, i32
  }
  func.func @transform_3(%arg0: i32) -> (i32, i32) {
    %c0_i32 = arith.constant 0 : i32
    %c0_i32_0 = arith.constant 0 : i32
    %c0_i32_1 = arith.constant 0 : i32
    return %c0_i32, %c0_i32_0 : i32, i32
  }
  func.func @transform_4(%arg0: i32) -> (i32, i32, i32) {
    %c0_i32 = arith.constant 0 : i32
    %c0_i32_0 = arith.constant 0 : i32
    %c0_i32_1 = arith.constant 0 : i32
    %c0_i32_2 = arith.constant 0 : i32
    return %c0_i32, %c0_i32_0, %c0_i32_1 : i32, i32, i32
  }
  func.func @transform_5(%arg0: i32) -> (i32, i32) {
    %c0_i32 = arith.constant 0 : i32
    %c0_i32_0 = arith.constant 0 : i32
    %c0_i32_1 = arith.constant 0 : i32
    return %c0_i32, %c0_i32_0 : i32, i32
  }
  func.func @transform_6(%arg0: i32) -> (i32, i32) {
    %c0_i32 = arith.constant 0 : i32
    %c0_i32_0 = arith.constant 0 : i32
    %c0_i32_1 = arith.constant 0 : i32
    return %c0_i32, %c0_i32_0 : i32, i32
  }
  func.func @transform_7(%arg0: i32) -> (i32, i32, i32) {
    %c0_i32 = arith.constant 0 : i32
    %c0_i32_0 = arith.constant 0 : i32
    %c0_i32_1 = arith.constant 0 : i32
    %c0_i32_2 = arith.constant 0 : i32
    return %c0_i32, %c0_i32_0, %c0_i32_1 : i32, i32, i32
  }
  func.func @transform_8(%arg0: i32) -> (i32, i32) {
    %c0_i32 = arith.constant 0 : i32
    %c0_i32_0 = arith.constant 0 : i32
    %c0_i32_1 = arith.constant 0 : i32
    return %c0_i32, %c0_i32_0 : i32, i32
  }
  func.func @transform_9(%arg0: i32) -> (i32, i32) {
    %c0_i32 = arith.constant 0 : i32
    %c0_i32_0 = arith.constant 0 : i32
    %c0_i32_1 = arith.constant 0 : i32
    return %c0_i32, %c0_i32_0 : i32, i32
  }
  func.func @transform_10(%arg0: i32) -> (i32, i32, i32) {
    %c0_i32 = arith.constant 0 : i32
    %c0_i32_0 = arith.constant 0 : i32
    %c0_i32_1 = arith.constant 0 : i32
    %c0_i32_2 = arith.constant 0 : i32
    return %c0_i32, %c0_i32_0, %c0_i32_1 : i32, i32, i32
  }
  func.func @transform_11(%arg0: i32) -> (i32, i32) {
    %c0_i32 = arith.constant 0 : i32
    %c0_i32_0 = arith.constant 0 : i32
    %c0_i32_1 = arith.constant 0 : i32
    return %c0_i32, %c0_i32_0 : i32, i32
  }
  func.func @transform_12(%arg0: i32) -> (i32, i32) {
    %c0_i32 = arith.constant 0 : i32
    %c0_i32_0 = arith.constant 0 : i32
    %c0_i32_1 = arith.constant 0 : i32
    return %c0_i32, %c0_i32_0 : i32, i32
  }
  func.func @transform_13(%arg0: i32) -> (i32, i32, i32, i32) {
    %c0_i32 = arith.constant 0 : i32
    %c0_i32_0 = arith.constant 0 : i32
    %c0_i32_1 = arith.constant 0 : i32
    %c0_i32_2 = arith.constant 0 : i32
    %c0_i32_3 = arith.constant 0 : i32
    return %c0_i32, %c0_i32_0, %c0_i32_1, %c0_i32_2 : i32, i32, i32, i32
  }
  func.func @transform_14(%arg0: i32) -> (i32, i32) {
    %c0_i32 = arith.constant 0 : i32
    %c0_i32_0 = arith.constant 0 : i32
    %c0_i32_1 = arith.constant 0 : i32
    return %c0_i32, %c0_i32_0 : i32, i32
  }
  func.func @transform_15(%arg0: i32) -> (i32, i32, i32) {
    %c0_i32 = arith.constant 0 : i32
    %c0_i32_0 = arith.constant 0 : i32
    %c0_i32_1 = arith.constant 0 : i32
    %c0_i32_2 = arith.constant 0 : i32
    return %c0_i32, %c0_i32_0, %c0_i32_1 : i32, i32, i32
  }
  func.func @transform_16(%arg0: i32) -> (i32, i32) {
    %c0_i32 = arith.constant 0 : i32
    %c0_i32_0 = arith.constant 0 : i32
    %c0_i32_1 = arith.constant 0 : i32
    return %c0_i32, %c0_i32_0 : i32, i32
  }
  func.func @transform_17(%arg0: i32) -> (i32, i32) {
    %c0_i32 = arith.constant 0 : i32
    %c0_i32_0 = arith.constant 0 : i32
    %c0_i32_1 = arith.constant 0 : i32
    return %c0_i32, %c0_i32_0 : i32, i32
  }
  func.func @transform_18(%arg0: i32) -> (i32, i32, i32) {
    %c0_i32 = arith.constant 0 : i32
    %c0_i32_0 = arith.constant 0 : i32
    %c0_i32_1 = arith.constant 0 : i32
    %c0_i32_2 = arith.constant 0 : i32
    return %c0_i32, %c0_i32_0, %c0_i32_1 : i32, i32, i32
  }
  func.func @transform_19(%arg0: i32) -> (i32, i32) {
    %c0_i32 = arith.constant 0 : i32
    %c0_i32_0 = arith.constant 0 : i32
    %c0_i32_1 = arith.constant 0 : i32
    return %c0_i32, %c0_i32_0 : i32, i32
  }
  func.func @transform_20(%arg0: i32) -> (i32, i32, i32, i32) {
    %c0_i32 = arith.constant 0 : i32
    %c0_i32_0 = arith.constant 0 : i32
    %c0_i32_1 = arith.constant 0 : i32
    %c0_i32_2 = arith.constant 0 : i32
    return %arg0, %c0_i32, %c0_i32_0, %c0_i32_1 : i32, i32, i32, i32
  }
}

</mosaic_0001>

<bundles_post_ra>
// kernel: localization_net_forward.1
= control target key start
LH: loop header
LB: loop body
LE: loop exit
PB: predicated region body
PF: predicated region fallthrough
CT: control target
= control target key end

     0   :  { %s30266_s0 = inlined_call_operand.vmem [shape: f32[2,16,16,4], index: 0, kind: input, shape index: {}]   ;;  %s30267_s1 = inlined_call_operand.vmem [shape: bf16[9,4,32], index: 1, kind: input, shape index: {}]   ;;  %s30268_s2 = inlined_call_operand.vmem [shape: f32[1,32], index: 2, kind: input, shape index: {}, may-alias: {2,5,16}]   ;;  %s30269_s3 = inlined_call_operand.vmem [shape: f32[1,32], index: 3, kind: input, shape index: {}]   ;;  %s30270_s4 = inlined_call_operand.hbm [shape: bf16[9,32,32], index: 4, kind: input, shape index: {}]   ;;  %s30271_s5 = inlined_call_operand.vmem [shape: f32[1,32], index: 5, kind: input, shape index: {}, may-alias: {2,5,16}]   ;;  %s30272_s6 = inlined_call_operand.vmem [shape: f32[1,32], index: 6, kind: input, shape index: {}]   ;;  %s30273_s7 = inlined_call_operand.hbm [shape: bf16[9,32,64], index: 7, kind: input, shape index: {}]   ;;  %s30274_s8 = inlined_call_operand.vmem [shape: f32[1,64], index: 8, kind: input, shape index: {}, may-alias: {8,11}]   ;;  %s30275_s9 = inlined_call_operand.vmem [shape: f32[1,64], index: 9, kind: input, shape index: {}]   ;;  %s30276_s10 = inlined_call_operand.hbm [shape: bf16[9,64,64], index: 10, kind: input, shape index: {}]   ;;  %s30277_s11 = inlined_call_operand.vmem [shape: f32[1,64], index: 11, kind: input, shape index: {}, may-alias: {8,11}]   ;;  %s30278_s12 = inlined_call_operand.vmem [shape: f32[1,64], index: 12, kind: input, shape index: {}]   ;;  %s30279_s13 = inlined_call_operand.vmem [shape: bf16[4,4,64,64], index: 13, kind: input, shape index: {}]   ;;  %s30280_s14 = inlined_call_operand.vmem [shape: f32[1,64], index: 14, kind: input, shape index: {}]   ;;  %s30281_s15 = inlined_call_operand.hbm [shape: bf16[9,64,32], index: 15, kind: input, shape index: {}]   ;;  %s30282_s16 = inlined_call_operand.vmem [shape: f32[1,32], index: 16, kind: input, shape index: {}, may-alias: {2,5,16}]   ;;  %s30283_s17 = inlined_call_operand.vmem [shape: f32[1,32], index: 17, kind: input, shape index: {}]   ;;  %s30284_s18 = inlined_call_operand.vmem [shape: bf16[9,32,4], index: 18, kind: input, shape index: {}]   ;;  %s30285_s19 = inlined_call_operand.vmem [shape: f32[1,4], index: 19, kind: input, shape index: {}]   ;;  %s30286_s20 = inlined_call_operand.vmem [shape: f32[2,16,16,4], index: 20, kind: output, shape index: {}]  }
   0x1   :  { %30293 = sst [smem:[#allocation20_spill]] %s30266_s0 }
   0x2   :  { %30294 = sst [smem:[#allocation21_spill]] %s30267_s1 }
   0x3   :  { %30295 = sst [smem:[#allocation22_spill]] %s30268_s2 }
   0x4   :  { %30296 = sst [smem:[#allocation23_spill]] %s30269_s3 }
   0x5   :  { %30297 = sst [smem:[#allocation24_spill]] %s30270_s4 }
   0x6   :  { %30298 = sst [smem:[#allocation25_spill]] %s30282_s16 }
   0x7   :  { %30299 = sst [smem:[#allocation26_spill]] %s30283_s17 }
   0x8   :  { %30300 = sst [smem:[#allocation27_spill]] %s30284_s18 }
   0x9   :  { %30301 = sst [smem:[#allocation28_spill]] %s30285_s19 }
   0xa   :  { %30302 = sst [smem:[#allocation29_spill]] %s30286_s20 }
   0xb   :  { %25 = vsyncpa [#allocation10], 0 }
   0xc   :  { %26 = vsyncpa [#allocation12], 0 }
   0xd   :  { %27 = vsyncpa [#allocation15], 0  ;;  %s26424_s1 = smov 0  }
   0xe LB: > { %30303 = sst [smem:[#allocation19_spill]] %s26308_s1  ;;  %s26430_s22 = sadd.s32 4294967295, %s26308_s1   ;;  %s26308_s1 = sphi %s26424_s1, %s33_s1  }
   0xf   : > { %p20269_p0 = scmp.ge.s32.totalorder %s26308_s1, 1  ;;  %p489_p1 = scmp.lt.s32.totalorder %s26308_s1, 3 }
  0x10   : > { %p30291_p2 = scmp.eq.s32.totalorder %s26430_s22, 0  ;;  %s26310_s24 = smov [#allocation11]  }
  0x11   : > { %p26435_p3 = pnand %p20269_p0, %p489_p1  ;;  %s529_s2 = sshll.u32 %s26310_s24, 4  ;;  %s26439_s2 = int_to_ptr.vmem [resolvable:$true] %s529_s2 }
  0x12   : > { %s26311_s25 = smov [#allocation9]   ;;  %s26312_s27 = smov [#allocation13]  }
  0x13   : > { %s30304_s23 = scalar_select %p26435_p3, 1, 0 }
  0x14   : > { %p25950_p4 = pneg %p26435_p3  ;;  %s510_s3 = sshll.u32 %s26311_s25, 4  ;;  %s26443_s3 = int_to_ptr.vmem [resolvable:$true] %s510_s3 }
  0x15   : > { %s548_s28 = sshll.u32 %s26312_s27, 4  ;;  %s26313_s4 = smov [#allocation14]   ;;  %s26451_s28 = int_to_ptr.vmem [resolvable:$true] %s548_s28 }
  0x16   : > { %p26447_p5 = pnand %p30291_p2, %p25950_p4  ;;  %s26453_s29 = sshll.u32 %s26313_s4, 4  ;;  %s574_s29 = int_to_ptr.vmem [resolvable:$true] %s26453_s29 }
  0x17   : > { %s26178_s21 = scalar_lea.hbm %s30273_s7, 2304 }
  0x18   : > { %p26179_p6 = scmp.ne.s32.totalorder %s30273_s7, %s26178_s21  ;;  %p26463_p7 = pneg %p26447_p5 }
  0x19   : > { %p26185_p10 = scmp.lt.u32.totalorder %s26178_s21, %s30273_s7 }
  0x1a   : > { %p26181_p8 = pnand %p26463_p7, %p26179_p6 }
  0x1c   : > { %p26182_p9 = pneg %p26181_p8 }
  0x1e   : > { %p26187_p11 = pnand %p26185_p10, %p26182_p9 }
  0x20   : > { %26190 = shalt.err (!%p26187_p11)
}
  0x21   : > { %s26191_s30 = scalar_lea.vmem %s26439_s2, 2304  ;;  %p26199_p1 = scmp.lt.s32.totalorder %s26439_s2, %s26439_s2 }
  0x22   : > { %p26192_p12 = scmp.ne.s32.totalorder %s26439_s2, %s26191_s30  ;;  %p26200_p4 = scmp.lt.s32.totalorder %s26191_s30, %s26191_s30 }
  0x24   : > { %p26194_p13 = pnand %p26192_p12, %p26463_p7  ;;  %p26201_p6 = por %p26200_p4, %p26199_p1 }
  0x26   : > { %p26195_p0 = pneg %p26194_p13 }
  0x28   : > { %p26202_p8 = pnand %p26201_p6, %p26195_p0 }
  0x2a   : > { %26205 = shalt.err (!%p26202_p8)
}
  0x2b   : > { %s26314_s0 = smov 64   ;;  %s26315_s21 = smov 4  }
  0x2c   : > { %25956 = dma.hbm_to_vmem [thread:$0]  (!%p26447_p5), %s30273_s7, 2304, %s26439_s2, [#allocation12], %s26314_s0, %s26314_s0, %s26315_s21  }
  0x2d   : > { %s30307_s20 = sld [smem:[#allocation24_spill]] }
  0x33   : > { %s26206_s30 = scalar_lea.hbm %s30307_s20, 2304 }
  0x34   : > { %p26207_p9 = scmp.ne.s32.totalorder %s30307_s20, %s26206_s30  ;;  %p26213_p12 = scmp.lt.u32.totalorder %s26206_s30, %s30307_s20 }
  0x36   : > { %p26209_p10 = pnand %p26207_p9, %p26463_p7 }
  0x38   : > { %p26210_p11 = pneg %p26209_p10 }
  0x3a   : > { %p26215_p13 = pnand %p26213_p12, %p26210_p11 }
  0x3c   : > { %26218 = shalt.err (!%p26215_p13)
}
  0x3d   : > { %s26219_s2 = scalar_lea.vmem %s26443_s3, 2304  ;;  %p26227_p6 = scmp.lt.s32.totalorder %s26443_s3, %s26443_s3 }
  0x3e   : > { %p26220_p0 = scmp.ne.s32.totalorder %s26443_s3, %s26219_s2  ;;  %p26228_p8 = scmp.lt.s32.totalorder %s26219_s2, %s26219_s2 }
  0x40   : > { %p26222_p1 = pnand %p26220_p0, %p26463_p7  ;;  %p26229_p9 = por %p26228_p8, %p26227_p6 }
  0x42   : > { %p26223_p4 = pneg %p26222_p1 }
  0x44   : > { %p26230_p10 = pnand %p26229_p9, %p26223_p4 }
  0x46   : > { %26233 = shalt.err (!%p26230_p10)
}
  0x47   : > { %25953 = dma.hbm_to_vmem [thread:$0]  (!%p26447_p5), %s30307_s20, 2304, %s26443_s3, [#allocation10], %s26314_s0, %s26314_s0, %s26315_s21  }
  0x48   : > { %s26234_s24 = scalar_lea.hbm %s30276_s10, 4608 }
  0x49   : > { %p26235_p11 = scmp.ne.s32.totalorder %s30276_s10, %s26234_s24  ;;  %p26241_p0 = scmp.lt.u32.totalorder %s26234_s24, %s30276_s10 }
  0x4b   : > { %p26237_p12 = pnand %p26235_p11, %p26463_p7 }
  0x4d   : > { %p26238_p13 = pneg %p26237_p12 }
  0x4f   : > { %p26243_p1 = pnand %p26241_p0, %p26238_p13 }
  0x51   : > { %26246 = shalt.err (!%p26243_p1)
}
  0x52   : > { %s26247_s3 = scalar_lea.vmem %s26451_s28, 4608  ;;  %p26255_p9 = scmp.lt.s32.totalorder %s26451_s28, %s26451_s28 }
  0x53   : > { %p26248_p4 = scmp.ne.s32.totalorder %s26451_s28, %s26247_s3  ;;  %p26256_p10 = scmp.lt.s32.totalorder %s26247_s3, %s26247_s3 }
  0x55   : > { %p26250_p6 = pnand %p26248_p4, %p26463_p7  ;;  %p26257_p11 = por %p26256_p10, %p26255_p9 }
  0x57   : > { %p26251_p8 = pneg %p26250_p6 }
  0x59   : > { %p26258_p12 = pnand %p26257_p11, %p26251_p8 }
  0x5b   : > { %26261 = shalt.err (!%p26258_p12)
}
  0x5c   : > { %25959 = dma.hbm_to_vmem [thread:$0]  (!%p26447_p5), %s30276_s10, 4608, %s26451_s28, [#allocation12], %s26314_s0, %s26314_s0, %s26315_s21  }
  0x5d   : > { %s26262_s19 = scalar_lea.hbm %s30281_s15, 4608 }
  0x5e   : > { %p26263_p13 = scmp.ne.s32.totalorder %s30281_s15, %s26262_s19  ;;  %p26269_p4 = scmp.lt.u32.totalorder %s26262_s19, %s30281_s15 }
  0x60   : > { %p26265_p0 = pnand %p26263_p13, %p26463_p7 }
  0x62   : > { %p26266_p1 = pneg %p26265_p0 }
  0x64   : > { %p26271_p6 = pnand %p26269_p4, %p26266_p1 }
  0x66   : > { %26274 = shalt.err (!%p26271_p6)
}
  0x67   : > { %s26275_s30 = scalar_lea.vmem %s574_s29, 4608  ;;  %p26283_p11 = scmp.lt.s32.totalorder %s574_s29, %s574_s29 }
  0x68   : > { %p26276_p8 = scmp.ne.s32.totalorder %s574_s29, %s26275_s30  ;;  %p26284_p12 = scmp.lt.s32.totalorder %s26275_s30, %s26275_s30 }
  0x6a   : > { %p26278_p9 = pnand %p26276_p8, %p26463_p7  ;;  %p26285_p2 = por %p26284_p12, %p26283_p11 }
  0x6c   : > { %p26279_p10 = pneg %p26278_p9 }
  0x6e   : > { %p26286_p3 = pnand %p26285_p2, %p26279_p10 }
  0x70   : > { %26289 = shalt.err (!%p26286_p3)
}
  0x71   : > { %25962 = dma.hbm_to_vmem [thread:$0]  (!%p26447_p5), %s30281_s15, 4608, %s574_s29, [#allocation15], %s26314_s0, %s26314_s0, %s26315_s21  }
  0x72   : > { %p30308_p13 = scmp.ne.s32.totalorder %s30304_s23, 0 }
  0x73   : > { %p30309_p7 = scmp.eq.s32.totalorder (!%p30308_p13), %s26430_s22, 0 }
  0x74   : > { %609 = sbr.rel (%p30308_p13) target bundleno = 4993 (0x1381), region = 100 }
  0x7b   : > { %26295 = dma.done.wait (%p30309_p7), [#allocation10], 2304   ;;  %p30310_p0 = pmov %p30309_p7 }
  0x7d   : > { %26297 = vsyncadd (%p30310_p0), [#allocation10], 4294964992  ;;  %p30311_p2 = pmov %p30310_p0 }
  0x7e   : > { %p30312_p3 = pmov %p30310_p0 }
  0x7f   : > { %26299 = dma.done.wait (%p30311_p2), [#allocation12], 6912  }
  0x80   : > { %26301 = vsyncadd (%p30312_p3), [#allocation12], 4294960384  ;;  %p30313_p1 = pmov %p30310_p0 }
  0x81   : > { %p30314_p5 = pmov %p30310_p0 }
  0x82   : > { %26303 = dma.done.wait (%p30313_p1), [#allocation15], 4608  }
  0x83   : > { %26305 = vsyncadd (%p30314_p5), [#allocation15], 4294962688  ;;  %vm690_vm0 = vcmask 31744   ;;  %vm693_vm1 = vcmask 25600   ;;  %v26316_v0 = vmov 0.0   ;;  %p679_p4 = scmp.lt.s32.totalorder %s26430_s22, 1 }
  0x84   : > { %691 = vst.msk [vmem:[#allocation2] sm:$0xff] %vm690_vm0, %v26316_v0  ;;  %692 = vst.msk [vmem:[#allocation2 + $0x8] sm:$0xff] %vm690_vm0, %v26316_v0  ;;  %vm1186_vm2 = vcmask 1041408   ;;  %s30315_s29 = sld [smem:[#allocation20_spill]]  ;;  %s30316_s16 = sld [smem:[#allocation21_spill]]  ;;  %vm746_vm3 = vcmask 261120  }
  0x85   : > { %694 = vst.msk [vmem:[#allocation2 + $0x10] sm:$0x3] %vm693_vm1, %v26316_v0  ;;  %697 = vst.msk [vmem:[#allocation2 + $0x28] sm:$0x3] %vm693_vm1, %v26316_v0  ;;  %s30326_s22 = smov (!%p679_p4, %s26430_s22), 1  ;;  %vm749_vm4 = vcmask 254976  }
  0x86   : > { %695 = vst.msk [vmem:[#allocation2 + $0x18] sm:$0xff] %vm690_vm0, %v26316_v0  ;;  %696 = vst.msk [vmem:[#allocation2 + $0x20] sm:$0xff] %vm690_vm0, %v26316_v0  ;;  %s21446_s1 = sshll.u32 %s30326_s22, 8  ;;  %s30317_s19 = sld [smem:[#allocation22_spill]]  ;;  %vm26318_vm5 = vmmov 0   ;;  %vm6577_vm11 = vcmask 130048  }
  0x87   : > { %698 = vst.msk [vmem:[#allocation2 + $0x30] sm:$0xff] %vm690_vm0, %v26316_v0  ;;  %699 = vst.msk [vmem:[#allocation2 + $0x38] sm:$0xff] %vm690_vm0, %v26316_v0  ;;  %s30318_s27 = sld [smem:[#allocation23_spill]]  ;;  %vm822_vm13 = vcmask 523264   ;;  %vm824_vm14 = vcmask 517120   ;;  %vm10997_vm15 = vcmask 64512  }
  0x88   : > { %700 = vst.msk [vmem:[#allocation2 + $0x40] sm:$0x3] %vm693_vm1, %v26316_v0  ;;  %703 = vst.msk [vmem:[#allocation2 + $0x58] sm:$0x3] %vm693_vm1, %v26316_v0  ;;  %s30319_s4 = sld [smem:[#allocation27_spill]]  ;;  %s30321_s17 = sld [smem:[#allocation26_spill]] }
  0x89   : > { %701 = vst.msk [vmem:[#allocation2 + $0x48] sm:$0xff] %vm690_vm0, %v26316_v0  ;;  %702 = vst.msk [vmem:[#allocation2 + $0x50] sm:$0xff] %vm690_vm0, %v26316_v0  ;;  %s30322_s24 = sld [smem:[#allocation28_spill]]  ;;  %s30323_s30 = sld [smem:[#allocation29_spill]] }
  0x8a   : > { %704 = vst.msk [vmem:[#allocation2 + $0x60] sm:$0xff] %vm690_vm0, %v26316_v0  ;;  %705 = vst.msk [vmem:[#allocation2 + $0x68] sm:$0xff] %vm690_vm0, %v26316_v0  ;;  %s26693_s0 = scalar_lea.vmem %s30315_s29, %s21446_s1  ;;  %v20284_v1 = vld [vmem:[%s30316_s16 + $0x2] sm:$0x3]  ;;  %v1087_v32 = vld [vmem:[%s30316_s16] sm:$0x3] }
  0x8b   : > { %706 = vst.msk [vmem:[#allocation2 + $0x70] sm:$0x3] %vm693_vm1, %v26316_v0  ;;  %709 = vst.msk [vmem:[#allocation2 + $0x88] sm:$0x3] %vm693_vm1, %v26316_v0  ;;  %v972_v2 = vld [vmem:[%s26693_s0] sm:$0xff]  ;;  %v973_v3 = vld [vmem:[%s26693_s0 + $0x8] sm:$0xff]  ;;  %25925 = vmatprep.subr.msk.bf16.mxu0 %vm1186_vm2, %v20284_v1 }
  0x8c   : > { %707 = vst.msk [vmem:[#allocation2 + $0x78] sm:$0xff] %vm690_vm0, %v26316_v0  ;;  %708 = vst.msk [vmem:[#allocation2 + $0x80] sm:$0xff] %vm690_vm0, %v26316_v0  ;;  %v1188_v4 = vsel %vm1186_vm2, %v20284_v1, 0  ;;  %v1088_v5 = vld [vmem:[#allocation2 + $0x1] sm:$0xff]  ;;  %v1089_v6 = vld [vmem:[#allocation2 + $0x9] sm:$0xff]  ;;  %v1400_v35 = vsel %vm1186_vm2, %v1087_v32, 0 }
  0x8d   : > { %710 = vst.msk [vmem:[#allocation2 + $0x90] sm:$0xff] %vm690_vm0, %v26316_v0  ;;  %711 = vst.msk [vmem:[#allocation2 + $0x98] sm:$0xff] %vm690_vm0, %v26316_v0  ;;  %v974_v7 = vld [vmem:[%s26693_s0 + $0x10] sm:$0xff]  ;;  %22504 = vmatpush3.bf16.msra.mxu0 %v1188_v4  ;;  %v1120_v8 = vpack.c.bf16 %v1089_v6, %v1088_v5  ;;  %v975_v9 = vld [vmem:[%s26693_s0 + $0x18] sm:$0xff] }
  0x8e   : > { %712 = vst.msk [vmem:[#allocation2 + $0xa0] sm:$0x3] %vm693_vm1, %v26316_v0  ;;  %715 = vst.msk [vmem:[#allocation2 + $0xb8] sm:$0x3] %vm693_vm1, %v26316_v0  ;;  %v976_v10 = vld [vmem:[%s26693_s0 + $0x20] sm:$0xff]  ;;  %v977_v11 = vld [vmem:[%s26693_s0 + $0x28] sm:$0xff]  ;;  %25926 = vmatprep.subr.msk.bf16.mxu0 %vm1186_vm2, %v1087_v32 }
  0x8f   : > { %713 = vst.msk [vmem:[#allocation2 + $0xa8] sm:$0xff] %vm690_vm0, %v26316_v0  ;;  %714 = vst.msk [vmem:[#allocation2 + $0xb0] sm:$0xff] %vm690_vm0, %v26316_v0  ;;  %v978_v12 = vld [vmem:[%s26693_s0 + $0x30] sm:$0xff]  ;;  %v979_v13 = vld [vmem:[%s26693_s0 + $0x38] sm:$0xff]  ;;  %22505 = vmatprep.mubr.msk.bf16.mxu0 %vm690_vm0, %v1120_v8  ;;  %s30165_s28 = scalar_lea.vmem %s30323_s30, %s21446_s1 }
  0x90   : > { %716 = vst.msk [vmem:[#allocation2 + $0xc0] sm:$0xff] %vm690_vm0, %v26316_v0  ;;  %717 = vst.msk [vmem:[#allocation2 + $0xc8] sm:$0xff] %vm690_vm0, %v26316_v0  ;;  %v980_v14 = vld [vmem:[%s26693_s0 + $0x40] sm:$0xff]  ;;  %v981_v15 = vld [vmem:[%s26693_s0 + $0x48] sm:$0xff] }
  0x91   : > { %718 = vst.msk [vmem:[#allocation2 + $0xd0] sm:$0x3] %vm693_vm1, %v26316_v0  ;;  %721 = vst.msk [vmem:[#allocation2 + $0xe8] sm:$0x3] %vm693_vm1, %v26316_v0  ;;  %v982_v16 = vld [vmem:[%s26693_s0 + $0x50] sm:$0xff]  ;;  %v983_v17 = vld [vmem:[%s26693_s0 + $0x58] sm:$0xff] }
  0x92   : > { %719 = vst.msk [vmem:[#allocation2 + $0xd8] sm:$0xff] %vm690_vm0, %v26316_v0  ;;  %720 = vst.msk [vmem:[#allocation2 + $0xe0] sm:$0xff] %vm690_vm0, %v26316_v0  ;;  %v984_v18 = vld [vmem:[%s26693_s0 + $0x60] sm:$0xff]  ;;  %v985_v19 = vld [vmem:[%s26693_s0 + $0x68] sm:$0xff] }
  0x93   : > { %722 = vst.msk [vmem:[#allocation2 + $0xf0] sm:$0xff] %vm690_vm0, %v26316_v0  ;;  %723 = vst.msk [vmem:[#allocation2 + $0xf8] sm:$0xff] %vm690_vm0, %v26316_v0  ;;  %v986_v20 = vld [vmem:[%s26693_s0 + $0x70] sm:$0xff]  ;;  %v987_v21 = vld [vmem:[%s26693_s0 + $0x78] sm:$0xff] }
  0x94   : > { %724 = vst.msk [vmem:[#allocation2 + $0x100] sm:$0x3] %vm693_vm1, %v26316_v0  ;;  %727 = vst.msk [vmem:[#allocation2 + $0x118] sm:$0x3] %vm693_vm1, %v26316_v0  ;;  %v988_v22 = vld [vmem:[%s26693_s0 + $0x80] sm:$0xff]  ;;  %v989_v23 = vld [vmem:[%s26693_s0 + $0x88] sm:$0xff] }
  0x95   : > { %725 = vst.msk [vmem:[#allocation2 + $0x108] sm:$0xff] %vm690_vm0, %v26316_v0  ;;  %726 = vst.msk [vmem:[#allocation2 + $0x110] sm:$0xff] %vm690_vm0, %v26316_v0  ;;  %v990_v24 = vld [vmem:[%s26693_s0 + $0x90] sm:$0xff]  ;;  %v991_v25 = vld [vmem:[%s26693_s0 + $0x98] sm:$0xff] }
  0x96   : > { %728 = vst.msk [vmem:[#allocation2 + $0x120] sm:$0xff] %vm690_vm0, %v26316_v0  ;;  %729 = vst.msk [vmem:[#allocation2 + $0x128] sm:$0xff] %vm690_vm0, %v26316_v0  ;;  %v992_v26 = vld [vmem:[%s26693_s0 + $0xa0] sm:$0xff]  ;;  %v993_v29 = vld [vmem:[%s26693_s0 + $0xa8] sm:$0xff] }
  0x97   : > { %730 = vst.msk [vmem:[#allocation2 + $0x130] sm:$0x3] %vm693_vm1, %v26316_v0  ;;  %733 = vst.msk [vmem:[#allocation2 + $0x148] sm:$0x3] %vm693_vm1, %v26316_v0  ;;  %v994_v33 = vld [vmem:[%s26693_s0 + $0xb0] sm:$0xff]  ;;  %v995_v43 = vld [vmem:[%s26693_s0 + $0xb8] sm:$0xff] }
  0x98   : > { %731 = vst.msk [vmem:[#allocation2 + $0x138] sm:$0xff] %vm690_vm0, %v26316_v0  ;;  %732 = vst.msk [vmem:[#allocation2 + $0x140] sm:$0xff] %vm690_vm0, %v26316_v0  ;;  %v996_v44 = vld [vmem:[%s26693_s0 + $0xc0] sm:$0xff]  ;;  %v997_v45 = vld [vmem:[%s26693_s0 + $0xc8] sm:$0xff] }
  0x99   : > { %734 = vst.msk [vmem:[#allocation2 + $0x150] sm:$0xff] %vm690_vm0, %v26316_v0  ;;  %735 = vst.msk [vmem:[#allocation2 + $0x158] sm:$0xff] %vm690_vm0, %v26316_v0  ;;  %v998_v46 = vld [vmem:[%s26693_s0 + $0xd0] sm:$0xff]  ;;  %v999_v47 = vld [vmem:[%s26693_s0 + $0xd8] sm:$0xff] }
  0x9a   : > { %736 = vst.msk [vmem:[#allocation2 + $0x160] sm:$0x3] %vm693_vm1, %v26316_v0  ;;  %739 = vst.msk [vmem:[#allocation2 + $0x178] sm:$0x3] %vm693_vm1, %v26316_v0  ;;  %v1000_v48 = vld [vmem:[%s26693_s0 + $0xe0] sm:$0xff]  ;;  %v1001_v49 = vld [vmem:[%s26693_s0 + $0xe8] sm:$0xff] }
  0x9b   : > { %737 = vst.msk [vmem:[#allocation2 + $0x168] sm:$0xff] %vm690_vm0, %v26316_v0  ;;  %738 = vst.msk [vmem:[#allocation2 + $0x170] sm:$0xff] %vm690_vm0, %v26316_v0  ;;  %v20317_v60 = vld [vmem:[%s30316_s16 + $0x4] sm:$0x3]  ;;  %v26839_v32 = vld [vmem:[%s30316_s16 + $0x6] sm:$0x3] }
  0x9c   : > { %740 = vst.msk [vmem:[#allocation2 + $0x180] sm:$0xff] %vm690_vm0, %v26316_v0  ;;  %741 = vst.msk [vmem:[#allocation2 + $0x188] sm:$0xff] %vm690_vm0, %v26316_v0 }
  0x9d   : > { %742 = vst.msk [vmem:[#allocation2 + $0x190] sm:$0x3] %vm693_vm1, %v26316_v0  ;;  %745 = vst.msk [vmem:[#allocation2 + $0x1a8] sm:$0x3] %vm693_vm1, %v26316_v0 }
  0x9e   : > { %743 = vst.msk [vmem:[#allocation2 + $0x198] sm:$0xff] %vm690_vm0, %v26316_v0  ;;  %744 = vst.msk [vmem:[#allocation2 + $0x1a0] sm:$0xff] %vm690_vm0, %v26316_v0 }
  0x9f   : > { %1005 = vst.msk [vmem:[#allocation2 + $0x19] sm:$0xff] %vm690_vm0, %v972_v2  ;;  %1006 = vst.msk [vmem:[#allocation2 + $0x21] sm:$0xff] %vm690_vm0, %v973_v3 }
  0xa0   : > { %1007 = vst.msk [vmem:[#allocation2 + $0x31] sm:$0xff] %vm690_vm0, %v974_v7  ;;  %1008 = vst.msk [vmem:[#allocation2 + $0x39] sm:$0xff] %vm690_vm0, %v975_v9 }
  0xa1   : > { %1009 = vst.msk [vmem:[#allocation2 + $0x49] sm:$0xff] %vm690_vm0, %v976_v10  ;;  %1010 = vst.msk [vmem:[#allocation2 + $0x51] sm:$0xff] %vm690_vm0, %v977_v11 }
  0xa2   : > { %1011 = vst.msk [vmem:[#allocation2 + $0x61] sm:$0xff] %vm690_vm0, %v978_v12  ;;  %1012 = vst.msk [vmem:[#allocation2 + $0x69] sm:$0xff] %vm690_vm0, %v979_v13 }
  0xa3   : > { %1013 = vst.msk [vmem:[#allocation2 + $0x79] sm:$0xff] %vm690_vm0, %v980_v14  ;;  %1014 = vst.msk [vmem:[#allocation2 + $0x81] sm:$0xff] %vm690_vm0, %v981_v15 }
  0xa4   : > { %1015 = vst.msk [vmem:[#allocation2 + $0x91] sm:$0xff] %vm690_vm0, %v982_v16  ;;  %1016 = vst.msk [vmem:[#allocation2 + $0x99] sm:$0xff] %vm690_vm0, %v983_v17 }
  0xa5   : > { %1017 = vst.msk [vmem:[#allocation2 + $0xa9] sm:$0xff] %vm690_vm0, %v984_v18  ;;  %1018 = vst.msk [vmem:[#allocation2 + $0xb1] sm:$0xff] %vm690_vm0, %v985_v19  ;;  %v1039_v18 = vld [vmem:[#allocation2] sm:$0xff]  ;;  %v1040_v19 = vld [vmem:[#allocation2 + $0x8] sm:$0xff] }
  0xa6   : > { %1019 = vst.msk [vmem:[#allocation2 + $0xc1] sm:$0xff] %vm690_vm0, %v986_v20  ;;  %1020 = vst.msk [vmem:[#allocation2 + $0xc9] sm:$0xff] %vm690_vm0, %v987_v21  ;;  %v1090_v27 = vld [vmem:[#allocation2 + $0x19] sm:$0xff]  ;;  %v1091_v28 = vld [vmem:[#allocation2 + $0x21] sm:$0xff] }
  0xa7   : > { %1021 = vst.msk [vmem:[#allocation2 + $0xd9] sm:$0xff] %vm690_vm0, %v988_v22  ;;  %1022 = vst.msk [vmem:[#allocation2 + $0xe1] sm:$0xff] %vm690_vm0, %v989_v23  ;;  %v26744_v30 = vpack.c.bf16 %v1091_v28, %v1090_v27  ;;  %v1092_v31 = vld [vmem:[#allocation2 + $0x31] sm:$0xff]  ;;  %v1093_v34 = vld [vmem:[#allocation2 + $0x39] sm:$0xff]  ;;  %v1662_v22 = vsel %vm1186_vm2, %v20317_v60, 0 }
  0xa8   : > { %1023 = vst.msk [vmem:[#allocation2 + $0xf1] sm:$0xff] %vm690_vm0, %v990_v24  ;;  %1024 = vst.msk [vmem:[#allocation2 + $0xf9] sm:$0xff] %vm690_vm0, %v991_v25  ;;  %v26756_v36 = vpack.c.bf16 %v1093_v34, %v1092_v31  ;;  %v1094_v37 = vld [vmem:[#allocation2 + $0x49] sm:$0xff]  ;;  %v1095_v38 = vld [vmem:[#allocation2 + $0x51] sm:$0xff]  ;;  %v1071_v24 = vpack.c.bf16 %v1040_v19, %v1039_v18 }
  0xa9   : > { %1025 = vst.msk [vmem:[#allocation2 + $0x109] sm:$0xff] %vm690_vm0, %v992_v26  ;;  %1026 = vst.msk [vmem:[#allocation2 + $0x111] sm:$0xff] %vm690_vm0, %v993_v29  ;;  %22506 = vmatmul.mubr.msk.bf16.vlgmr.msra.gmra.mrb[0].mxu0 %vm690_vm0, %v26744_v30  ;;  %v1096_v39 = vld [vmem:[#allocation2 + $0x61] sm:$0xff]  ;;  %v1097_v40 = vld [vmem:[#allocation2 + $0x69] sm:$0xff]  ;;  %v26760_v41 = vpack.c.bf16 %v1095_v38, %v1094_v37 }
  0xaa   : > { %1027 = vst.msk [vmem:[#allocation2 + $0x121] sm:$0xff] %vm690_vm0, %v994_v33  ;;  %22538 = vmatpush3.bf16.msra.mxu0 %v1400_v35  ;;  %22509 = vmatprep.mubr.msk.bf16.mxu0 %vm690_vm0, %v26756_v36  ;;  %v26762_v42 = vpack.c.bf16 %v1097_v40, %v1096_v39  ;;  %1028 = vst.msk [vmem:[#allocation2 + $0x129] sm:$0xff] %vm690_vm0, %v995_v43  ;;  %v1098_v50 = vld [vmem:[#allocation2 + $0x79] sm:$0xff]  ;;  %v1099_v51 = vld [vmem:[#allocation2 + $0x81] sm:$0xff] }
  0xab   : > { %1029 = vst.msk [vmem:[#allocation2 + $0x139] sm:$0xff] %vm690_vm0, %v996_v44  ;;  %1030 = vst.msk [vmem:[#allocation2 + $0x141] sm:$0xff] %vm690_vm0, %v997_v45  ;;  %v1100_v52 = vld [vmem:[#allocation2 + $0x91] sm:$0xff]  ;;  %v1101_v53 = vld [vmem:[#allocation2 + $0x99] sm:$0xff]  ;;  %v26782_v54 = vpack.c.bf16 %v1099_v51, %v1098_v50  ;;  %25927 = vmatprep.subr.msk.bf16.mxu0 %vm1186_vm2, %v20317_v60 }
  0xac   : > { %1031 = vst.msk [vmem:[#allocation2 + $0x151] sm:$0xff] %vm690_vm0, %v998_v46  ;;  %1032 = vst.msk [vmem:[#allocation2 + $0x159] sm:$0xff] %vm690_vm0, %v999_v47  ;;  %v26784_v55 = vpack.c.bf16 %v1101_v53, %v1100_v52  ;;  %v1102_v56 = vld [vmem:[#allocation2 + $0xa9] sm:$0xff]  ;;  %v1103_v57 = vld [vmem:[#allocation2 + $0xb1] sm:$0xff] }
  0xad   : > { %1033 = vst.msk [vmem:[#allocation2 + $0x169] sm:$0xff] %vm690_vm0, %v1000_v48  ;;  %1034 = vst.msk [vmem:[#allocation2 + $0x171] sm:$0xff] %vm690_vm0, %v1001_v49  ;;  %v1104_v58 = vld [vmem:[#allocation2 + $0xc1] sm:$0xff]  ;;  %v1105_v59 = vld [vmem:[#allocation2 + $0xc9] sm:$0xff]  ;;  %v26794_v61 = vpack.c.bf16 %v1103_v57, %v1102_v56 }
  0xae   : > { %v26796_v62 = vpack.c.bf16 %v1105_v59, %v1104_v58  ;;  %v1106_v63 = vld [vmem:[#allocation2 + $0xd9] sm:$0xff]  ;;  %v1107_v1 = vld [vmem:[#allocation2 + $0xe1] sm:$0xff]  ;;  %v1043_v27 = vld [vmem:[#allocation2 + $0x30] sm:$0xff]  ;;  %754 = vst.msk [vmem:[#allocation3 + $0x30] sm:$0xff] %vm746_vm3, %v26316_v0 }
  0xaf   : > { %v1108_v2 = vld [vmem:[#allocation2 + $0xf1] sm:$0xff]  ;;  %v1109_v3 = vld [vmem:[#allocation2 + $0xf9] sm:$0xff]  ;;  %v26802_v4 = vpack.c.bf16 %v1107_v1, %v1106_v63  ;;  %v1045_v33 = vld [vmem:[#allocation2 + $0x48] sm:$0xff]  ;;  %755 = vst.msk [vmem:[#allocation3 + $0x38] sm:$0xff] %vm746_vm3, %v26316_v0 }
  0xb0   : > { %v26804_v5 = vpack.c.bf16 %v1109_v3, %v1108_v2  ;;  %v1110_v6 = vld [vmem:[#allocation2 + $0x109] sm:$0xff]  ;;  %v1111_v7 = vld [vmem:[#allocation2 + $0x111] sm:$0xff]  ;;  %v1042_v26 = vld [vmem:[#allocation2 + $0x20] sm:$0xff]  ;;  %747 = vst.msk [vmem:[#allocation3] sm:$0xff] %vm746_vm3, %v26316_v0 }
  0xb1   : > { %22510 = vmatmul.mubr.msk.bf16.gmra.mrb[4].mxu0 %vm690_vm0, %v26760_v41  ;;  %v1112_v8 = vld [vmem:[#allocation2 + $0x121] sm:$0xff]  ;;  %v1113_v9 = vld [vmem:[#allocation2 + $0x129] sm:$0xff]  ;;  %v26810_v10 = vpack.c.bf16 %v1111_v7, %v1110_v6  ;;  %v1041_v25 = vld [vmem:[#allocation2 + $0x18] sm:$0xff]  ;;  %748 = vst.msk [vmem:[#allocation3 + $0x8] sm:$0xff] %vm746_vm3, %v26316_v0 }
  0xb2   : > { %22513 = vmatprep.mubr.msk.bf16.mxu0 %vm690_vm0, %v26762_v42  ;;  %v26812_v11 = vpack.c.bf16 %v1113_v9, %v1112_v8  ;;  %v1114_v12 = vld [vmem:[#allocation2 + $0x139] sm:$0xff]  ;;  %v1115_v13 = vld [vmem:[#allocation2 + $0x141] sm:$0xff]  ;;  %v26832_v29 = vpack.c.bf16 %v1042_v26, %v1041_v25  ;;  %v1046_v34 = vld [vmem:[#allocation2 + $0x50] sm:$0xff]  ;;  %751 = vst.msk [vmem:[#allocation3 + $0x18] sm:$0xff] %vm746_vm3, %v26316_v0 }
  0xb3   : > { %v1116_v14 = vld [vmem:[#allocation2 + $0x151] sm:$0xff]  ;;  %v1117_v15 = vld [vmem:[#allocation2 + $0x159] sm:$0xff]  ;;  %v26818_v16 = vpack.c.bf16 %v1115_v13, %v1114_v12  ;;  %v1048_v37 = vld [vmem:[#allocation2 + $0x68] sm:$0xff]  ;;  %v26847_v38 = vpack.c.bf16 %v1046_v34, %v1045_v33  ;;  %752 = vst.msk [vmem:[#allocation3 + $0x20] sm:$0xff] %vm746_vm3, %v26316_v0 }
  0xb4   : > { %v26820_v17 = vpack.c.bf16 %v1117_v15, %v1116_v14  ;;  %v1118_v20 = vld [vmem:[#allocation2 + $0x169] sm:$0xff]  ;;  %v1119_v21 = vld [vmem:[#allocation2 + $0x171] sm:$0xff]  ;;  %v1047_v35 = vld [vmem:[#allocation2 + $0x60] sm:$0xff]  ;;  %757 = vst.msk [vmem:[#allocation3 + $0x48] sm:$0xff] %vm746_vm3, %v26316_v0 }
  0xb5   : > { %v26827_v23 = vpack.c.bf16 %v1119_v21, %v1118_v20  ;;  %v1044_v28 = vld [vmem:[#allocation2 + $0x38] sm:$0xff]  ;;  %v26849_v39 = vpack.c.bf16 %v1048_v37, %v1047_v35  ;;  %v1050_v43 = vld [vmem:[#allocation2 + $0x80] sm:$0xff]  ;;  %v1051_v44 = vld [vmem:[#allocation2 + $0x90] sm:$0xff]  ;;  %758 = vst.msk [vmem:[#allocation3 + $0x50] sm:$0xff] %vm746_vm3, %v26316_v0 }
  0xb6   : > { %v26834_v31 = vpack.c.bf16 %v1044_v28, %v1043_v27  ;;  %v1049_v40 = vld [vmem:[#allocation2 + $0x78] sm:$0xff]  ;;  %v1053_v48 = vld [vmem:[#allocation2 + $0xa8] sm:$0xff]  ;;  %v1054_v49 = vld [vmem:[#allocation2 + $0xb0] sm:$0xff]  ;;  %v1956_v28 = vsel %vm1186_vm2, %v26839_v32, 0  ;;  %760 = vst.msk [vmem:[#allocation3 + $0x60] sm:$0xff] %vm746_vm3, %v26316_v0 }
  0xb7   : > { %v1052_v45 = vld [vmem:[#allocation2 + $0x98] sm:$0xff]  ;;  %v26855_v46 = vpack.c.bf16 %v1050_v43, %v1049_v40  ;;  %v1055_v50 = vld [vmem:[#allocation2 + $0xc0] sm:$0xff]  ;;  %v1056_v51 = vld [vmem:[#allocation2 + $0xc8] sm:$0xff]  ;;  %v26863_v52 = vpack.c.bf16 %v1054_v49, %v1053_v48  ;;  %761 = vst.msk [vmem:[#allocation3 + $0x68] sm:$0xff] %vm746_vm3, %v26316_v0 }
  0xb8   : > { %v26857_v47 = vpack.c.bf16 %v1052_v45, %v1051_v44  ;;  %v26865_v53 = vpack.c.bf16 %v1056_v51, %v1055_v50  ;;  %v1057_v56 = vld [vmem:[#allocation2 + $0xd8] sm:$0xff]  ;;  %v1058_v57 = vld [vmem:[#allocation2 + $0xe0] sm:$0xff]  ;;  %v1059_v58 = vld [vmem:[#allocation2 + $0xf0] sm:$0xff]  ;;  %763 = vst.msk [vmem:[#allocation3 + $0x78] sm:$0xff] %vm746_vm3, %v26316_v0 }
  0xb9   : > { %22514 = vmatmul.mubr.msk.bf16.gmra.mrb[8].mxu0 %vm690_vm0, %v26782_v54  ;;  %v1060_v59 = vld [vmem:[#allocation2 + $0xf8] sm:$0xff]  ;;  %v26871_v60 = vpack.c.bf16 %v1058_v57, %v1057_v56  ;;  %v1061_v1 = vld [vmem:[#allocation2 + $0x108] sm:$0xff]  ;;  %v1062_v2 = vld [vmem:[#allocation2 + $0x110] sm:$0xff]  ;;  %764 = vst.msk [vmem:[#allocation3 + $0x80] sm:$0xff] %vm746_vm3, %v26316_v0 }
  0xba   : > { %22517 = vmatprep.mubr.msk.bf16.mxu0 %vm690_vm0, %v26784_v55  ;;  %v26873_v63 = vpack.c.bf16 %v1060_v59, %v1059_v58  ;;  %v1063_v3 = vld [vmem:[#allocation2 + $0x120] sm:$0xff]  ;;  %v1064_v6 = vld [vmem:[#allocation2 + $0x128] sm:$0xff]  ;;  %v26879_v7 = vpack.c.bf16 %v1062_v2, %v1061_v1  ;;  %v1065_v9 = vld [vmem:[#allocation2 + $0x138] sm:$0xff]  ;;  %766 = vst.msk [vmem:[#allocation3 + $0x90] sm:$0xff] %vm746_vm3, %v26316_v0 }
  0xbb   : > { %v26881_v8 = vpack.c.bf16 %v1064_v6, %v1063_v3  ;;  %v1066_v12 = vld [vmem:[#allocation2 + $0x140] sm:$0xff]  ;;  %v1067_v13 = vld [vmem:[#allocation2 + $0x150] sm:$0xff]  ;;  %v1068_v14 = vld [vmem:[#allocation2 + $0x158] sm:$0xff]  ;;  %767 = vst.msk [vmem:[#allocation3 + $0x98] sm:$0xff] %vm746_vm3, %v26316_v0 }
  0xbc   : > { %v26887_v15 = vpack.c.bf16 %v1066_v12, %v1065_v9  ;;  %v26889_v18 = vpack.c.bf16 %v1068_v14, %v1067_v13  ;;  %v1002_v19 = vld [vmem:[%s26693_s0 + $0xf0] sm:$0xff]  ;;  %v1003_v20 = vld [vmem:[%s26693_s0 + $0xf8] sm:$0xff]  ;;  %v1069_v21 = vld [vmem:[#allocation2 + $0x168] sm:$0xff]  ;;  %769 = vst.msk [vmem:[#allocation3 + $0xa8] sm:$0xff] %vm746_vm3, %v26316_v0  ;;  %s30320_s0 = sld [smem:[#allocation25_spill]] }
  0xbd   : > { %1035 = vst.msk [vmem:[#allocation2 + $0x181] sm:$0xff] %vm690_vm0, %v1002_v19  ;;  %1036 = vst.msk [vmem:[#allocation2 + $0x189] sm:$0xff] %vm690_vm0, %v1003_v20  ;;  %v1564_v25 = vld [vmem:[#allocation2 + $0xa] sm:$0xff]  ;;  %v1565_v33 = vld [vmem:[#allocation2 + $0x1a] sm:$0xff] }
  0xbe   : > { %v1566_v34 = vld [vmem:[#allocation2 + $0x22] sm:$0xff]  ;;  %v1567_v35 = vld [vmem:[#allocation2 + $0x32] sm:$0xff]  ;;  %v1568_v37 = vld [vmem:[#allocation2 + $0x3a] sm:$0xff]  ;;  %770 = vst.msk [vmem:[#allocation3 + $0xb0] sm:$0xff] %vm746_vm3, %v26316_v0 }
  0xbf   : > { %v26906_v40 = vpack.c.bf16 %v1566_v34, %v1565_v33  ;;  %v26908_v43 = vpack.c.bf16 %v1568_v37, %v1567_v35  ;;  %v20351_v44 = vld [vmem:[%s30316_s16 + $0x8] sm:$0x3]  ;;  %v1569_v45 = vld [vmem:[#allocation2 + $0x4a] sm:$0xff]  ;;  %v1570_v48 = vld [vmem:[#allocation2 + $0x52] sm:$0xff]  ;;  %772 = vst.msk [vmem:[#allocation3 + $0xc0] sm:$0xff] %vm746_vm3, %v26316_v0 }
  0xc0   : > { %v1572_v49 = vld [vmem:[#allocation2 + $0x6a] sm:$0xff]  ;;  %v26918_v50 = vpack.c.bf16 %v1570_v48, %v1569_v45  ;;  %v1573_v56 = vld [vmem:[#allocation2 + $0x7a] sm:$0xff]  ;;  %v1574_v57 = vld [vmem:[#allocation2 + $0x82] sm:$0xff]  ;;  %773 = vst.msk [vmem:[#allocation3 + $0xc8] sm:$0xff] %vm746_vm3, %v26316_v0 }
  0xc1   : > { %22518 = vmatmul.mubr.msk.bf16.gmra.mrb[12].mxu0 %vm690_vm0, %v26794_v61  ;;  %v1575_v58 = vld [vmem:[#allocation2 + $0x92] sm:$0xff]  ;;  %v1576_v59 = vld [vmem:[#allocation2 + $0x9a] sm:$0xff]  ;;  %v26926_v1 = vpack.c.bf16 %v1574_v57, %v1573_v56  ;;  %v1577_v3 = vld [vmem:[#allocation2 + $0xaa] sm:$0xff]  ;;  %775 = vst.msk [vmem:[#allocation3 + $0xd8] sm:$0xff] %vm746_vm3, %v26316_v0 }
  0xc2   : > { %22521 = vmatprep.mubr.msk.bf16.mxu0 %vm690_vm0, %v26796_v62  ;;  %v26928_v2 = vpack.c.bf16 %v1576_v59, %v1575_v58  ;;  %v1578_v6 = vld [vmem:[#allocation2 + $0xb2] sm:$0xff]  ;;  %v1579_v9 = vld [vmem:[#allocation2 + $0xc2] sm:$0xff]  ;;  %v1580_v12 = vld [vmem:[#allocation2 + $0xca] sm:$0xff]  ;;  %776 = vst.msk [vmem:[#allocation3 + $0xe0] sm:$0xff] %vm746_vm3, %v26316_v0 }
  0xc3   : > { %v26934_v13 = vpack.c.bf16 %v1578_v6, %v1577_v3  ;;  %v26936_v14 = vpack.c.bf16 %v1580_v12, %v1579_v9  ;;  %v1581_v19 = vld [vmem:[#allocation2 + $0xda] sm:$0xff]  ;;  %v1582_v20 = vld [vmem:[#allocation2 + $0xe2] sm:$0xff]  ;;  %v1588_v34 = vld [vmem:[#allocation2 + $0x12a] sm:$0xff]  ;;  %v2250_v6 = vsel %vm1186_vm2, %v20351_v44, 0  ;;  %778 = vst.msk [vmem:[#allocation3 + $0xf0] sm:$0xff] %vm746_vm3, %v26316_v0 }
  0xc4   : > { %v1587_v33 = vld [vmem:[#allocation2 + $0x122] sm:$0xff]  ;;  %v1589_v45 = vld [vmem:[#allocation2 + $0x13a] sm:$0xff]  ;;  %v1593_v58 = vld [vmem:[#allocation2 + $0x16a] sm:$0xff]  ;;  %779 = vst.msk [vmem:[#allocation3 + $0xf8] sm:$0xff] %vm746_vm3, %v26316_v0 }
  0xc5   : > { %v26952_v37 = vpack.c.bf16 %v1588_v34, %v1587_v33  ;;  %v1590_v48 = vld [vmem:[#allocation2 + $0x142] sm:$0xff]  ;;  %v1594_v59 = vld [vmem:[#allocation2 + $0x172] sm:$0xff]  ;;  %v20368_v9 = vld [vmem:[%s30316_s16 + $0xa] sm:$0x3]  ;;  %781 = vst.msk [vmem:[#allocation3 + $0x108] sm:$0xff] %vm746_vm3, %v26316_v0 }
  0xc6   : > { %v26958_v56 = vpack.c.bf16 %v1590_v48, %v1589_v45  ;;  %v26966_v3 = vpack.c.bf16 %v1594_v59, %v1593_v58  ;;  %v27093_v33 = vld [vmem:[%s30316_s16 + $0x10] sm:$0x3]  ;;  %782 = vst.msk [vmem:[#allocation3 + $0x110] sm:$0xff] %vm746_vm3, %v26316_v0  ;;  %784 = vst.msk [vmem:[#allocation3 + $0x120] sm:$0xff] %vm746_vm3, %v26316_v0 }
  0xc7   : > { %785 = vst.msk [vmem:[#allocation3 + $0x128] sm:$0xff] %vm746_vm3, %v26316_v0  ;;  %787 = vst.msk [vmem:[#allocation3 + $0x138] sm:$0xff] %vm746_vm3, %v26316_v0 }
  0xc8   : > { %788 = vst.msk [vmem:[#allocation3 + $0x140] sm:$0xff] %vm746_vm3, %v26316_v0  ;;  %790 = vst.msk [vmem:[#allocation3 + $0x150] sm:$0xff] %vm746_vm3, %v26316_v0 }
  0xc9   : > { %22522 = vmatmul.mubr.msk.bf16.gmra.mrb[16].mxu0 %vm690_vm0, %v26802_v4  ;;  %791 = vst.msk [vmem:[#allocation3 + $0x158] sm:$0xff] %vm746_vm3, %v26316_v0  ;;  %793 = vst.msk [vmem:[#allocation3 + $0x168] sm:$0xff] %vm746_vm3, %v26316_v0 }
  0xca   : > { %22525 = vmatprep.mubr.msk.bf16.mxu0 %vm690_vm0, %v26804_v5  ;;  %794 = vst.msk [vmem:[#allocation3 + $0x170] sm:$0xff] %vm746_vm3, %v26316_v0  ;;  %796 = vst.msk [vmem:[#allocation3 + $0x180] sm:$0xff] %vm746_vm3, %v26316_v0 }
  0xcb   : > { %797 = vst.msk [vmem:[#allocation3 + $0x188] sm:$0xff] %vm746_vm3, %v26316_v0  ;;  %799 = vst.msk [vmem:[#allocation3 + $0x198] sm:$0xff] %vm746_vm3, %v26316_v0 }
  0xcc   : > { %800 = vst.msk [vmem:[#allocation3 + $0x1a0] sm:$0xff] %vm746_vm3, %v26316_v0  ;;  %802 = vst.msk [vmem:[#allocation4] sm:$0xff] %vm746_vm3, %v26316_v0 }
  0xcd   : > { %804 = vst.msk [vmem:[#allocation4 + $0x10] sm:$0xff] %vm746_vm3, %v26316_v0  ;;  %806 = vst.msk [vmem:[#allocation4 + $0x20] sm:$0xff] %vm746_vm3, %v26316_v0 }
  0xce   : > { %808 = vst.msk [vmem:[#allocation4 + $0x30] sm:$0xff] %vm746_vm3, %v26316_v0  ;;  %810 = vst.msk [vmem:[#allocation4 + $0x40] sm:$0xff] %vm746_vm3, %v26316_v0 }
  0xcf   : > { %812 = vst.msk [vmem:[#allocation4 + $0x50] sm:$0xff] %vm746_vm3, %v26316_v0  ;;  %814 = vst.msk [vmem:[#allocation4 + $0x60] sm:$0xff] %vm746_vm3, %v26316_v0 }
  0xd0   : > { %816 = vst.msk [vmem:[#allocation4 + $0x70] sm:$0xff] %vm746_vm3, %v26316_v0  ;;  %818 = vst.msk [vmem:[#allocation4 + $0x80] sm:$0xff] %vm746_vm3, %v26316_v0 }
  0xd1   : > { %22526 = vmatmul.mubr.msk.bf16.gmra.mrb[20].mxu0 %vm690_vm0, %v26810_v10  ;;  %820 = vst.msk [vmem:[#allocation4 + $0x90] sm:$0xff] %vm746_vm3, %v26316_v0  ;;  %918 = vst.msk [vmem:[#allocation8] sm:$0xff] %vm746_vm3, %v26316_v0 }
  0xd2   : > { %22529 = vmatprep.mubr.msk.bf16.mxu0 %vm690_vm0, %v26812_v11  ;;  %919 = vst.msk [vmem:[#allocation8 + $0x8] sm:$0xff] %vm746_vm3, %v26316_v0  ;;  %921 = vst.msk [vmem:[#allocation8 + $0x18] sm:$0xff] %vm746_vm3, %v26316_v0 }
  0xd3   : > { %922 = vst.msk [vmem:[#allocation8 + $0x20] sm:$0xff] %vm746_vm3, %v26316_v0  ;;  %924 = vst.msk [vmem:[#allocation8 + $0x30] sm:$0xff] %vm746_vm3, %v26316_v0 }
  0xd4   : > { %925 = vst.msk [vmem:[#allocation8 + $0x38] sm:$0xff] %vm746_vm3, %v26316_v0  ;;  %927 = vst.msk [vmem:[#allocation8 + $0x48] sm:$0xff] %vm746_vm3, %v26316_v0 }
  0xd5   : > { %928 = vst.msk [vmem:[#allocation8 + $0x50] sm:$0xff] %vm746_vm3, %v26316_v0  ;;  %930 = vst.msk [vmem:[#allocation8 + $0x60] sm:$0xff] %vm746_vm3, %v26316_v0 }
  0xd6   : > { %931 = vst.msk [vmem:[#allocation8 + $0x68] sm:$0xff] %vm746_vm3, %v26316_v0  ;;  %933 = vst.msk [vmem:[#allocation8 + $0x78] sm:$0xff] %vm746_vm3, %v26316_v0 }
  0xd7   : > { %934 = vst.msk [vmem:[#allocation8 + $0x80] sm:$0xff] %vm746_vm3, %v26316_v0  ;;  %936 = vst.msk [vmem:[#allocation8 + $0x90] sm:$0xff] %vm746_vm3, %v26316_v0 }
  0xd8   : > { %937 = vst.msk [vmem:[#allocation8 + $0x98] sm:$0xff] %vm746_vm3, %v26316_v0  ;;  %939 = vst.msk [vmem:[#allocation8 + $0xa8] sm:$0xff] %vm746_vm3, %v26316_v0 }
  0xd9   : > { %22530 = vmatmul.mubr.msk.bf16.gmra.mrb[24].mxu0 %vm690_vm0, %v26818_v16  ;;  %940 = vst.msk [vmem:[#allocation8 + $0xb0] sm:$0xff] %vm746_vm3, %v26316_v0  ;;  %942 = vst.msk [vmem:[#allocation8 + $0xc0] sm:$0xff] %vm746_vm3, %v26316_v0 }
  0xda   : > { %22533 = vmatprep.mubr.msk.bf16.mxu0 %vm690_vm0, %v26820_v17  ;;  %943 = vst.msk [vmem:[#allocation8 + $0xc8] sm:$0xff] %vm746_vm3, %v26316_v0  ;;  %945 = vst.msk [vmem:[#allocation8 + $0xd8] sm:$0xff] %vm746_vm3, %v26316_v0 }
  0xdb   : > { %946 = vst.msk [vmem:[#allocation8 + $0xe0] sm:$0xff] %vm746_vm3, %v26316_v0  ;;  %948 = vst.msk [vmem:[#allocation8 + $0xf0] sm:$0xff] %vm746_vm3, %v26316_v0 }
  0xdc   : > { %949 = vst.msk [vmem:[#allocation8 + $0xf8] sm:$0xff] %vm746_vm3, %v26316_v0  ;;  %951 = vst.msk [vmem:[#allocation8 + $0x108] sm:$0xff] %vm746_vm3, %v26316_v0 }
  0xdd   : > { %952 = vst.msk [vmem:[#allocation8 + $0x110] sm:$0xff] %vm746_vm3, %v26316_v0  ;;  %954 = vst.msk [vmem:[#allocation8 + $0x120] sm:$0xff] %vm746_vm3, %v26316_v0 }
  0xde   : > { %955 = vst.msk [vmem:[#allocation8 + $0x128] sm:$0xff] %vm746_vm3, %v26316_v0  ;;  %957 = vst.msk [vmem:[#allocation8 + $0x138] sm:$0xff] %vm746_vm3, %v26316_v0 }
  0xdf   : > { %958 = vst.msk [vmem:[#allocation8 + $0x140] sm:$0xff] %vm746_vm3, %v26316_v0  ;;  %960 = vst.msk [vmem:[#allocation8 + $0x150] sm:$0xff] %vm746_vm3, %v26316_v0 }
  0xe0   : > { %961 = vst.msk [vmem:[#allocation8 + $0x158] sm:$0xff] %vm746_vm3, %v26316_v0  ;;  %963 = vst.msk [vmem:[#allocation8 + $0x168] sm:$0xff] %vm746_vm3, %v26316_v0 }
  0xe1   : > { %22534 = vmatmul.mubr.msk.bf16.gmra.mrb[28].mxu0 %vm690_vm0, %v26827_v23  ;;  %964 = vst.msk [vmem:[#allocation8 + $0x170] sm:$0xff] %vm746_vm3, %v26316_v0  ;;  %966 = vst.msk [vmem:[#allocation8 + $0x180] sm:$0xff] %vm746_vm3, %v26316_v0 }
  0xe2   : > { %22539 = vmatprep.mubr.msk.bf16.mxu0 %vm690_vm0, %v1071_v24  ;;  %v1563_v24 = vld [vmem:[#allocation2 + $0x2] sm:$0xff]  ;;  %967 = vst.msk [vmem:[#allocation8 + $0x188] sm:$0xff] %vm746_vm3, %v26316_v0  ;;  %969 = vst.msk [vmem:[#allocation8 + $0x198] sm:$0xff] %vm746_vm3, %v26316_v0 }
  0xe3   : > { %v1595_v27 = vpack.c.bf16 %v1564_v25, %v1563_v24  ;;  %v26942_v24 = vpack.c.bf16 %v1582_v20, %v1581_v19  ;;  %v2544_v19 = vsel %vm1186_vm2, %v20368_v9, 0  ;;  %v20385_v20 = vld [vmem:[%s30316_s16 + $0xc] sm:$0x3]  ;;  %970 = vst.msk [vmem:[#allocation8 + $0x1a0] sm:$0xff] %vm746_vm3, %v26316_v0 }
  0xe4   : > { %756 = vst.msk [vmem:[#allocation3 + $0x40] sm:$0x3] %vm749_vm4, %v26316_v0  ;;  %750 = vst.msk [vmem:[#allocation3 + $0x10] sm:$0x3] %vm749_vm4, %v26316_v0 }
  0xe5   : > { %753 = vst.msk [vmem:[#allocation3 + $0x28] sm:$0x3] %vm749_vm4, %v26316_v0  ;;  %759 = vst.msk [vmem:[#allocation3 + $0x58] sm:$0x3] %vm749_vm4, %v26316_v0 }
  0xe6   : > { %762 = vst.msk [vmem:[#allocation3 + $0x70] sm:$0x3] %vm749_vm4, %v26316_v0  ;;  %765 = vst.msk [vmem:[#allocation3 + $0x88] sm:$0x3] %vm749_vm4, %v26316_v0 }
  0xe7   : > { %768 = vst.msk [vmem:[#allocation3 + $0xa0] sm:$0x3] %vm749_vm4, %v26316_v0  ;;  %771 = vst.msk [vmem:[#allocation3 + $0xb8] sm:$0x3] %vm749_vm4, %v26316_v0 }
  0xe8   : > { %774 = vst.msk [vmem:[#allocation3 + $0xd0] sm:$0x3] %vm749_vm4, %v26316_v0  ;;  %777 = vst.msk [vmem:[#allocation3 + $0xe8] sm:$0x3] %vm749_vm4, %v26316_v0 }
  0xe9   : > { %22540 = vmatmul.mubr.msk.bf16.vlgmr.msra.gmra.mrb[0].mxu0 %vm690_vm0, %v26832_v29  ;;  %780 = vst.msk [vmem:[#allocation3 + $0x100] sm:$0x3] %vm749_vm4, %v26316_v0  ;;  %783 = vst.msk [vmem:[#allocation3 + $0x118] sm:$0x3] %vm749_vm4, %v26316_v0 }
  0xea   : > { %22543 = vmatprep.mubr.msk.bf16.mxu0 %vm690_vm0, %v26834_v31  ;;  %22572 = vmatpush3.bf16.msra.mxu0 %v1662_v22  ;;  %v1070_v22 = vld [vmem:[#allocation2 + $0x170] sm:$0xff]  ;;  %786 = vst.msk [vmem:[#allocation3 + $0x130] sm:$0x3] %vm749_vm4, %v26316_v0  ;;  %789 = vst.msk [vmem:[#allocation3 + $0x148] sm:$0x3] %vm749_vm4, %v26316_v0 }
  0xeb   : > { %25928 = vmatprep.subr.msk.bf16.mxu0 %vm1186_vm2, %v26839_v32  ;;  %v26899_v26 = vpack.c.bf16 %v1070_v22, %v1069_v21  ;;  %v1571_v32 = vld [vmem:[#allocation2 + $0x62] sm:$0xff]  ;;  %v1583_v21 = vld [vmem:[#allocation2 + $0xf2] sm:$0xff]  ;;  %v1584_v22 = vld [vmem:[#allocation2 + $0xfa] sm:$0xff]  ;;  %792 = vst.msk [vmem:[#allocation3 + $0x160] sm:$0x3] %vm749_vm4, %v26316_v0 }
  0xec   : > { %v26920_v51 = vpack.c.bf16 %v1572_v49, %v1571_v32  ;;  %v26944_v25 = vpack.c.bf16 %v1584_v22, %v1583_v21  ;;  %v1591_v32 = vld [vmem:[#allocation2 + $0x152] sm:$0xff]  ;;  %v1592_v49 = vld [vmem:[#allocation2 + $0x15a] sm:$0xff]  ;;  %v20402_v21 = vld [vmem:[%s30316_s16 + $0xe] sm:$0x3]  ;;  %795 = vst.msk [vmem:[#allocation3 + $0x178] sm:$0x3] %vm749_vm4, %v26316_v0 }
  0xed   : > { %v26960_v57 = vpack.c.bf16 %v1592_v49, %v1591_v32  ;;  %v2476_v22 = vld [vmem:[#allocation2 + $0x18a] sm:$0xff]  ;;  %798 = vst.msk [vmem:[#allocation3 + $0x190] sm:$0x3] %vm749_vm4, %v26316_v0  ;;  %801 = vst.msk [vmem:[#allocation3 + $0x1a8] sm:$0x3] %vm749_vm4, %v26316_v0 }
  0xee   : > { %803 = vst.msk [vmem:[#allocation4 + $0x8] sm:$0x3] %vm749_vm4, %v26316_v0  ;;  %805 = vst.msk [vmem:[#allocation4 + $0x18] sm:$0x3] %vm749_vm4, %v26316_v0 }
  0xef   : > { %807 = vst.msk [vmem:[#allocation4 + $0x28] sm:$0x3] %vm749_vm4, %v26316_v0  ;;  %809 = vst.msk [vmem:[#allocation4 + $0x38] sm:$0x3] %vm749_vm4, %v26316_v0 }
  0xf0   : > { %811 = vst.msk [vmem:[#allocation4 + $0x48] sm:$0x3] %vm749_vm4, %v26316_v0  ;;  %813 = vst.msk [vmem:[#allocation4 + $0x58] sm:$0x3] %vm749_vm4, %v26316_v0 }
  0xf1   : > { %22544 = vmatmul.mubr.msk.bf16.gmra.mrb[4].mxu0 %vm690_vm0, %v26847_v38  ;;  %815 = vst.msk [vmem:[#allocation4 + $0x68] sm:$0x3] %vm749_vm4, %v26316_v0  ;;  %817 = vst.msk [vmem:[#allocation4 + $0x78] sm:$0x3] %vm749_vm4, %v26316_v0 }
  0xf2   : > { %22547 = vmatprep.mubr.msk.bf16.mxu0 %vm690_vm0, %v26849_v39  ;;  %819 = vst.msk [vmem:[#allocation4 + $0x88] sm:$0x3] %vm749_vm4, %v26316_v0  ;;  %821 = vst.msk [vmem:[#allocation4 + $0x98] sm:$0x3] %vm749_vm4, %v26316_v0 }
  0xf3   : > { %920 = vst.msk [vmem:[#allocation8 + $0x10] sm:$0x3] %vm749_vm4, %v26316_v0  ;;  %923 = vst.msk [vmem:[#allocation8 + $0x28] sm:$0x3] %vm749_vm4, %v26316_v0 }
  0xf4   : > { %926 = vst.msk [vmem:[#allocation8 + $0x40] sm:$0x3] %vm749_vm4, %v26316_v0  ;;  %929 = vst.msk [vmem:[#allocation8 + $0x58] sm:$0x3] %vm749_vm4, %v26316_v0 }
  0xf5   : > { %932 = vst.msk [vmem:[#allocation8 + $0x70] sm:$0x3] %vm749_vm4, %v26316_v0  ;;  %935 = vst.msk [vmem:[#allocation8 + $0x88] sm:$0x3] %vm749_vm4, %v26316_v0 }
  0xf6   : > { %938 = vst.msk [vmem:[#allocation8 + $0xa0] sm:$0x3] %vm749_vm4, %v26316_v0  ;;  %941 = vst.msk [vmem:[#allocation8 + $0xb8] sm:$0x3] %vm749_vm4, %v26316_v0 }
  0xf7   : > { %944 = vst.msk [vmem:[#allocation8 + $0xd0] sm:$0x3] %vm749_vm4, %v26316_v0  ;;  %947 = vst.msk [vmem:[#allocation8 + $0xe8] sm:$0x3] %vm749_vm4, %v26316_v0 }
  0xf8   : > { %950 = vst.msk [vmem:[#allocation8 + $0x100] sm:$0x3] %vm749_vm4, %v26316_v0  ;;  %953 = vst.msk [vmem:[#allocation8 + $0x118] sm:$0x3] %vm749_vm4, %v26316_v0 }
  0xf9   : > { %22548 = vmatmul.mubr.msk.bf16.gmra.mrb[8].mxu0 %vm690_vm0, %v26855_v46  ;;  %956 = vst.msk [vmem:[#allocation8 + $0x130] sm:$0x3] %vm749_vm4, %v26316_v0  ;;  %959 = vst.msk [vmem:[#allocation8 + $0x148] sm:$0x3] %vm749_vm4, %v26316_v0 }
  0xfa   : > { %22551 = vmatprep.mubr.msk.bf16.mxu0 %vm690_vm0, %v26857_v47  ;;  %962 = vst.msk [vmem:[#allocation8 + $0x160] sm:$0x3] %vm749_vm4, %v26316_v0  ;;  %965 = vst.msk [vmem:[#allocation8 + $0x178] sm:$0x3] %vm749_vm4, %v26316_v0 }
  0xfb   : > { %968 = vst.msk [vmem:[#allocation8 + $0x190] sm:$0x3] %vm749_vm4, %v26316_v0  ;;  %971 = vst.msk [vmem:[#allocation8 + $0x1a8] sm:$0x3] %vm749_vm4, %v26316_v0 }
  0xfc   : > { %830 = vst.msk [vmem:[#allocation5 + $0x30] sm:$0xff] %vm822_vm13, %v26316_v0  ;;  %823 = vst.msk [vmem:[#allocation5] sm:$0xff] %vm822_vm13, %v26316_v0 }
  0xfd   : > { %831 = vst.msk [vmem:[#allocation5 + $0x38] sm:$0x3] %vm824_vm14, %v26316_v0  ;;  %825 = vst.msk [vmem:[#allocation5 + $0x8] sm:$0x3] %vm824_vm14, %v26316_v0 }
  0xfe   : > { %826 = vst.msk [vmem:[#allocation5 + $0x10] sm:$0xff] %vm822_vm13, %v26316_v0  ;;  %828 = vst.msk [vmem:[#allocation5 + $0x20] sm:$0xff] %vm822_vm13, %v26316_v0 }
  0xff   : > { %827 = vst.msk [vmem:[#allocation5 + $0x18] sm:$0x3] %vm824_vm14, %v26316_v0  ;;  %829 = vst.msk [vmem:[#allocation5 + $0x28] sm:$0x3] %vm824_vm14, %v26316_v0 }
 0x100   : > { %832 = vst.msk [vmem:[#allocation5 + $0x40] sm:$0xff] %vm822_vm13, %v26316_v0  ;;  %834 = vst.msk [vmem:[#allocation5 + $0x50] sm:$0xff] %vm822_vm13, %v26316_v0 }
 0x101   : > { %22552 = vmatmul.mubr.msk.bf16.gmra.mrb[12].mxu0 %vm690_vm0, %v26863_v52  ;;  %833 = vst.msk [vmem:[#allocation5 + $0x48] sm:$0x3] %vm824_vm14, %v26316_v0  ;;  %835 = vst.msk [vmem:[#allocation5 + $0x58] sm:$0x3] %vm824_vm14, %v26316_v0 }
 0x102   : > { %22555 = vmatprep.mubr.msk.bf16.mxu0 %vm690_vm0, %v26865_v53  ;;  %836 = vst.msk [vmem:[#allocation5 + $0x60] sm:$0xff] %vm822_vm13, %v26316_v0  ;;  %838 = vst.msk [vmem:[#allocation5 + $0x70] sm:$0xff] %vm822_vm13, %v26316_v0 }
 0x103   : > { %837 = vst.msk [vmem:[#allocation5 + $0x68] sm:$0x3] %vm824_vm14, %v26316_v0  ;;  %839 = vst.msk [vmem:[#allocation5 + $0x78] sm:$0x3] %vm824_vm14, %v26316_v0 }
 0x104   : > { %840 = vst.msk [vmem:[#allocation5 + $0x80] sm:$0xff] %vm822_vm13, %v26316_v0  ;;  %842 = vst.msk [vmem:[#allocation5 + $0x90] sm:$0xff] %vm822_vm13, %v26316_v0 }
 0x105   : > { %841 = vst.msk [vmem:[#allocation5 + $0x88] sm:$0x3] %vm824_vm14, %v26316_v0  ;;  %843 = vst.msk [vmem:[#allocation5 + $0x98] sm:$0x3] %vm824_vm14, %v26316_v0 }
 0x106   : > { %844 = vst.msk [vmem:[#allocation6] sm:$0xff] %vm822_vm13, %v26316_v0  ;;  %846 = vst.msk [vmem:[#allocation6 + $0x10] sm:$0xff] %vm822_vm13, %v26316_v0 }
 0x107   : > { %845 = vst.msk [vmem:[#allocation6 + $0x8] sm:$0x3] %vm824_vm14, %v26316_v0  ;;  %847 = vst.msk [vmem:[#allocation6 + $0x18] sm:$0x3] %vm824_vm14, %v26316_v0 }
 0x108   : > { %848 = vst.msk [vmem:[#allocation6 + $0x20] sm:$0xff] %vm822_vm13, %v26316_v0  ;;  %850 = vst.msk [vmem:[#allocation6 + $0x30] sm:$0xff] %vm822_vm13, %v26316_v0 }
 0x109   : > { %22556 = vmatmul.mubr.msk.bf16.gmra.mrb[16].mxu0 %vm690_vm0, %v26871_v60  ;;  %849 = vst.msk [vmem:[#allocation6 + $0x28] sm:$0x3] %vm824_vm14, %v26316_v0  ;;  %851 = vst.msk [vmem:[#allocation6 + $0x38] sm:$0x3] %vm824_vm14, %v26316_v0 }
 0x10a   : > { %22559 = vmatprep.mubr.msk.bf16.mxu0 %vm690_vm0, %v26873_v63  ;;  %852 = vst.msk [vmem:[#allocation6 + $0x40] sm:$0xff] %vm822_vm13, %v26316_v0  ;;  %854 = vst.msk [vmem:[#allocation6 + $0x50] sm:$0xff] %vm822_vm13, %v26316_v0 }
 0x10b   : > { %853 = vst.msk [vmem:[#allocation6 + $0x48] sm:$0x3] %vm824_vm14, %v26316_v0  ;;  %855 = vst.msk [vmem:[#allocation6 + $0x58] sm:$0x3] %vm824_vm14, %v26316_v0 }
 0x10c   : > { %856 = vst.msk [vmem:[#allocation6 + $0x60] sm:$0xff] %vm822_vm13, %v26316_v0  ;;  %858 = vst.msk [vmem:[#allocation6 + $0x70] sm:$0xff] %vm822_vm13, %v26316_v0 }
 0x10d   : > { %857 = vst.msk [vmem:[#allocation6 + $0x68] sm:$0x3] %vm824_vm14, %v26316_v0  ;;  %859 = vst.msk [vmem:[#allocation6 + $0x78] sm:$0x3] %vm824_vm14, %v26316_v0 }
 0x10e   : > { %860 = vst.msk [vmem:[#allocation6 + $0x80] sm:$0xff] %vm822_vm13, %v26316_v0  ;;  %862 = vst.msk [vmem:[#allocation6 + $0x90] sm:$0xff] %vm822_vm13, %v26316_v0 }
 0x10f   : > { %861 = vst.msk [vmem:[#allocation6 + $0x88] sm:$0x3] %vm824_vm14, %v26316_v0  ;;  %863 = vst.msk [vmem:[#allocation6 + $0x98] sm:$0x3] %vm824_vm14, %v26316_v0 }
 0x110   : > { %864 = vst.msk [vmem:[#allocation7] sm:$0xff] %vm822_vm13, %v26316_v0  ;;  %865 = vst.msk [vmem:[#allocation7 + $0x8] sm:$0xff] %vm822_vm13, %v26316_v0 }
 0x111   : > { %22560 = vmatmul.mubr.msk.bf16.gmra.mrb[20].mxu0 %vm690_vm0, %v26879_v7  ;;  %866 = vst.msk [vmem:[#allocation7 + $0x10] sm:$0x3] %vm824_vm14, %v26316_v0  ;;  %869 = vst.msk [vmem:[#allocation7 + $0x28] sm:$0x3] %vm824_vm14, %v26316_v0 }
 0x112   : > { %22563 = vmatprep.mubr.msk.bf16.mxu0 %vm690_vm0, %v26881_v8  ;;  %867 = vst.msk [vmem:[#allocation7 + $0x18] sm:$0xff] %vm822_vm13, %v26316_v0  ;;  %868 = vst.msk [vmem:[#allocation7 + $0x20] sm:$0xff] %vm822_vm13, %v26316_v0 }
 0x113   : > { %870 = vst.msk [vmem:[#allocation7 + $0x30] sm:$0xff] %vm822_vm13, %v26316_v0  ;;  %871 = vst.msk [vmem:[#allocation7 + $0x38] sm:$0xff] %vm822_vm13, %v26316_v0 }
 0x114   : > { %872 = vst.msk [vmem:[#allocation7 + $0x40] sm:$0x3] %vm824_vm14, %v26316_v0  ;;  %875 = vst.msk [vmem:[#allocation7 + $0x58] sm:$0x3] %vm824_vm14, %v26316_v0 }
 0x115   : > { %873 = vst.msk [vmem:[#allocation7 + $0x48] sm:$0xff] %vm822_vm13, %v26316_v0  ;;  %874 = vst.msk [vmem:[#allocation7 + $0x50] sm:$0xff] %vm822_vm13, %v26316_v0 }
 0x116   : > { %876 = vst.msk [vmem:[#allocation7 + $0x60] sm:$0xff] %vm822_vm13, %v26316_v0  ;;  %877 = vst.msk [vmem:[#allocation7 + $0x68] sm:$0xff] %vm822_vm13, %v26316_v0 }
 0x117   : > { %878 = vst.msk [vmem:[#allocation7 + $0x70] sm:$0x3] %vm824_vm14, %v26316_v0  ;;  %881 = vst.msk [vmem:[#allocation7 + $0x88] sm:$0x3] %vm824_vm14, %v26316_v0 }
 0x118   : > { %879 = vst.msk [vmem:[#allocation7 + $0x78] sm:$0xff] %vm822_vm13, %v26316_v0  ;;  %880 = vst.msk [vmem:[#allocation7 + $0x80] sm:$0xff] %vm822_vm13, %v26316_v0 }
 0x119   : > { %22564 = vmatmul.mubr.msk.bf16.gmra.mrb[24].mxu0 %vm690_vm0, %v26887_v15  ;;  %882 = vst.msk [vmem:[#allocation7 + $0x90] sm:$0xff] %vm822_vm13, %v26316_v0  ;;  %883 = vst.msk [vmem:[#allocation7 + $0x98] sm:$0xff] %vm822_vm13, %v26316_v0 }
 0x11a   : > { %22567 = vmatprep.mubr.msk.bf16.mxu0 %vm690_vm0, %v26889_v18  ;;  %884 = vst.msk [vmem:[#allocation7 + $0xa0] sm:$0x3] %vm824_vm14, %v26316_v0  ;;  %887 = vst.msk [vmem:[#allocation7 + $0xb8] sm:$0x3] %vm824_vm14, %v26316_v0 }
 0x11b   : > { %885 = vst.msk [vmem:[#allocation7 + $0xa8] sm:$0xff] %vm822_vm13, %v26316_v0  ;;  %886 = vst.msk [vmem:[#allocation7 + $0xb0] sm:$0xff] %vm822_vm13, %v26316_v0 }
 0x11c   : > { %888 = vst.msk [vmem:[#allocation7 + $0xc0] sm:$0xff] %vm822_vm13, %v26316_v0  ;;  %889 = vst.msk [vmem:[#allocation7 + $0xc8] sm:$0xff] %vm822_vm13, %v26316_v0 }
 0x11d   : > { %890 = vst.msk [vmem:[#allocation7 + $0xd0] sm:$0x3] %vm824_vm14, %v26316_v0  ;;  %893 = vst.msk [vmem:[#allocation7 + $0xe8] sm:$0x3] %vm824_vm14, %v26316_v0 }
 0x11e   : > { %891 = vst.msk [vmem:[#allocation7 + $0xd8] sm:$0xff] %vm822_vm13, %v26316_v0  ;;  %892 = vst.msk [vmem:[#allocation7 + $0xe0] sm:$0xff] %vm822_vm13, %v26316_v0 }
 0x11f   : > { %894 = vst.msk [vmem:[#allocation7 + $0xf0] sm:$0xff] %vm822_vm13, %v26316_v0  ;;  %895 = vst.msk [vmem:[#allocation7 + $0xf8] sm:$0xff] %vm822_vm13, %v26316_v0 }
 0x120   : > { %896 = vst.msk [vmem:[#allocation7 + $0x100] sm:$0x3] %vm824_vm14, %v26316_v0  ;;  %899 = vst.msk [vmem:[#allocation7 + $0x118] sm:$0x3] %vm824_vm14, %v26316_v0 }
 0x121   : > { %22568 = vmatmul.mubr.msk.bf16.gmra.mrb[28].mxu0 %vm690_vm0, %v26899_v26  ;;  %897 = vst.msk [vmem:[#allocation7 + $0x108] sm:$0xff] %vm822_vm13, %v26316_v0  ;;  %898 = vst.msk [vmem:[#allocation7 + $0x110] sm:$0xff] %vm822_vm13, %v26316_v0 }
 0x122   : > { %22573 = vmatprep.mubr.msk.bf16.mxu0 %vm690_vm0, %v1595_v27  ;;  %v1585_v27 = vld [vmem:[#allocation2 + $0x10a] sm:$0xff]  ;;  %900 = vst.msk [vmem:[#allocation7 + $0x120] sm:$0xff] %vm822_vm13, %v26316_v0  ;;  %901 = vst.msk [vmem:[#allocation7 + $0x128] sm:$0xff] %vm822_vm13, %v26316_v0 }
 0x123   : > { %902 = vst.msk [vmem:[#allocation7 + $0x130] sm:$0x3] %vm824_vm14, %v26316_v0  ;;  %905 = vst.msk [vmem:[#allocation7 + $0x148] sm:$0x3] %vm824_vm14, %v26316_v0 }
 0x124   : > { %903 = vst.msk [vmem:[#allocation7 + $0x138] sm:$0xff] %vm822_vm13, %v26316_v0  ;;  %904 = vst.msk [vmem:[#allocation7 + $0x140] sm:$0xff] %vm822_vm13, %v26316_v0 }
 0x125   : > { %906 = vst.msk [vmem:[#allocation7 + $0x150] sm:$0xff] %vm822_vm13, %v26316_v0  ;;  %907 = vst.msk [vmem:[#allocation7 + $0x158] sm:$0xff] %vm822_vm13, %v26316_v0 }
 0x126   : > { %908 = vst.msk [vmem:[#allocation7 + $0x160] sm:$0x3] %vm824_vm14, %v26316_v0  ;;  %911 = vst.msk [vmem:[#allocation7 + $0x178] sm:$0x3] %vm824_vm14, %v26316_v0 }
 0x127   : > { %909 = vst.msk [vmem:[#allocation7 + $0x168] sm:$0xff] %vm822_vm13, %v26316_v0  ;;  %910 = vst.msk [vmem:[#allocation7 + $0x170] sm:$0xff] %vm822_vm13, %v26316_v0 }
 0x128   : > { %912 = vst.msk [vmem:[#allocation7 + $0x180] sm:$0xff] %vm822_vm13, %v26316_v0  ;;  %913 = vst.msk [vmem:[#allocation7 + $0x188] sm:$0xff] %vm822_vm13, %v26316_v0 }
 0x129   : > { %22574 = vmatmul.mubr.msk.bf16.vlgmr.msra.gmra.mrb[0].mxu0 %vm690_vm0, %v26906_v40  ;;  %914 = vst.msk [vmem:[#allocation7 + $0x190] sm:$0x3] %vm824_vm14, %v26316_v0  ;;  %917 = vst.msk [vmem:[#allocation7 + $0x1a8] sm:$0x3] %vm824_vm14, %v26316_v0 }
 0x12a   : > { %22577 = vmatprep.mubr.msk.bf16.mxu0 %vm690_vm0, %v26908_v43  ;;  %22606 = vmatpush3.bf16.msra.mxu0 %v1956_v28  ;;  %v1586_v28 = vld [vmem:[#allocation2 + $0x112] sm:$0xff]  ;;  %915 = vst.msk [vmem:[#allocation7 + $0x198] sm:$0xff] %vm822_vm13, %v26316_v0  ;;  %916 = vst.msk [vmem:[#allocation7 + $0x1a0] sm:$0xff] %vm822_vm13, %v26316_v0 }
 0x12b   : > { %25929 = vmatprep.subr.msk.bf16.mxu0 %vm1186_vm2, %v20351_v44  ;;  %v26950_v35 = vpack.c.bf16 %v1586_v28, %v1585_v27  ;;  %v1888_v44 = vld [vmem:[#allocation2 + $0x188] sm:$0xff]  ;;  %v3133_v28 = vsel %vm1186_vm2, %v20402_v21, 0 }
 0x131   : > { %22578 = vmatmul.mubr.msk.bf16.gmra.mrb[4].mxu0 %vm690_vm0, %v26918_v50 }
 0x132   : > { %22581 = vmatprep.mubr.msk.bf16.mxu0 %vm690_vm0, %v26920_v51 }
 0x139   : > { %22582 = vmatmul.mubr.msk.bf16.gmra.mrb[8].mxu0 %vm690_vm0, %v26926_v1 }
 0x13a   : > { %22585 = vmatprep.mubr.msk.bf16.mxu0 %vm690_vm0, %v26928_v2 }
 0x141   : > { %22586 = vmatmul.mubr.msk.bf16.gmra.mrb[12].mxu0 %vm690_vm0, %v26934_v13 }
 0x142   : > { %22589 = vmatprep.mubr.msk.bf16.mxu0 %vm690_vm0, %v26936_v14 }
 0x149   : > { %22590 = vmatmul.mubr.msk.bf16.gmra.mrb[16].mxu0 %vm690_vm0, %v26942_v24 }
 0x14a   : > { %22593 = vmatprep.mubr.msk.bf16.mxu0 %vm690_vm0, %v26944_v25 }
 0x151   : > { %22594 = vmatmul.mubr.msk.bf16.gmra.mrb[20].mxu0 %vm690_vm0, %v26950_v35 }
 0x152   : > { %22597 = vmatprep.mubr.msk.bf16.mxu0 %vm690_vm0, %v26952_v37 }
 0x159   : > { %22598 = vmatmul.mubr.msk.bf16.gmra.mrb[24].mxu0 %vm690_vm0, %v26958_v56 }
 0x15a   : > { %22601 = vmatprep.mubr.msk.bf16.mxu0 %vm690_vm0, %v26960_v57 }
 0x161   : > { %22602 = vmatmul.mubr.msk.bf16.gmra.mrb[28].mxu0 %vm690_vm0, %v26966_v3 }
 0x162   : > { %22607 = vmatprep.mubr.msk.bf16.mxu0 %vm690_vm0, %v26832_v29  ;;  %v1887_v29 = vld [vmem:[#allocation2 + $0x180] sm:$0xff] }
 0x163   : > { %v27005_v12 = vpack.c.bf16 %v1888_v44, %v1887_v29 }
 0x169   : > { %22608 = vmatmul.mubr.msk.bf16.vlgmr.msra.gmra.mrb[0].mxu0 %vm690_vm0, %v26834_v31 }
 0x16a   : > { %22611 = vmatprep.mubr.msk.bf16.mxu0 %vm690_vm0, %v26847_v38  ;;  %22640 = vmatpush3.bf16.msra.mxu0 %v2250_v6 }
 0x16b   : > { %25930 = vmatprep.subr.msk.bf16.mxu0 %vm1186_vm2, %v20368_v9 }
 0x171   : > { %22612 = vmatmul.mubr.msk.bf16.gmra.mrb[4].mxu0 %vm690_vm0, %v26849_v39 }
 0x172   : > { %22615 = vmatprep.mubr.msk.bf16.mxu0 %vm690_vm0, %v26855_v46 }
 0x179   : > { %22616 = vmatmul.mubr.msk.bf16.gmra.mrb[8].mxu0 %vm690_vm0, %v26857_v47 }
 0x17a   : > { %22619 = vmatprep.mubr.msk.bf16.mxu0 %vm690_vm0, %v26863_v52 }
 0x181   : > { %22620 = vmatmul.mubr.msk.bf16.gmra.mrb[12].mxu0 %vm690_vm0, %v26865_v53 }
 0x182   : > { %22623 = vmatprep.mubr.msk.bf16.mxu0 %vm690_vm0, %v26871_v60 }
 0x189   : > { %22624 = vmatmul.mubr.msk.bf16.gmra.mrb[16].mxu0 %vm690_vm0, %v26873_v63 }
 0x18a   : > { %22627 = vmatprep.mubr.msk.bf16.mxu0 %vm690_vm0, %v26879_v7 }
 0x191   : > { %22628 = vmatmul.mubr.msk.bf16.gmra.mrb[20].mxu0 %vm690_vm0, %v26881_v8 }
 0x192   : > { %22631 = vmatprep.mubr.msk.bf16.mxu0 %vm690_vm0, %v26887_v15 }
 0x199   : > { %22632 = vmatmul.mubr.msk.bf16.gmra.mrb[24].mxu0 %vm690_vm0, %v26889_v18 }
 0x19a   : > { %22635 = vmatprep.mubr.msk.bf16.mxu0 %vm690_vm0, %v26899_v26 }
 0x1a1   : > { %22636 = vmatmul.mubr.msk.bf16.gmra.mrb[28].mxu0 %vm690_vm0, %v27005_v12 }
 0x1a2   : > { %22641 = vmatprep.mubr.msk.bf16.mxu0 %vm690_vm0, %v26744_v30  ;;  %v2181_v30 = vld [vmem:[#allocation2 + $0x181] sm:$0xff] }
 0x1a9   : > { %22642 = vmatmul.mubr.msk.bf16.vlgmr.msra.gmra.mrb[0].mxu0 %vm690_vm0, %v26756_v36  ;;  %v2182_v36 = vld [vmem:[#allocation2 + $0x189] sm:$0xff] }
 0x1aa   : > { %22645 = vmatprep.mubr.msk.bf16.mxu0 %vm690_vm0, %v26760_v41  ;;  %22674 = vmatpush3.bf16.msra.mxu0 %v2544_v19  ;;  %v27044_v41 = vpack.c.bf16 %v2182_v36, %v2181_v30 }
 0x1ab   : > { %25931 = vmatprep.subr.msk.bf16.mxu0 %vm1186_vm2, %v20385_v20 }
 0x1b1   : > { %22646 = vmatmul.mubr.msk.bf16.gmra.mrb[4].mxu0 %vm690_vm0, %v26762_v42  ;;  %v2839_v42 = vsel %vm1186_vm2, %v20385_v20, 0 }
 0x1b2   : > { %22649 = vmatprep.mubr.msk.bf16.mxu0 %vm690_vm0, %v26782_v54 }
 0x1b9   : > { %22650 = vmatmul.mubr.msk.bf16.gmra.mrb[8].mxu0 %vm690_vm0, %v26784_v55 }
 0x1ba   : > { %22653 = vmatprep.mubr.msk.bf16.mxu0 %vm690_vm0, %v26794_v61 }
 0x1c1   : > { %22654 = vmatmul.mubr.msk.bf16.gmra.mrb[12].mxu0 %vm690_vm0, %v26796_v62 }
 0x1c2   : > { %22657 = vmatprep.mubr.msk.bf16.mxu0 %vm690_vm0, %v26802_v4 }
 0x1c9   : > { %22658 = vmatmul.mubr.msk.bf16.gmra.mrb[16].mxu0 %vm690_vm0, %v26804_v5 }
 0x1ca   : > { %22661 = vmatprep.mubr.msk.bf16.mxu0 %vm690_vm0, %v26810_v10 }
 0x1d1   : > { %22662 = vmatmul.mubr.msk.bf16.gmra.mrb[20].mxu0 %vm690_vm0, %v26812_v11 }
 0x1d2   : > { %22665 = vmatprep.mubr.msk.bf16.mxu0 %vm690_vm0, %v26818_v16 }
 0x1d9   : > { %22666 = vmatmul.mubr.msk.bf16.gmra.mrb[24].mxu0 %vm690_vm0, %v26820_v17 }
 0x1da   : > { %22669 = vmatprep.mubr.msk.bf16.mxu0 %vm690_vm0, %v26827_v23 }
 0x1e1   : > { %22670 = vmatmul.mubr.msk.bf16.gmra.mrb[28].mxu0 %vm690_vm0, %v27044_v41 }
 0x1e2   : > { %22675 = vmatprep.mubr.msk.bf16.mxu0 %vm690_vm0, %v26906_v40  ;;  %v2475_v40 = vld [vmem:[#allocation2 + $0x182] sm:$0xff] }
 0x1e3   : > { %v27083_v27 = vpack.c.bf16 %v2476_v22, %v2475_v40 }
 0x1e9   : > { %22676 = vmatmul.mubr.msk.bf16.vlgmr.msra.gmra.mrb[0].mxu0 %vm690_vm0, %v26908_v43 }
 0x1ea   : > { %22679 = vmatprep.mubr.msk.bf16.mxu0 %vm690_vm0, %v26918_v50  ;;  %22708 = vmatpush3.bf16.msra.mxu0 %v2839_v42 }
 0x1eb   : > { %25932 = vmatprep.subr.msk.bf16.mxu0 %vm1186_vm2, %v20402_v21 }
 0x1f1   : > { %22680 = vmatmul.mubr.msk.bf16.gmra.mrb[4].mxu0 %vm690_vm0, %v26920_v51 }
 0x1f2   : > { %22683 = vmatprep.mubr.msk.bf16.mxu0 %vm690_vm0, %v26926_v1 }
 0x1f9   : > { %22684 = vmatmul.mubr.msk.bf16.gmra.mrb[8].mxu0 %vm690_vm0, %v26928_v2 }
 0x1fa   : > { %22687 = vmatprep.mubr.msk.bf16.mxu0 %vm690_vm0, %v26934_v13 }
 0x201   : > { %22688 = vmatmul.mubr.msk.bf16.gmra.mrb[12].mxu0 %vm690_vm0, %v26936_v14 }
 0x202   : > { %22691 = vmatprep.mubr.msk.bf16.mxu0 %vm690_vm0, %v26942_v24 }
 0x209   : > { %22692 = vmatmul.mubr.msk.bf16.gmra.mrb[16].mxu0 %vm690_vm0, %v26944_v25 }
 0x20a   : > { %22695 = vmatprep.mubr.msk.bf16.mxu0 %vm690_vm0, %v26950_v35 }
 0x211   : > { %22696 = vmatmul.mubr.msk.bf16.gmra.mrb[20].mxu0 %vm690_vm0, %v26952_v37 }
 0x212   : > { %22699 = vmatprep.mubr.msk.bf16.mxu0 %vm690_vm0, %v26958_v56 }
 0x219   : > { %22700 = vmatmul.mubr.msk.bf16.gmra.mrb[24].mxu0 %vm690_vm0, %v26960_v57 }
 0x21a   : > { %22703 = vmatprep.mubr.msk.bf16.mxu0 %vm690_vm0, %v26966_v3 }
 0x221   : > { %22704 = vmatmul.mubr.msk.bf16.gmra.mrb[28].mxu0 %vm690_vm0, %v27083_v27 }
 0x222   : > { %22709 = vmatprep.mubr.msk.bf16.mxu0 %vm690_vm0, %v26834_v31  ;;  %v2770_v31 = vld [vmem:[#allocation2 + $0x198] sm:$0xff] }
 0x229   : > { %22710 = vmatmul.mubr.msk.bf16.vlgmr.msra.gmra.mrb[0].mxu0 %vm690_vm0, %v26847_v38  ;;  %v2771_v38 = vld [vmem:[#allocation2 + $0x1a0] sm:$0xff] }
 0x22a   : > { %22713 = vmatprep.mubr.msk.bf16.mxu0 %vm690_vm0, %v26849_v39  ;;  %22742 = vmatpush3.bf16.msra.mxu0 %v3133_v28  ;;  %v3034_v39 = vld [vmem:[#allocation2 + $0x31] sm:$0xff] }
 0x22b   : > { %25933 = vmatprep.subr.msk.bf16.mxu0 %vm1186_vm2, %v27093_v33 }
 0x231   : > { %22714 = vmatmul.mubr.msk.bf16.gmra.mrb[4].mxu0 %vm690_vm0, %v26855_v46  ;;  %v3035_v46 = vld [vmem:[#allocation2 + $0x39] sm:$0xff] }
 0x232   : > { %22717 = vmatprep.mubr.msk.bf16.mxu0 %vm690_vm0, %v26857_v47  ;;  %v2787_v47 = vpack.c.bf16 %v2771_v38, %v2770_v31 }
 0x239   : > { %22718 = vmatmul.mubr.msk.bf16.gmra.mrb[8].mxu0 %vm690_vm0, %v26863_v52  ;;  %v3066_v52 = vpack.c.bf16 %v3035_v46, %v3034_v39 }
 0x23a   : > { %22721 = vmatprep.mubr.msk.bf16.mxu0 %vm690_vm0, %v26865_v53  ;;  %v27127_v53 = vld [vmem:[#allocation2 + $0x49] sm:$0xff] }
 0x241   : > { %22722 = vmatmul.mubr.msk.bf16.gmra.mrb[12].mxu0 %vm690_vm0, %v26871_v60  ;;  %v27129_v60 = vld [vmem:[#allocation2 + $0x51] sm:$0xff] }
 0x242   : > { %22725 = vmatprep.mubr.msk.bf16.mxu0 %vm690_vm0, %v26873_v63  ;;  %v3038_v63 = vld [vmem:[#allocation2 + $0x61] sm:$0xff] }
 0x249   : > { %22726 = vmatmul.mubr.msk.bf16.gmra.mrb[16].mxu0 %vm690_vm0, %v26879_v7  ;;  %v3039_v7 = vld [vmem:[#allocation2 + $0x69] sm:$0xff] }
 0x24a   : > { %22729 = vmatprep.mubr.msk.bf16.mxu0 %vm690_vm0, %v26881_v8  ;;  %v3067_v8 = vpack.c.bf16 %v27129_v60, %v27127_v53  ;;  %v25991_v53 = vld [vmem:[#allocation9 + $0x8] sm:$0xff]  }
 0x251   : > { %22730 = vmatmul.mubr.msk.bf16.gmra.mrb[20].mxu0 %vm690_vm0, %v26887_v15  ;;  %v3068_v15 = vpack.c.bf16 %v3039_v7, %v3038_v63 }
 0x252   : > { %22733 = vmatprep.mubr.msk.bf16.mxu0 %vm690_vm0, %v26889_v18  ;;  %v3427_v18 = vsel %vm1186_vm2, %v27093_v33, 0 }
 0x259   : > { %22734 = vmatmul.mubr.msk.bf16.gmra.mrb[24].mxu0 %vm690_vm0, %v26899_v26  ;;  %v27450_v26 = vld [vmem:[#allocation9] sm:$0xff]  }
 0x25a   : > { %22737 = vmatprep.mubr.msk.bf16.mxu0 %vm690_vm0, %v27005_v12 }
 0x261   : > { %22738 = vmatmul.mubr.msk.bf16.gmra.mrb[28].mxu0 %vm690_vm0, %v2787_v47 }
 0x262   : > { %22743 = vmatprep.mubr.msk.bf16.mxu0 %vm690_vm0, %v3066_v52 }
 0x269   : > { %22744 = vmatmul.mubr.msk.bf16.vlgmr.msra.gmra.mrb[0].mxu0 %vm690_vm0, %v3067_v8 }
 0x26a   : > { %22747 = vmatprep.mubr.msk.bf16.mxu0 %vm690_vm0, %v3068_v15  ;;  %22776 = vmatpush3.bf16.msra.mxu0 %v3427_v18 }
 0x271   : > { %22748 = vmatmul.mubr.msk.bf16.gmra.mrb[4].mxu0 %vm690_vm0, %v26782_v54  ;;  %v3064_v54 = vld [vmem:[#allocation2 + $0x199] sm:$0xff] }
 0x272   : > { %22751 = vmatprep.mubr.msk.bf16.mxu0 %vm690_vm0, %v26784_v55  ;;  %v3065_v55 = vld [vmem:[#allocation2 + $0x1a1] sm:$0xff] }
 0x279   : > { %22752 = vmatmul.mubr.msk.bf16.gmra.mrb[8].mxu0 %vm690_vm0, %v26794_v61  ;;  %v3081_v61 = vpack.c.bf16 %v3065_v55, %v3064_v54 }
 0x27a   : > { %22755 = vmatprep.mubr.msk.bf16.mxu0 %vm690_vm0, %v26796_v62  ;;  %v3358_v62 = vld [vmem:[#allocation2 + $0x19a] sm:$0xff] }
 0x281   : > { %22756 = vmatmul.mubr.msk.bf16.gmra.mrb[12].mxu0 %vm690_vm0, %v26802_v4  ;;  %v3359_v4 = vld [vmem:[#allocation2 + $0x1a2] sm:$0xff] }
 0x282   : > { %22759 = vmatprep.mubr.msk.bf16.mxu0 %vm690_vm0, %v26804_v5  ;;  %v3375_v5 = vpack.c.bf16 %v3359_v4, %v3358_v62  ;;  %v27504_v4 = vld [vmem:[#allocation9 + $0x20] sm:$0xff]  }
 0x289   : > { %22760 = vmatmul.mubr.msk.bf16.gmra.mrb[16].mxu0 %vm690_vm0, %v26810_v10  ;;  %v25988_v10 = vld [vmem:[#allocation9 + $0x10] sm:$0xff]  }
 0x28a   : > { %22763 = vmatprep.mubr.msk.bf16.mxu0 %vm690_vm0, %v26812_v11  ;;  %22809 = vmatprep.subr.bf16.mxu1 %v25988_v10  ;;  %v25989_v11 = vld [vmem:[#allocation9 + $0x18] sm:$0xff]  }
 0x28b   : > { %22810 = vmatpush3.bf16.msra.mxu1 %v25988_v10 }
 0x28c   : > { %22811 = vmatprep.subr.bf16.mxu1 %v25989_v11 }
 0x28f   : > { %22812 = vmatpush3.bf16.msra.mxu1 %v25989_v11 }
 0x290   : > { %22845 = vmatprep.subr.bf16.mxu1 %v27450_v26 }
 0x291   : > { %22764 = vmatmul.mubr.msk.bf16.gmra.mrb[20].mxu0 %vm690_vm0, %v26818_v16  ;;  %v3817_v16 = vld [vmem:[#allocation3 + $0x1] sm:$0xff] }
 0x292   : > { %22767 = vmatprep.mubr.msk.bf16.mxu0 %vm690_vm0, %v26820_v17  ;;  %v3818_v17 = vld [vmem:[#allocation3 + $0x9] sm:$0xff] }
 0x299   : > { %22768 = vmatmul.mubr.msk.bf16.gmra.mrb[24].mxu0 %vm690_vm0, %v26827_v23  ;;  %v3849_v23 = vpack.c.bf16 %v3818_v17, %v3817_v16 }
 0x29a   : > { %22771 = vmatprep.mubr.msk.bf16.mxu0 %vm690_vm0, %v27044_v41 }
 0x29b   : > { %22813 = vmatprep.mubr.msk.bf16.mxu1 %vm746_vm3, %v3849_v23 }
 0x2a1   : > { %22772 = vmatmul.mubr.msk.bf16.gmra.mrb[28].mxu0 %vm690_vm0, %v3081_v61 }
 0x2a2   : > { %22777 = vmatprep.mubr.msk.bf16.mxu0 %vm690_vm0, %v26908_v43  ;;  %v27456_v43 = vld [vmem:[%s30317_s19] ss:$0 sm:$0xff] }
 0x2a9   : > { %22778 = vmatmul.mubr.msk.bf16.vlgmr.msra.gmra.mrb[0].mxu0 %vm690_vm0, %v26918_v50  ;;  %v27461_v50 = vld [vmem:[%s30318_s27] ss:$0 sm:$0xff] }
 0x2aa   : > { %22781 = vmatprep.mubr.msk.bf16.mxu0 %vm690_vm0, %v26920_v51 }
 0x2b1   : > { %22782 = vmatmul.mubr.msk.bf16.gmra.mrb[4].mxu0 %vm690_vm0, %v26926_v1 }
 0x2b2   : > { %22785 = vmatprep.mubr.msk.bf16.mxu0 %vm690_vm0, %v26928_v2 }
 0x2b9   : > { %22786 = vmatmul.mubr.msk.bf16.gmra.mrb[8].mxu0 %vm690_vm0, %v26934_v13 }
 0x2ba   : > { %22789 = vmatprep.mubr.msk.bf16.mxu0 %vm690_vm0, %v26936_v14 }
 0x2c1   : > { %22790 = vmatmul.mubr.msk.bf16.gmra.mrb[12].mxu0 %vm690_vm0, %v26942_v24 }
 0x2c2   : > { %22793 = vmatprep.mubr.msk.bf16.mxu0 %vm690_vm0, %v26944_v25 }
 0x2c9   : > { %22794 = vmatmul.mubr.msk.bf16.gmra.mrb[16].mxu0 %vm690_vm0, %v26950_v35 }
 0x2ca   : > { %22797 = vmatprep.mubr.msk.bf16.mxu0 %vm690_vm0, %v26952_v37 }
 0x2d1   : > { %22798 = vmatmul.mubr.msk.bf16.gmra.mrb[20].mxu0 %vm690_vm0, %v26958_v56 }
 0x2d2   : > { %22801 = vmatprep.mubr.msk.bf16.mxu0 %vm690_vm0, %v26960_v57 }
 0x2d9   : > { %22802 = vmatmul.mubr.msk.bf16.gmra.mrb[24].mxu0 %vm690_vm0, %v26966_v3 }
 0x2da   : > { %22805 = vmatprep.mubr.msk.bf16.mxu0 %vm690_vm0, %v27083_v27 }
 0x2e1   : > { %22806 = vmatmul.mubr.msk.bf16.gmra.mrb[28].mxu0 %vm690_vm0, %v3375_v5 }
 0x2e2   : > { %23137 = vmatprep.mubr.msk.f32.mxu0 %vm26318_vm5, %v26316_v0 }
 0x37c   : > { %v22779_v51 = vpop.f32.mrb[0].mxu0 }
 0x37d   : > { %v3630_v1 = vmul.f32 %v22779_v51, %v27456_v43  ;;  %v3463_v2 = vpop.f32.mrb[1].mxu0 }
 0x37e   : > { %v3628_v13 = vmul.f32 %v27456_v43, %v3463_v2  ;;  %v22780_v14 = vpop.f32.mrb[2].mxu0 }
 0x37f   : > { %v3668_v24 = vadd.f32 %v27461_v50, %v3630_v1  ;;  %v3631_v25 = vmul.f32 %v22780_v14, %v27456_v43  ;;  %v3466_v34 = vpop.f32.mrb[3].mxu0 }
 0x380   : > { %v3666_v35 = vadd.f32 %v27461_v50, %v3628_v13  ;;  %v3629_v37 = vmul.f32 %v27456_v43, %v3466_v34 }
 0x381   : > { %v3700_v45 = vmax.f32 %v3668_v24, 0.0  ;;  %v3669_v48 = vadd.f32 %v27461_v50, %v3631_v25 }
 0x382   : > { %v3698_v32 = vmax.f32 %v3666_v35, 0.0  ;;  %v3667_v49 = vadd.f32 %v27461_v50, %v3629_v37 }
 0x383   : > { %3733 = vst.msk [vmem:[#allocation3 + $0x31] sm:$0xff] %vm746_vm3, %v3700_v45  ;;  %v3701_v56 = vmax.f32 %v3669_v48, 0.0 }
 0x384   : > { %3731 = vst.msk [vmem:[#allocation3 + $0x19] sm:$0xff] %vm746_vm3, %v3698_v32  ;;  %v3699_v57 = vmax.f32 %v3667_v49, 0.0  ;;  %v22783_v58 = vpop.f32.mrb[4].mxu0 }
 0x385   : > { %3734 = vst.msk [vmem:[#allocation3 + $0x39] sm:$0xff] %vm746_vm3, %v3701_v56  ;;  %v3634_v59 = vmul.f32 %v22783_v58, %v27456_v43  ;;  %v3479_v3 = vpop.f32.mrb[5].mxu0 }
 0x386   : > { %3732 = vst.msk [vmem:[#allocation3 + $0x21] sm:$0xff] %vm746_vm3, %v3699_v57  ;;  %v3632_v6 = vmul.f32 %v27456_v43, %v3479_v3  ;;  %v22784_v9 = vpop.f32.mrb[6].mxu0 }
 0x387   : > { %v3672_v29 = vadd.f32 %v27461_v50, %v3634_v59  ;;  %v3635_v44 = vmul.f32 %v22784_v9, %v27456_v43  ;;  %v3482_v12 = vpop.f32.mrb[7].mxu0 }
 0x388   : > { %v3670_v19 = vadd.f32 %v27461_v50, %v3632_v6  ;;  %v3633_v20 = vmul.f32 %v27456_v43, %v3482_v12 }
 0x389   : > { %v3704_v30 = vmax.f32 %v3672_v29, 0.0  ;;  %v3673_v36 = vadd.f32 %v27461_v50, %v3635_v44 }
 0x38a   : > { %v3702_v41 = vmax.f32 %v3670_v19, 0.0  ;;  %v3671_v42 = vadd.f32 %v27461_v50, %v3633_v20  ;;  %v3821_v52 = vld [vmem:[#allocation3 + $0x31] sm:$0xff] }
 0x38b   : > { %3737 = vst.msk [vmem:[#allocation3 + $0x61] sm:$0xff] %vm746_vm3, %v3704_v30  ;;  %v3705_v21 = vmax.f32 %v3673_v36, 0.0  ;;  %v3819_v31 = vld [vmem:[#allocation3 + $0x19] sm:$0xff] }
 0x38c   : > { %3735 = vst.msk [vmem:[#allocation3 + $0x49] sm:$0xff] %vm746_vm3, %v3702_v41  ;;  %v3703_v40 = vmax.f32 %v3671_v42, 0.0  ;;  %v22787_v22 = vpop.f32.mrb[8].mxu0  ;;  %v3822_v27 = vld [vmem:[#allocation3 + $0x39] sm:$0xff] }
 0x38d   : > { %3738 = vst.msk [vmem:[#allocation3 + $0x69] sm:$0xff] %vm746_vm3, %v3705_v21  ;;  %v3638_v28 = vmul.f32 %v22787_v22, %v27456_v43  ;;  %v3495_v33 = vpop.f32.mrb[9].mxu0  ;;  %v3820_v38 = vld [vmem:[#allocation3 + $0x21] sm:$0xff]  ;;  %v27493_v8 = vpack.c.bf16 %v3822_v27, %v3821_v52 }
 0x38e   : > { %3736 = vst.msk [vmem:[#allocation3 + $0x51] sm:$0xff] %vm746_vm3, %v3703_v40  ;;  %v3636_v39 = vmul.f32 %v27456_v43, %v3495_v33  ;;  %v22788_v46 = vpop.f32.mrb[10].mxu0  ;;  %v27489_v47 = vpack.c.bf16 %v3820_v38, %v3819_v31 }
 0x38f   : > { %v3676_v60 = vadd.f32 %v27461_v50, %v3638_v28  ;;  %v3639_v63 = vmul.f32 %v22788_v46, %v27456_v43  ;;  %v3498_v7 = vpop.f32.mrb[11].mxu0 }
 0x390   : > { %v3674_v15 = vadd.f32 %v27461_v50, %v3636_v39  ;;  %v3637_v18 = vmul.f32 %v27456_v43, %v3498_v7  ;;  %22814 = vmatmul.mubr.msk.bf16.vlgmr.msra.gmra.mrb[0].mxu1 %vm746_vm3, %v27489_v47 }
 0x391   : > { %v3708_v54 = vmax.f32 %v3676_v60, 0.0  ;;  %v3677_v55 = vadd.f32 %v27461_v50, %v3639_v63  ;;  %22817 = vmatprep.mubr.msk.bf16.mxu1 %vm746_vm3, %v27493_v8  ;;  %22846 = vmatpush3.bf16.msra.mxu1 %v27450_v26 }
 0x392   : > { %v3706_v61 = vmax.f32 %v3674_v15, 0.0  ;;  %v3675_v62 = vadd.f32 %v27461_v50, %v3637_v18  ;;  %22847 = vmatprep.subr.bf16.mxu1 %v25991_v53  ;;  %v3825_v14 = vld [vmem:[#allocation3 + $0x61] sm:$0xff] }
 0x393   : > { %3741 = vst.msk [vmem:[#allocation3 + $0x91] sm:$0xff] %vm746_vm3, %v3708_v54  ;;  %v3709_v5 = vmax.f32 %v3677_v55, 0.0  ;;  %v3823_v26 = vld [vmem:[#allocation3 + $0x49] sm:$0xff] }
 0x394   : > { %3739 = vst.msk [vmem:[#allocation3 + $0x79] sm:$0xff] %vm746_vm3, %v3706_v61  ;;  %v3707_v10 = vmax.f32 %v3675_v62, 0.0  ;;  %v22791_v11 = vpop.f32.mrb[12].mxu0  ;;  %v3826_v16 = vld [vmem:[#allocation3 + $0x69] sm:$0xff] }
 0x395   : > { %3742 = vst.msk [vmem:[#allocation3 + $0x99] sm:$0xff] %vm746_vm3, %v3709_v5  ;;  %v3642_v17 = vmul.f32 %v22791_v11, %v27456_v43  ;;  %v3511_v23 = vpop.f32.mrb[13].mxu0  ;;  %v3824_v51 = vld [vmem:[#allocation3 + $0x51] sm:$0xff]  ;;  %22848 = vmatpush3.bf16.msra.mxu1 %v25991_v53  ;;  %v27517_v35 = vpack.c.bf16 %v3826_v16, %v3825_v14 }
 0x396   : > { %3740 = vst.msk [vmem:[#allocation3 + $0x81] sm:$0xff] %vm746_vm3, %v3707_v10  ;;  %v3640_v1 = vmul.f32 %v27456_v43, %v3511_v23  ;;  %v22792_v2 = vpop.f32.mrb[14].mxu0  ;;  %v27512_v13 = vpack.c.bf16 %v3824_v51, %v3823_v26  ;;  %22881 = vmatprep.subr.bf16.mxu1 %v27504_v4 }
 0x397   : > { %v3680_v24 = vadd.f32 %v27461_v50, %v3642_v17  ;;  %v3643_v25 = vmul.f32 %v22792_v2, %v27456_v43  ;;  %v3514_v34 = vpop.f32.mrb[15].mxu0 }
 0x398   : > { %v3678_v37 = vadd.f32 %v27461_v50, %v3640_v1  ;;  %v3641_v45 = vmul.f32 %v27456_v43, %v3514_v34  ;;  %22818 = vmatmul.mubr.msk.bf16.gmra.mrb[4].mxu1 %vm746_vm3, %v27512_v13 }
 0x399   : > { %v3712_v48 = vmax.f32 %v3680_v24, 0.0  ;;  %v3681_v32 = vadd.f32 %v27461_v50, %v3643_v25  ;;  %22821 = vmatprep.mubr.msk.bf16.mxu1 %vm746_vm3, %v27517_v35 }
 0x39a   : > { %v3710_v49 = vmax.f32 %v3678_v37, 0.0  ;;  %v3679_v56 = vadd.f32 %v27461_v50, %v3641_v45  ;;  %v3829_v30 = vld [vmem:[#allocation3 + $0x91] sm:$0xff] }
 0x39b   : > { %3745 = vst.msk [vmem:[#allocation3 + $0xc1] sm:$0xff] %vm746_vm3, %v3712_v48  ;;  %v3713_v57 = vmax.f32 %v3681_v32, 0.0  ;;  %v3827_v29 = vld [vmem:[#allocation3 + $0x79] sm:$0xff] }
 0x39c   : > { %3743 = vst.msk [vmem:[#allocation3 + $0xa9] sm:$0xff] %vm746_vm3, %v3710_v49  ;;  %v3711_v58 = vmax.f32 %v3679_v56, 0.0  ;;  %v22795_v59 = vpop.f32.mrb[16].mxu0  ;;  %v3830_v3 = vld [vmem:[#allocation3 + $0x99] sm:$0xff] }
 0x39d   : > { %3746 = vst.msk [vmem:[#allocation3 + $0xc9] sm:$0xff] %vm746_vm3, %v3713_v57  ;;  %v3646_v6 = vmul.f32 %v22795_v59, %v27456_v43  ;;  %v3527_v9 = vpop.f32.mrb[17].mxu0  ;;  %v3828_v44 = vld [vmem:[#allocation3 + $0x81] sm:$0xff]  ;;  %v27537_v21 = vpack.c.bf16 %v3830_v3, %v3829_v30 }
 0x39e   : > { %3744 = vst.msk [vmem:[#allocation3 + $0xb1] sm:$0xff] %vm746_vm3, %v3711_v58  ;;  %v3644_v12 = vmul.f32 %v27456_v43, %v3527_v9  ;;  %v22796_v19 = vpop.f32.mrb[18].mxu0  ;;  %v27533_v20 = vpack.c.bf16 %v3828_v44, %v3827_v29 }
 0x39f   : > { %v3684_v36 = vadd.f32 %v27461_v50, %v3646_v6  ;;  %v3647_v41 = vmul.f32 %v22796_v19, %v27456_v43  ;;  %v3530_v42 = vpop.f32.mrb[19].mxu0 }
 0x3a0   : > { %v3682_v40 = vadd.f32 %v27461_v50, %v3644_v12  ;;  %v3645_v22 = vmul.f32 %v27456_v43, %v3530_v42  ;;  %22822 = vmatmul.mubr.msk.bf16.gmra.mrb[8].mxu1 %vm746_vm3, %v27533_v20 }
 0x3a1   : > { %v3716_v27 = vmax.f32 %v3684_v36, 0.0  ;;  %v3685_v28 = vadd.f32 %v27461_v50, %v3647_v41  ;;  %22825 = vmatprep.mubr.msk.bf16.mxu1 %vm746_vm3, %v27537_v21 }
 0x3a2   : > { %v3714_v33 = vmax.f32 %v3682_v40, 0.0  ;;  %v3683_v31 = vadd.f32 %v27461_v50, %v3645_v22  ;;  %v3833_v55 = vld [vmem:[#allocation3 + $0xc1] sm:$0xff] }
 0x3a3   : > { %3749 = vst.msk [vmem:[#allocation3 + $0xf1] sm:$0xff] %vm746_vm3, %v3716_v27  ;;  %v3717_v38 = vmax.f32 %v3685_v28, 0.0  ;;  %v3831_v63 = vld [vmem:[#allocation3 + $0xa9] sm:$0xff] }
 0x3a4   : > { %3747 = vst.msk [vmem:[#allocation3 + $0xd9] sm:$0xff] %vm746_vm3, %v3714_v33  ;;  %v3715_v39 = vmax.f32 %v3683_v31, 0.0  ;;  %v22799_v46 = vpop.f32.mrb[20].mxu0  ;;  %v3834_v52 = vld [vmem:[#allocation3 + $0xc9] sm:$0xff] }
 0x3a5   : > { %3750 = vst.msk [vmem:[#allocation3 + $0xf9] sm:$0xff] %vm746_vm3, %v3717_v38  ;;  %v3650_v53 = vmul.f32 %v22799_v46, %v27456_v43  ;;  %v3543_v60 = vpop.f32.mrb[21].mxu0  ;;  %v3832_v7 = vld [vmem:[#allocation3 + $0xb1] sm:$0xff]  ;;  %v27557_v10 = vpack.c.bf16 %v3834_v52, %v3833_v55 }
 0x3a6   : > { %3748 = vst.msk [vmem:[#allocation3 + $0xe1] sm:$0xff] %vm746_vm3, %v3715_v39  ;;  %v3648_v15 = vmul.f32 %v27456_v43, %v3543_v60  ;;  %v22800_v18 = vpop.f32.mrb[22].mxu0  ;;  %v27553_v54 = vpack.c.bf16 %v3832_v7, %v3831_v63 }
 0x3a7   : > { %v3688_v61 = vadd.f32 %v27461_v50, %v3650_v53  ;;  %v3651_v62 = vmul.f32 %v22800_v18, %v27456_v43  ;;  %v3546_v5 = vpop.f32.mrb[23].mxu0 }
 0x3a8   : > { %v3686_v11 = vadd.f32 %v27461_v50, %v3648_v15  ;;  %v3649_v16 = vmul.f32 %v27456_v43, %v3546_v5  ;;  %22826 = vmatmul.mubr.msk.bf16.gmra.mrb[12].mxu1 %vm746_vm3, %v27553_v54 }
 0x3a9   : > { %v3720_v17 = vmax.f32 %v3688_v61, 0.0  ;;  %v3689_v23 = vadd.f32 %v27461_v50, %v3651_v62  ;;  %22829 = vmatprep.mubr.msk.bf16.mxu1 %vm746_vm3, %v27557_v10 }
 0x3aa   : > { %v3718_v26 = vmax.f32 %v3686_v11, 0.0  ;;  %v3687_v51 = vadd.f32 %v27461_v50, %v3649_v16  ;;  %v3837_v56 = vld [vmem:[#allocation3 + $0xf1] sm:$0xff] }
 0x3ab   : > { %3753 = vst.msk [vmem:[#allocation3 + $0x121] sm:$0xff] %vm746_vm3, %v3720_v17  ;;  %v3721_v1 = vmax.f32 %v3689_v23, 0.0  ;;  %v3835_v37 = vld [vmem:[#allocation3 + $0xd9] sm:$0xff] }
 0x3ac   : > { %3751 = vst.msk [vmem:[#allocation3 + $0x109] sm:$0xff] %vm746_vm3, %v3718_v26  ;;  %v3719_v2 = vmax.f32 %v3687_v51, 0.0  ;;  %v22803_v14 = vpop.f32.mrb[24].mxu0  ;;  %v3838_v24 = vld [vmem:[#allocation3 + $0xf9] sm:$0xff]  ;;  %v3766_v51 = vld [vmem:[#allocation3 + $0x8] sm:$0xff] }
 0x3ad   : > { %3754 = vst.msk [vmem:[#allocation3 + $0x129] sm:$0xff] %vm746_vm3, %v3721_v1  ;;  %v3654_v25 = vmul.f32 %v22803_v14, %v27456_v43  ;;  %v3559_v34 = vpop.f32.mrb[25].mxu0  ;;  %v3836_v45 = vld [vmem:[#allocation3 + $0xe1] sm:$0xff]  ;;  %v27577_v3 = vpack.c.bf16 %v3838_v24, %v3837_v56 }
 0x3ae   : > { %3752 = vst.msk [vmem:[#allocation3 + $0x111] sm:$0xff] %vm746_vm3, %v3719_v2  ;;  %v3652_v48 = vmul.f32 %v27456_v43, %v3559_v34  ;;  %v22804_v32 = vpop.f32.mrb[26].mxu0  ;;  %v27573_v49 = vpack.c.bf16 %v3836_v45, %v3835_v37  ;;  %v3770_v34 = vld [vmem:[#allocation3 + $0x38] sm:$0xff] }
 0x3af   : > { %v3692_v57 = vadd.f32 %v27461_v50, %v3654_v25  ;;  %v3655_v58 = vmul.f32 %v22804_v32, %v27456_v43  ;;  %v3562_v59 = vpop.f32.mrb[27].mxu0  ;;  %v3768_v25 = vld [vmem:[#allocation3 + $0x20] sm:$0xff]  ;;  %v3767_v37 = vld [vmem:[#allocation3 + $0x18] sm:$0xff] }
 0x3b0   : > { %v3690_v6 = vadd.f32 %v27461_v50, %v3652_v48  ;;  %v3653_v9 = vmul.f32 %v27456_v43, %v3562_v59  ;;  %22830 = vmatmul.mubr.msk.bf16.gmra.mrb[16].mxu1 %vm746_vm3, %v27573_v49  ;;  %v27624_v45 = vpack.c.bf16 %v3768_v25, %v3767_v37  ;;  %v3769_v48 = vld [vmem:[#allocation3 + $0x30] sm:$0xff]  ;;  %v25993_v32 = vld [vmem:[#allocation9 + $0x28] sm:$0xff]   ;;  %v3774_v59 = vld [vmem:[#allocation3 + $0x68] sm:$0xff] }
 0x3b1   : > { %v3724_v29 = vmax.f32 %v3692_v57, 0.0  ;;  %v3693_v44 = vadd.f32 %v27461_v50, %v3655_v58  ;;  %22833 = vmatprep.mubr.msk.bf16.mxu1 %vm746_vm3, %v27577_v3  ;;  %v27626_v56 = vpack.c.bf16 %v3770_v34, %v3769_v48  ;;  %v27633_v57 = vld [vmem:[#allocation9 + $0x30] sm:$0xff]   ;;  %v3772_v58 = vld [vmem:[#allocation3 + $0x50] sm:$0xff] }
 0x3b2   : > { %v3722_v12 = vmax.f32 %v3690_v6, 0.0  ;;  %v3691_v19 = vadd.f32 %v27461_v50, %v3653_v9  ;;  %v3841_v39 = vld [vmem:[#allocation3 + $0x121] sm:$0xff] }
 0x3b3   : > { %3757 = vst.msk [vmem:[#allocation3 + $0x151] sm:$0xff] %vm746_vm3, %v3724_v29  ;;  %v3725_v30 = vmax.f32 %v3693_v44, 0.0  ;;  %v3839_v27 = vld [vmem:[#allocation3 + $0x109] sm:$0xff]  ;;  %v3773_v29 = vld [vmem:[#allocation3 + $0x60] sm:$0xff] }
 0x3b4   : > { %3755 = vst.msk [vmem:[#allocation3 + $0x139] sm:$0xff] %vm746_vm3, %v3722_v12  ;;  %v3723_v36 = vmax.f32 %v3691_v19, 0.0  ;;  %v22807_v41 = vpop.f32.mrb[28].mxu0  ;;  %v3842_v42 = vld [vmem:[#allocation3 + $0x129] sm:$0xff]  ;;  %v27638_v44 = vpack.c.bf16 %v3774_v59, %v3773_v29  ;;  %v3778_v12 = vld [vmem:[#allocation3 + $0x98] sm:$0xff] }
 0x3b5   : > { %3758 = vst.msk [vmem:[#allocation3 + $0x159] sm:$0xff] %vm746_vm3, %v3725_v30  ;;  %v3658_v40 = vmul.f32 %v22807_v41, %v27456_v43  ;;  %v3575_v22 = vpop.f32.mrb[29].mxu0  ;;  %v3840_v28 = vld [vmem:[#allocation3 + $0x111] sm:$0xff]  ;;  %v27597_v60 = vpack.c.bf16 %v3842_v42, %v3841_v39  ;;  %v3771_v6 = vld [vmem:[#allocation3 + $0x48] sm:$0xff]  ;;  %v4314_v37 = vld [vmem:[#allocation3 + $0x1a] sm:$0xff] }
 0x3b6   : > { %3756 = vst.msk [vmem:[#allocation3 + $0x141] sm:$0xff] %vm746_vm3, %v3723_v36  ;;  %v3656_v33 = vmul.f32 %v27456_v43, %v3575_v22  ;;  %v22808_v31 = vpop.f32.mrb[30].mxu0  ;;  %v27593_v38 = vpack.c.bf16 %v3840_v28, %v3839_v27  ;;  %v27635_v9 = vpack.c.bf16 %v3772_v58, %v3771_v6  ;;  %v3775_v19 = vld [vmem:[#allocation3 + $0x78] sm:$0xff]  ;;  %v3777_v36 = vld [vmem:[#allocation3 + $0x90] sm:$0xff]  ;;  %v3779_v22 = vld [vmem:[#allocation3 + $0xa8] sm:$0xff] }
 0x3b7   : > { %v3696_v46 = vadd.f32 %v27461_v50, %v3658_v40  ;;  %v3659_v52 = vmul.f32 %v22808_v31, %v27456_v43  ;;  %v3578_v53 = vpop.f32.mrb[31].mxu0  ;;  %v27646_v41 = vpack.c.bf16 %v3778_v12, %v3777_v36  ;;  %v3780_v42 = vld [vmem:[#allocation3 + $0xb0] sm:$0xff]  ;;  %v3782_v40 = vld [vmem:[#allocation3 + $0xc8] sm:$0xff]  ;;  %v3781_v28 = vld [vmem:[#allocation3 + $0xc0] sm:$0xff] }
 0x3b8   : > { %v3694_v63 = vadd.f32 %v27461_v50, %v3656_v33  ;;  %v3657_v7 = vmul.f32 %v27456_v43, %v3578_v53  ;;  %22834 = vmatmul.mubr.msk.bf16.gmra.mrb[20].mxu1 %vm746_vm3, %v27593_v38  ;;  %v27652_v27 = vpack.c.bf16 %v3780_v42, %v3779_v22  ;;  %v27654_v33 = vpack.c.bf16 %v3782_v40, %v3781_v28  ;;  %v3784_v31 = vld [vmem:[#allocation3 + $0xe0] sm:$0xff]  ;;  %v3786_v39 = vld [vmem:[#allocation3 + $0xf8] sm:$0xff]  ;;  %v3785_v53 = vld [vmem:[#allocation3 + $0xf0] sm:$0xff] }
 0x3b9   : > { %v3728_v15 = vmax.f32 %v3696_v46, 0.0  ;;  %v3697_v18 = vadd.f32 %v27461_v50, %v3659_v52  ;;  %22837 = vmatprep.mubr.msk.bf16.mxu1 %vm746_vm3, %v27597_v60  ;;  %v3783_v46 = vld [vmem:[#allocation3 + $0xd8] sm:$0xff]  ;;  %v4315_v48 = vld [vmem:[#allocation3 + $0x22] sm:$0xff]  ;;  %v4318_v12 = vld [vmem:[#allocation3 + $0x4a] sm:$0xff] }
 0x3ba   : > { %v3726_v55 = vmax.f32 %v3694_v63, 0.0  ;;  %v3695_v61 = vadd.f32 %v27461_v50, %v3657_v7  ;;  %v3845_v23 = vld [vmem:[#allocation3 + $0x151] sm:$0xff]  ;;  %v3765_v50 = vld [vmem:[#allocation3] sm:$0xff]  ;;  %v27660_v52 = vpack.c.bf16 %v3784_v31, %v3783_v46  ;;  %v27662_v63 = vpack.c.bf16 %v3786_v39, %v3785_v53  ;;  %v25995_v6 = vld [vmem:[#allocation9 + $0x38] sm:$0xff]  }
 0x3bb   : > { %3761 = vst.msk [vmem:[#allocation3 + $0x181] sm:$0xff] %vm746_vm3, %v3728_v15  ;;  %v3729_v62 = vmax.f32 %v3697_v18, 0.0  ;;  %v3843_v43 = vld [vmem:[#allocation3 + $0x139] sm:$0xff]  ;;  %v3797_v14 = vpack.c.bf16 %v3766_v51, %v3765_v50  ;;  %v3788_v7 = vld [vmem:[#allocation3 + $0x110] sm:$0xff]  ;;  %v3790_v15 = vld [vmem:[#allocation3 + $0x128] sm:$0xff]  ;;  %v27689_v59 = vpack.c.bf16 %v4315_v48, %v4314_v37 }
 0x3bc   : > { %3759 = vst.msk [vmem:[#allocation3 + $0x169] sm:$0xff] %vm746_vm3, %v3726_v55  ;;  %v3727_v5 = vmax.f32 %v3695_v61, 0.0  ;;  %v3846_v11 = vld [vmem:[#allocation3 + $0x159] sm:$0xff]  ;;  %v3787_v18 = vld [vmem:[#allocation3 + $0x108] sm:$0xff] }
 0x3bd   : > { %3762 = vst.msk [vmem:[#allocation3 + $0x189] sm:$0xff] %vm746_vm3, %v3729_v62  ;;  %v3844_v16 = vld [vmem:[#allocation3 + $0x141] sm:$0xff]  ;;  %v27613_v26 = vpack.c.bf16 %v3846_v11, %v3845_v23  ;;  %v27668_v55 = vpack.c.bf16 %v3788_v7, %v3787_v18  ;;  %v3794_v11 = vld [vmem:[#allocation3 + $0x158] sm:$0xff]  ;;  %v3793_v23 = vld [vmem:[#allocation3 + $0x150] sm:$0xff] }
 0x3be   : > { %3760 = vst.msk [vmem:[#allocation3 + $0x171] sm:$0xff] %vm746_vm3, %v3727_v5  ;;  %v27611_v17 = vpack.c.bf16 %v3844_v16, %v3843_v43  ;;  %v3789_v61 = vld [vmem:[#allocation3 + $0x120] sm:$0xff]  ;;  %v3791_v43 = vld [vmem:[#allocation3 + $0x138] sm:$0xff]  ;;  %v27678_v50 = vpack.c.bf16 %v3794_v11, %v3793_v23  ;;  %v4321_v42 = vld [vmem:[#allocation3 + $0x6a] sm:$0xff] }
 0x3bf   : > { %v27670_v62 = vpack.c.bf16 %v3790_v15, %v3789_v61  ;;  %v3792_v5 = vld [vmem:[#allocation3 + $0x140] sm:$0xff]  ;;  %v4324_v31 = vld [vmem:[#allocation3 + $0x92] sm:$0xff]  ;;  %v4326_v7 = vld [vmem:[#allocation3 + $0xaa] sm:$0xff] }
 0x3c0   : > { %22838 = vmatmul.mubr.msk.bf16.gmra.mrb[24].mxu1 %vm746_vm3, %v27611_v17  ;;  %v27676_v16 = vpack.c.bf16 %v3792_v5, %v3791_v43  ;;  %v4312_v51 = vld [vmem:[#allocation3 + $0x2] sm:$0xff]  ;;  %v4317_v58 = vld [vmem:[#allocation3 + $0x3a] sm:$0xff]  ;;  %v4327_v15 = vld [vmem:[#allocation3 + $0xb2] sm:$0xff] }
 0x3c1   : > { %22841 = vmatprep.mubr.msk.bf16.mxu1 %vm746_vm3, %v27613_v26  ;;  %v4320_v36 = vld [vmem:[#allocation3 + $0x62] sm:$0xff]  ;;  %v4322_v28 = vld [vmem:[#allocation3 + $0x7a] sm:$0xff]  ;;  %v4329_v61 = vld [vmem:[#allocation3 + $0xca] sm:$0xff]  ;;  %v27714_v5 = vpack.c.bf16 %v4327_v15, %v4326_v7 }
 0x3c2   : > { %v27700_v22 = vpack.c.bf16 %v4321_v42, %v4320_v36  ;;  %v4325_v39 = vld [vmem:[#allocation3 + $0x9a] sm:$0xff]  ;;  %v4328_v18 = vld [vmem:[#allocation3 + $0xc2] sm:$0xff]  ;;  %v4335_v37 = vld [vmem:[#allocation3 + $0x112] sm:$0xff] }
 0x3c3   : > { %v3847_v1 = vld [vmem:[#allocation3 + $0x169] sm:$0xff]  ;;  %v27708_v53 = vpack.c.bf16 %v4325_v39, %v4324_v31  ;;  %v27716_v11 = vpack.c.bf16 %v4329_v61, %v4328_v18  ;;  %v4330_v43 = vld [vmem:[#allocation3 + $0xda] sm:$0xff]  ;;  %v4340_v36 = vld [vmem:[#allocation3 + $0x152] sm:$0xff] }
 0x3c4   : > { %v4331_v23 = vld [vmem:[#allocation3 + $0xe2] sm:$0xff]  ;;  %v4341_v42 = vld [vmem:[#allocation3 + $0x15a] sm:$0xff] }
 0x3c5   : > { %v3848_v2 = vld [vmem:[#allocation3 + $0x171] sm:$0xff]  ;;  %v4336_v48 = vld [vmem:[#allocation3 + $0x122] sm:$0xff] }
 0x3c6   : > { %v27619_v24 = vpack.c.bf16 %v3848_v2, %v3847_v1  ;;  %v4313_v1 = vld [vmem:[#allocation3 + $0xa] sm:$0xff]  ;;  %v4343_v39 = vld [vmem:[#allocation3 + $0x172] sm:$0xff]  ;;  %v25998_v18 = vld [vmem:[#allocation9 + $0x50] sm:$0xff]  }
 0x3c7   : > { %v3796_v2 = vld [vmem:[#allocation3 + $0x170] sm:$0xff]  ;;  %v4344_v25 = vpack.c.bf16 %v4313_v1, %v4312_v51  ;;  %v4333_v1 = vld [vmem:[#allocation3 + $0xfa] sm:$0xff] }
 0x3c8   : > { %22842 = vmatmul.mubr.msk.bf16.gmra.mrb[28].mxu1 %vm746_vm3, %v27619_v24  ;;  %v4332_v51 = vld [vmem:[#allocation3 + $0xf2] sm:$0xff]  ;;  %v4342_v31 = vld [vmem:[#allocation3 + $0x16a] sm:$0xff] }
 0x3c9   : > { %22849 = vmatprep.mubr.msk.bf16.mxu1 %vm746_vm3, %v3797_v14  ;;  %v3795_v14 = vld [vmem:[#allocation3 + $0x168] sm:$0xff]  ;;  %v27746_v7 = vpack.c.bf16 %v4343_v39, %v4342_v31  ;;  %v25997_v15 = vld [vmem:[#allocation9 + $0x48] sm:$0xff]  }
 0x3ca   : > { %v27684_v34 = vpack.c.bf16 %v3796_v2, %v3795_v14  ;;  %v27722_v2 = vpack.c.bf16 %v4331_v23, %v4330_v43  ;;  %v27724_v14 = vpack.c.bf16 %v4333_v1, %v4332_v51  ;;  %v25999_v43 = vld [vmem:[#allocation9 + $0x58] sm:$0xff]   ;;  %v26000_v23 = vld [vmem:[#allocation9 + $0x60] sm:$0xff]   ;;  %v5849_v51 = vld [vmem:[#allocation3 + $0x79] sm:$0xff] }
 0x3cb   : > { %v5858_v31 = vld [vmem:[#allocation3 + $0xe1] sm:$0xff]  ;;  %v5860_v39 = vld [vmem:[#allocation3 + $0xf9] sm:$0xff] }
 0x3d0   : > { %22850 = vmatmul.mubr.msk.bf16.vlgmr.msra.gmra.mrb[0].mxu1 %vm746_vm3, %v27624_v45 }
 0x3d1   : > { %22853 = vmatprep.mubr.msk.bf16.mxu1 %vm746_vm3, %v27626_v56  ;;  %22882 = vmatpush3.bf16.msra.mxu1 %v27504_v4  ;;  %v3776_v4 = vld [vmem:[#allocation3 + $0x80] sm:$0xff] }
 0x3d2   : > { %22883 = vmatprep.subr.bf16.mxu1 %v25993_v32  ;;  %v27644_v30 = vpack.c.bf16 %v3776_v4, %v3775_v19  ;;  %v25996_v4 = vld [vmem:[#allocation9 + $0x40] sm:$0xff]  }
 0x3d3   : > { %v4319_v19 = vld [vmem:[#allocation3 + $0x52] sm:$0xff] }
 0x3d4   : > { %v27698_v40 = vpack.c.bf16 %v4319_v19, %v4318_v12  ;;  %v4338_v12 = vld [vmem:[#allocation3 + $0x13a] sm:$0xff]  ;;  %v4339_v19 = vld [vmem:[#allocation3 + $0x142] sm:$0xff] }
 0x3d5   : > { %22884 = vmatpush3.bf16.msra.mxu1 %v25993_v32  ;;  %v4316_v32 = vld [vmem:[#allocation3 + $0x32] sm:$0xff] }
 0x3d6   : > { %22917 = vmatprep.subr.bf16.mxu1 %v27633_v57  ;;  %v27691_v29 = vpack.c.bf16 %v4317_v58, %v4316_v32  ;;  %v4337_v32 = vld [vmem:[#allocation3 + $0x12a] sm:$0xff] }
 0x3d8   : > { %22854 = vmatmul.mubr.msk.bf16.gmra.mrb[4].mxu1 %vm746_vm3, %v27635_v9 }
 0x3d9   : > { %22857 = vmatprep.mubr.msk.bf16.mxu1 %vm746_vm3, %v27638_v44 }
 0x3e0   : > { %22858 = vmatmul.mubr.msk.bf16.gmra.mrb[8].mxu1 %vm746_vm3, %v27644_v30 }
 0x3e1   : > { %22861 = vmatprep.mubr.msk.bf16.mxu1 %vm746_vm3, %v27646_v41 }
 0x3e8   : > { %22862 = vmatmul.mubr.msk.bf16.gmra.mrb[12].mxu1 %vm746_vm3, %v27652_v27 }
 0x3e9   : > { %22865 = vmatprep.mubr.msk.bf16.mxu1 %vm746_vm3, %v27654_v33 }
 0x3f0   : > { %22866 = vmatmul.mubr.msk.bf16.gmra.mrb[16].mxu1 %vm746_vm3, %v27660_v52 }
 0x3f1   : > { %22869 = vmatprep.mubr.msk.bf16.mxu1 %vm746_vm3, %v27662_v63 }
 0x3f8   : > { %22870 = vmatmul.mubr.msk.bf16.gmra.mrb[20].mxu1 %vm746_vm3, %v27668_v55 }
 0x3f9   : > { %22873 = vmatprep.mubr.msk.bf16.mxu1 %vm746_vm3, %v27670_v62 }
 0x400   : > { %22874 = vmatmul.mubr.msk.bf16.gmra.mrb[24].mxu1 %vm746_vm3, %v27676_v16 }
 0x401   : > { %22877 = vmatprep.mubr.msk.bf16.mxu1 %vm746_vm3, %v27678_v50 }
 0x408   : > { %22878 = vmatmul.mubr.msk.bf16.gmra.mrb[28].mxu1 %vm746_vm3, %v27684_v34 }
 0x409   : > { %22885 = vmatprep.mubr.msk.bf16.mxu1 %vm746_vm3, %v4344_v25  ;;  %v4334_v25 = vld [vmem:[#allocation3 + $0x10a] sm:$0xff] }
 0x40a   : > { %v27730_v58 = vpack.c.bf16 %v4335_v37, %v4334_v25  ;;  %v5851_v25 = vld [vmem:[#allocation3 + $0x91] sm:$0xff] }
 0x410   : > { %22886 = vmatmul.mubr.msk.bf16.vlgmr.msra.gmra.mrb[0].mxu1 %vm746_vm3, %v27689_v59 }
 0x411   : > { %22889 = vmatprep.mubr.msk.bf16.mxu1 %vm746_vm3, %v27691_v29  ;;  %22918 = vmatpush3.bf16.msra.mxu1 %v27633_v57  ;;  %v4323_v57 = vld [vmem:[#allocation3 + $0x82] sm:$0xff] }
 0x412   : > { %22919 = vmatprep.subr.bf16.mxu1 %v25995_v6  ;;  %v27706_v46 = vpack.c.bf16 %v4323_v57, %v4322_v28  ;;  %v27738_v28 = vpack.c.bf16 %v4339_v19, %v4338_v12  ;;  %v27740_v57 = vpack.c.bf16 %v4341_v42, %v4340_v36  ;;  %v5853_v12 = vld [vmem:[#allocation3 + $0xa9] sm:$0xff]  ;;  %v5855_v36 = vld [vmem:[#allocation3 + $0xc1] sm:$0xff] }
 0x415   : > { %22920 = vmatpush3.bf16.msra.mxu1 %v25995_v6  ;;  %v27732_v6 = vpack.c.bf16 %v4337_v32, %v4336_v48  ;;  %v5854_v48 = vld [vmem:[#allocation3 + $0xb1] sm:$0xff]  ;;  %v5856_v32 = vld [vmem:[#allocation3 + $0xc9] sm:$0xff] }
 0x416   : > { %22953 = vmatprep.subr.bf16.mxu1 %v25996_v4  ;;  %v5880_v19 = vpack.c.bf16 %v5854_v48, %v5853_v12  ;;  %v5881_v42 = vpack.c.bf16 %v5856_v32, %v5855_v36 }
 0x418   : > { %22890 = vmatmul.mubr.msk.bf16.gmra.mrb[4].mxu1 %vm746_vm3, %v27698_v40 }
 0x419   : > { %22893 = vmatprep.mubr.msk.bf16.mxu1 %vm746_vm3, %v27700_v22 }
 0x420   : > { %22894 = vmatmul.mubr.msk.bf16.gmra.mrb[8].mxu1 %vm746_vm3, %v27706_v46 }
 0x421   : > { %22897 = vmatprep.mubr.msk.bf16.mxu1 %vm746_vm3, %v27708_v53 }
 0x428   : > { %22898 = vmatmul.mubr.msk.bf16.gmra.mrb[12].mxu1 %vm746_vm3, %v27714_v5 }
 0x429   : > { %22901 = vmatprep.mubr.msk.bf16.mxu1 %vm746_vm3, %v27716_v11 }
 0x430   : > { %22902 = vmatmul.mubr.msk.bf16.gmra.mrb[16].mxu1 %vm746_vm3, %v27722_v2 }
 0x431   : > { %22905 = vmatprep.mubr.msk.bf16.mxu1 %vm746_vm3, %v27724_v14 }
 0x438   : > { %22906 = vmatmul.mubr.msk.bf16.gmra.mrb[20].mxu1 %vm746_vm3, %v27730_v58 }
 0x439   : > { %22909 = vmatprep.mubr.msk.bf16.mxu1 %vm746_vm3, %v27732_v6 }
 0x440   : > { %22910 = vmatmul.mubr.msk.bf16.gmra.mrb[24].mxu1 %vm746_vm3, %v27738_v28 }
 0x441   : > { %22913 = vmatprep.mubr.msk.bf16.mxu1 %vm746_vm3, %v27740_v57 }
 0x448   : > { %22914 = vmatmul.mubr.msk.bf16.gmra.mrb[28].mxu1 %vm746_vm3, %v27746_v7 }
 0x449   : > { %22921 = vmatprep.mubr.msk.bf16.mxu1 %vm746_vm3, %v27624_v45  ;;  %v4649_v45 = vld [vmem:[#allocation3 + $0x188] sm:$0xff] }
 0x450   : > { %22922 = vmatmul.mubr.msk.bf16.vlgmr.msra.gmra.mrb[0].mxu1 %vm746_vm3, %v27626_v56 }
 0x451   : > { %22925 = vmatprep.mubr.msk.bf16.mxu1 %vm746_vm3, %v27635_v9  ;;  %22954 = vmatpush3.bf16.msra.mxu1 %v25996_v4  ;;  %v4648_v4 = vld [vmem:[#allocation3 + $0x180] sm:$0xff] }
 0x452   : > { %22955 = vmatprep.subr.bf16.mxu1 %v25997_v15  ;;  %v27780_v61 = vpack.c.bf16 %v4649_v45, %v4648_v4  ;;  %v5859_v45 = vld [vmem:[#allocation3 + $0xf1] sm:$0xff] }
 0x453   : > { %v5883_v4 = vpack.c.bf16 %v5860_v39, %v5859_v45 }
 0x455   : > { %22956 = vmatpush3.bf16.msra.mxu1 %v25997_v15  ;;  %v5857_v15 = vld [vmem:[#allocation3 + $0xd9] sm:$0xff] }
 0x456   : > { %22989 = vmatprep.subr.bf16.mxu1 %v25998_v18 }
 0x458   : > { %22926 = vmatmul.mubr.msk.bf16.gmra.mrb[4].mxu1 %vm746_vm3, %v27638_v44 }
 0x459   : > { %22929 = vmatprep.mubr.msk.bf16.mxu1 %vm746_vm3, %v27644_v30 }
 0x460   : > { %22930 = vmatmul.mubr.msk.bf16.gmra.mrb[8].mxu1 %vm746_vm3, %v27646_v41 }
 0x461   : > { %22933 = vmatprep.mubr.msk.bf16.mxu1 %vm746_vm3, %v27652_v27 }
 0x468   : > { %22934 = vmatmul.mubr.msk.bf16.gmra.mrb[12].mxu1 %vm746_vm3, %v27654_v33 }
 0x469   : > { %22937 = vmatprep.mubr.msk.bf16.mxu1 %vm746_vm3, %v27660_v52 }
 0x470   : > { %22938 = vmatmul.mubr.msk.bf16.gmra.mrb[16].mxu1 %vm746_vm3, %v27662_v63 }
 0x471   : > { %22941 = vmatprep.mubr.msk.bf16.mxu1 %vm746_vm3, %v27668_v55 }
 0x478   : > { %22942 = vmatmul.mubr.msk.bf16.gmra.mrb[20].mxu1 %vm746_vm3, %v27670_v62 }
 0x479   : > { %22945 = vmatprep.mubr.msk.bf16.mxu1 %vm746_vm3, %v27676_v16 }
 0x480   : > { %22946 = vmatmul.mubr.msk.bf16.gmra.mrb[24].mxu1 %vm746_vm3, %v27678_v50 }
 0x481   : > { %22949 = vmatprep.mubr.msk.bf16.mxu1 %vm746_vm3, %v27684_v34 }
 0x488   : > { %22950 = vmatmul.mubr.msk.bf16.gmra.mrb[28].mxu1 %vm746_vm3, %v27780_v61 }
 0x489   : > { %22957 = vmatprep.mubr.msk.bf16.mxu1 %vm746_vm3, %v27489_v47  ;;  %v4955_v47 = vld [vmem:[#allocation3 + $0x189] sm:$0xff] }
 0x490   : > { %22958 = vmatmul.mubr.msk.bf16.vlgmr.msra.gmra.mrb[0].mxu1 %vm746_vm3, %v27493_v8  ;;  %v4954_v8 = vld [vmem:[#allocation3 + $0x181] sm:$0xff] }
 0x491   : > { %22961 = vmatprep.mubr.msk.bf16.mxu1 %vm746_vm3, %v27512_v13  ;;  %22990 = vmatpush3.bf16.msra.mxu1 %v25998_v18  ;;  %v27814_v13 = vpack.c.bf16 %v4955_v47, %v4954_v8  ;;  %v5882_v18 = vpack.c.bf16 %v5858_v31, %v5857_v15 }
 0x492   : > { %22991 = vmatprep.subr.bf16.mxu1 %v25999_v43 }
 0x495   : > { %22992 = vmatpush3.bf16.msra.mxu1 %v25999_v43  ;;  %v5874_v43 = vld [vmem:[#allocation3 + $0x1a1] sm:$0xff] }
 0x496   : > { %23025 = vmatprep.subr.bf16.mxu1 %v26000_v23 }
 0x498   : > { %22962 = vmatmul.mubr.msk.bf16.gmra.mrb[4].mxu1 %vm746_vm3, %v27517_v35  ;;  %v26001_v35 = vld [vmem:[#allocation9 + $0x68] sm:$0xff]  }
 0x499   : > { %22965 = vmatprep.mubr.msk.bf16.mxu1 %vm746_vm3, %v27533_v20  ;;  %v26002_v20 = vld [vmem:[#allocation9 + $0x70] sm:$0xff]  }
 0x4a0   : > { %22966 = vmatmul.mubr.msk.bf16.gmra.mrb[8].mxu1 %vm746_vm3, %v27537_v21  ;;  %v5260_v21 = vld [vmem:[#allocation3 + $0x182] sm:$0xff] }
 0x4a1   : > { %22969 = vmatprep.mubr.msk.bf16.mxu1 %vm746_vm3, %v27553_v54  ;;  %v5261_v54 = vld [vmem:[#allocation3 + $0x18a] sm:$0xff] }
 0x4a8   : > { %22970 = vmatmul.mubr.msk.bf16.gmra.mrb[12].mxu1 %vm746_vm3, %v27557_v10  ;;  %v27848_v10 = vpack.c.bf16 %v5261_v54, %v5260_v21 }
 0x4a9   : > { %22973 = vmatprep.mubr.msk.bf16.mxu1 %vm746_vm3, %v27573_v49  ;;  %v26003_v49 = vld [vmem:[#allocation9 + $0x78] sm:$0xff]  }
 0x4b0   : > { %22974 = vmatmul.mubr.msk.bf16.gmra.mrb[16].mxu1 %vm746_vm3, %v27577_v3  ;;  %v26004_v3 = vld [vmem:[#allocation9 + $0x80] sm:$0xff]  }
 0x4b1   : > { %22977 = vmatprep.mubr.msk.bf16.mxu1 %vm746_vm3, %v27593_v38 }
 0x4b8   : > { %22978 = vmatmul.mubr.msk.bf16.gmra.mrb[20].mxu1 %vm746_vm3, %v27597_v60 }
 0x4b9   : > { %22981 = vmatprep.mubr.msk.bf16.mxu1 %vm746_vm3, %v27611_v17 }
 0x4c0   : > { %22982 = vmatmul.mubr.msk.bf16.gmra.mrb[24].mxu1 %vm746_vm3, %v27613_v26 }
 0x4c1   : > { %22985 = vmatprep.mubr.msk.bf16.mxu1 %vm746_vm3, %v27619_v24 }
 0x4c8   : > { %22986 = vmatmul.mubr.msk.bf16.gmra.mrb[28].mxu1 %vm746_vm3, %v27814_v13 }
 0x4c9   : > { %22993 = vmatprep.mubr.msk.bf16.mxu1 %vm746_vm3, %v27689_v59  ;;  %v5852_v59 = vld [vmem:[#allocation3 + $0x99] sm:$0xff] }
 0x4ca   : > { %v5879_v37 = vpack.c.bf16 %v5852_v59, %v5851_v25 }
 0x4d0   : > { %22994 = vmatmul.mubr.msk.bf16.vlgmr.msra.gmra.mrb[0].mxu1 %vm746_vm3, %v27691_v29 }
 0x4d1   : > { %22997 = vmatprep.mubr.msk.bf16.mxu1 %vm746_vm3, %v27698_v40  ;;  %23026 = vmatpush3.bf16.msra.mxu1 %v26000_v23 }
 0x4d2   : > { %23027 = vmatprep.subr.bf16.mxu1 %v26001_v35 }
 0x4d5   : > { %23028 = vmatpush3.bf16.msra.mxu1 %v26001_v35 }
 0x4d6   : > { %23061 = vmatprep.subr.bf16.mxu1 %v26002_v20 }
 0x4d8   : > { %22998 = vmatmul.mubr.msk.bf16.gmra.mrb[4].mxu1 %vm746_vm3, %v27700_v22 }
 0x4d9   : > { %23001 = vmatprep.mubr.msk.bf16.mxu1 %vm746_vm3, %v27706_v46 }
 0x4e0   : > { %23002 = vmatmul.mubr.msk.bf16.gmra.mrb[8].mxu1 %vm746_vm3, %v27708_v53 }
 0x4e1   : > { %23005 = vmatprep.mubr.msk.bf16.mxu1 %vm746_vm3, %v27714_v5 }
 0x4e8   : > { %23006 = vmatmul.mubr.msk.bf16.gmra.mrb[12].mxu1 %vm746_vm3, %v27716_v11 }
 0x4e9   : > { %23009 = vmatprep.mubr.msk.bf16.mxu1 %vm746_vm3, %v27722_v2 }
 0x4f0   : > { %23010 = vmatmul.mubr.msk.bf16.gmra.mrb[16].mxu1 %vm746_vm3, %v27724_v14 }
 0x4f1   : > { %23013 = vmatprep.mubr.msk.bf16.mxu1 %vm746_vm3, %v27730_v58 }
 0x4f8   : > { %23014 = vmatmul.mubr.msk.bf16.gmra.mrb[20].mxu1 %vm746_vm3, %v27732_v6 }
 0x4f9   : > { %23017 = vmatprep.mubr.msk.bf16.mxu1 %vm746_vm3, %v27738_v28 }
 0x500   : > { %23018 = vmatmul.mubr.msk.bf16.gmra.mrb[24].mxu1 %vm746_vm3, %v27740_v57 }
 0x501   : > { %23021 = vmatprep.mubr.msk.bf16.mxu1 %vm746_vm3, %v27746_v7 }
 0x508   : > { %23022 = vmatmul.mubr.msk.bf16.gmra.mrb[28].mxu1 %vm746_vm3, %v27848_v10 }
 0x509   : > { %23029 = vmatprep.mubr.msk.bf16.mxu1 %vm746_vm3, %v27626_v56  ;;  %v5567_v56 = vld [vmem:[#allocation3 + $0x198] sm:$0xff] }
 0x510   : > { %23030 = vmatmul.mubr.msk.bf16.vlgmr.msra.gmra.mrb[0].mxu1 %vm746_vm3, %v27635_v9  ;;  %v5568_v9 = vld [vmem:[#allocation3 + $0x1a0] sm:$0xff] }
 0x511   : > { %23033 = vmatprep.mubr.msk.bf16.mxu1 %vm746_vm3, %v27638_v44  ;;  %23062 = vmatpush3.bf16.msra.mxu1 %v26002_v20  ;;  %v5584_v44 = vpack.c.bf16 %v5568_v9, %v5567_v56 }
 0x512   : > { %23063 = vmatprep.subr.bf16.mxu1 %v26003_v49 }
 0x515   : > { %23064 = vmatpush3.bf16.msra.mxu1 %v26003_v49 }
 0x516   : > { %23097 = vmatprep.subr.bf16.mxu1 %v26004_v3 }
 0x518   : > { %23034 = vmatmul.mubr.msk.bf16.gmra.mrb[4].mxu1 %vm746_vm3, %v27644_v30  ;;  %v5844_v30 = vld [vmem:[#allocation3 + $0x39] sm:$0xff] }
 0x519   : > { %23037 = vmatprep.mubr.msk.bf16.mxu1 %vm746_vm3, %v27646_v41  ;;  %v5843_v41 = vld [vmem:[#allocation3 + $0x31] sm:$0xff] }
 0x520   : > { %23038 = vmatmul.mubr.msk.bf16.gmra.mrb[8].mxu1 %vm746_vm3, %v27652_v27  ;;  %v5875_v27 = vpack.c.bf16 %v5844_v30, %v5843_v41 }
 0x521   : > { %23041 = vmatprep.mubr.msk.bf16.mxu1 %vm746_vm3, %v27654_v33  ;;  %v5846_v33 = vld [vmem:[#allocation3 + $0x51] sm:$0xff] }
 0x528   : > { %23042 = vmatmul.mubr.msk.bf16.gmra.mrb[12].mxu1 %vm746_vm3, %v27660_v52  ;;  %v5848_v52 = vld [vmem:[#allocation3 + $0x69] sm:$0xff] }
 0x529   : > { %23045 = vmatprep.mubr.msk.bf16.mxu1 %vm746_vm3, %v27662_v63  ;;  %v5845_v63 = vld [vmem:[#allocation3 + $0x49] sm:$0xff] }
 0x530   : > { %23046 = vmatmul.mubr.msk.bf16.gmra.mrb[16].mxu1 %vm746_vm3, %v27668_v55  ;;  %v5876_v55 = vpack.c.bf16 %v5846_v33, %v5845_v63 }
 0x531   : > { %23049 = vmatprep.mubr.msk.bf16.mxu1 %vm746_vm3, %v27670_v62  ;;  %v5847_v62 = vld [vmem:[#allocation3 + $0x61] sm:$0xff] }
 0x538   : > { %23050 = vmatmul.mubr.msk.bf16.gmra.mrb[20].mxu1 %vm746_vm3, %v27676_v16  ;;  %v26005_v16 = vld [vmem:[#allocation9 + $0x88] sm:$0xff]  }
 0x539   : > { %23053 = vmatprep.mubr.msk.bf16.mxu1 %vm746_vm3, %v27678_v50  ;;  %v5877_v50 = vpack.c.bf16 %v5848_v52, %v5847_v62 }
 0x540   : > { %23054 = vmatmul.mubr.msk.bf16.gmra.mrb[24].mxu1 %vm746_vm3, %v27684_v34  ;;  %v5850_v34 = vld [vmem:[#allocation3 + $0x81] sm:$0xff] }
 0x541   : > { %23057 = vmatprep.mubr.msk.bf16.mxu1 %vm746_vm3, %v27780_v61  ;;  %v5878_v1 = vpack.c.bf16 %v5850_v34, %v5849_v51  ;;  %v5873_v61 = vld [vmem:[#allocation3 + $0x199] sm:$0xff] }
 0x542   : > { %v5890_v23 = vpack.c.bf16 %v5874_v43, %v5873_v61 }
 0x548   : > { %23058 = vmatmul.mubr.msk.bf16.gmra.mrb[28].mxu1 %vm746_vm3, %v5584_v44 }
 0x549   : > { %23065 = vmatprep.mubr.msk.bf16.mxu1 %vm746_vm3, %v5875_v27 }
 0x550   : > { %23066 = vmatmul.mubr.msk.bf16.vlgmr.msra.gmra.mrb[0].mxu1 %vm746_vm3, %v5876_v55 }
 0x551   : > { %23069 = vmatprep.mubr.msk.bf16.mxu1 %vm746_vm3, %v5877_v50  ;;  %23098 = vmatpush3.bf16.msra.mxu1 %v26004_v3 }
 0x552   : > { %23099 = vmatprep.subr.bf16.mxu1 %v26005_v16 }
 0x555   : > { %23100 = vmatpush3.bf16.msra.mxu1 %v26005_v16 }
 0x558   : > { %23070 = vmatmul.mubr.msk.bf16.gmra.mrb[4].mxu1 %vm746_vm3, %v5878_v1 }
 0x559   : > { %23073 = vmatprep.mubr.msk.bf16.mxu1 %vm746_vm3, %v5879_v37 }
 0x560   : > { %23074 = vmatmul.mubr.msk.bf16.gmra.mrb[8].mxu1 %vm746_vm3, %v5880_v19 }
 0x561   : > { %23077 = vmatprep.mubr.msk.bf16.mxu1 %vm746_vm3, %v5881_v42 }
 0x568   : > { %23078 = vmatmul.mubr.msk.bf16.gmra.mrb[12].mxu1 %vm746_vm3, %v5882_v18 }
 0x569   : > { %23081 = vmatprep.mubr.msk.bf16.mxu1 %vm746_vm3, %v5883_v4 }
 0x570   : > { %23082 = vmatmul.mubr.msk.bf16.gmra.mrb[16].mxu1 %vm746_vm3, %v27593_v38  ;;  %v6179_v38 = vld [vmem:[#allocation3 + $0x19a] sm:$0xff] }
 0x571   : > { %23085 = vmatprep.mubr.msk.bf16.mxu1 %vm746_vm3, %v27597_v60  ;;  %v6180_v60 = vld [vmem:[#allocation3 + $0x1a2] sm:$0xff] }
 0x578   : > { %23086 = vmatmul.mubr.msk.bf16.gmra.mrb[20].mxu1 %vm746_vm3, %v27611_v17  ;;  %v6196_v17 = vpack.c.bf16 %v6180_v60, %v6179_v38 }
 0x579   : > { %23089 = vmatprep.mubr.msk.bf16.mxu1 %vm746_vm3, %v27613_v26  ;;  %v26317_v26 = vmov 0.0|0.0  }
 0x57a   : > { %24597 = vmatprep.subr.bf16.mxu0 %v26317_v26  ;;  %24603 = vmatprep.subr.bf16.mxu1 %v26317_v26 }
 0x580   : > { %23090 = vmatmul.mubr.msk.bf16.gmra.mrb[24].mxu1 %vm746_vm3, %v27619_v24  ;;  %v6563_v24 = vlaneseq }
 0x581   : > { %23093 = vmatprep.mubr.msk.bf16.mxu1 %vm746_vm3, %v27814_v13 }
 0x588   : > { %23094 = vmatmul.mubr.msk.bf16.gmra.mrb[28].mxu1 %vm746_vm3, %v5890_v23 }
 0x589   : > { %23101 = vmatprep.mubr.msk.bf16.mxu1 %vm746_vm3, %v27691_v29  ;;  %v27942_v29 = vshrl.u32 %v6563_v24, 7 }
 0x58b   : > { %v6567_v49 = vmul.u32 2, %v27942_v29 }
 0x58d   : > { %v6571_v62 = vadd.s32 1, %v6567_v49 }
 0x590   : > { %23102 = vmatmul.mubr.msk.bf16.vlgmr.msra.gmra.mrb[0].mxu1 %vm746_vm3, %v27698_v40  ;;  %v27944_v40 = vand.u32 127, %v6563_v24 }
 0x591   : > { %23105 = vmatprep.mubr.msk.bf16.mxu1 %vm746_vm3, %v27700_v22  ;;  %v27947_v22 = vadd.s32 8, %v27942_v29 }
 0x592   : > { %vm6568_vm10 = vcmp.eq.s32.totalorder %v27944_v40, %v6567_v49  ;;  %vm6572_vm12 = vcmp.eq.s32.totalorder %v27944_v40, %v6571_v62 }
 0x593   : > { %v27992_v37 = vsel %vm6568_vm10, 1.0, %v26316_v0  ;;  %v28003_v18 = vsel %vm6572_vm12, 1.0, %v26316_v0 }
 0x598   : > { %23106 = vmatmul.mubr.msk.bf16.gmra.mrb[4].mxu1 %vm746_vm3, %v27706_v46  ;;  %v27950_v46 = vmul.u32 2, %v27944_v40 }
 0x599   : > { %23109 = vmatprep.mubr.msk.bf16.mxu1 %vm746_vm3, %v27708_v53 }
 0x59a   : > { %vm10002_vm6 = vcmp.eq.s32.totalorder %v27942_v29, %v27950_v46  ;;  %vm10003_vm7 = vcmp.eq.s32.totalorder %v27947_v22, %v27950_v46  ;;  %v27957_v53 = vadd.s32 1, %v27950_v46 }
 0x59c   : > { %vm10009_vm8 = vcmp.eq.s32.totalorder %v27942_v29, %v27957_v53  ;;  %vm10010_vm9 = vcmp.eq.s32.totalorder %v27947_v22, %v27957_v53 }
 0x5a0   : > { %23110 = vmatmul.mubr.msk.bf16.gmra.mrb[8].mxu1 %vm746_vm3, %v27714_v5  ;;  %v27966_v5 = vld [vmem:[%s30271_s5] ss:$0 sm:$0xff] }
 0x5a1   : > { %23113 = vmatprep.mubr.msk.bf16.mxu1 %vm746_vm3, %v27716_v11  ;;  %v27971_v11 = vld [vmem:[%s30272_s6] ss:$0 sm:$0xff] }
 0x5a8   : > { %23114 = vmatmul.mubr.msk.bf16.gmra.mrb[12].mxu1 %vm746_vm3, %v27722_v2 }
 0x5a9   : > { %23117 = vmatprep.mubr.msk.bf16.mxu1 %vm746_vm3, %v27724_v14 }
 0x5b0   : > { %23118 = vmatmul.mubr.msk.bf16.gmra.mrb[16].mxu1 %vm746_vm3, %v27730_v58 }
 0x5b1   : > { %23121 = vmatprep.mubr.msk.bf16.mxu1 %vm746_vm3, %v27732_v6 }
 0x5b8   : > { %23122 = vmatmul.mubr.msk.bf16.gmra.mrb[20].mxu1 %vm746_vm3, %v27738_v28 }
 0x5b9   : > { %23125 = vmatprep.mubr.msk.bf16.mxu1 %vm746_vm3, %v27740_v57 }
 0x5c0   : > { %23126 = vmatmul.mubr.msk.bf16.gmra.mrb[24].mxu1 %vm746_vm3, %v27746_v7 }
 0x5c1   : > { %23129 = vmatprep.mubr.msk.bf16.mxu1 %vm746_vm3, %v27848_v10 }
 0x5c8   : > { %23130 = vmatmul.mubr.msk.bf16.gmra.mrb[28].mxu1 %vm746_vm3, %v6196_v17 }
 0x5c9   : > { %23151 = vmatprep.mubr.msk.f32.mxu1 %vm26318_vm5, %v26316_v0 }
 0x663   : > { %v23103_v2 = vpop.f32.mrb[0].mxu1 }
 0x664   : > { %v6463_v14 = vmul.f32 %v23103_v2, %v27966_v5  ;;  %v6296_v58 = vpop.f32.mrb[1].mxu1 }
 0x665   : > { %v6461_v6 = vmul.f32 %v27966_v5, %v6296_v58  ;;  %v23104_v28 = vpop.f32.mrb[2].mxu1 }
 0x666   : > { %v6501_v57 = vadd.f32 %v27971_v11, %v6463_v14  ;;  %v6464_v7 = vmul.f32 %v23104_v28, %v27966_v5  ;;  %v6299_v47 = vpop.f32.mrb[3].mxu1 }
 0x667   : > { %v6499_v8 = vadd.f32 %v27971_v11, %v6461_v6  ;;  %v6462_v13 = vmul.f32 %v27966_v5, %v6299_v47 }
 0x668   : > { %v6533_v35 = vmax.f32 %v6501_v57, 0.0  ;;  %v6502_v20 = vadd.f32 %v27971_v11, %v6464_v7 }
 0x669   : > { %v6531_v21 = vmax.f32 %v6499_v8, 0.0  ;;  %v6500_v54 = vadd.f32 %v27971_v11, %v6462_v13 }
 0x66a   : > { %v6534_v10 = vmax.f32 %v6502_v20, 0.0 }
 0x66b   : > { %v6575_v3 = vmax.f32 %v6531_v21, %v6533_v35  ;;  %v6532_v56 = vmax.f32 %v6500_v54, 0.0  ;;  %v23107_v9 = vpop.f32.mrb[4].mxu1 }
 0x66c   : > { %v6467_v44 = vmul.f32 %v23107_v9, %v27966_v5  ;;  %v6312_v30 = vpop.f32.mrb[5].mxu1 }
 0x66d   : > { %v6576_v41 = vmax.f32 %v6532_v56, %v6534_v10  ;;  %v6465_v27 = vmul.f32 %v27966_v5, %v6312_v30  ;;  %v23108_v33 = vpop.f32.mrb[6].mxu1 }
 0x66e   : > { %v6505_v52 = vadd.f32 %v27971_v11, %v6467_v44  ;;  %v6468_v63 = vmul.f32 %v23108_v33, %v27966_v5  ;;  %v6315_v55 = vpop.f32.mrb[7].mxu1 }
 0x66f   : > { %v24598_v16 = vpack.c.bf16 %v6576_v41, %v6575_v3  ;;  %v6503_v50 = vadd.f32 %v27971_v11, %v6465_v27  ;;  %v6466_v34 = vmul.f32 %v27966_v5, %v6315_v55 }
 0x670   : > { %v6537_v59 = vmax.f32 %v6505_v52, 0.0  ;;  %v6506_v51 = vadd.f32 %v27971_v11, %v6468_v63 }
 0x671   : > { %v6535_v1 = vmax.f32 %v6503_v50, 0.0  ;;  %v6504_v25 = vadd.f32 %v27971_v11, %v6466_v34  ;;  %24599 = vmatpush3.bf16.msra.mxu0 %v24598_v16 }
 0x672   : > { %v6538_v48 = vmax.f32 %v6506_v51, 0.0  ;;  %24600 = vmatprep.subr.bf16.mxu0 %v26317_v26 }
 0x673   : > { %v6727_v32 = vmax.f32 %v6535_v1, %v6537_v59  ;;  %v6536_v12 = vmax.f32 %v6504_v25, 0.0  ;;  %v23111_v19 = vpop.f32.mrb[8].mxu1 }
 0x674   : > { %v6471_v36 = vmul.f32 %v23111_v19, %v27966_v5  ;;  %v6328_v42 = vpop.f32.mrb[9].mxu1  ;;  %23138 = vmatmul.mubr.msk.f32.vlgmr.msra.gmra.mrb[32].mxu0 %vm6577_vm11, %v27992_v37 }
 0x675   : > { %v6728_v31 = vmax.f32 %v6536_v12, %v6538_v48  ;;  %v6469_v39 = vmul.f32 %v27966_v5, %v6328_v42  ;;  %v23112_v15 = vpop.f32.mrb[10].mxu1  ;;  %24602 = vmatpush3.bf16.msra.mxu0 %v24598_v16  ;;  %23144 = vmatprep.mubr.msk.f32.mxu0 %vm26318_vm5, %v26316_v0 }
 0x676   : > { %v6509_v45 = vadd.f32 %v27971_v11, %v6471_v36  ;;  %v6472_v4 = vmul.f32 %v23112_v15, %v27966_v5  ;;  %v6331_v61 = vpop.f32.mrb[11].mxu1  ;;  %24606 = vmatprep.subr.bf16.mxu0 %v26317_v26 }
 0x677   : > { %v24604_v43 = vpack.c.bf16 %v6728_v31, %v6727_v32  ;;  %v6507_v23 = vadd.f32 %v27971_v11, %v6469_v39  ;;  %v6470_v38 = vmul.f32 %v27966_v5, %v6331_v61 }
 0x678   : > { %v6541_v60 = vmax.f32 %v6509_v45, 0.0  ;;  %v6510_v17 = vadd.f32 %v27971_v11, %v6472_v4  ;;  %23145 = vmatmul.mubr.msk.f32.vlgmr.msra.gmra.mrb[34].mxu0 %vm6577_vm11, %v28003_v18 }
 0x679   : > { %v6539_v24 = vmax.f32 %v6507_v23, 0.0  ;;  %v6508_v40 = vadd.f32 %v27971_v11, %v6470_v38  ;;  %24605 = vmatpush3.bf16.msra.mxu1 %v24604_v43  ;;  %24608 = vmatpush3.bf16.msra.mxu0 %v24604_v43 }
 0x67a   : > { %v6542_v2 = vmax.f32 %v6510_v17, 0.0  ;;  %23158 = vmatprep.mubr.msk.f32.mxu0 %vm26318_vm5, %v26316_v0  ;;  %24609 = vmatprep.subr.bf16.mxu1 %v26317_v26 }
 0x67b   : > { %v6872_v14 = vmax.f32 %v6539_v24, %v6541_v60  ;;  %v6540_v58 = vmax.f32 %v6508_v40, 0.0  ;;  %v23115_v6 = vpop.f32.mrb[12].mxu1  ;;  %24612 = vmatprep.subr.bf16.mxu0 %v26317_v26 }
 0x67c   : > { %v6475_v28 = vmul.f32 %v23115_v6, %v27966_v5  ;;  %v6344_v57 = vpop.f32.mrb[13].mxu1  ;;  %23152 = vmatmul.mubr.msk.f32.vlgmr.msra.gmra.mrb[32].mxu1 %vm6577_vm11, %v27992_v37  ;;  %23159 = vmatmul.mubr.msk.f32.vlgmr.msra.gmra.mrb[36].mxu0 %vm6577_vm11, %v28003_v18 }
 0x67d   : > { %v6873_v7 = vmax.f32 %v6540_v58, %v6542_v2  ;;  %v6473_v47 = vmul.f32 %v27966_v5, %v6344_v57  ;;  %v23116_v8 = vpop.f32.mrb[14].mxu1  ;;  %23165 = vmatprep.mubr.msk.f32.mxu1 %vm26318_vm5, %v26316_v0  ;;  %23172 = vmatprep.mubr.msk.f32.mxu0 %vm26318_vm5, %v26316_v0 }
 0x67e   : > { %v6513_v13 = vadd.f32 %v27971_v11, %v6475_v28  ;;  %v6476_v35 = vmul.f32 %v23116_v8, %v27966_v5  ;;  %v6347_v20 = vpop.f32.mrb[15].mxu1 }
 0x67f   : > { %v24610_v21 = vpack.c.bf16 %v6873_v7, %v6872_v14  ;;  %v6511_v54 = vadd.f32 %v27971_v11, %v6473_v47  ;;  %v6474_v10 = vmul.f32 %v27966_v5, %v6347_v20 }
 0x680   : > { %v6545_v49 = vmax.f32 %v6513_v13, 0.0  ;;  %v6514_v3 = vadd.f32 %v27971_v11, %v6476_v35 }
 0x681   : > { %v6543_v56 = vmax.f32 %v6511_v54, 0.0  ;;  %v6512_v9 = vadd.f32 %v27971_v11, %v6474_v10  ;;  %24611 = vmatpush3.bf16.msra.mxu1 %v24610_v21  ;;  %24614 = vmatpush3.bf16.msra.mxu0 %v24610_v21 }
 0x682   : > { %v6546_v44 = vmax.f32 %v6514_v3, 0.0  ;;  %24615 = vmatprep.subr.bf16.mxu1 %v26317_v26  ;;  %24618 = vmatprep.subr.bf16.mxu0 %v26317_v26 }
 0x683   : > { %v7017_v30 = vmax.f32 %v6543_v56, %v6545_v49  ;;  %v6544_v41 = vmax.f32 %v6512_v9, 0.0  ;;  %v23119_v27 = vpop.f32.mrb[16].mxu1 }
 0x684   : > { %v6479_v33 = vmul.f32 %v23119_v27, %v27966_v5  ;;  %v6360_v52 = vpop.f32.mrb[17].mxu1  ;;  %23166 = vmatmul.mubr.msk.f32.vlgmr.msra.gmra.mrb[34].mxu1 %vm6577_vm11, %v27992_v37  ;;  %23173 = vmatmul.mubr.msk.f32.vlgmr.msra.gmra.mrb[38].mxu0 %vm6577_vm11, %v28003_v18 }
 0x685   : > { %v7018_v63 = vmax.f32 %v6544_v41, %v6546_v44  ;;  %v6477_v55 = vmul.f32 %v27966_v5, %v6360_v52  ;;  %v23120_v62 = vpop.f32.mrb[18].mxu1  ;;  %23179 = vmatprep.mubr.msk.f32.mxu1 %vm26318_vm5, %v26316_v0  ;;  %23186 = vmatprep.mubr.msk.f32.mxu0 %vm26318_vm5, %v26316_v0 }
 0x686   : > { %v6517_v16 = vadd.f32 %v27971_v11, %v6479_v33  ;;  %v6480_v50 = vmul.f32 %v23120_v62, %v27966_v5  ;;  %v6363_v34 = vpop.f32.mrb[19].mxu1 }
 0x687   : > { %v24616_v59 = vpack.c.bf16 %v7018_v63, %v7017_v30  ;;  %v6515_v51 = vadd.f32 %v27971_v11, %v6477_v55  ;;  %v6478_v1 = vmul.f32 %v27966_v5, %v6363_v34 }
 0x688   : > { %v6549_v25 = vmax.f32 %v6517_v16, 0.0  ;;  %v6518_v48 = vadd.f32 %v27971_v11, %v6480_v50 }
 0x689   : > { %v6547_v32 = vmax.f32 %v6515_v51, 0.0  ;;  %v6516_v12 = vadd.f32 %v27971_v11, %v6478_v1  ;;  %24617 = vmatpush3.bf16.msra.mxu1 %v24616_v59  ;;  %24620 = vmatpush3.bf16.msra.mxu0 %v24616_v59 }
 0x68a   : > { %v6550_v19 = vmax.f32 %v6518_v48, 0.0  ;;  %24621 = vmatprep.subr.bf16.mxu1 %v26317_v26  ;;  %24624 = vmatprep.subr.bf16.mxu0 %v26317_v26 }
 0x68b   : > { %v7162_v36 = vmax.f32 %v6547_v32, %v6549_v25  ;;  %v6548_v42 = vmax.f32 %v6516_v12, 0.0  ;;  %v23123_v31 = vpop.f32.mrb[20].mxu1 }
 0x68c   : > { %v6483_v39 = vmul.f32 %v23123_v31, %v27966_v5  ;;  %v6376_v15 = vpop.f32.mrb[21].mxu1  ;;  %23180 = vmatmul.mubr.msk.f32.vlgmr.msra.gmra.mrb[36].mxu1 %vm6577_vm11, %v27992_v37  ;;  %23187 = vmatmul.mubr.msk.f32.vlgmr.msra.gmra.mrb[40].mxu0 %vm6577_vm11, %v28003_v18 }
 0x68d   : > { %v7163_v45 = vmax.f32 %v6548_v42, %v6550_v19  ;;  %v6481_v4 = vmul.f32 %v27966_v5, %v6376_v15  ;;  %v23124_v61 = vpop.f32.mrb[22].mxu1  ;;  %23193 = vmatprep.mubr.msk.f32.mxu1 %vm26318_vm5, %v26316_v0  ;;  %23200 = vmatprep.mubr.msk.f32.mxu0 %vm26318_vm5, %v26316_v0 }
 0x68e   : > { %v6521_v43 = vadd.f32 %v27971_v11, %v6483_v39  ;;  %v6484_v23 = vmul.f32 %v23124_v61, %v27966_v5  ;;  %v6379_v38 = vpop.f32.mrb[23].mxu1 }
 0x68f   : > { %v24622_v60 = vpack.c.bf16 %v7163_v45, %v7162_v36  ;;  %v6519_v17 = vadd.f32 %v27971_v11, %v6481_v4  ;;  %v6482_v24 = vmul.f32 %v27966_v5, %v6379_v38  ;;  %v26007_v45 = vld [vmem:[#allocation11 + $0x18] sm:$0xff]   ;;  %v26008_v4 = vld [vmem:[#allocation11] sm:$0xff]  }
 0x690   : > { %v6553_v40 = vmax.f32 %v6521_v43, 0.0  ;;  %v6522_v2 = vadd.f32 %v27971_v11, %v6484_v23 }
 0x691   : > { %v6551_v14 = vmax.f32 %v6519_v17, 0.0  ;;  %v6520_v58 = vadd.f32 %v27971_v11, %v6482_v24  ;;  %24623 = vmatpush3.bf16.msra.mxu1 %v24622_v60  ;;  %24626 = vmatpush3.bf16.msra.mxu0 %v24622_v60 }
 0x692   : > { %v6554_v6 = vmax.f32 %v6522_v2, 0.0  ;;  %24627 = vmatprep.subr.bf16.mxu1 %v26317_v26  ;;  %24630 = vmatprep.subr.bf16.mxu0 %v26317_v26  ;;  %v7760_v2 = vld [vmem:[#allocation4 + $0x1] sm:$0xff] }
 0x693   : > { %v7307_v28 = vmax.f32 %v6551_v14, %v6553_v40  ;;  %v6552_v57 = vmax.f32 %v6520_v58, 0.0  ;;  %v23127_v7 = vpop.f32.mrb[24].mxu1 }
 0x694   : > { %v6487_v47 = vmul.f32 %v23127_v7, %v27966_v5  ;;  %v6392_v8 = vpop.f32.mrb[25].mxu1  ;;  %23194 = vmatmul.mubr.msk.f32.vlgmr.msra.gmra.mrb[38].mxu1 %vm6577_vm11, %v27992_v37  ;;  %23201 = vmatmul.mubr.msk.f32.vlgmr.msra.gmra.mrb[42].mxu0 %vm6577_vm11, %v28003_v18 }
 0x695   : > { %v7308_v13 = vmax.f32 %v6552_v57, %v6554_v6  ;;  %v6485_v35 = vmul.f32 %v27966_v5, %v6392_v8  ;;  %v23128_v20 = vpop.f32.mrb[26].mxu1  ;;  %23207 = vmatprep.mubr.msk.f32.mxu1 %vm26318_vm5, %v26316_v0  ;;  %23214 = vmatprep.mubr.msk.f32.mxu0 %vm26318_vm5, %v26316_v0 }
 0x696   : > { %v6525_v21 = vadd.f32 %v27971_v11, %v6487_v47  ;;  %v6488_v54 = vmul.f32 %v23128_v20, %v27966_v5  ;;  %v6395_v10 = vpop.f32.mrb[27].mxu1 }
 0x697   : > { %v24628_v49 = vpack.c.bf16 %v7308_v13, %v7307_v28  ;;  %v6523_v3 = vadd.f32 %v27971_v11, %v6485_v35  ;;  %v6486_v56 = vmul.f32 %v27966_v5, %v6395_v10 }
 0x698   : > { %v6557_v9 = vmax.f32 %v6525_v21, 0.0  ;;  %v6526_v44 = vadd.f32 %v27971_v11, %v6488_v54 }
 0x699   : > { %v6555_v30 = vmax.f32 %v6523_v3, 0.0  ;;  %v6524_v41 = vadd.f32 %v27971_v11, %v6486_v56  ;;  %24629 = vmatpush3.bf16.msra.mxu1 %v24628_v49  ;;  %24632 = vmatpush3.bf16.msra.mxu0 %v24628_v49  ;;  %v26009_v56 = vld [vmem:[#allocation11 + $0x8] sm:$0xff]  }
 0x69a   : > { %v6558_v27 = vmax.f32 %v6526_v44, 0.0  ;;  %24633 = vmatprep.subr.bf16.mxu1 %v26317_v26  ;;  %24636 = vmatprep.subr.bf16.mxu0 %v26317_v26 }
 0x69b   : > { %v7452_v33 = vmax.f32 %v6555_v30, %v6557_v9  ;;  %v6556_v52 = vmax.f32 %v6524_v41, 0.0  ;;  %v23131_v63 = vpop.f32.mrb[28].mxu1  ;;  %v28140_v9 = vld [vmem:[#allocation11 + $0x20] sm:$0xff]  }
 0x69c   : > { %v6491_v55 = vmul.f32 %v23131_v63, %v27966_v5  ;;  %v6408_v62 = vpop.f32.mrb[29].mxu1  ;;  %23208 = vmatmul.mubr.msk.f32.vlgmr.msra.gmra.mrb[40].mxu1 %vm6577_vm11, %v27992_v37  ;;  %23215 = vmatmul.mubr.msk.f32.vlgmr.msra.gmra.mrb[44].mxu0 %vm6577_vm11, %v28003_v18 }
 0x69d   : > { %v7453_v16 = vmax.f32 %v6556_v52, %v6558_v27  ;;  %v6489_v50 = vmul.f32 %v27966_v5, %v6408_v62  ;;  %v23132_v34 = vpop.f32.mrb[30].mxu1  ;;  %23221 = vmatprep.mubr.msk.f32.mxu1 %vm26318_vm5, %v26316_v0  ;;  %23228 = vmatprep.mubr.msk.f32.mxu0 %vm26318_vm5, %v26316_v0 }
 0x69e   : > { %v6529_v59 = vadd.f32 %v27971_v11, %v6491_v55  ;;  %v6492_v51 = vmul.f32 %v23132_v34, %v27966_v5  ;;  %v6411_v1 = vpop.f32.mrb[31].mxu1 }
 0x69f   : > { %v24634_v25 = vpack.c.bf16 %v7453_v16, %v7452_v33  ;;  %v6527_v48 = vadd.f32 %v27971_v11, %v6489_v50  ;;  %v6490_v32 = vmul.f32 %v27966_v5, %v6411_v1 }
 0x6a0   : > { %v6561_v12 = vmax.f32 %v6529_v59, 0.0  ;;  %v6530_v19 = vadd.f32 %v27971_v11, %v6492_v51 }
 0x6a1   : > { %v6559_v36 = vmax.f32 %v6527_v48, 0.0  ;;  %v6528_v42 = vadd.f32 %v27971_v11, %v6490_v32  ;;  %24635 = vmatpush3.bf16.msra.mxu1 %v24634_v25  ;;  %24638 = vmatpush3.bf16.msra.mxu0 %v24634_v25 }
 0x6a2   : > { %v6562_v31 = vmax.f32 %v6530_v19, 0.0  ;;  %24639 = vmatprep.subr.bf16.mxu1 %v26317_v26  ;;  %24642 = vmatprep.subr.bf16.mxu0 %v26317_v26  ;;  %v26006_v26 = vld [vmem:[#allocation11 + $0x10] sm:$0xff]  }
 0x6a3   : > { %v7597_v39 = vmax.f32 %v6559_v36, %v6561_v12  ;;  %v6560_v15 = vmax.f32 %v6528_v42, 0.0  ;;  %v7744_v42 = vld [vmem:[#allocation4] sm:$0xff] }
 0x6a4   : > { %23222 = vmatmul.mubr.msk.f32.vlgmr.msra.gmra.mrb[42].mxu1 %vm6577_vm11, %v27992_v37  ;;  %23229 = vmatmul.mubr.msk.f32.vlgmr.msra.gmra.mrb[46].mxu0 %vm6577_vm11, %v28003_v18 }
 0x6a5   : > { %v7598_v5 = vmax.f32 %v6560_v15, %v6562_v31  ;;  %23235 = vmatprep.mubr.msk.f32.mxu1 %vm26318_vm5, %v26316_v0  ;;  %23242 = vmatprep.mubr.msk.f32.mxu0 %vm26318_vm5, %v26316_v0 }
 0x6a7   : > { %v24640_v11 = vpack.c.bf16 %v7598_v5, %v7597_v39 }
 0x6a9   : > { %24641 = vmatpush3.bf16.msra.mxu1 %v24640_v11  ;;  %24644 = vmatpush3.bf16.msra.mxu0 %v24640_v11 }
 0x6aa   : > { %23245 = vmatprep.subr.bf16.mxu1 %v26006_v26 }
 0x6ac   : > { %23236 = vmatmul.mubr.msk.f32.vlgmr.msra.gmra.mrb[44].mxu1 %vm6577_vm11, %v27992_v37  ;;  %23243 = vmatmul.mubr.msk.f32.vlgmr.msra.gmra.mrb[48].mxu0 %vm6577_vm11, %v28003_v18 }
 0x6ad   : > { %23246 = vmatpush3.bf16.msra.mxu1 %v26006_v26 }
 0x6ae   : > { %23247 = vmatprep.subr.bf16.mxu1 %v26007_v45 }
 0x6b1   : > { %23248 = vmatpush3.bf16.msra.mxu1 %v26007_v45 }
 0x6b2   : > { %23257 = vmatprep.subr.bf16.mxu1 %v26008_v4 }
 0x747   : > { %v6647_v61 = vpop.f32.mrb[32].mxu0 }
 0x748   : > { %v23139_v43 = vpop.f32.mrb[33].mxu0 }
 0x74b   : > { %v6720_v23 = vpop.f32.mrb[34].mxu0 }
 0x74c   : > { %v6724_v38 = vmax.f32 %v6647_v61, %v6720_v23  ;;  %v23146_v60 = vpop.f32.mrb[35].mxu0 }
 0x74e   : > { %6726 = vst.msk [vmem:[#allocation4 + $0x11] sm:$0xff] %vm746_vm3, %v6724_v38 }
 0x74f   : > { %v6795_v17 = vpop.f32.mrb[32].mxu1  ;;  %v6865_v37 = vpop.f32.mrb[36].mxu0 }
 0x750   : > { %v6869_v24 = vmax.f32 %v6795_v17, %v6865_v37  ;;  %v23153_v40 = vpop.f32.mrb[33].mxu1  ;;  %v23160_v18 = vpop.f32.mrb[37].mxu0  ;;  %v26011_v17 = vld [vmem:[#allocation11 + $0x28] sm:$0xff]  }
 0x751   : > { %v7955_v18 = vld [vmem:[#allocation4 + $0x2] sm:$0xff] }
 0x752   : > { %6871 = vst.msk [vmem:[#allocation4 + $0x21] sm:$0xff] %vm746_vm3, %v6869_v24  ;;  %v26012_v24 = vld [vmem:[#allocation11 + $0x30] sm:$0xff]  }
 0x755   : > { %v28122_v14 = vld [vmem:[#allocation4 + $0x11] sm:$0xff] }
 0x756   : > { %v7768_v58 = vpack.c.bf16 %v28122_v14, %v7760_v2  ;;  %v28158_v31 = vld [vmem:[#allocation4 + $0x10] sm:$0xff] }
 0x757   : > { %v6940_v6 = vpop.f32.mrb[34].mxu1  ;;  %v7010_v28 = vpop.f32.mrb[38].mxu0  ;;  %v7956_v2 = vld [vmem:[#allocation4 + $0x12] sm:$0xff] }
 0x758   : > { %v7014_v57 = vmax.f32 %v6940_v6, %v7010_v28  ;;  %v23167_v7 = vpop.f32.mrb[35].mxu1  ;;  %v23174_v47 = vpop.f32.mrb[39].mxu0  ;;  %23249 = vmatprep.mubr.msk.bf16.mxu1 %vm746_vm3, %v7768_v58  ;;  %v7963_v28 = vpack.c.bf16 %v7956_v2, %v7955_v18 }
 0x759   : > { %v28126_v8 = vld [vmem:[#allocation4 + $0x21] sm:$0xff] }
 0x75a   : > { %7016 = vst.msk [vmem:[#allocation4 + $0x31] sm:$0xff] %vm746_vm3, %v7014_v57  ;;  %v8191_v13 = vpack.c.bf16 %v28126_v8, %v28122_v14  ;;  %v7746_v23 = vld [vmem:[#allocation4 + $0x20] sm:$0xff] }
 0x75b   : > { %v7957_v47 = vld [vmem:[#allocation4 + $0x22] sm:$0xff] }
 0x75f   : > { %v7085_v35 = vpop.f32.mrb[36].mxu1  ;;  %v7155_v20 = vpop.f32.mrb[40].mxu0 }
 0x760   : > { %v7159_v21 = vmax.f32 %v7085_v35, %v7155_v20  ;;  %v23181_v54 = vpop.f32.mrb[37].mxu1  ;;  %v23188_v10 = vpop.f32.mrb[41].mxu0 }
 0x761   : > { %v28131_v49 = vld [vmem:[#allocation4 + $0x31] sm:$0xff] }
 0x762   : > { %7161 = vst.msk [vmem:[#allocation4 + $0x41] sm:$0xff] %vm746_vm3, %v7159_v21  ;;  %v28136_v3 = vpack.c.bf16 %v28131_v49, %v28126_v8  ;;  %v7747_v61 = vld [vmem:[#allocation4 + $0x30] sm:$0xff]  ;;  %v26013_v21 = vld [vmem:[#allocation11 + $0x38] sm:$0xff]   ;;  %v8305_v8 = vpack.c.bf16 %v7957_v47, %v7956_v2 }
 0x763   : > { %v28361_v38 = vpack.c.bf16 %v7747_v61, %v7746_v23  ;;  %v7958_v57 = vld [vmem:[#allocation4 + $0x32] sm:$0xff] }
 0x764   : > { %23250 = vmatmul.mubr.msk.bf16.vlgmr.msra.gmra.mrb[48].mxu1 %vm746_vm3, %v28136_v3  ;;  %v28375_v35 = vpack.c.bf16 %v7958_v57, %v7957_v47  ;;  %v26014_v10 = vld [vmem:[#allocation11 + $0x40] sm:$0xff]  }
 0x765   : > { %23258 = vmatpush3.bf16.msra.mxu1 %v26008_v4  ;;  %v7752_v4 = vpack.c.bf16 %v28158_v31, %v7744_v42  ;;  %v26023_v42 = vld [vmem:[#allocation11 + $0x88] sm:$0xff]  }
 0x766   : > { %23259 = vmatprep.subr.bf16.mxu1 %v26009_v56 }
 0x767   : > { %v7230_v44 = vpop.f32.mrb[38].mxu1  ;;  %v7300_v30 = vpop.f32.mrb[42].mxu0 }
 0x768   : > { %v7304_v41 = vmax.f32 %v7230_v44, %v7300_v30  ;;  %v23195_v27 = vpop.f32.mrb[39].mxu1  ;;  %v23202_v33 = vpop.f32.mrb[43].mxu0  ;;  %v8077_v30 = vpack.c.bf16 %v7746_v23, %v28158_v31  ;;  %v8532_v31 = vld [vmem:[#allocation4 + $0x91] sm:$0xff] }
 0x769   : > { %v28142_v52 = vld [vmem:[#allocation4 + $0x41] sm:$0xff]  ;;  %23260 = vmatpush3.bf16.msra.mxu1 %v26009_v56  ;;  %v26015_v27 = vld [vmem:[#allocation11 + $0x48] sm:$0xff]  }
 0x76a   : > { %7306 = vst.msk [vmem:[#allocation4 + $0x51] sm:$0xff] %vm746_vm3, %v7304_v41  ;;  %23269 = vmatprep.subr.bf16.mxu1 %v28140_v9  ;;  %v8192_v63 = vpack.c.bf16 %v28142_v52, %v28131_v49  ;;  %v7748_v60 = vld [vmem:[#allocation4 + $0x40] sm:$0xff] }
 0x76b   : > { %v7959_v20 = vld [vmem:[#allocation4 + $0x42] sm:$0xff]  ;;  %v8078_v41 = vpack.c.bf16 %v7748_v60, %v7747_v61  ;;  %v20675_v61 = vld [vmem:[%s30275_s9] ss:$0 sm:$0xff] }
 0x76f   : > { %v7375_v55 = vpop.f32.mrb[40].mxu1  ;;  %v7445_v62 = vpop.f32.mrb[44].mxu0 }
 0x770   : > { %v7449_v16 = vmax.f32 %v7375_v55, %v7445_v62  ;;  %v23209_v50 = vpop.f32.mrb[41].mxu1  ;;  %v23216_v34 = vpop.f32.mrb[45].mxu0  ;;  %v26016_v55 = vld [vmem:[#allocation11 + $0x50] sm:$0xff]  }
 0x771   : > { %v28148_v59 = vld [vmem:[#allocation4 + $0x51] sm:$0xff]  ;;  %v26017_v50 = vld [vmem:[#allocation11 + $0x58] sm:$0xff]  }
 0x772   : > { %7451 = vst.msk [vmem:[#allocation4 + $0x61] sm:$0xff] %vm746_vm3, %v7449_v16  ;;  %v28153_v51 = vpack.c.bf16 %v28148_v59, %v28142_v52  ;;  %v7749_v43 = vld [vmem:[#allocation4 + $0x50] sm:$0xff]  ;;  %v26020_v52 = vld [vmem:[#allocation11 + $0x70] sm:$0xff]  }
 0x773   : > { %v28363_v37 = vpack.c.bf16 %v7749_v43, %v7748_v60  ;;  %v7960_v7 = vld [vmem:[#allocation4 + $0x52] sm:$0xff] }
 0x774   : > { %23253 = vmatprep.mubr.msk.bf16.mxu1 %vm746_vm3, %v28153_v51  ;;  %v28377_v54 = vpack.c.bf16 %v7960_v7, %v7959_v20 }
 0x777   : > { %v7520_v1 = vpop.f32.mrb[42].mxu1  ;;  %v7590_v25 = vpop.f32.mrb[46].mxu0 }
 0x778   : > { %v7594_v48 = vmax.f32 %v7520_v1, %v7590_v25  ;;  %v23223_v32 = vpop.f32.mrb[43].mxu1  ;;  %v23230_v12 = vpop.f32.mrb[47].mxu0  ;;  %v26018_v1 = vld [vmem:[#allocation11 + $0x60] sm:$0xff]  }
 0x779   : > { %v28160_v11 = vld [vmem:[#allocation4 + $0x61] sm:$0xff]  ;;  %v26022_v12 = vld [vmem:[#allocation11 + $0x80] sm:$0xff]  }
 0x77a   : > { %7596 = vst.msk [vmem:[#allocation4 + $0x71] sm:$0xff] %vm746_vm3, %v7594_v48  ;;  %v7750_v58 = vld [vmem:[#allocation4 + $0x60] sm:$0xff]  ;;  %v8193_v34 = vpack.c.bf16 %v28160_v11, %v28148_v59  ;;  %v26019_v59 = vld [vmem:[#allocation11 + $0x68] sm:$0xff]   ;;  %v26021_v32 = vld [vmem:[#allocation11 + $0x78] sm:$0xff]  }
 0x77b   : > { %v8079_v33 = vpack.c.bf16 %v7750_v58, %v7749_v43 }
 0x77f   : > { %v7665_v19 = vpop.f32.mrb[44].mxu1  ;;  %v7735_v36 = vpop.f32.mrb[48].mxu0 }
 0x780   : > { %v7739_v39 = vmax.f32 %v7665_v19, %v7735_v36  ;;  %v23237_v15 = vpop.f32.mrb[45].mxu1  ;;  %v23244_v5 = vpop.f32.mrb[49].mxu0  ;;  %v8418_v19 = vld [vmem:[#allocation4 + $0x90] sm:$0xff] }
 0x781   : > { %v28162_v26 = vld [vmem:[#allocation4 + $0x71] sm:$0xff]  ;;  %v26024_v15 = vld [vmem:[#allocation13 + $0x20] sm:$0xff]   ;;  %v26025_v5 = vld [vmem:[#allocation13 + $0x28] sm:$0xff]  }
 0x782   : > { %v28166_v45 = vpack.c.bf16 %v28162_v26, %v28160_v11  ;;  %7741 = vst.msk [vmem:[#allocation4 + $0x81] sm:$0xff] %vm746_vm3, %v7739_v39  ;;  %v7751_v40 = vld [vmem:[#allocation4 + $0x70] sm:$0xff]  ;;  %23353 = vmatprep.subr.bf16.mxu0 %v26024_v15 }
 0x783   : > { %v28370_v6 = vpack.c.bf16 %v7751_v40, %v7750_v58  ;;  %v7962_v56 = vld [vmem:[#allocation4 + $0x72] sm:$0xff]  ;;  %23354 = vmatpush3.bf16.msra.mxu0 %v26024_v15 }
 0x784   : > { %23254 = vmatmul.mubr.msk.bf16.gmra.mrb[52].mxu1 %vm746_vm3, %v28166_v45  ;;  %23355 = vmatprep.subr.bf16.mxu0 %v26025_v5  ;;  %v26026_v11 = vld [vmem:[#allocation13 + $0x30] sm:$0xff]  }
 0x785   : > { %23261 = vmatprep.mubr.msk.bf16.mxu1 %vm746_vm3, %v7752_v4  ;;  %v20674_v4 = vld [vmem:[%s30274_s8] ss:$0 sm:$0xff] }
 0x787   : > { %23356 = vmatpush3.bf16.msra.mxu0 %v26025_v5 }
 0x788   : > { %23357 = vmatprep.subr.bf16.mxu0 %v26026_v11 }
 0x789   : > { %v8076_v62 = vld [vmem:[#allocation4 + $0x80] sm:$0xff] }
 0x78a   : > { %v8080_v16 = vpack.c.bf16 %v8076_v62, %v7751_v40  ;;  %v8190_v25 = vld [vmem:[#allocation4 + $0x81] sm:$0xff]  ;;  %v8422_v36 = vpack.c.bf16 %v8418_v19, %v8076_v62 }
 0x78b   : > { %v8194_v14 = vpack.c.bf16 %v8190_v25, %v28162_v26  ;;  %v8536_v39 = vpack.c.bf16 %v8532_v31, %v8190_v25  ;;  %23358 = vmatpush3.bf16.msra.mxu0 %v26026_v11  ;;  %v26027_v26 = vld [vmem:[#allocation13 + $0x38] sm:$0xff]  }
 0x78c   : > { %23262 = vmatmul.mubr.msk.bf16.vlgmr.msra.gmra.mrb[48].mxu1 %vm746_vm3, %v28361_v38  ;;  %23359 = vmatprep.subr.bf16.mxu0 %v26027_v26  ;;  %v26031_v31 = vld [vmem:[#allocation13 + $0x18] sm:$0xff]  }
 0x78d   : > { %23265 = vmatprep.mubr.msk.bf16.mxu1 %vm746_vm3, %v28363_v37  ;;  %23270 = vmatpush3.bf16.msra.mxu1 %v28140_v9  ;;  %v7961_v9 = vld [vmem:[#allocation4 + $0x62] sm:$0xff] }
 0x78e   : > { %23271 = vmatprep.subr.bf16.mxu1 %v26011_v17  ;;  %v28383_v44 = vpack.c.bf16 %v7962_v56, %v7961_v9  ;;  %v8307_v49 = vpack.c.bf16 %v7961_v9, %v7960_v7 }
 0x78f   : > { %23360 = vmatpush3.bf16.msra.mxu0 %v26027_v26 }
 0x791   : > { %23272 = vmatpush3.bf16.msra.mxu1 %v26011_v17 }
 0x792   : > { %23281 = vmatprep.subr.bf16.mxu1 %v26012_v24 }
 0x794   : > { %23266 = vmatmul.mubr.msk.bf16.gmra.mrb[52].mxu1 %vm746_vm3, %v28370_v6 }
 0x795   : > { %23273 = vmatprep.mubr.msk.bf16.mxu1 %vm746_vm3, %v7963_v28 }
 0x79c   : > { %23274 = vmatmul.mubr.msk.bf16.vlgmr.msra.gmra.mrb[48].mxu1 %vm746_vm3, %v28375_v35 }
 0x79d   : > { %23277 = vmatprep.mubr.msk.bf16.mxu1 %vm746_vm3, %v28377_v54  ;;  %23282 = vmatpush3.bf16.msra.mxu1 %v26012_v24 }
 0x79e   : > { %23283 = vmatprep.subr.bf16.mxu1 %v26013_v21 }
 0x7a1   : > { %23284 = vmatpush3.bf16.msra.mxu1 %v26013_v21 }
 0x7a2   : > { %23293 = vmatprep.subr.bf16.mxu1 %v26014_v10 }
 0x7a4   : > { %23278 = vmatmul.mubr.msk.bf16.gmra.mrb[52].mxu1 %vm746_vm3, %v28383_v44 }
 0x7a5   : > { %23285 = vmatprep.mubr.msk.bf16.mxu1 %vm746_vm3, %v8077_v30 }
 0x7ac   : > { %23286 = vmatmul.mubr.msk.bf16.vlgmr.msra.gmra.mrb[48].mxu1 %vm746_vm3, %v8078_v41 }
 0x7ad   : > { %23289 = vmatprep.mubr.msk.bf16.mxu1 %vm746_vm3, %v8079_v33  ;;  %23294 = vmatpush3.bf16.msra.mxu1 %v26014_v10 }
 0x7ae   : > { %23295 = vmatprep.subr.bf16.mxu1 %v26015_v27 }
 0x7b1   : > { %23296 = vmatpush3.bf16.msra.mxu1 %v26015_v27 }
 0x7b2   : > { %23305 = vmatprep.subr.bf16.mxu1 %v26016_v55 }
 0x7b4   : > { %23290 = vmatmul.mubr.msk.bf16.gmra.mrb[52].mxu1 %vm746_vm3, %v8080_v16 }
 0x7b5   : > { %23297 = vmatprep.mubr.msk.bf16.mxu1 %vm746_vm3, %v8191_v13  ;;  %v8306_v13 = vpack.c.bf16 %v7959_v20, %v7958_v57 }
 0x7bc   : > { %23298 = vmatmul.mubr.msk.bf16.vlgmr.msra.gmra.mrb[48].mxu1 %vm746_vm3, %v8192_v63  ;;  %v8304_v63 = vld [vmem:[#allocation4 + $0x82] sm:$0xff] }
 0x7bd   : > { %23301 = vmatprep.mubr.msk.bf16.mxu1 %vm746_vm3, %v8193_v34  ;;  %23306 = vmatpush3.bf16.msra.mxu1 %v26016_v55  ;;  %v8308_v48 = vpack.c.bf16 %v8304_v63, %v7962_v56  ;;  %v8820_v55 = vld [vmem:[#allocation5 + $0x1] sm:$0xff] }
 0x7be   : > { %23307 = vmatprep.subr.bf16.mxu1 %v26017_v50 }
 0x7c1   : > { %23308 = vmatpush3.bf16.msra.mxu1 %v26017_v50 }
 0x7c2   : > { %23317 = vmatprep.subr.bf16.mxu1 %v26018_v1 }
 0x7c4   : > { %23302 = vmatmul.mubr.msk.bf16.gmra.mrb[52].mxu1 %vm746_vm3, %v8194_v14 }
 0x7c5   : > { %23309 = vmatprep.mubr.msk.bf16.mxu1 %vm746_vm3, %v8305_v8 }
 0x7cc   : > { %23310 = vmatmul.mubr.msk.bf16.vlgmr.msra.gmra.mrb[48].mxu1 %vm746_vm3, %v8306_v13 }
 0x7cd   : > { %23313 = vmatprep.mubr.msk.bf16.mxu1 %vm746_vm3, %v8307_v49  ;;  %23318 = vmatpush3.bf16.msra.mxu1 %v26018_v1  ;;  %v26030_v49 = vld [vmem:[#allocation13 + $0x10] sm:$0xff]  }
 0x7ce   : > { %23319 = vmatprep.subr.bf16.mxu1 %v26019_v59 }
 0x7d1   : > { %23320 = vmatpush3.bf16.msra.mxu1 %v26019_v59  ;;  %v26029_v59 = vld [vmem:[#allocation13 + $0x8] sm:$0xff]  }
 0x7d2   : > { %23329 = vmatprep.subr.bf16.mxu1 %v26020_v52 }
 0x7d4   : > { %23314 = vmatmul.mubr.msk.bf16.gmra.mrb[52].mxu1 %vm746_vm3, %v8308_v48 }
 0x7d5   : > { %23321 = vmatprep.mubr.msk.bf16.mxu1 %vm746_vm3, %v28361_v38 }
 0x7dc   : > { %23322 = vmatmul.mubr.msk.bf16.vlgmr.msra.gmra.mrb[48].mxu1 %vm746_vm3, %v28363_v37 }
 0x7dd   : > { %23325 = vmatprep.mubr.msk.bf16.mxu1 %vm746_vm3, %v28370_v6  ;;  %23330 = vmatpush3.bf16.msra.mxu1 %v26020_v52 }
 0x7de   : > { %23331 = vmatprep.subr.bf16.mxu1 %v26021_v32 }
 0x7e1   : > { %23332 = vmatpush3.bf16.msra.mxu1 %v26021_v32  ;;  %v8800_v32 = vld [vmem:[#allocation5] sm:$0xff] }
 0x7e2   : > { %23341 = vmatprep.subr.bf16.mxu1 %v26022_v12 }
 0x7e4   : > { %23326 = vmatmul.mubr.msk.bf16.gmra.mrb[52].mxu1 %vm746_vm3, %v8422_v36 }
 0x7e5   : > { %23333 = vmatprep.mubr.msk.bf16.mxu1 %vm746_vm3, %v28136_v3  ;;  %v8646_v3 = vld [vmem:[#allocation4 + $0x92] sm:$0xff] }
 0x7ec   : > { %23334 = vmatmul.mubr.msk.bf16.vlgmr.msra.gmra.mrb[48].mxu1 %vm746_vm3, %v28153_v51  ;;  %v8650_v51 = vpack.c.bf16 %v8646_v3, %v8304_v63  ;;  %v26032_v3 = vld [vmem:[#allocation13 + $0x40] sm:$0xff]  }
 0x7ed   : > { %23337 = vmatprep.mubr.msk.bf16.mxu1 %vm746_vm3, %v28166_v45  ;;  %23342 = vmatpush3.bf16.msra.mxu1 %v26022_v12  ;;  %v26028_v45 = vld [vmem:[#allocation13] sm:$0xff]  }
 0x7ee   : > { %23343 = vmatprep.subr.bf16.mxu1 %v26023_v42  ;;  %23369 = vmatprep.subr.bf16.mxu0 %v26028_v45 }
 0x7f1   : > { %23344 = vmatpush3.bf16.msra.mxu1 %v26023_v42 }
 0x7f4   : > { %23338 = vmatmul.mubr.msk.bf16.gmra.mrb[52].mxu1 %vm746_vm3, %v8536_v39 }
 0x7f5   : > { %23345 = vmatprep.mubr.msk.bf16.mxu1 %vm746_vm3, %v28375_v35 }
 0x7fc   : > { %23346 = vmatmul.mubr.msk.bf16.vlgmr.msra.gmra.mrb[48].mxu1 %vm746_vm3, %v28377_v54 }
 0x7fd   : > { %23349 = vmatprep.mubr.msk.bf16.mxu1 %vm746_vm3, %v28383_v44 }
 0x804   : > { %23350 = vmatmul.mubr.msk.bf16.gmra.mrb[52].mxu1 %vm746_vm3, %v8650_v51 }
 0x8cf   : > { %v23347_v43 = vpop.f32.mrb[48].mxu1 }
 0x8d0   : > { %v8761_v23 = vmul.f32 %v23347_v43, %v20674_v4  ;;  %v8714_v38 = vpop.f32.mrb[49].mxu1 }
 0x8d1   : > { %v8759_v60 = vmul.f32 %v20674_v4, %v8714_v38  ;;  %v23348_v17 = vpop.f32.mrb[50].mxu1 }
 0x8d2   : > { %v8775_v37 = vadd.f32 %v20675_v61, %v8761_v23  ;;  %v8762_v24 = vmul.f32 %v23348_v17, %v20674_v4  ;;  %v8717_v40 = vpop.f32.mrb[51].mxu1  ;;  %v9043_v23 = vld [vmem:[#allocation5 + $0x2] sm:$0xff] }
 0x8d3   : > { %v8773_v18 = vadd.f32 %v20675_v61, %v8759_v60  ;;  %v8760_v2 = vmul.f32 %v20674_v4, %v8717_v40  ;;  %v26036_v40 = vld [vmem:[#allocation13 + $0x60] sm:$0xff]  }
 0x8d4   : > { %v8783_v58 = vmax.f32 %v8775_v37, 0.0  ;;  %v8776_v6 = vadd.f32 %v20675_v61, %v8762_v24  ;;  %v26035_v37 = vld [vmem:[#allocation13 + $0x58] sm:$0xff]  }
 0x8d5   : > { %v8781_v28 = vmax.f32 %v8773_v18, 0.0  ;;  %v8774_v57 = vadd.f32 %v20675_v61, %v8760_v2 }
 0x8d6   : > { %8792 = vst.msk [vmem:[#allocation5 + $0x31] sm:$0xff] %vm822_vm13, %v8783_v58  ;;  %v8784_v7 = vmax.f32 %v8776_v6, 0.0 }
 0x8d7   : > { %8790 = vst.msk [vmem:[#allocation5 + $0x11] sm:$0xff] %vm822_vm13, %v8781_v28  ;;  %v8782_v47 = vmax.f32 %v8774_v57, 0.0  ;;  %v23351_v35 = vpop.f32.mrb[52].mxu1  ;;  %v26037_v57 = vld [vmem:[#allocation13 + $0x68] sm:$0xff]  }
 0x8d8   : > { %8793 = vst.msk [vmem:[#allocation5 + $0x41] sm:$0xff] %vm822_vm13, %v8784_v7  ;;  %v8765_v20 = vmul.f32 %v23351_v35, %v20674_v4  ;;  %v8730_v21 = vpop.f32.mrb[53].mxu1 }
 0x8d9   : > { %8791 = vst.msk [vmem:[#allocation5 + $0x21] sm:$0xff] %vm822_vm13, %v8782_v47  ;;  %v8763_v54 = vmul.f32 %v20674_v4, %v8730_v21  ;;  %v23352_v10 = vpop.f32.mrb[54].mxu1  ;;  %v26038_v47 = vld [vmem:[#allocation13 + $0x70] sm:$0xff]  }
 0x8da   : > { %v8779_v56 = vadd.f32 %v20675_v61, %v8765_v20  ;;  %v8766_v9 = vmul.f32 %v23352_v10, %v20674_v4  ;;  %v8733_v44 = vpop.f32.mrb[55].mxu1 }
 0x8db   : > { %v8777_v30 = vadd.f32 %v20675_v61, %v8763_v54  ;;  %v8764_v41 = vmul.f32 %v20674_v4, %v8733_v44  ;;  %v26039_v54 = vld [vmem:[#allocation13 + $0x78] sm:$0xff]   ;;  %v26041_v44 = vld [vmem:[#allocation13 + $0x88] sm:$0xff]  }
 0x8dc   : > { %v8787_v27 = vmax.f32 %v8779_v56, 0.0  ;;  %v8780_v33 = vadd.f32 %v20675_v61, %v8766_v9  ;;  %v26040_v56 = vld [vmem:[#allocation13 + $0x80] sm:$0xff]  }
 0x8dd   : > { %v8785_v62 = vmax.f32 %v8777_v30, 0.0  ;;  %v8778_v16 = vadd.f32 %v20675_v61, %v8764_v41  ;;  %v28448_v8 = vld [vmem:[#allocation5 + $0x31] sm:$0xff] }
 0x8de   : > { %8796 = vst.msk [vmem:[#allocation5 + $0x71] sm:$0xff] %vm822_vm13, %v8787_v27  ;;  %v8788_v50 = vmax.f32 %v8780_v33, 0.0  ;;  %v28441_v34 = vld [vmem:[#allocation5 + $0x11] sm:$0xff] }
 0x8df   : > { %8794 = vst.msk [vmem:[#allocation5 + $0x51] sm:$0xff] %vm822_vm13, %v8785_v62  ;;  %v8786_v1 = vmax.f32 %v8778_v16, 0.0  ;;  %v8828_v25 = vpack.c.bf16 %v28441_v34, %v8820_v55  ;;  %v28458_v52 = vld [vmem:[#allocation5 + $0x41] sm:$0xff]  ;;  %v28466_v12 = vld [vmem:[#allocation5 + $0x10] sm:$0xff]  ;;  %v26043_v55 = vld [vmem:[#allocation13 + $0x98] sm:$0xff]  }
 0x8e0   : > { %8797 = vst.msk [vmem:[#allocation5 + $0x81] sm:$0xff] %vm822_vm13, %v8788_v50  ;;  %v28446_v14 = vld [vmem:[#allocation5 + $0x21] sm:$0xff]  ;;  %v8808_v39 = vpack.c.bf16 %v28466_v12, %v8800_v32  ;;  %v8803_v5 = vld [vmem:[#allocation5 + $0x30] sm:$0xff]  ;;  %v9312_v50 = vpack.c.bf16 %v28458_v52, %v28448_v8 }
 0x8e1   : > { %8795 = vst.msk [vmem:[#allocation5 + $0x61] sm:$0xff] %vm822_vm13, %v8786_v1  ;;  %23361 = vmatprep.mubr.msk.bf16.mxu0 %vm822_vm13, %v8828_v25  ;;  %v28454_v13 = vpack.c.bf16 %v28448_v8, %v28446_v14  ;;  %v8802_v51 = vld [vmem:[#allocation5 + $0x20] sm:$0xff]  ;;  %v26034_v61 = vld [vmem:[#allocation13 + $0x50] sm:$0xff]   ;;  %v9311_v62 = vpack.c.bf16 %v28446_v14, %v28441_v34  ;;  %v26045_v1 = vld [vmem:[#allocation13 + $0xa8] sm:$0xff]  }
 0x8e2   : > { %v28482_v11 = vpack.c.bf16 %v8803_v5, %v8802_v51  ;;  %v8804_v26 = vld [vmem:[#allocation5 + $0x40] sm:$0xff]  ;;  %v28490_v38 = vld [vmem:[#allocation5 + $0x12] sm:$0xff]  ;;  %v9181_v10 = vpack.c.bf16 %v8802_v51, %v28466_v12  ;;  %v26049_v32 = vld [vmem:[#allocation13 + $0xc8] sm:$0xff]  }
 0x8e3   : > { %23362 = vmatmul.mubr.msk.bf16.vlgmr.msra.gmra.mrb[52].mxu0 %vm822_vm13, %v28454_v13  ;;  %v9051_v24 = vpack.c.bf16 %v28490_v38, %v9043_v23  ;;  %v28498_v18 = vld [vmem:[#allocation5 + $0x22] sm:$0xff]  ;;  %v28502_v58 = vld [vmem:[#allocation5 + $0x32] sm:$0xff]  ;;  %v9182_v9 = vpack.c.bf16 %v8804_v26, %v8803_v5 }
 0x8e4   : > { %23370 = vmatpush3.bf16.msra.mxu0 %v26028_v45  ;;  %v26033_v45 = vld [vmem:[#allocation13 + $0x48] sm:$0xff]   ;;  %v28506_v6 = vpack.c.bf16 %v28502_v58, %v28498_v18  ;;  %v26042_v41 = vld [vmem:[#allocation13 + $0x90] sm:$0xff]   ;;  %v26044_v16 = vld [vmem:[#allocation13 + $0xa0] sm:$0xff]  }
 0x8e5   : > { %23371 = vmatprep.subr.bf16.mxu0 %v26029_v59  ;;  %v28470_v36 = vld [vmem:[#allocation5 + $0x71] sm:$0xff]  ;;  %v28508_v28 = vld [vmem:[#allocation5 + $0x42] sm:$0xff] }
 0x8e6   : > { %v28460_v63 = vld [vmem:[#allocation5 + $0x51] sm:$0xff]  ;;  %v26053_v51 = vld [vmem:[#allocation13 + $0xe8] sm:$0xff]  }
 0x8e7   : > { %v28464_v48 = vpack.c.bf16 %v28460_v63, %v28458_v52  ;;  %v8805_v15 = vld [vmem:[#allocation5 + $0x50] sm:$0xff]  ;;  %v28529_v27 = vld [vmem:[#allocation5 + $0x80] sm:$0xff]  ;;  %v26047_v8 = vld [vmem:[#allocation13 + $0xb8] sm:$0xff]  }
 0x8e8   : > { %23372 = vmatpush3.bf16.msra.mxu0 %v26029_v59  ;;  %v28468_v19 = vld [vmem:[#allocation5 + $0x61] sm:$0xff]  ;;  %v28484_v4 = vpack.c.bf16 %v8805_v15, %v8804_v26  ;;  %v8807_v60 = vld [vmem:[#allocation5 + $0x70] sm:$0xff] }
 0x8e9   : > { %23365 = vmatprep.mubr.msk.bf16.mxu0 %vm822_vm13, %v28464_v48  ;;  %v28476_v42 = vpack.c.bf16 %v28470_v36, %v28468_v19  ;;  %23373 = vmatprep.subr.bf16.mxu0 %v26030_v49  ;;  %v8806_v43 = vld [vmem:[#allocation5 + $0x60] sm:$0xff]  ;;  %v28500_v2 = vld [vmem:[#allocation5 + $0x52] sm:$0xff]  ;;  %v9184_v33 = vpack.c.bf16 %v28529_v27, %v8807_v60  ;;  %v9313_v25 = vpack.c.bf16 %v28468_v19, %v28460_v63 }
 0x8ea   : > { %v28492_v17 = vpack.c.bf16 %v8807_v60, %v8806_v43  ;;  %v28512_v7 = vpack.c.bf16 %v28500_v2, %v28508_v28  ;;  %v9049_v35 = vld [vmem:[#allocation5 + $0x62] sm:$0xff]  ;;  %v28518_v20 = vld [vmem:[#allocation5 + $0x72] sm:$0xff]  ;;  %v9183_v30 = vpack.c.bf16 %v8806_v43, %v8805_v15  ;;  %v9442_v63 = vpack.c.bf16 %v28508_v28, %v28502_v58  ;;  %v20748_v28 = vld [vmem:[%s30277_s11] ss:$0 sm:$0xff] }
 0x8eb   : > { %23366 = vmatmul.mubr.msk.bf16.gmra.mrb[56].mxu0 %vm822_vm13, %v28476_v42  ;;  %v28521_v21 = vpack.c.bf16 %v28518_v20, %v9049_v35  ;;  %v26046_v34 = vld [vmem:[#allocation13 + $0xb0] sm:$0xff]   ;;  %v28542_v14 = vld [vmem:[#allocation5 + $0x81] sm:$0xff]  ;;  %v9443_v12 = vpack.c.bf16 %v9049_v35, %v28500_v2  ;;  %v26067_v2 = vld [vmem:[%s30279_s13 + $0x198] sm:$0xff]  }
 0x8ec   : > { %23374 = vmatpush3.bf16.msra.mxu0 %v26030_v49  ;;  %23377 = vmatprep.mubr.msk.bf16.mxu0 %vm822_vm13, %v8808_v39  ;;  %v9314_v59 = vpack.c.bf16 %v28542_v14, %v28470_v36  ;;  %v9441_v49 = vpack.c.bf16 %v28498_v18, %v28490_v38  ;;  %v26048_v52 = vld [vmem:[#allocation13 + $0xc0] sm:$0xff]   ;;  %v26050_v19 = vld [vmem:[#allocation13 + $0xd0] sm:$0xff]   ;;  %v26051_v39 = vld [vmem:[#allocation13 + $0xd8] sm:$0xff]  }
 0x8ed   : > { %23375 = vmatprep.subr.bf16.mxu0 %v26031_v31  ;;  %v9440_v36 = vld [vmem:[#allocation5 + $0x82] sm:$0xff]  ;;  %v26054_v15 = vld [vmem:[#allocation13 + $0xf0] sm:$0xff]   ;;  %v26066_v18 = vld [vmem:[%s30279_s13 + $0x1b8] sm:$0xff]  }
 0x8ee   : > { %v9571_v5 = vld [vmem:[#allocation5 + $0x90] sm:$0xff]  ;;  %v26060_v38 = vld [vmem:[%s30279_s13 + $0x1a0] sm:$0xff]  }
 0x8ef   : > { %v9575_v26 = vpack.c.bf16 %v9571_v5, %v28529_v27  ;;  %v9701_v43 = vld [vmem:[#allocation5 + $0x91] sm:$0xff]  ;;  %v26061_v60 = vld [vmem:[%s30279_s13 + $0x180] sm:$0xff]   ;;  %23497 = vmatprep.subr.bf16.mxu1 %v26060_v38 }
 0x8f0   : > { %23376 = vmatpush3.bf16.msra.mxu0 %v26031_v31  ;;  %v9444_v31 = vpack.c.bf16 %v9440_v36, %v28518_v20  ;;  %v9705_v23 = vpack.c.bf16 %v9701_v43, %v28542_v14  ;;  %23498 = vmatpush3.bf16.msra.mxu1 %v26060_v38  ;;  %v28607_v58 = vld [vmem:[%s30279_s13 + $0x1e0] sm:$0xff]   ;;  %v26072_v38 = vld [vmem:[%s30279_s13 + $0x1f0] sm:$0xff]  }
 0x8f1   : > { %23385 = vmatprep.subr.bf16.mxu0 %v26032_v3 }
 0x8f3   : > { %23378 = vmatmul.mubr.msk.bf16.vlgmr.msra.gmra.mrb[52].mxu0 %vm822_vm13, %v28482_v11 }
 0x8f4   : > { %23381 = vmatprep.mubr.msk.bf16.mxu0 %vm822_vm13, %v28484_v4  ;;  %23386 = vmatpush3.bf16.msra.mxu0 %v26032_v3  ;;  %v26052_v3 = vld [vmem:[#allocation13 + $0xe0] sm:$0xff]  }
 0x8f5   : > { %23387 = vmatprep.subr.bf16.mxu0 %v26033_v45 }
 0x8f8   : > { %23388 = vmatpush3.bf16.msra.mxu0 %v26033_v45  ;;  %v26056_v45 = vld [vmem:[#allocation13 + $0x100] sm:$0xff]  }
 0x8f9   : > { %23389 = vmatprep.subr.bf16.mxu0 %v26034_v61 }
 0x8fb   : > { %23382 = vmatmul.mubr.msk.bf16.gmra.mrb[56].mxu0 %vm822_vm13, %v28492_v17 }
 0x8fc   : > { %23390 = vmatpush3.bf16.msra.mxu0 %v26034_v61  ;;  %23393 = vmatprep.mubr.msk.bf16.mxu0 %vm822_vm13, %v9051_v24  ;;  %v26058_v61 = vld [vmem:[#allocation13 + $0x110] sm:$0xff]  }
 0x8fd   : > { %23391 = vmatprep.subr.bf16.mxu0 %v26035_v37  ;;  %v26064_v24 = vld [vmem:[%s30279_s13 + $0x1b0] sm:$0xff]  }
 0x900   : > { %23392 = vmatpush3.bf16.msra.mxu0 %v26035_v37  ;;  %v26063_v37 = vld [vmem:[%s30279_s13 + $0x188] sm:$0xff]  }
 0x901   : > { %23401 = vmatprep.subr.bf16.mxu0 %v26036_v40 }
 0x903   : > { %23394 = vmatmul.mubr.msk.bf16.vlgmr.msra.gmra.mrb[52].mxu0 %vm822_vm13, %v28506_v6 }
 0x904   : > { %23397 = vmatprep.mubr.msk.bf16.mxu0 %vm822_vm13, %v28512_v7  ;;  %23402 = vmatpush3.bf16.msra.mxu0 %v26036_v40  ;;  %v26065_v40 = vld [vmem:[%s30279_s13 + $0x190] sm:$0xff]  }
 0x905   : > { %23403 = vmatprep.subr.bf16.mxu0 %v26037_v57 }
 0x908   : > { %23404 = vmatpush3.bf16.msra.mxu0 %v26037_v57  ;;  %v20749_v57 = vld [vmem:[%s30278_s12] ss:$0 sm:$0xff] }
 0x909   : > { %23405 = vmatprep.subr.bf16.mxu0 %v26038_v47 }
 0x90b   : > { %23398 = vmatmul.mubr.msk.bf16.gmra.mrb[56].mxu0 %vm822_vm13, %v28521_v21 }
 0x90c   : > { %23406 = vmatpush3.bf16.msra.mxu0 %v26038_v47  ;;  %23409 = vmatprep.mubr.msk.bf16.mxu0 %vm822_vm13, %v9181_v10 }
 0x90d   : > { %23407 = vmatprep.subr.bf16.mxu0 %v26039_v54 }
 0x910   : > { %23408 = vmatpush3.bf16.msra.mxu0 %v26039_v54 }
 0x911   : > { %23417 = vmatprep.subr.bf16.mxu0 %v26040_v56 }
 0x913   : > { %23410 = vmatmul.mubr.msk.bf16.vlgmr.msra.gmra.mrb[52].mxu0 %vm822_vm13, %v9182_v9 }
 0x914   : > { %23413 = vmatprep.mubr.msk.bf16.mxu0 %vm822_vm13, %v9183_v30  ;;  %23418 = vmatpush3.bf16.msra.mxu0 %v26040_v56 }
 0x915   : > { %23419 = vmatprep.subr.bf16.mxu0 %v26041_v44 }
 0x918   : > { %23420 = vmatpush3.bf16.msra.mxu0 %v26041_v44 }
 0x919   : > { %23421 = vmatprep.subr.bf16.mxu0 %v26042_v41 }
 0x91b   : > { %23414 = vmatmul.mubr.msk.bf16.gmra.mrb[56].mxu0 %vm822_vm13, %v9184_v33 }
 0x91c   : > { %23422 = vmatpush3.bf16.msra.mxu0 %v26042_v41  ;;  %23425 = vmatprep.mubr.msk.bf16.mxu0 %vm822_vm13, %v9311_v62 }
 0x91d   : > { %23423 = vmatprep.subr.bf16.mxu0 %v26043_v55 }
 0x920   : > { %23424 = vmatpush3.bf16.msra.mxu0 %v26043_v55 }
 0x921   : > { %23433 = vmatprep.subr.bf16.mxu0 %v26044_v16 }
 0x923   : > { %23426 = vmatmul.mubr.msk.bf16.vlgmr.msra.gmra.mrb[52].mxu0 %vm822_vm13, %v9312_v50 }
 0x924   : > { %23429 = vmatprep.mubr.msk.bf16.mxu0 %vm822_vm13, %v9313_v25  ;;  %23434 = vmatpush3.bf16.msra.mxu0 %v26044_v16 }
 0x925   : > { %23435 = vmatprep.subr.bf16.mxu0 %v26045_v1 }
 0x928   : > { %23436 = vmatpush3.bf16.msra.mxu0 %v26045_v1 }
 0x929   : > { %23437 = vmatprep.subr.bf16.mxu0 %v26046_v34 }
 0x92b   : > { %23430 = vmatmul.mubr.msk.bf16.gmra.mrb[56].mxu0 %vm822_vm13, %v9314_v59 }
 0x92c   : > { %23438 = vmatpush3.bf16.msra.mxu0 %v26046_v34  ;;  %23441 = vmatprep.mubr.msk.bf16.mxu0 %vm822_vm13, %v9441_v49 }
 0x92d   : > { %23439 = vmatprep.subr.bf16.mxu0 %v26047_v8 }
 0x930   : > { %23440 = vmatpush3.bf16.msra.mxu0 %v26047_v8 }
 0x931   : > { %23449 = vmatprep.subr.bf16.mxu0 %v26048_v52 }
 0x933   : > { %23442 = vmatmul.mubr.msk.bf16.vlgmr.msra.gmra.mrb[52].mxu0 %vm822_vm13, %v9442_v63 }
 0x934   : > { %23445 = vmatprep.mubr.msk.bf16.mxu0 %vm822_vm13, %v9443_v12  ;;  %23450 = vmatpush3.bf16.msra.mxu0 %v26048_v52  ;;  %v10036_v12 = vld [vmem:[#allocation6 + $0x1] sm:$0xff] }
 0x935   : > { %23451 = vmatprep.subr.bf16.mxu0 %v26049_v32 }
 0x938   : > { %23452 = vmatpush3.bf16.msra.mxu0 %v26049_v32 }
 0x939   : > { %23453 = vmatprep.subr.bf16.mxu0 %v26050_v19 }
 0x93b   : > { %23446 = vmatmul.mubr.msk.bf16.gmra.mrb[56].mxu0 %vm822_vm13, %v9444_v31 }
 0x93c   : > { %23454 = vmatpush3.bf16.msra.mxu0 %v26050_v19  ;;  %23457 = vmatprep.mubr.msk.bf16.mxu0 %vm822_vm13, %v28482_v11  ;;  %v26055_v11 = vld [vmem:[#allocation13 + $0xf8] sm:$0xff]   ;;  %v10542_v19 = vld [vmem:[#allocation6 + $0x2] sm:$0xff] }
 0x93d   : > { %23455 = vmatprep.subr.bf16.mxu0 %v26051_v39 }
 0x940   : > { %23456 = vmatpush3.bf16.msra.mxu0 %v26051_v39 }
 0x941   : > { %23465 = vmatprep.subr.bf16.mxu0 %v26052_v3 }
 0x943   : > { %23458 = vmatmul.mubr.msk.bf16.vlgmr.msra.gmra.mrb[52].mxu0 %vm822_vm13, %v28484_v4  ;;  %v26057_v4 = vld [vmem:[#allocation13 + $0x108] sm:$0xff]  }
 0x944   : > { %23461 = vmatprep.mubr.msk.bf16.mxu0 %vm822_vm13, %v28492_v17  ;;  %23466 = vmatpush3.bf16.msra.mxu0 %v26052_v3  ;;  %v26062_v17 = vld [vmem:[%s30279_s13 + $0x1a8] sm:$0xff]  }
 0x945   : > { %23467 = vmatprep.subr.bf16.mxu0 %v26053_v51  ;;  %23499 = vmatprep.subr.bf16.mxu1 %v26062_v17 }
 0x946   : > { %23500 = vmatpush3.bf16.msra.mxu1 %v26062_v17 }
 0x947   : > { %23501 = vmatprep.subr.bf16.mxu1 %v26064_v24 }
 0x948   : > { %23468 = vmatpush3.bf16.msra.mxu0 %v26053_v51 }
 0x949   : > { %23469 = vmatprep.subr.bf16.mxu0 %v26054_v15 }
 0x94a   : > { %23502 = vmatpush3.bf16.msra.mxu1 %v26064_v24 }
 0x94b   : > { %23462 = vmatmul.mubr.msk.bf16.gmra.mrb[56].mxu0 %vm822_vm13, %v9575_v26  ;;  %23503 = vmatprep.subr.bf16.mxu1 %v26066_v18 }
 0x94c   : > { %23470 = vmatpush3.bf16.msra.mxu0 %v26054_v15  ;;  %23473 = vmatprep.mubr.msk.bf16.mxu0 %vm822_vm13, %v28454_v13  ;;  %v26059_v13 = vld [vmem:[#allocation13 + $0x118] sm:$0xff]  }
 0x94d   : > { %23471 = vmatprep.subr.bf16.mxu0 %v26055_v11 }
 0x94e   : > { %23504 = vmatpush3.bf16.msra.mxu1 %v26066_v18 }
 0x94f   : > { %23513 = vmatprep.subr.bf16.mxu1 %v28607_v58 }
 0x950   : > { %23472 = vmatpush3.bf16.msra.mxu0 %v26055_v11 }
 0x951   : > { %23481 = vmatprep.subr.bf16.mxu0 %v26056_v45 }
 0x953   : > { %23474 = vmatmul.mubr.msk.bf16.vlgmr.msra.gmra.mrb[52].mxu0 %vm822_vm13, %v28464_v48  ;;  %v9831_v48 = vld [vmem:[#allocation5 + $0x92] sm:$0xff] }
 0x954   : > { %23477 = vmatprep.mubr.msk.bf16.mxu0 %vm822_vm13, %v28476_v42  ;;  %23482 = vmatpush3.bf16.msra.mxu0 %v26056_v45  ;;  %v9835_v42 = vpack.c.bf16 %v9831_v48, %v9440_v36  ;;  %v26071_v48 = vld [vmem:[%s30279_s13 + $0x1c8] sm:$0xff]  }
 0x955   : > { %23483 = vmatprep.subr.bf16.mxu0 %v26057_v4 }
 0x958   : > { %23484 = vmatpush3.bf16.msra.mxu0 %v26057_v4 }
 0x959   : > { %23485 = vmatprep.subr.bf16.mxu0 %v26058_v61 }
 0x95b   : > { %23478 = vmatmul.mubr.msk.bf16.gmra.mrb[56].mxu0 %vm822_vm13, %v9705_v23 }
 0x95c   : > { %23486 = vmatpush3.bf16.msra.mxu0 %v26058_v61  ;;  %23489 = vmatprep.mubr.msk.bf16.mxu0 %vm822_vm13, %v28506_v6  ;;  %v28612_v6 = vld [vmem:[%s30279_s13 + $0x1c0] sm:$0xff]  }
 0x95d   : > { %23487 = vmatprep.subr.bf16.mxu0 %v26059_v13 }
 0x960   : > { %23488 = vmatpush3.bf16.msra.mxu0 %v26059_v13  ;;  %v26070_v13 = vld [vmem:[%s30279_s13 + $0x1e8] sm:$0xff]  }
 0x961   : > { %23561 = vmatprep.subr.bf16.mxu0 %v26061_v60 }
 0x963   : > { %23490 = vmatmul.mubr.msk.bf16.vlgmr.msra.gmra.mrb[52].mxu0 %vm822_vm13, %v28512_v7 }
 0x964   : > { %23493 = vmatprep.mubr.msk.bf16.mxu0 %vm822_vm13, %v28521_v21  ;;  %23562 = vmatpush3.bf16.msra.mxu0 %v26061_v60  ;;  %v26073_v60 = vld [vmem:[%s30279_s13 + $0x1d0] sm:$0xff]  }
 0x965   : > { %23563 = vmatprep.subr.bf16.mxu0 %v26063_v37 }
 0x968   : > { %23564 = vmatpush3.bf16.msra.mxu0 %v26063_v37 }
 0x969   : > { %23565 = vmatprep.subr.bf16.mxu0 %v26065_v40 }
 0x96b   : > { %23494 = vmatmul.mubr.msk.bf16.gmra.mrb[56].mxu0 %vm822_vm13, %v9835_v42 }
 0x96c   : > { %23566 = vmatpush3.bf16.msra.mxu0 %v26065_v40 }
 0x96d   : > { %23567 = vmatprep.subr.bf16.mxu0 %v26067_v2 }
 0x970   : > { %23568 = vmatpush3.bf16.msra.mxu0 %v26067_v2 }
 0x971   : > { %23577 = vmatprep.subr.bf16.mxu0 %v28612_v6 }
 0xa36   : > { %v23491_v7 = vpop.f32.mrb[52].mxu0 }
 0xa37   : > { %v9962_v47 = vmul.f32 %v23491_v7, %v20748_v28  ;;  %v9915_v35 = vpop.f32.mrb[53].mxu0 }
 0xa38   : > { %v9960_v20 = vmul.f32 %v20748_v28, %v9915_v35  ;;  %v23492_v21 = vpop.f32.mrb[54].mxu0 }
 0xa39   : > { %v9976_v54 = vadd.f32 %v20749_v57, %v9962_v47  ;;  %v9963_v10 = vmul.f32 %v23492_v21, %v20748_v28  ;;  %v9918_v56 = vpop.f32.mrb[55].mxu0  ;;  %v26074_v21 = vld [vmem:[%s30279_s13 + $0x1f8] sm:$0xff]  }
 0xa3a   : > { %v9974_v9 = vadd.f32 %v20749_v57, %v9960_v20  ;;  %v9961_v44 = vmul.f32 %v20748_v28, %v9918_v56 }
 0xa3b   : > { %v9984_v30 = vmax.f32 %v9976_v54, 0.0  ;;  %v9977_v41 = vadd.f32 %v20749_v57, %v9963_v10  ;;  %v26075_v54 = vld [vmem:[%s30279_s13 + $0x1d8] sm:$0xff]   ;;  %v26076_v10 = vld [vmem:[%s30279_s13 + $0xe0] sm:$0xff]  }
 0xa3c   : > { %v9982_v27 = vmax.f32 %v9974_v9, 0.0  ;;  %v9975_v33 = vadd.f32 %v20749_v57, %v9961_v44  ;;  %v26077_v9 = vld [vmem:[%s30279_s13 + $0xc0] sm:$0xff]  }
 0xa3d   : > { %9993 = vst.msk [vmem:[#allocation6 + $0x31] sm:$0xff] %vm822_vm13, %v9984_v30  ;;  %v9985_v55 = vmax.f32 %v9977_v41, 0.0 }
 0xa3e   : > { %9991 = vst.msk [vmem:[#allocation6 + $0x11] sm:$0xff] %vm822_vm13, %v9982_v27  ;;  %v9983_v62 = vmax.f32 %v9975_v33, 0.0  ;;  %v23495_v16 = vpop.f32.mrb[56].mxu0 }
 0xa3f   : > { %9994 = vst.msk [vmem:[#allocation6 + $0x41] sm:$0xff] %vm822_vm13, %v9985_v55  ;;  %v9966_v50 = vmul.f32 %v23495_v16, %v20748_v28  ;;  %v9931_v1 = vpop.f32.mrb[57].mxu0  ;;  %v26078_v55 = vld [vmem:[%s30279_s13 + $0xe8] sm:$0xff]  }
 0xa40   : > { %9992 = vst.msk [vmem:[#allocation6 + $0x21] sm:$0xff] %vm822_vm13, %v9983_v62  ;;  %v9964_v25 = vmul.f32 %v20748_v28, %v9931_v1  ;;  %v23496_v34 = vpop.f32.mrb[58].mxu0  ;;  %v26079_v62 = vld [vmem:[%s30279_s13 + $0xc8] sm:$0xff]   ;;  %v26081_v1 = vld [vmem:[%s30279_s13 + $0xd0] sm:$0xff]  }
 0xa41   : > { %v9980_v14 = vadd.f32 %v20749_v57, %v9966_v50  ;;  %v9967_v59 = vmul.f32 %v23496_v34, %v20748_v28  ;;  %v9934_v8 = vpop.f32.mrb[59].mxu0  ;;  %v26080_v50 = vld [vmem:[%s30279_s13 + $0xf0] sm:$0xff]  }
 0xa42   : > { %v9978_v49 = vadd.f32 %v20749_v57, %v9964_v25  ;;  %v9965_v52 = vmul.f32 %v20748_v28, %v9934_v8 }
 0xa43   : > { %v9988_v63 = vmax.f32 %v9980_v14, 0.0  ;;  %v9981_v32 = vadd.f32 %v20749_v57, %v9967_v59  ;;  %v26082_v59 = vld [vmem:[%s30279_s13 + $0xf8] sm:$0xff]  }
 0xa44   : > { %v9986_v36 = vmax.f32 %v9978_v49, 0.0  ;;  %v9979_v31 = vadd.f32 %v20749_v57, %v9965_v52  ;;  %v28634_v11 = vld [vmem:[#allocation6 + $0x31] sm:$0xff]  ;;  %v26084_v52 = vld [vmem:[%s30279_s13 + $0xa0] sm:$0xff]  }
 0xa45   : > { %9997 = vst.msk [vmem:[#allocation6 + $0x71] sm:$0xff] %vm822_vm13, %v9988_v63  ;;  %v9989_v39 = vmax.f32 %v9981_v32, 0.0  ;;  %v28627_v3 = vld [vmem:[#allocation6 + $0x11] sm:$0xff]  ;;  %v26085_v63 = vld [vmem:[%s30279_s13 + $0x80] sm:$0xff]  }
 0xa46   : > { %v28629_v51 = vld [vmem:[#allocation6 + $0x12] sm:$0xff]  ;;  %9995 = vst.msk [vmem:[#allocation6 + $0x51] sm:$0xff] %vm822_vm13, %v9986_v36  ;;  %v9987_v15 = vmax.f32 %v9979_v31, 0.0  ;;  %v10044_v5 = vpack.c.bf16 %v28627_v3, %v10036_v12  ;;  %v28663_v42 = vld [vmem:[#allocation6 + $0x41] sm:$0xff] }
 0xa47   : > { %v10550_v26 = vpack.c.bf16 %v28629_v51, %v10542_v19  ;;  %9998 = vst.msk [vmem:[#allocation6 + $0x81] sm:$0xff] %vm822_vm13, %v9989_v39  ;;  %v28637_v45 = vld [vmem:[#allocation6 + $0x21] sm:$0xff]  ;;  %v28641_v61 = vld [vmem:[#allocation6 + $0x32] sm:$0xff]  ;;  %v28773_v12 = vpack.c.bf16 %v28663_v42, %v28634_v11 }
 0xa48   : > { %v28639_v4 = vld [vmem:[#allocation6 + $0x22] sm:$0xff]  ;;  %9996 = vst.msk [vmem:[#allocation6 + $0x61] sm:$0xff] %vm822_vm13, %v9987_v15  ;;  %23505 = vmatprep.mubr.msk.bf16.mxu1 %vm822_vm13, %v10044_v5  ;;  %v28648_v43 = vpack.c.bf16 %v28634_v11, %v28637_v45  ;;  %v10018_v30 = vld [vmem:[#allocation6 + $0x30] sm:$0xff]  ;;  %v28752_v8 = vpack.c.bf16 %v28637_v45, %v28627_v3  ;;  %v26083_v49 = vld [vmem:[%s30279_s13 + $0xd8] sm:$0xff]  }
 0xa49   : > { %23569 = vmatprep.mubr.msk.bf16.mxu0 %vm822_vm13, %v10550_v26  ;;  %v10551_v23 = vpack.c.bf16 %v28641_v61, %v28639_v4  ;;  %v28673_v37 = vld [vmem:[#allocation6 + $0x42] sm:$0xff]  ;;  %v26088_v15 = vld [vmem:[%s30279_s13 + $0xb0] sm:$0xff]  }
 0xa4a   : > { %23506 = vmatmul.mubr.msk.bf16.vlgmr.msra.gmra.mrb[56].mxu1 %vm822_vm13, %v28648_v43  ;;  %v10017_v56 = vld [vmem:[#allocation6 + $0x20] sm:$0xff]  ;;  %v26086_v36 = vld [vmem:[%s30279_s13 + $0xa8] sm:$0xff]   ;;  %v26089_v26 = vld [vmem:[%s30279_s13 + $0x90] sm:$0xff]  }
 0xa4b   : > { %23570 = vmatmul.mubr.msk.bf16.vlgmr.msra.gmra.mrb[60].mxu0 %vm822_vm13, %v10551_v23  ;;  %23514 = vmatpush3.bf16.msra.mxu1 %v28607_v58  ;;  %v10015_v58 = vld [vmem:[#allocation6] sm:$0xff]  ;;  %v28717_v41 = vpack.c.bf16 %v10018_v30, %v10017_v56  ;;  %v26087_v39 = vld [vmem:[%s30279_s13 + $0x88] sm:$0xff]   ;;  %v26090_v23 = vld [vmem:[%s30279_s13 + $0xb8] sm:$0xff]  }
 0xa4c   : > { %23578 = vmatpush3.bf16.msra.mxu0 %v28612_v6  ;;  %23515 = vmatprep.subr.bf16.mxu1 %v26070_v13  ;;  %v28683_v2 = vld [vmem:[#allocation6 + $0x71] sm:$0xff]  ;;  %v10019_v27 = vld [vmem:[#allocation6 + $0x40] sm:$0xff] }
 0xa4d   : > { %23579 = vmatprep.subr.bf16.mxu0 %v26071_v48  ;;  %v28671_v17 = vld [vmem:[#allocation6 + $0x51] sm:$0xff]  ;;  %v28769_v32 = vpack.c.bf16 %v10019_v27, %v10018_v30  ;;  %v28902_v30 = vsel %vm10003_vm7, 1.0, %v26316_v0 }
 0xa4e   : > { %v28675_v24 = vld [vmem:[#allocation6 + $0x52] sm:$0xff]  ;;  %v28679_v40 = vpack.c.bf16 %v28671_v17, %v28663_v42  ;;  %v28795_v3 = vld [vmem:[#allocation6 + $0x80] sm:$0xff] }
 0xa4f   : > { %v10552_v18 = vpack.c.bf16 %v28675_v24, %v28673_v37  ;;  %v10016_v6 = vld [vmem:[#allocation6 + $0x10] sm:$0xff]  ;;  %23516 = vmatpush3.bf16.msra.mxu1 %v26070_v13  ;;  %v28685_v28 = vld [vmem:[#allocation6 + $0x61] sm:$0xff]  ;;  %v28819_v13 = vpack.c.bf16 %v28639_v4, %v28629_v51  ;;  %v28832_v51 = vpack.c.bf16 %v28673_v37, %v28641_v61 }
 0xa50   : > { %23580 = vmatpush3.bf16.msra.mxu0 %v26071_v48  ;;  %v28687_v57 = vld [vmem:[#allocation6 + $0x62] sm:$0xff]  ;;  %v28689_v7 = vld [vmem:[#allocation6 + $0x72] sm:$0xff]  ;;  %23509 = vmatprep.mubr.msk.bf16.mxu1 %vm822_vm13, %v28679_v40  ;;  %v28696_v47 = vpack.c.bf16 %v28683_v2, %v28685_v28  ;;  %v10023_v20 = vpack.c.bf16 %v10016_v6, %v10015_v58  ;;  %v28743_v14 = vpack.c.bf16 %v10017_v56, %v10016_v6  ;;  %v28876_v6 = vsel %vm10010_vm9, 1.0, %v26316_v0 }
 0xa51   : > { %23573 = vmatprep.mubr.msk.bf16.mxu0 %vm822_vm13, %v10552_v18  ;;  %v10553_v35 = vpack.c.bf16 %v28689_v7, %v28687_v57  ;;  %23517 = vmatprep.subr.bf16.mxu1 %v26072_v38  ;;  %v10020_v44 = vld [vmem:[#allocation6 + $0x50] sm:$0xff]  ;;  %v10021_v16 = vld [vmem:[#allocation6 + $0x60] sm:$0xff]  ;;  %v28784_v31 = vpack.c.bf16 %v28685_v28, %v28671_v17  ;;  %v26091_v48 = vld [vmem:[%s30279_s13 + $0x98] sm:$0xff]   ;;  %v28838_v4 = vpack.c.bf16 %v28687_v57, %v28675_v24 }
 0xa52   : > { %23581 = vmatprep.subr.bf16.mxu0 %v26073_v60  ;;  %23510 = vmatmul.mubr.msk.bf16.gmra.mrb[60].mxu1 %vm822_vm13, %v28696_v47  ;;  %v28719_v33 = vpack.c.bf16 %v10020_v44, %v10019_v27  ;;  %v10022_v25 = vld [vmem:[#allocation6 + $0x70] sm:$0xff]  ;;  %v28775_v19 = vpack.c.bf16 %v10021_v16, %v10020_v44  ;;  %v28846_v42 = vld [vmem:[#allocation6 + $0x82] sm:$0xff] }
 0xa53   : > { %23574 = vmatmul.mubr.msk.bf16.gmra.mrb[64].mxu0 %vm822_vm13, %v10553_v35  ;;  %23518 = vmatpush3.bf16.msra.mxu1 %v26072_v38  ;;  %v28741_v34 = vpack.c.bf16 %v10022_v25, %v10021_v16  ;;  %v28806_v11 = vpack.c.bf16 %v28795_v3, %v10022_v25  ;;  %v28850_v61 = vpack.c.bf16 %v28846_v42, %v28689_v7  ;;  %v28860_v38 = vsel %vm10009_vm8, 1.0, %v26316_v0 }
 0xa54   : > { %23521 = vmatprep.mubr.msk.bf16.mxu1 %vm822_vm13, %v10023_v20  ;;  %23582 = vmatpush3.bf16.msra.mxu0 %v26073_v60  ;;  %v28869_v60 = vld [vmem:[%s30280_s14] ss:$0 sm:$0xff] }
 0xa55   : > { %23585 = vmatprep.mubr.msk.bf16.mxu0 %vm822_vm13, %v10044_v5  ;;  %23519 = vmatprep.subr.bf16.mxu1 %v26074_v21  ;;  %v28800_v5 = vld [vmem:[#allocation6 + $0x81] sm:$0xff] }
 0xa56   : > { %23583 = vmatprep.subr.bf16.mxu0 %v26075_v54  ;;  %v28810_v45 = vpack.c.bf16 %v28800_v5, %v28683_v2 }
 0xa57   : > { %23520 = vmatpush3.bf16.msra.mxu1 %v26074_v21  ;;  %v28884_v21 = vsel %vm10002_vm6, 1.0, %v26316_v0 }
 0xa58   : > { %23584 = vmatpush3.bf16.msra.mxu0 %v26075_v54  ;;  %23529 = vmatprep.subr.bf16.mxu1 %v26076_v10 }
 0xa59   : > { %23593 = vmatprep.subr.bf16.mxu0 %v26077_v9 }
 0xa5a   : > { %23522 = vmatmul.mubr.msk.bf16.vlgmr.msra.gmra.mrb[56].mxu1 %vm822_vm13, %v28717_v41 }
 0xa5b   : > { %23586 = vmatmul.mubr.msk.bf16.vlgmr.msra.gmra.mrb[60].mxu0 %vm822_vm13, %v28648_v43  ;;  %23525 = vmatprep.mubr.msk.bf16.mxu1 %vm822_vm13, %v28719_v33 }
 0xa5c   : > { %23530 = vmatpush3.bf16.msra.mxu1 %v26076_v10  ;;  %23589 = vmatprep.mubr.msk.bf16.mxu0 %vm822_vm13, %v28679_v40 }
 0xa5d   : > { %23594 = vmatpush3.bf16.msra.mxu0 %v26077_v9  ;;  %23531 = vmatprep.subr.bf16.mxu1 %v26078_v55 }
 0xa5e   : > { %23595 = vmatprep.subr.bf16.mxu0 %v26079_v62 }
 0xa60   : > { %23532 = vmatpush3.bf16.msra.mxu1 %v26078_v55 }
 0xa61   : > { %23596 = vmatpush3.bf16.msra.mxu0 %v26079_v62  ;;  %23533 = vmatprep.subr.bf16.mxu1 %v26080_v50 }
 0xa62   : > { %23526 = vmatmul.mubr.msk.bf16.gmra.mrb[60].mxu1 %vm822_vm13, %v28741_v34  ;;  %23597 = vmatprep.subr.bf16.mxu0 %v26081_v1 }
 0xa63   : > { %23590 = vmatmul.mubr.msk.bf16.gmra.mrb[64].mxu0 %vm822_vm13, %v28696_v47  ;;  %23537 = vmatprep.mubr.msk.bf16.mxu1 %vm822_vm13, %v28743_v14 }
 0xa64   : > { %23534 = vmatpush3.bf16.msra.mxu1 %v26080_v50  ;;  %23601 = vmatprep.mubr.msk.bf16.mxu0 %vm822_vm13, %v28752_v8 }
 0xa65   : > { %23598 = vmatpush3.bf16.msra.mxu0 %v26081_v1  ;;  %23535 = vmatprep.subr.bf16.mxu1 %v26082_v59 }
 0xa66   : > { %23599 = vmatprep.subr.bf16.mxu0 %v26083_v49 }
 0xa68   : > { %23536 = vmatpush3.bf16.msra.mxu1 %v26082_v59  ;;  %v26092_v59 = vld [vmem:[%s30279_s13 + $0x120] sm:$0xff]  }
 0xa69   : > { %23600 = vmatpush3.bf16.msra.mxu0 %v26083_v49  ;;  %23545 = vmatprep.subr.bf16.mxu1 %v26084_v52 }
 0xa6a   : > { %23609 = vmatprep.subr.bf16.mxu0 %v26085_v63 }
 0xa6b   : > { %23538 = vmatmul.mubr.msk.bf16.vlgmr.msra.gmra.mrb[56].mxu1 %vm822_vm13, %v28769_v32 }
 0xa6c   : > { %23602 = vmatmul.mubr.msk.bf16.vlgmr.msra.gmra.mrb[60].mxu0 %vm822_vm13, %v28773_v12  ;;  %23541 = vmatprep.mubr.msk.bf16.mxu1 %vm822_vm13, %v28775_v19 }
 0xa6d   : > { %23546 = vmatpush3.bf16.msra.mxu1 %v26084_v52  ;;  %23605 = vmatprep.mubr.msk.bf16.mxu0 %vm822_vm13, %v28784_v31  ;;  %v26093_v52 = vld [vmem:[%s30279_s13 + $0x128] sm:$0xff]  }
 0xa6e   : > { %23610 = vmatpush3.bf16.msra.mxu0 %v26085_v63  ;;  %23547 = vmatprep.subr.bf16.mxu1 %v26086_v36 }
 0xa6f   : > { %23611 = vmatprep.subr.bf16.mxu0 %v26087_v39 }
 0xa71   : > { %23548 = vmatpush3.bf16.msra.mxu1 %v26086_v36  ;;  %v26094_v36 = vld [vmem:[%s30279_s13 + $0x130] sm:$0xff]  }
 0xa72   : > { %23612 = vmatpush3.bf16.msra.mxu0 %v26087_v39  ;;  %23549 = vmatprep.subr.bf16.mxu1 %v26088_v15 }
 0xa73   : > { %23542 = vmatmul.mubr.msk.bf16.gmra.mrb[60].mxu1 %vm822_vm13, %v28806_v11  ;;  %23613 = vmatprep.subr.bf16.mxu0 %v26089_v26 }
 0xa74   : > { %23606 = vmatmul.mubr.msk.bf16.gmra.mrb[64].mxu0 %vm822_vm13, %v28810_v45  ;;  %23553 = vmatprep.mubr.msk.bf16.mxu1 %vm822_vm13, %v28752_v8 }
 0xa75   : > { %23550 = vmatpush3.bf16.msra.mxu1 %v26088_v15  ;;  %23617 = vmatprep.mubr.msk.bf16.mxu0 %vm822_vm13, %v28819_v13  ;;  %v26095_v15 = vld [vmem:[%s30279_s13 + $0x138] sm:$0xff]  }
 0xa76   : > { %23614 = vmatpush3.bf16.msra.mxu0 %v26089_v26  ;;  %23551 = vmatprep.subr.bf16.mxu1 %v26090_v23  ;;  %v26096_v26 = vld [vmem:[%s30279_s13 + $0x160] sm:$0xff]  }
 0xa77   : > { %23615 = vmatprep.subr.bf16.mxu0 %v26091_v48 }
 0xa79   : > { %23552 = vmatpush3.bf16.msra.mxu1 %v26090_v23 }
 0xa7a   : > { %23616 = vmatpush3.bf16.msra.mxu0 %v26091_v48  ;;  %v26097_v48 = vld [vmem:[%s30279_s13 + $0x168] sm:$0xff]  }
 0xa7c   : > { %23554 = vmatmul.mubr.msk.bf16.vlgmr.msra.gmra.mrb[56].mxu1 %vm822_vm13, %v28773_v12 }
 0xa7d   : > { %23618 = vmatmul.mubr.msk.bf16.vlgmr.msra.gmra.mrb[60].mxu0 %vm822_vm13, %v28832_v51  ;;  %23557 = vmatprep.mubr.msk.bf16.mxu1 %vm822_vm13, %v28784_v31 }
 0xa7e   : > { %23621 = vmatprep.mubr.msk.bf16.mxu0 %vm822_vm13, %v28838_v4 }
 0xa84   : > { %23558 = vmatmul.mubr.msk.bf16.gmra.mrb[60].mxu1 %vm822_vm13, %v28810_v45 }
 0xa85   : > { %23622 = vmatmul.mubr.msk.bf16.gmra.mrb[64].mxu0 %vm822_vm13, %v28850_v61  ;;  %23627 = vmatprep.mubr.msk.f32.mxu1 %vm10997_vm15, %v28860_v38 }
 0xa86   : > { %23647 = vmatprep.mubr.msk.f32.mxu0 %vm10997_vm15, %v28860_v38 }
 0xb4f   : > { %v23555_v17 = vpop.f32.mrb[56].mxu1 }
 0xb50   : > { %v23619_v37 = vpop.f32.mrb[60].mxu0  ;;  %v10480_v24 = vpop.f32.mrb[57].mxu1  ;;  %v10527_v20 = vadd.f32 %v23555_v17, %v28869_v60  ;;  %v26099_v17 = vld [vmem:[%s30279_s13 + $0x100] sm:$0xff]  }
 0xb51   : > { %v10991_v18 = vadd.f32 %v23619_v37, %v28869_v60  ;;  %v10950_v2 = vpop.f32.mrb[61].mxu0  ;;  %v23556_v58 = vpop.f32.mrb[58].mxu1  ;;  %v10525_v53 = vadd.f32 %v28869_v60, %v10480_v24  ;;  %v26098_v37 = vld [vmem:[%s30279_s13 + $0x170] sm:$0xff]   ;;  %v26100_v24 = vld [vmem:[%s30279_s13 + $0x178] sm:$0xff]  }
 0xb52   : > { %v10989_v28 = vadd.f32 %v28869_v60, %v10950_v2  ;;  %v23620_v57 = vpop.f32.mrb[62].mxu0  ;;  %v10483_v7 = vpop.f32.mrb[59].mxu1  ;;  %v10528_v25 = vadd.f32 %v23556_v58, %v28869_v60  ;;  %v26102_v2 = vld [vmem:[%s30279_s13 + $0x60] sm:$0xff]   ;;  %v26103_v58 = vld [vmem:[%s30279_s13 + $0x110] sm:$0xff]  }
 0xb53   : > { %v10953_v35 = vpop.f32.mrb[63].mxu0  ;;  %23645 = vmatprep.subr.mxu0 %v10991_v18  ;;  %v10526_v1 = vadd.f32 %v28869_v60, %v10483_v7  ;;  %v10992_v22 = vadd.f32 %v23620_v57, %v28869_v60  ;;  %v26108_v57 = vld [vmem:[%s30279_s13 + $0x78] sm:$0xff]   ;;  %v26110_v7 = vld [vmem:[%s30279_s13 + $0x20] sm:$0xff]  }
 0xb54   : > { %23625 = vmatprep.subr.mxu1 %v10989_v28  ;;  %23646 = vmatpush3.msra.mxu0 %v10991_v18  ;;  %v10990_v54 = vadd.f32 %v28869_v60, %v10953_v35  ;;  %v26101_v18 = vld [vmem:[%s30279_s13 + $0x108] sm:$0xff]   ;;  %v26115_v35 = vld [vmem:[%s30279_s13 + $0x40] sm:$0xff]  }
 0xb55   : > { %23626 = vmatpush3.msra.mxu1 %v10989_v28  ;;  %23648 = vmatmul.mubr.msk.f32.vlgmr.msra.gmra.mrb[50].mxu0 %vm10997_vm15, %v28876_v6  ;;  %v26106_v28 = vld [vmem:[%s30279_s13 + $0x70] sm:$0xff]  }
 0xb56   : > { %23650 = vmatprep.subr.mxu0 %v10527_v20  ;;  %23628 = vmatmul.mubr.msk.f32.vlgmr.msra.gmra.mrb[46].mxu1 %vm10997_vm15, %v28876_v6 }
 0xb57   : > { %23630 = vmatprep.subr.mxu1 %v10525_v53  ;;  %23651 = vmatpush3.msra.mxu0 %v10527_v20  ;;  %v23559_v10 = vpop.f32.mrb[60].mxu1  ;;  %v26120_v20 = vld [vmem:[%s30279_s13] sm:$0xff]  }
 0xb58   : > { %23631 = vmatpush3.msra.mxu1 %v10525_v53  ;;  %v23623_v56 = vpop.f32.mrb[64].mxu0  ;;  %v10496_v29 = vpop.f32.mrb[61].mxu1  ;;  %23652 = vmatprep.mubr.msk.f32.mxu0 %vm10997_vm15, %v28884_v21  ;;  %v10531_v46 = vadd.f32 %v23559_v10, %v28869_v60  ;;  %v26123_v10 = vld [vmem:[%s30279_s13 + $0x18] sm:$0xff]  }
 0xb59   : > { %23635 = vmatprep.subr.mxu1 %v10990_v54  ;;  %v10966_v9 = vpop.f32.mrb[65].mxu0  ;;  %v28894_v44 = vpop.f32.mrb[62].mxu1  ;;  %23632 = vmatprep.mubr.msk.f32.mxu1 %vm10997_vm15, %v28884_v21  ;;  %v10529_v50 = vadd.f32 %v28869_v60, %v10496_v29  ;;  %v10995_v0 = vadd.f32 %v23623_v56, %v28869_v60  ;;  %v13075_v29 = vld [vmem:[#allocation6 + $0x42] sm:$0xff] }
 0xb5a   : > { %v10993_v27 = vadd.f32 %v28869_v60, %v10966_v9  ;;  %v23624_v55 = vpop.f32.mrb[66].mxu0  ;;  %v10499_v62 = vpop.f32.mrb[63].mxu1  ;;  %v10532_v23 = vadd.f32 %v28894_v44, %v28869_v60  ;;  %v13078_v44 = vld [vmem:[#allocation6 + $0x72] sm:$0xff] }
 0xb5b   : > { %v10969_v16 = vpop.f32.mrb[67].mxu0  ;;  %v10530_v63 = vadd.f32 %v28869_v60, %v10499_v62  ;;  %v10996_v39 = vadd.f32 %v23624_v55, %v28869_v60  ;;  %v13080_v55 = vld [vmem:[#allocation6 + $0x92] sm:$0xff] }
 0xb5c   : > { %23665 = vmatprep.subr.mxu0 %v10993_v27  ;;  %v10994_v49 = vadd.f32 %v28869_v60, %v10969_v16  ;;  %v13084_v62 = vpack.c.bf16 %v13080_v55, %v28846_v42  ;;  %v29231_v55 = vld [vmem:[#allocation14 + $0x40] sm:$0xff]  }
 0xb5d   : > { %23653 = vmatmul.mubr.msk.f32.vlgmr.msra.gmra.mrb[50].mxu0 %vm10997_vm15, %v28902_v30 }
 0xb5e   : > { %23666 = vmatpush3.msra.mxu0 %v10993_v27  ;;  %23633 = vmatmul.mubr.msk.f32.vlgmr.msra.gmra.mrb[46].mxu1 %vm10997_vm15, %v28902_v30 }
 0xb5f   : > { %23636 = vmatpush3.msra.mxu1 %v10990_v54  ;;  %23670 = vmatprep.subr.mxu0 %v10529_v50  ;;  %v13074_v54 = vld [vmem:[#allocation6 + $0x32] sm:$0xff] }
 0xb60   : > { %23640 = vmatprep.subr.mxu1 %v10526_v1  ;;  %23667 = vmatprep.mubr.msk.f32.mxu0 %vm10997_vm15, %v28860_v38 }
 0xb61   : > { %23637 = vmatprep.mubr.msk.f32.mxu1 %vm10997_vm15, %v28860_v38  ;;  %23668 = vmatmul.mubr.msk.f32.vlgmr.msra.gmra.mrb[68].mxu0 %vm10997_vm15, %v28876_v6 }
 0xb62   : > { %23671 = vmatpush3.msra.mxu0 %v10529_v50  ;;  %23638 = vmatmul.mubr.msk.f32.vlgmr.msra.gmra.mrb[64].mxu1 %vm10997_vm15, %v28876_v6 }
 0xb63   : > { %23641 = vmatpush3.msra.mxu1 %v10526_v1  ;;  %23685 = vmatprep.subr.mxu0 %v10995_v0 }
 0xb64   : > { %23655 = vmatprep.subr.mxu1 %v10992_v22  ;;  %23672 = vmatprep.mubr.msk.f32.mxu0 %vm10997_vm15, %v28884_v21 }
 0xb65   : > { %23642 = vmatprep.mubr.msk.f32.mxu1 %vm10997_vm15, %v28884_v21 }
 0xb69   : > { %23673 = vmatmul.mubr.msk.f32.vlgmr.msra.gmra.mrb[68].mxu0 %vm10997_vm15, %v28902_v30 }
 0xb6a   : > { %23686 = vmatpush3.msra.mxu0 %v10995_v0  ;;  %23643 = vmatmul.mubr.msk.f32.vlgmr.msra.gmra.mrb[64].mxu1 %vm10997_vm15, %v28902_v30 }
 0xb6b   : > { %23656 = vmatpush3.msra.mxu1 %v10992_v22  ;;  %23690 = vmatprep.subr.mxu0 %v10531_v46 }
 0xb6c   : > { %23660 = vmatprep.subr.mxu1 %v10528_v25  ;;  %23687 = vmatprep.mubr.msk.f32.mxu0 %vm10997_vm15, %v28860_v38 }
 0xb6d   : > { %23657 = vmatprep.mubr.msk.f32.mxu1 %vm10997_vm15, %v28860_v38  ;;  %23688 = vmatmul.mubr.msk.f32.vlgmr.msra.gmra.mrb[70].mxu0 %vm10997_vm15, %v28876_v6 }
 0xb6e   : > { %23691 = vmatpush3.msra.mxu0 %v10531_v46  ;;  %23658 = vmatmul.mubr.msk.f32.vlgmr.msra.gmra.mrb[66].mxu1 %vm10997_vm15, %v28876_v6 }
 0xb6f   : > { %23661 = vmatpush3.msra.mxu1 %v10528_v25  ;;  %23692 = vmatprep.mubr.msk.f32.mxu0 %vm10997_vm15, %v28884_v21 }
 0xb70   : > { %23675 = vmatprep.subr.mxu1 %v10994_v49  ;;  %23705 = vmatprep.subr.bf16.mxu0 %v26092_v59 }
 0xb71   : > { %23662 = vmatprep.mubr.msk.f32.mxu1 %vm10997_vm15, %v28884_v21 }
 0xb75   : > { %23693 = vmatmul.mubr.msk.f32.vlgmr.msra.gmra.mrb[70].mxu0 %vm10997_vm15, %v28902_v30 }
 0xb76   : > { %23706 = vmatpush3.bf16.msra.mxu0 %v26092_v59  ;;  %23663 = vmatmul.mubr.msk.f32.vlgmr.msra.gmra.mrb[66].mxu1 %vm10997_vm15, %v28902_v30 }
 0xb77   : > { %23676 = vmatpush3.msra.mxu1 %v10994_v49  ;;  %23713 = vmatprep.mubr.msk.bf16.mxu0 %vm822_vm13, %v28752_v8 }
 0xb78   : > { %23680 = vmatprep.subr.mxu1 %v10530_v63  ;;  %23707 = vmatprep.subr.bf16.mxu0 %v26093_v52 }
 0xb79   : > { %23677 = vmatprep.mubr.msk.f32.mxu1 %vm10997_vm15, %v28860_v38 }
 0xb7a   : > { %23708 = vmatpush3.bf16.msra.mxu0 %v26093_v52  ;;  %23678 = vmatmul.mubr.msk.f32.vlgmr.msra.gmra.mrb[68].mxu1 %vm10997_vm15, %v28876_v6 }
 0xb7b   : > { %23681 = vmatpush3.msra.mxu1 %v10530_v63  ;;  %23709 = vmatprep.subr.bf16.mxu0 %v26094_v36 }
 0xb7c   : > { %23695 = vmatprep.subr.mxu1 %v10996_v39  ;;  %23682 = vmatprep.mubr.msk.f32.mxu1 %vm10997_vm15, %v28884_v21 }
 0xb7e   : > { %23710 = vmatpush3.bf16.msra.mxu0 %v26094_v36 }
 0xb7f   : > { %23711 = vmatprep.subr.bf16.mxu0 %v26095_v15 }
 0xb82   : > { %23712 = vmatpush3.bf16.msra.mxu0 %v26095_v15  ;;  %23683 = vmatmul.mubr.msk.f32.vlgmr.msra.gmra.mrb[68].mxu1 %vm10997_vm15, %v28902_v30 }
 0xb83   : > { %23696 = vmatpush3.msra.mxu1 %v10996_v39  ;;  %23721 = vmatprep.subr.bf16.mxu0 %v26096_v26 }
 0xb84   : > { %23700 = vmatprep.subr.mxu1 %v10532_v23  ;;  %23697 = vmatprep.mubr.msk.f32.mxu1 %vm10997_vm15, %v28860_v38 }
 0xb85   : > { %23714 = vmatmul.mubr.msk.bf16.vlgmr.msra.gmra.mrb[72].mxu0 %vm822_vm13, %v28773_v12 }
 0xb86   : > { %23717 = vmatprep.mubr.msk.bf16.mxu0 %vm822_vm13, %v28784_v31  ;;  %23722 = vmatpush3.bf16.msra.mxu0 %v26096_v26 }
 0xb87   : > { %23698 = vmatmul.mubr.msk.f32.vlgmr.msra.gmra.mrb[70].mxu1 %vm10997_vm15, %v28876_v6  ;;  %23723 = vmatprep.subr.bf16.mxu0 %v26097_v48 }
 0xb88   : > { %23701 = vmatpush3.msra.mxu1 %v10532_v23  ;;  %23702 = vmatprep.mubr.msk.f32.mxu1 %vm10997_vm15, %v28884_v21 }
 0xb89   : > { %23769 = vmatprep.subr.bf16.mxu1 %v26099_v17 }
 0xb8a   : > { %23724 = vmatpush3.bf16.msra.mxu0 %v26097_v48 }
 0xb8b   : > { %23725 = vmatprep.subr.bf16.mxu0 %v26098_v37 }
 0xb8d   : > { %23718 = vmatmul.mubr.msk.bf16.gmra.mrb[76].mxu0 %vm822_vm13, %v28810_v45 }
 0xb8e   : > { %23726 = vmatpush3.bf16.msra.mxu0 %v26098_v37  ;;  %23729 = vmatprep.mubr.msk.bf16.mxu0 %vm822_vm13, %v28743_v14  ;;  %v26104_v14 = vld [vmem:[%s30279_s13 + $0x68] sm:$0xff]  }
 0xb8f   : > { %23703 = vmatmul.mubr.msk.f32.vlgmr.msra.gmra.mrb[70].mxu1 %vm10997_vm15, %v28902_v30  ;;  %23727 = vmatprep.subr.bf16.mxu0 %v26100_v24 }
 0xb90   : > { %23770 = vmatpush3.bf16.msra.mxu1 %v26099_v17  ;;  %23777 = vmatprep.mubr.msk.bf16.mxu1 %vm822_vm13, %v28819_v13  ;;  %v26105_v13 = vld [vmem:[%s30279_s13 + $0x118] sm:$0xff]  }
 0xb91   : > { %23771 = vmatprep.subr.bf16.mxu1 %v26101_v18 }
 0xb92   : > { %23728 = vmatpush3.bf16.msra.mxu0 %v26100_v24 }
 0xb93   : > { %23737 = vmatprep.subr.bf16.mxu0 %v26102_v2 }
 0xb94   : > { %23772 = vmatpush3.bf16.msra.mxu1 %v26101_v18 }
 0xb95   : > { %23730 = vmatmul.mubr.msk.bf16.vlgmr.msra.gmra.mrb[72].mxu0 %vm822_vm13, %v28769_v32  ;;  %23773 = vmatprep.subr.bf16.mxu1 %v26103_v58  ;;  %v26107_v32 = vld [vmem:[%s30279_s13 + $0x140] sm:$0xff]  }
 0xb96   : > { %23733 = vmatprep.mubr.msk.bf16.mxu0 %vm822_vm13, %v28775_v19  ;;  %23738 = vmatpush3.bf16.msra.mxu0 %v26102_v2  ;;  %v26109_v19 = vld [vmem:[%s30279_s13 + $0x148] sm:$0xff]  }
 0xb97   : > { %23739 = vmatprep.subr.bf16.mxu0 %v26104_v14 }
 0xb98   : > { %23774 = vmatpush3.bf16.msra.mxu1 %v26103_v58 }
 0xb99   : > { %23775 = vmatprep.subr.bf16.mxu1 %v26105_v13 }
 0xb9a   : > { %23740 = vmatpush3.bf16.msra.mxu0 %v26104_v14 }
 0xb9b   : > { %23741 = vmatprep.subr.bf16.mxu0 %v26106_v28 }
 0xb9c   : > { %23776 = vmatpush3.bf16.msra.mxu1 %v26105_v13 }
 0xb9d   : > { %23734 = vmatmul.mubr.msk.bf16.gmra.mrb[76].mxu0 %vm822_vm13, %v28806_v11  ;;  %23785 = vmatprep.subr.bf16.mxu1 %v26107_v32  ;;  %v26111_v11 = vld [vmem:[%s30279_s13 + $0x150] sm:$0xff]  }
 0xb9e   : > { %23742 = vmatpush3.bf16.msra.mxu0 %v26106_v28  ;;  %23745 = vmatprep.mubr.msk.bf16.mxu0 %vm822_vm13, %v28717_v41  ;;  %v26112_v41 = vld [vmem:[%s30279_s13 + $0x28] sm:$0xff]  }
 0xb9f   : > { %23778 = vmatmul.mubr.msk.bf16.vlgmr.msra.gmra.mrb[72].mxu1 %vm822_vm13, %v28832_v51  ;;  %23743 = vmatprep.subr.bf16.mxu0 %v26108_v57  ;;  %v26113_v51 = vld [vmem:[%s30279_s13 + $0x158] sm:$0xff]  }
 0xba0   : > { %23781 = vmatprep.mubr.msk.bf16.mxu1 %vm822_vm13, %v28838_v4  ;;  %23786 = vmatpush3.bf16.msra.mxu1 %v26107_v32  ;;  %v26114_v4 = vld [vmem:[%s30279_s13 + $0x30] sm:$0xff]  }
 0xba1   : > { %23787 = vmatprep.subr.bf16.mxu1 %v26109_v19 }
 0xba2   : > { %23744 = vmatpush3.bf16.msra.mxu0 %v26108_v57 }
 0xba3   : > { %23753 = vmatprep.subr.bf16.mxu0 %v26110_v7 }
 0xba4   : > { %23788 = vmatpush3.bf16.msra.mxu1 %v26109_v19 }
 0xba5   : > { %23746 = vmatmul.mubr.msk.bf16.vlgmr.msra.gmra.mrb[72].mxu0 %vm822_vm13, %v28719_v33  ;;  %23789 = vmatprep.subr.bf16.mxu1 %v26111_v11  ;;  %v12486_v33 = vld [vmem:[#allocation6 + $0x90] sm:$0xff] }
 0xba6   : > { %23749 = vmatprep.mubr.msk.bf16.mxu0 %vm822_vm13, %v28741_v34  ;;  %23754 = vmatpush3.bf16.msra.mxu0 %v26110_v7  ;;  %v12490_v34 = vpack.c.bf16 %v12486_v33, %v28795_v3  ;;  %v26118_v3 = vld [vmem:[%s30279_s13 + $0x50] sm:$0xff]  }
 0xba7   : > { %23782 = vmatmul.mubr.msk.bf16.gmra.mrb[76].mxu1 %vm822_vm13, %v28850_v61  ;;  %23755 = vmatprep.subr.bf16.mxu0 %v26112_v41  ;;  %v26116_v61 = vld [vmem:[%s30279_s13 + $0x38] sm:$0xff]  }
 0xba8   : > { %23790 = vmatpush3.bf16.msra.mxu1 %v26111_v11  ;;  %23793 = vmatprep.mubr.msk.bf16.mxu1 %vm822_vm13, %v28752_v8  ;;  %v26117_v8 = vld [vmem:[%s30279_s13 + $0x48] sm:$0xff]  }
 0xba9   : > { %23791 = vmatprep.subr.bf16.mxu1 %v26113_v51 }
 0xbaa   : > { %23756 = vmatpush3.bf16.msra.mxu0 %v26112_v41 }
 0xbab   : > { %23757 = vmatprep.subr.bf16.mxu0 %v26114_v4 }
 0xbac   : > { %23792 = vmatpush3.bf16.msra.mxu1 %v26113_v51 }
 0xbad   : > { %23750 = vmatmul.mubr.msk.bf16.gmra.mrb[76].mxu0 %vm822_vm13, %v12490_v34  ;;  %23801 = vmatprep.subr.bf16.mxu1 %v26115_v35 }
 0xbae   : > { %23758 = vmatpush3.bf16.msra.mxu0 %v26114_v4  ;;  %23761 = vmatprep.mubr.msk.bf16.mxu0 %vm822_vm13, %v28648_v43 }
 0xbaf   : > { %23794 = vmatmul.mubr.msk.bf16.vlgmr.msra.gmra.mrb[72].mxu1 %vm822_vm13, %v28773_v12  ;;  %23759 = vmatprep.subr.bf16.mxu0 %v26116_v61  ;;  %v26119_v12 = vld [vmem:[%s30279_s13 + $0x58] sm:$0xff]  }
 0xbb0   : > { %23797 = vmatprep.mubr.msk.bf16.mxu1 %vm822_vm13, %v28784_v31  ;;  %23802 = vmatpush3.bf16.msra.mxu1 %v26115_v35  ;;  %v12616_v31 = vld [vmem:[#allocation6 + $0x91] sm:$0xff] }
 0xbb1   : > { %23803 = vmatprep.subr.bf16.mxu1 %v26117_v8  ;;  %v12620_v53 = vpack.c.bf16 %v12616_v31, %v28800_v5  ;;  %v13073_v5 = vld [vmem:[#allocation6 + $0x22] sm:$0xff] }
 0xbb2   : > { %23760 = vmatpush3.bf16.msra.mxu0 %v26116_v61  ;;  %v13081_v56 = vpack.c.bf16 %v13074_v54, %v13073_v5  ;;  %v26124_v54 = vld [vmem:[#allocation14 + $0x20] sm:$0xff]  }
 0xbb4   : > { %23804 = vmatpush3.bf16.msra.mxu1 %v26117_v8 }
 0xbb5   : > { %23762 = vmatmul.mubr.msk.bf16.vlgmr.msra.gmra.mrb[72].mxu0 %vm822_vm13, %v28679_v40  ;;  %23805 = vmatprep.subr.bf16.mxu1 %v26118_v3 }
 0xbb6   : > { %23765 = vmatprep.mubr.msk.bf16.mxu0 %vm822_vm13, %v28696_v47 }
 0xbb7   : > { %23798 = vmatmul.mubr.msk.bf16.gmra.mrb[76].mxu1 %vm822_vm13, %v28810_v45  ;;  %v26121_v45 = vld [vmem:[%s30279_s13 + $0x8] sm:$0xff]  }
 0xbb8   : > { %23806 = vmatpush3.bf16.msra.mxu1 %v26118_v3  ;;  %23809 = vmatprep.mubr.msk.bf16.mxu1 %vm822_vm13, %v28648_v43  ;;  %v26122_v43 = vld [vmem:[%s30279_s13 + $0x10] sm:$0xff]  }
 0xbb9   : > { %23807 = vmatprep.subr.bf16.mxu1 %v26119_v12 }
 0xbbc   : > { %23808 = vmatpush3.bf16.msra.mxu1 %v26119_v12 }
 0xbbd   : > { %23766 = vmatmul.mubr.msk.bf16.gmra.mrb[76].mxu0 %vm822_vm13, %v12620_v53  ;;  %23817 = vmatprep.subr.bf16.mxu1 %v26120_v20 }
 0xbbe   : > { %23835 = vmatprep.mubr.msk.f32.mxu0 %vm10997_vm15, %v28860_v38 }
 0xbbf   : > { %23810 = vmatmul.mubr.msk.bf16.vlgmr.msra.gmra.mrb[72].mxu1 %vm822_vm13, %v28679_v40  ;;  %v13076_v40 = vld [vmem:[#allocation6 + $0x52] sm:$0xff] }
 0xbc0   : > { %23813 = vmatprep.mubr.msk.bf16.mxu1 %vm822_vm13, %v28696_v47  ;;  %23818 = vmatpush3.bf16.msra.mxu1 %v26120_v20  ;;  %v13077_v47 = vld [vmem:[#allocation6 + $0x62] sm:$0xff]  ;;  %v13082_v9 = vpack.c.bf16 %v13076_v40, %v13075_v29 }
 0xbc1   : > { %23819 = vmatprep.subr.bf16.mxu1 %v26121_v45  ;;  %v13083_v27 = vpack.c.bf16 %v13078_v44, %v13077_v47  ;;  %v26125_v40 = vld [vmem:[#allocation14 + $0x28] sm:$0xff]  }
 0xbc2   : > { %v26129_v44 = vld [vmem:[#allocation14 + $0x8] sm:$0xff]  }
 0xbc4   : > { %23820 = vmatpush3.bf16.msra.mxu1 %v26121_v45 }
 0xbc5   : > { %23821 = vmatprep.subr.bf16.mxu1 %v26122_v43 }
 0xbc7   : > { %23814 = vmatmul.mubr.msk.bf16.gmra.mrb[76].mxu1 %vm822_vm13, %v12620_v53 }
 0xbc8   : > { %23822 = vmatpush3.bf16.msra.mxu1 %v26122_v43  ;;  %23825 = vmatprep.mubr.msk.bf16.mxu1 %vm822_vm13, %v13081_v56  ;;  %v14493_v56 = vld [vmem:[#allocation7 + $0x9] sm:$0xff] }
 0xbc9   : > { %23823 = vmatprep.subr.bf16.mxu1 %v26123_v10 }
 0xbcc   : > { %23824 = vmatpush3.bf16.msra.mxu1 %v26123_v10  ;;  %v14492_v10 = vld [vmem:[#allocation7 + $0x1] sm:$0xff] }
 0xbcf   : > { %23826 = vmatmul.mubr.msk.bf16.vlgmr.msra.gmra.mrb[72].mxu1 %vm822_vm13, %v13082_v9  ;;  %v26128_v9 = vld [vmem:[#allocation14] sm:$0xff]  }
 0xbd0   : > { %23829 = vmatprep.mubr.msk.bf16.mxu1 %vm822_vm13, %v13083_v27  ;;  %v26131_v27 = vld [vmem:[#allocation14 + $0x18] sm:$0xff]  }
 0xbd7   : > { %23830 = vmatmul.mubr.msk.bf16.gmra.mrb[76].mxu1 %vm822_vm13, %v13084_v62 }
 0xbd8   : > { %23845 = vmatprep.mubr.msk.f32.mxu1 %vm10997_vm15, %v28860_v38 }
 0xc30   : > { %v23654_v16 = vpop.f32.mrb[50].mxu0 }
 0xc31   : > { %v23634_v50 = vpop.f32.mrb[46].mxu1  ;;  %11468 = vst.msk [vmem:[#allocation7 + $0x81] sm:$0xff] %vm822_vm13, %v23654_v16  ;;  %v11457_v1 = vpop.f32.mrb[51].mxu0 }
 0xc32   : > { %11162 = vst.msk [vmem:[#allocation7 + $0x21] sm:$0xff] %vm822_vm13, %v23634_v50  ;;  %v11151_v0 = vpop.f32.mrb[47].mxu1  ;;  %11467 = vst.msk [vmem:[#allocation7 + $0x79] sm:$0xff] %vm822_vm13, %v11457_v1 }
 0xc33   : > { %11161 = vst.msk [vmem:[#allocation7 + $0x19] sm:$0xff] %vm822_vm13, %v11151_v0 }
 0xc3a   : > { %v14494_v47 = vld [vmem:[#allocation7 + $0x19] sm:$0xff] }
 0xc3c   : > { %v23674_v22 = vpop.f32.mrb[68].mxu0 }
 0xc3d   : > { %v23644_v46 = vpop.f32.mrb[64].mxu1  ;;  %11774 = vst.msk [vmem:[#allocation7 + $0xe1] sm:$0xff] %vm822_vm13, %v23674_v22  ;;  %v11763_v42 = vpop.f32.mrb[69].mxu0 }
 0xc3e   : > { %11315 = vst.msk [vmem:[#allocation7 + $0x51] sm:$0xff] %vm822_vm13, %v23644_v46  ;;  %v11304_v25 = vpop.f32.mrb[65].mxu1  ;;  %11773 = vst.msk [vmem:[#allocation7 + $0xd9] sm:$0xff] %vm822_vm13, %v11763_v42 }
 0xc3f   : > { %11314 = vst.msk [vmem:[#allocation7 + $0x49] sm:$0xff] %vm822_vm13, %v11304_v25 }
 0xc45   : > { %v14499_v46 = vld [vmem:[#allocation7 + $0x51] sm:$0xff] }
 0xc46   : > { %v14498_v22 = vld [vmem:[#allocation7 + $0x49] sm:$0xff] }
 0xc48   : > { %v23694_v59 = vpop.f32.mrb[70].mxu0 }
 0xc49   : > { %v23664_v49 = vpop.f32.mrb[66].mxu1  ;;  %12080 = vst.msk [vmem:[#allocation7 + $0x141] sm:$0xff] %vm822_vm13, %v23694_v59  ;;  %v12069_v52 = vpop.f32.mrb[71].mxu0  ;;  %v29240_v59 = vpack.c.bf16 %v14499_v46, %v14498_v22  ;;  %v14442_v22 = vld [vmem:[#allocation7 + $0x48] sm:$0xff]  ;;  %v14443_v46 = vld [vmem:[#allocation7 + $0x50] sm:$0xff] }
 0xc4a   : > { %11621 = vst.msk [vmem:[#allocation7 + $0xb1] sm:$0xff] %vm822_vm13, %v23664_v49  ;;  %v11610_v63 = vpop.f32.mrb[67].mxu1  ;;  %12079 = vst.msk [vmem:[#allocation7 + $0x139] sm:$0xff] %vm822_vm13, %v12069_v52 }
 0xc4b   : > { %11620 = vst.msk [vmem:[#allocation7 + $0xa9] sm:$0xff] %vm822_vm13, %v11610_v63 }
 0xc55   : > { %v23684_v36 = vpop.f32.mrb[68].mxu1 }
 0xc56   : > { %11927 = vst.msk [vmem:[#allocation7 + $0x111] sm:$0xff] %vm822_vm13, %v23684_v36  ;;  %v11916_v39 = vpop.f32.mrb[69].mxu1 }
 0xc57   : > { %11926 = vst.msk [vmem:[#allocation7 + $0x109] sm:$0xff] %vm822_vm13, %v11916_v39 }
 0xc62   : > { %v23704_v15 = vpop.f32.mrb[70].mxu1 }
 0xc63   : > { %12233 = vst.msk [vmem:[#allocation7 + $0x171] sm:$0xff] %vm822_vm13, %v23704_v15  ;;  %v12222_v26 = vpop.f32.mrb[71].mxu1 }
 0xc64   : > { %12232 = vst.msk [vmem:[#allocation7 + $0x169] sm:$0xff] %vm822_vm13, %v12222_v26  ;;  %v14502_v26 = vld [vmem:[#allocation7 + $0x79] sm:$0xff] }
 0xc88   : > { %v23763_v23 = vpop.f32.mrb[72].mxu0 }
 0xc89   : > { %v12700_v48 = vpop.f32.mrb[73].mxu0  ;;  %v12741_v61 = vadd.f32 %v23763_v23, %v28869_v60  ;;  %v14503_v23 = vld [vmem:[#allocation7 + $0x81] sm:$0xff] }
 0xc8a   : > { %v23764_v17 = vpop.f32.mrb[74].mxu0  ;;  %v12739_v19 = vadd.f32 %v28869_v60, %v12700_v48 }
 0xc8b   : > { %v12703_v37 = vpop.f32.mrb[75].mxu0  ;;  %v12742_v8 = vadd.f32 %v23764_v17, %v28869_v60  ;;  %v29254_v17 = vpack.c.bf16 %v14503_v23, %v14502_v26  ;;  %v14447_v26 = vld [vmem:[#allocation7 + $0x80] sm:$0xff] }
 0xc8c   : > { %v12740_v41 = vadd.f32 %v28869_v60, %v12703_v37 }
 0xc90   : > { %v29144_v24 = vpop.f32.mrb[76].mxu0 }
 0xc91   : > { %v12716_v18 = vpop.f32.mrb[77].mxu0  ;;  %v12745_v43 = vadd.f32 %v29144_v24, %v28869_v60 }
 0xc92   : > { %v29146_v2 = vpop.f32.mrb[78].mxu0  ;;  %v12743_v31 = vadd.f32 %v28869_v60, %v12716_v18 }
 0xc93   : > { %v12719_v58 = vpop.f32.mrb[79].mxu0  ;;  %v12746_v5 = vadd.f32 %v29146_v2, %v28869_v60  ;;  %v14506_v2 = vld [vmem:[#allocation7 + $0xa9] sm:$0xff] }
 0xc94   : > { %v12744_v20 = vadd.f32 %v28869_v60, %v12719_v58  ;;  %v14507_v58 = vld [vmem:[#allocation7 + $0xb1] sm:$0xff] }
 0xca2   : > { %v23827_v14 = vpop.f32.mrb[72].mxu1 }
 0xca3   : > { %v13163_v13 = vpop.f32.mrb[73].mxu1  ;;  %v13204_v11 = vadd.f32 %v23827_v14, %v28869_v60 }
 0xca4   : > { %v13202_v28 = vadd.f32 %v28869_v60, %v13163_v13  ;;  %v23828_v32 = vpop.f32.mrb[74].mxu1 }
 0xca5   : > { %v13166_v57 = vpop.f32.mrb[75].mxu1  ;;  %v13205_v4 = vadd.f32 %v23828_v32, %v28869_v60 }
 0xca6   : > { %v13203_v7 = vadd.f32 %v28869_v60, %v13166_v57  ;;  %23833 = vmatprep.subr.mxu0 %v13202_v28  ;;  %v29264_v57 = vpack.c.bf16 %v14507_v58, %v14506_v2  ;;  %v14450_v2 = vld [vmem:[#allocation7 + $0xa8] sm:$0xff]  ;;  %v14451_v58 = vld [vmem:[#allocation7 + $0xb0] sm:$0xff] }
 0xca7   : > { %23834 = vmatpush3.msra.mxu0 %v13202_v28 }
 0xca8   : > { %23836 = vmatmul.mubr.msk.f32.vlgmr.msra.gmra.mrb[80].mxu0 %vm10997_vm15, %v28876_v6  ;;  %23838 = vmatprep.subr.mxu0 %v12739_v19 }
 0xca9   : > { %23843 = vmatprep.subr.mxu1 %v13203_v7  ;;  %23839 = vmatpush3.msra.mxu0 %v12739_v19 }
 0xcaa   : > { %23844 = vmatpush3.msra.mxu1 %v13203_v7  ;;  %v23831_v51 = vpop.f32.mrb[76].mxu1  ;;  %23853 = vmatprep.subr.mxu0 %v13204_v11 }
 0xcab   : > { %23846 = vmatmul.mubr.msk.f32.vlgmr.msra.gmra.mrb[80].mxu1 %vm10997_vm15, %v28876_v6  ;;  %23848 = vmatprep.subr.mxu1 %v12740_v41  ;;  %v13179_v33 = vpop.f32.mrb[77].mxu1  ;;  %v13208_v53 = vadd.f32 %v23831_v51, %v28869_v60  ;;  %v14511_v51 = vld [vmem:[#allocation7 + $0xe1] sm:$0xff] }
 0xcac   : > { %23849 = vmatpush3.msra.mxu1 %v12740_v41  ;;  %v23832_v35 = vpop.f32.mrb[78].mxu1  ;;  %23840 = vmatprep.mubr.msk.f32.mxu0 %vm10997_vm15, %v28884_v21  ;;  %v13206_v3 = vadd.f32 %v28869_v60, %v13179_v33  ;;  %v14510_v41 = vld [vmem:[#allocation7 + $0xd9] sm:$0xff] }
 0xcad   : > { %23863 = vmatprep.subr.mxu1 %v13205_v4  ;;  %v13182_v34 = vpop.f32.mrb[79].mxu1  ;;  %23850 = vmatprep.mubr.msk.f32.mxu1 %vm10997_vm15, %v28884_v21  ;;  %v13209_v45 = vadd.f32 %v23832_v35, %v28869_v60  ;;  %v29274_v35 = vpack.c.bf16 %v14511_v51, %v14510_v41 }
 0xcae   : > { %v13207_v12 = vadd.f32 %v28869_v60, %v13182_v34  ;;  %v14524_v60 = vpack.c.bf16 %v14493_v56, %v14492_v10 }
 0xcb0   : > { %23841 = vmatmul.mubr.msk.f32.vlgmr.msra.gmra.mrb[80].mxu0 %vm10997_vm15, %v28902_v30 }
 0xcb1   : > { %23854 = vmatpush3.msra.mxu0 %v13204_v11  ;;  %23855 = vmatprep.mubr.msk.f32.mxu0 %vm10997_vm15, %v28860_v38 }
 0xcb2   : > { %23858 = vmatprep.subr.mxu0 %v12741_v61 }
 0xcb3   : > { %23851 = vmatmul.mubr.msk.f32.vlgmr.msra.gmra.mrb[80].mxu1 %vm10997_vm15, %v28902_v30 }
 0xcb4   : > { %23864 = vmatpush3.msra.mxu1 %v13205_v4  ;;  %23856 = vmatmul.mubr.msk.f32.vlgmr.msra.gmra.mrb[82].mxu0 %vm10997_vm15, %v28876_v6 }
 0xcb5   : > { %23868 = vmatprep.subr.mxu1 %v12742_v8  ;;  %23859 = vmatpush3.msra.mxu0 %v12741_v61 }
 0xcb6   : > { %23865 = vmatprep.mubr.msk.f32.mxu1 %vm10997_vm15, %v28860_v38  ;;  %23873 = vmatprep.subr.mxu0 %v13206_v3 }
 0xcb7   : > { %23866 = vmatmul.mubr.msk.f32.vlgmr.msra.gmra.mrb[82].mxu1 %vm10997_vm15, %v28876_v6  ;;  %23860 = vmatprep.mubr.msk.f32.mxu0 %vm10997_vm15, %v28884_v21 }
 0xcb8   : > { %23869 = vmatpush3.msra.mxu1 %v12742_v8  ;;  %23870 = vmatprep.mubr.msk.f32.mxu1 %vm10997_vm15, %v28884_v21 }
 0xcb9   : > { %23883 = vmatprep.subr.mxu1 %v13207_v12 }
 0xcbc   : > { %23861 = vmatmul.mubr.msk.f32.vlgmr.msra.gmra.mrb[82].mxu0 %vm10997_vm15, %v28902_v30 }
 0xcbd   : > { %23874 = vmatpush3.msra.mxu0 %v13206_v3  ;;  %23875 = vmatprep.mubr.msk.f32.mxu0 %vm10997_vm15, %v28860_v38  ;;  %v14514_v3 = vld [vmem:[#allocation7 + $0x109] sm:$0xff] }
 0xcbe   : > { %23878 = vmatprep.subr.mxu0 %v12743_v31 }
 0xcbf   : > { %23871 = vmatmul.mubr.msk.f32.vlgmr.msra.gmra.mrb[82].mxu1 %vm10997_vm15, %v28902_v30 }
 0xcc0   : > { %23884 = vmatpush3.msra.mxu1 %v13207_v12  ;;  %23876 = vmatmul.mubr.msk.f32.vlgmr.msra.gmra.mrb[84].mxu0 %vm10997_vm15, %v28876_v6  ;;  %v14515_v12 = vld [vmem:[#allocation7 + $0x111] sm:$0xff] }
 0xcc1   : > { %23888 = vmatprep.subr.mxu1 %v12744_v20  ;;  %23879 = vmatpush3.msra.mxu0 %v12743_v31 }
 0xcc2   : > { %23885 = vmatprep.mubr.msk.f32.mxu1 %vm10997_vm15, %v28860_v38  ;;  %23893 = vmatprep.subr.mxu0 %v13208_v53 }
 0xcc3   : > { %23886 = vmatmul.mubr.msk.f32.vlgmr.msra.gmra.mrb[84].mxu1 %vm10997_vm15, %v28876_v6  ;;  %23880 = vmatprep.mubr.msk.f32.mxu0 %vm10997_vm15, %v28884_v21 }
 0xcc4   : > { %23889 = vmatpush3.msra.mxu1 %v12744_v20  ;;  %23890 = vmatprep.mubr.msk.f32.mxu1 %vm10997_vm15, %v28884_v21 }
 0xcc5   : > { %23903 = vmatprep.subr.mxu1 %v13209_v45 }
 0xcc8   : > { %23881 = vmatmul.mubr.msk.f32.vlgmr.msra.gmra.mrb[84].mxu0 %vm10997_vm15, %v28902_v30 }
 0xcc9   : > { %23894 = vmatpush3.msra.mxu0 %v13208_v53  ;;  %23895 = vmatprep.mubr.msk.f32.mxu0 %vm10997_vm15, %v28860_v38  ;;  %v29284_v53 = vpack.c.bf16 %v14515_v12, %v14514_v3 }
 0xcca   : > { %23898 = vmatprep.subr.mxu0 %v12745_v43 }
 0xccb   : > { %23891 = vmatmul.mubr.msk.f32.vlgmr.msra.gmra.mrb[84].mxu1 %vm10997_vm15, %v28902_v30 }
 0xccc   : > { %23904 = vmatpush3.msra.mxu1 %v13209_v45  ;;  %23896 = vmatmul.mubr.msk.f32.vlgmr.msra.gmra.mrb[86].mxu0 %vm10997_vm15, %v28876_v6 }
 0xccd   : > { %23908 = vmatprep.subr.mxu1 %v12746_v5  ;;  %23899 = vmatpush3.msra.mxu0 %v12745_v43  ;;  %v14518_v43 = vld [vmem:[#allocation7 + $0x139] sm:$0xff] }
 0xcce   : > { %23905 = vmatprep.mubr.msk.f32.mxu1 %vm10997_vm15, %v28860_v38  ;;  %23900 = vmatprep.mubr.msk.f32.mxu0 %vm10997_vm15, %v28884_v21  ;;  %v26126_v38 = vld [vmem:[#allocation14 + $0x30] sm:$0xff]  }
 0xccf   : > { %23906 = vmatmul.mubr.msk.f32.vlgmr.msra.gmra.mrb[86].mxu1 %vm10997_vm15, %v28876_v6  ;;  %23913 = vmatprep.subr.bf16.mxu0 %v26124_v54  ;;  %v26127_v6 = vld [vmem:[#allocation14 + $0x38] sm:$0xff]  }
 0xcd0   : > { %23909 = vmatpush3.msra.mxu1 %v12746_v5  ;;  %23910 = vmatprep.mubr.msk.f32.mxu1 %vm10997_vm15, %v28884_v21  ;;  %v14495_v21 = vld [vmem:[#allocation7 + $0x21] sm:$0xff] }
 0xcd1   : > { %v29227_v29 = vpack.c.bf16 %v14495_v21, %v14494_v47  ;;  %v14519_v5 = vld [vmem:[#allocation7 + $0x141] sm:$0xff]  ;;  %v14523_v47 = vld [vmem:[#allocation7 + $0x171] sm:$0xff] }
 0xcd2   : > { %v29292_v56 = vpack.c.bf16 %v14519_v5, %v14518_v43 }
 0xcd4   : > { %23901 = vmatmul.mubr.msk.f32.vlgmr.msra.gmra.mrb[86].mxu0 %vm10997_vm15, %v28902_v30 }
 0xcd5   : > { %23914 = vmatpush3.bf16.msra.mxu0 %v26124_v54  ;;  %23921 = vmatprep.mubr.msk.bf16.mxu0 %vm822_vm13, %v14524_v60 }
 0xcd6   : > { %23915 = vmatprep.subr.bf16.mxu0 %v26125_v40 }
 0xcd7   : > { %23911 = vmatmul.mubr.msk.f32.vlgmr.msra.gmra.mrb[86].mxu1 %vm10997_vm15, %v28902_v30  ;;  %v26130_v30 = vld [vmem:[#allocation14 + $0x10] sm:$0xff]  }
 0xcd9   : > { %23916 = vmatpush3.bf16.msra.mxu0 %v26125_v40  ;;  %v14436_v40 = vld [vmem:[#allocation7] sm:$0xff] }
 0xcda   : > { %23917 = vmatprep.subr.bf16.mxu0 %v26126_v38 }
 0xcdd   : > { %23918 = vmatpush3.bf16.msra.mxu0 %v26126_v38  ;;  %v14437_v38 = vld [vmem:[#allocation7 + $0x8] sm:$0xff] }
 0xcde   : > { %23919 = vmatprep.subr.bf16.mxu0 %v26127_v6  ;;  %v14468_v21 = vpack.c.bf16 %v14437_v38, %v14436_v40 }
 0xce1   : > { %23920 = vmatpush3.bf16.msra.mxu0 %v26127_v6  ;;  %v14522_v6 = vld [vmem:[#allocation7 + $0x169] sm:$0xff] }
 0xce2   : > { %23953 = vmatprep.subr.bf16.mxu0 %v26128_v9 }
 0xce4   : > { %23922 = vmatmul.mubr.msk.bf16.vlgmr.msra.gmra.mrb[88].mxu0 %vm822_vm13, %v29227_v29 }
 0xce5   : > { %23954 = vmatpush3.bf16.msra.mxu0 %v26128_v9  ;;  %v29300_v9 = vpack.c.bf16 %v14523_v47, %v14522_v6 }
 0xce6   : > { %23955 = vmatprep.subr.bf16.mxu0 %v26129_v44 }
 0xce9   : > { %23956 = vmatpush3.bf16.msra.mxu0 %v26129_v44  ;;  %v14438_v44 = vld [vmem:[#allocation7 + $0x18] sm:$0xff] }
 0xcea   : > { %23957 = vmatprep.subr.bf16.mxu0 %v26130_v30 }
 0xced   : > { %23958 = vmatpush3.bf16.msra.mxu0 %v26130_v30  ;;  %v14439_v30 = vld [vmem:[#allocation7 + $0x20] sm:$0xff] }
 0xcee   : > { %23959 = vmatprep.subr.bf16.mxu0 %v26131_v27 }
 0xcf1   : > { %23960 = vmatpush3.bf16.msra.mxu0 %v26131_v27 }
 0xcf2   : > { %23993 = vmatprep.subr.bf16.mxu0 %v29231_v55 }
 0xd83   : > { %v23842_v62 = vpop.f32.mrb[80].mxu0 }
 0xd84   : > { %13362 = vst.msk [vmem:[#allocation7 + $0x39] sm:$0xff] %vm822_vm13, %v23842_v62  ;;  %v13351_v16 = vpop.f32.mrb[81].mxu0 }
 0xd85   : > { %13361 = vst.msk [vmem:[#allocation7 + $0x31] sm:$0xff] %vm822_vm13, %v13351_v16  ;;  %v29305_v16 = vpack.c.bf16 %v14439_v30, %v14438_v44  ;;  %v15016_v44 = vld [vmem:[#allocation7 + $0xa] sm:$0xff] }
 0xd86   : > { %v23852_v50 = vpop.f32.mrb[80].mxu1  ;;  %v14466_v30 = vld [vmem:[#allocation7 + $0x168] sm:$0xff] }
 0xd87   : > { %13515 = vst.msk [vmem:[#allocation7 + $0x69] sm:$0xff] %vm822_vm13, %v23852_v50  ;;  %v13504_v1 = vpop.f32.mrb[81].mxu1  ;;  %v26133_v50 = vld [vmem:[#allocation14 + $0x48] sm:$0xff]  }
 0xd88   : > { %13514 = vst.msk [vmem:[#allocation7 + $0x61] sm:$0xff] %vm822_vm13, %v13504_v1 }
 0xd8b   : > { %v14497_v0 = vld [vmem:[#allocation7 + $0x39] sm:$0xff] }
 0xd8c   : > { %v14496_v42 = vld [vmem:[#allocation7 + $0x31] sm:$0xff] }
 0xd8d   : > { %v29238_v25 = vpack.c.bf16 %v14497_v0, %v14496_v42  ;;  %v14440_v27 = vld [vmem:[#allocation7 + $0x30] sm:$0xff]  ;;  %v14441_v62 = vld [vmem:[#allocation7 + $0x38] sm:$0xff] }
 0xd8e   : > { %v14501_v49 = vld [vmem:[#allocation7 + $0x69] sm:$0xff]  ;;  %v29307_v1 = vpack.c.bf16 %v14441_v62, %v14440_v27 }
 0xd8f   : > { %23925 = vmatprep.mubr.msk.bf16.mxu0 %vm822_vm13, %v29238_v25  ;;  %v23862_v52 = vpop.f32.mrb[82].mxu0  ;;  %v14500_v63 = vld [vmem:[#allocation7 + $0x61] sm:$0xff]  ;;  %v26134_v0 = vld [vmem:[#allocation14 + $0x50] sm:$0xff]  }
 0xd90   : > { %23926 = vmatmul.mubr.msk.bf16.gmra.mrb[92].mxu0 %vm822_vm13, %v29240_v59  ;;  %13668 = vst.msk [vmem:[#allocation7 + $0x99] sm:$0xff] %vm822_vm13, %v23862_v52  ;;  %v13657_v36 = vpop.f32.mrb[83].mxu0  ;;  %v29247_v39 = vpack.c.bf16 %v14501_v49, %v14500_v63  ;;  %v14444_v42 = vld [vmem:[#allocation7 + $0x60] sm:$0xff]  ;;  %v14445_v49 = vld [vmem:[#allocation7 + $0x68] sm:$0xff]  ;;  %v29314_v52 = vpack.c.bf16 %v14443_v46, %v14442_v22  ;;  %v26135_v63 = vld [vmem:[#allocation14 + $0x58] sm:$0xff]  }
 0xd91   : > { %13667 = vst.msk [vmem:[#allocation7 + $0x91] sm:$0xff] %vm822_vm13, %v13657_v36  ;;  %v29316_v36 = vpack.c.bf16 %v14445_v49, %v14444_v42  ;;  %v14467_v27 = vld [vmem:[#allocation7 + $0x170] sm:$0xff]  ;;  %v15018_v22 = vld [vmem:[#allocation7 + $0x22] sm:$0xff]  ;;  %v15020_v42 = vld [vmem:[#allocation7 + $0x3a] sm:$0xff] }
 0xd92   : > { %23929 = vmatprep.mubr.msk.bf16.mxu0 %vm822_vm13, %v29247_v39  ;;  %v23872_v15 = vpop.f32.mrb[82].mxu1  ;;  %v15019_v46 = vld [vmem:[#allocation7 + $0x32] sm:$0xff] }
 0xd93   : > { %13821 = vst.msk [vmem:[#allocation7 + $0xc9] sm:$0xff] %vm822_vm13, %v23872_v15  ;;  %v13810_v48 = vpop.f32.mrb[83].mxu1  ;;  %v14446_v15 = vld [vmem:[#allocation7 + $0x78] sm:$0xff] }
 0xd94   : > { %13820 = vst.msk [vmem:[#allocation7 + $0xc1] sm:$0xff] %vm822_vm13, %v13810_v48 }
 0xd97   : > { %v14505_v37 = vld [vmem:[#allocation7 + $0x99] sm:$0xff] }
 0xd98   : > { %23930 = vmatmul.mubr.msk.bf16.gmra.mrb[96].mxu0 %vm822_vm13, %v29254_v17  ;;  %v14504_v24 = vld [vmem:[#allocation7 + $0x91] sm:$0xff] }
 0xd99   : > { %v29258_v18 = vpack.c.bf16 %v14505_v37, %v14504_v24  ;;  %v14448_v23 = vld [vmem:[#allocation7 + $0x90] sm:$0xff]  ;;  %v14449_v48 = vld [vmem:[#allocation7 + $0x98] sm:$0xff]  ;;  %v29324_v37 = vpack.c.bf16 %v14447_v26, %v14446_v15  ;;  %v29374_v15 = vpack.c.bf16 %v15020_v42, %v15019_v46 }
 0xd9a   : > { %v14509_v32 = vld [vmem:[#allocation7 + $0xc9] sm:$0xff]  ;;  %v29327_v24 = vpack.c.bf16 %v14449_v48, %v14448_v23  ;;  %v15022_v48 = vld [vmem:[#allocation7 + $0x52] sm:$0xff] }
 0xd9b   : > { %23933 = vmatprep.mubr.msk.bf16.mxu0 %vm822_vm13, %v29258_v18  ;;  %v23882_v14 = vpop.f32.mrb[84].mxu0  ;;  %v14508_v28 = vld [vmem:[#allocation7 + $0xc1] sm:$0xff]  ;;  %v26138_v26 = vld [vmem:[#allocation14 + $0x70] sm:$0xff]  }
 0xd9c   : > { %13974 = vst.msk [vmem:[#allocation7 + $0xf9] sm:$0xff] %vm822_vm13, %v23882_v14  ;;  %v13963_v13 = vpop.f32.mrb[85].mxu0  ;;  %v29266_v7 = vpack.c.bf16 %v14509_v32, %v14508_v28  ;;  %v14452_v14 = vld [vmem:[#allocation7 + $0xc0] sm:$0xff]  ;;  %v29333_v28 = vpack.c.bf16 %v14451_v58, %v14450_v2  ;;  %v15021_v23 = vld [vmem:[#allocation7 + $0x4a] sm:$0xff] }
 0xd9d   : > { %13973 = vst.msk [vmem:[#allocation7 + $0xf1] sm:$0xff] %vm822_vm13, %v13963_v13  ;;  %v14453_v13 = vld [vmem:[#allocation7 + $0xc8] sm:$0xff] }
 0xd9e   : > { %v23892_v19 = vpop.f32.mrb[84].mxu1  ;;  %v29335_v32 = vpack.c.bf16 %v14453_v13, %v14452_v14  ;;  %v15023_v2 = vld [vmem:[#allocation7 + $0x62] sm:$0xff]  ;;  %v15024_v58 = vld [vmem:[#allocation7 + $0x6a] sm:$0xff]  ;;  %v29381_v14 = vpack.c.bf16 %v15022_v48, %v15021_v23  ;;  %v26139_v13 = vld [vmem:[#allocation14 + $0x78] sm:$0xff]  }
 0xd9f   : > { %14127 = vst.msk [vmem:[#allocation7 + $0x129] sm:$0xff] %vm822_vm13, %v23892_v19  ;;  %v14116_v11 = vpop.f32.mrb[85].mxu1  ;;  %v14454_v19 = vld [vmem:[#allocation7 + $0xd8] sm:$0xff]  ;;  %v15042_v48 = vld [vmem:[#allocation7 + $0x142] sm:$0xff] }
 0xda0   : > { %23934 = vmatmul.mubr.msk.bf16.gmra.mrb[100].mxu0 %vm822_vm13, %v29264_v57  ;;  %14126 = vst.msk [vmem:[#allocation7 + $0x121] sm:$0xff] %vm822_vm13, %v14116_v11  ;;  %v14455_v11 = vld [vmem:[#allocation7 + $0xe0] sm:$0xff] }
 0xda1   : > { %23937 = vmatprep.mubr.msk.bf16.mxu0 %vm822_vm13, %v29266_v7  ;;  %v15041_v23 = vld [vmem:[#allocation7 + $0x13a] sm:$0xff] }
 0xda3   : > { %v14513_v33 = vld [vmem:[#allocation7 + $0xf9] sm:$0xff] }
 0xda4   : > { %v14512_v4 = vld [vmem:[#allocation7 + $0xf1] sm:$0xff] }
 0xda5   : > { %v29276_v34 = vpack.c.bf16 %v14513_v33, %v14512_v4  ;;  %v14456_v41 = vld [vmem:[#allocation7 + $0xf0] sm:$0xff]  ;;  %v14457_v51 = vld [vmem:[#allocation7 + $0xf8] sm:$0xff]  ;;  %v29341_v4 = vpack.c.bf16 %v14455_v11, %v14454_v19  ;;  %v29383_v19 = vpack.c.bf16 %v15024_v58, %v15023_v2 }
 0xda6   : > { %v14517_v20 = vld [vmem:[#allocation7 + $0x129] sm:$0xff]  ;;  %v29343_v33 = vpack.c.bf16 %v14457_v51, %v14456_v41  ;;  %v15025_v11 = vld [vmem:[#allocation7 + $0x7a] sm:$0xff]  ;;  %v15027_v51 = vld [vmem:[#allocation7 + $0x92] sm:$0xff] }
 0xda7   : > { %v23902_v61 = vpop.f32.mrb[86].mxu0  ;;  %v14516_v31 = vld [vmem:[#allocation7 + $0x121] sm:$0xff]  ;;  %v15040_v42 = vld [vmem:[#allocation7 + $0x12a] sm:$0xff] }
 0xda8   : > { %23938 = vmatmul.mubr.msk.bf16.gmra.mrb[104].mxu0 %vm822_vm13, %v29274_v35  ;;  %14280 = vst.msk [vmem:[#allocation7 + $0x159] sm:$0xff] %vm822_vm13, %v23902_v61  ;;  %v14269_v8 = vpop.f32.mrb[87].mxu0  ;;  %v29286_v45 = vpack.c.bf16 %v14517_v20, %v14516_v31  ;;  %v14458_v61 = vld [vmem:[#allocation7 + $0x108] sm:$0xff]  ;;  %v14460_v3 = vld [vmem:[#allocation7 + $0x120] sm:$0xff] }
 0xda9   : > { %23941 = vmatprep.mubr.msk.bf16.mxu0 %vm822_vm13, %v29276_v34  ;;  %14279 = vst.msk [vmem:[#allocation7 + $0x151] sm:$0xff] %vm822_vm13, %v14269_v8  ;;  %v14459_v8 = vld [vmem:[#allocation7 + $0x110] sm:$0xff]  ;;  %v14461_v12 = vld [vmem:[#allocation7 + $0x128] sm:$0xff] }
 0xdaa   : > { %v23912_v31 = vpop.f32.mrb[86].mxu1  ;;  %v29349_v20 = vpack.c.bf16 %v14459_v8, %v14458_v61  ;;  %v29352_v5 = vpack.c.bf16 %v14461_v12, %v14460_v3  ;;  %v15026_v41 = vld [vmem:[#allocation7 + $0x82] sm:$0xff]  ;;  %v15028_v61 = vld [vmem:[#allocation7 + $0x9a] sm:$0xff]  ;;  %v15029_v12 = vld [vmem:[#allocation7 + $0xaa] sm:$0xff] }
 0xdab   : > { %14433 = vst.msk [vmem:[#allocation7 + $0x189] sm:$0xff] %vm822_vm13, %v23912_v31  ;;  %v14422_v43 = vpop.f32.mrb[87].mxu1  ;;  %v29389_v8 = vpack.c.bf16 %v15026_v41, %v15025_v11  ;;  %v29391_v3 = vpack.c.bf16 %v15028_v61, %v15027_v51  ;;  %v15030_v31 = vld [vmem:[#allocation7 + $0xb2] sm:$0xff]  ;;  %v15039_v46 = vld [vmem:[#allocation7 + $0x122] sm:$0xff]  ;;  %v15045_v41 = vld [vmem:[#allocation7 + $0x16a] sm:$0xff] }
 0xdac   : > { %14432 = vst.msk [vmem:[#allocation7 + $0x181] sm:$0xff] %vm822_vm13, %v14422_v43  ;;  %v15031_v43 = vld [vmem:[#allocation7 + $0xc2] sm:$0xff]  ;;  %v15046_v51 = vld [vmem:[#allocation7 + $0x172] sm:$0xff] }
 0xdad   : > { %v29429_v61 = vpack.c.bf16 %v15046_v51, %v15045_v41  ;;  %v16637_v41 = vld [vmem:[#allocation7 + $0xc1] sm:$0xff]  ;;  %v16638_v51 = vld [vmem:[#allocation7 + $0xc9] sm:$0xff] }
 0xdaf   : > { %v14521_v10 = vld [vmem:[#allocation7 + $0x159] sm:$0xff] }
 0xdb0   : > { %23942 = vmatmul.mubr.msk.bf16.gmra.mrb[108].mxu0 %vm822_vm13, %v29284_v53  ;;  %v14520_v54 = vld [vmem:[#allocation7 + $0x151] sm:$0xff]  ;;  %v15044_v58 = vld [vmem:[#allocation7 + $0x15a] sm:$0xff] }
 0xdb1   : > { %23945 = vmatprep.mubr.msk.bf16.mxu0 %vm822_vm13, %v29286_v45  ;;  %v29294_v60 = vpack.c.bf16 %v14521_v10, %v14520_v54  ;;  %v14462_v54 = vld [vmem:[#allocation7 + $0x138] sm:$0xff]  ;;  %v14463_v10 = vld [vmem:[#allocation7 + $0x140] sm:$0xff]  ;;  %v14464_v40 = vld [vmem:[#allocation7 + $0x150] sm:$0xff] }
 0xdb2   : > { %v14465_v38 = vld [vmem:[#allocation7 + $0x158] sm:$0xff]  ;;  %v29359_v6 = vpack.c.bf16 %v14463_v10, %v14462_v54  ;;  %v15032_v54 = vld [vmem:[#allocation7 + $0xca] sm:$0xff]  ;;  %v29397_v10 = vpack.c.bf16 %v15030_v31, %v15029_v12 }
 0xdb3   : > { %v29361_v47 = vpack.c.bf16 %v14465_v38, %v14464_v40  ;;  %v29399_v40 = vpack.c.bf16 %v15032_v54, %v15031_v43  ;;  %v15033_v38 = vld [vmem:[#allocation7 + $0xda] sm:$0xff]  ;;  %v15043_v2 = vld [vmem:[#allocation7 + $0x152] sm:$0xff]  ;;  %v26141_v12 = vld [vmem:[#allocation14 + $0x88] sm:$0xff]  }
 0xdb4   : > { %v29423_v11 = vpack.c.bf16 %v15044_v58, %v15043_v2  ;;  %v26142_v31 = vld [vmem:[#allocation14 + $0x90] sm:$0xff]   ;;  %v26143_v43 = vld [vmem:[#allocation14 + $0x98] sm:$0xff]   ;;  %v15368_v54 = vld [vmem:[#allocation7 + $0x188] sm:$0xff] }
 0xdb5   : > { %v16635_v2 = vld [vmem:[#allocation7 + $0xa9] sm:$0xff]  ;;  %v16636_v58 = vld [vmem:[#allocation7 + $0xb1] sm:$0xff] }
 0xdb8   : > { %23946 = vmatmul.mubr.msk.bf16.gmra.mrb[112].mxu0 %vm822_vm13, %v29292_v56 }
 0xdb9   : > { %23949 = vmatprep.mubr.msk.bf16.mxu0 %vm822_vm13, %v29294_v60 }
 0xdc0   : > { %23950 = vmatmul.mubr.msk.bf16.gmra.mrb[116].mxu0 %vm822_vm13, %v29300_v9 }
 0xdc1   : > { %23961 = vmatprep.mubr.msk.bf16.mxu0 %vm822_vm13, %v14468_v21  ;;  %v15015_v21 = vld [vmem:[#allocation7 + $0x2] sm:$0xff] }
 0xdc2   : > { %v15047_v62 = vpack.c.bf16 %v15016_v44, %v15015_v21  ;;  %v15034_v21 = vld [vmem:[#allocation7 + $0xe2] sm:$0xff]  ;;  %v15035_v44 = vld [vmem:[#allocation7 + $0xf2] sm:$0xff] }
 0xdc8   : > { %23962 = vmatmul.mubr.msk.bf16.vlgmr.msra.gmra.mrb[88].mxu0 %vm822_vm13, %v29305_v16 }
 0xdc9   : > { %23965 = vmatprep.mubr.msk.bf16.mxu0 %vm822_vm13, %v29307_v1  ;;  %23994 = vmatpush3.bf16.msra.mxu0 %v29231_v55  ;;  %v29322_v55 = vld [vmem:[#allocation14 + $0x60] sm:$0xff]  }
 0xdca   : > { %23995 = vmatprep.subr.bf16.mxu0 %v26133_v50 }
 0xdcd   : > { %23996 = vmatpush3.bf16.msra.mxu0 %v26133_v50  ;;  %v29367_v50 = vpack.c.bf16 %v14467_v27, %v14466_v30  ;;  %v15036_v30 = vld [vmem:[#allocation7 + $0xfa] sm:$0xff]  ;;  %v29405_v27 = vpack.c.bf16 %v15034_v21, %v15033_v38  ;;  %v26145_v21 = vld [vmem:[#allocation14 + $0xa8] sm:$0xff]  }
 0xdce   : > { %23997 = vmatprep.subr.bf16.mxu0 %v26134_v0 }
 0xdd0   : > { %23966 = vmatmul.mubr.msk.bf16.gmra.mrb[92].mxu0 %vm822_vm13, %v29314_v52 }
 0xdd1   : > { %23969 = vmatprep.mubr.msk.bf16.mxu0 %vm822_vm13, %v29316_v36  ;;  %23998 = vmatpush3.bf16.msra.mxu0 %v26134_v0  ;;  %v15017_v0 = vld [vmem:[#allocation7 + $0x1a] sm:$0xff] }
 0xdd2   : > { %23999 = vmatprep.subr.bf16.mxu0 %v26135_v63  ;;  %v29372_v49 = vpack.c.bf16 %v15018_v22, %v15017_v0  ;;  %v15037_v0 = vld [vmem:[#allocation7 + $0x10a] sm:$0xff]  ;;  %v15038_v22 = vld [vmem:[#allocation7 + $0x112] sm:$0xff] }
 0xdd5   : > { %24000 = vmatpush3.bf16.msra.mxu0 %v26135_v63  ;;  %v26137_v63 = vld [vmem:[#allocation14 + $0x68] sm:$0xff]  }
 0xdd6   : > { %24033 = vmatprep.subr.bf16.mxu0 %v29322_v55 }
 0xdd8   : > { %23970 = vmatmul.mubr.msk.bf16.gmra.mrb[96].mxu0 %vm822_vm13, %v29324_v37 }
 0xdd9   : > { %23973 = vmatprep.mubr.msk.bf16.mxu0 %vm822_vm13, %v29327_v24 }
 0xde0   : > { %23974 = vmatmul.mubr.msk.bf16.gmra.mrb[100].mxu0 %vm822_vm13, %v29333_v28 }
 0xde1   : > { %23977 = vmatprep.mubr.msk.bf16.mxu0 %vm822_vm13, %v29335_v32 }
 0xde8   : > { %23978 = vmatmul.mubr.msk.bf16.gmra.mrb[104].mxu0 %vm822_vm13, %v29341_v4 }
 0xde9   : > { %23981 = vmatprep.mubr.msk.bf16.mxu0 %vm822_vm13, %v29343_v33 }
 0xdf0   : > { %23982 = vmatmul.mubr.msk.bf16.gmra.mrb[108].mxu0 %vm822_vm13, %v29349_v20 }
 0xdf1   : > { %23985 = vmatprep.mubr.msk.bf16.mxu0 %vm822_vm13, %v29352_v5 }
 0xdf8   : > { %23986 = vmatmul.mubr.msk.bf16.gmra.mrb[112].mxu0 %vm822_vm13, %v29359_v6 }
 0xdf9   : > { %23989 = vmatprep.mubr.msk.bf16.mxu0 %vm822_vm13, %v29361_v47 }
 0xe00   : > { %23990 = vmatmul.mubr.msk.bf16.gmra.mrb[116].mxu0 %vm822_vm13, %v29367_v50 }
 0xe01   : > { %24001 = vmatprep.mubr.msk.bf16.mxu0 %vm822_vm13, %v15047_v62  ;;  %v29407_v62 = vpack.c.bf16 %v15036_v30, %v15035_v44  ;;  %v26146_v44 = vld [vmem:[#allocation14 + $0xb0] sm:$0xff]   ;;  %v26147_v30 = vld [vmem:[#allocation14 + $0xb8] sm:$0xff]  }
 0xe08   : > { %24002 = vmatmul.mubr.msk.bf16.vlgmr.msra.gmra.mrb[88].mxu0 %vm822_vm13, %v29372_v49 }
 0xe09   : > { %24005 = vmatprep.mubr.msk.bf16.mxu0 %vm822_vm13, %v29374_v15  ;;  %24034 = vmatpush3.bf16.msra.mxu0 %v29322_v55  ;;  %v26140_v55 = vld [vmem:[#allocation14 + $0x80] sm:$0xff]  }
 0xe0a   : > { %24035 = vmatprep.subr.bf16.mxu0 %v26137_v63 }
 0xe0d   : > { %24036 = vmatpush3.bf16.msra.mxu0 %v26137_v63  ;;  %v29413_v63 = vpack.c.bf16 %v15038_v22, %v15037_v0  ;;  %v16632_v0 = vld [vmem:[#allocation7 + $0x81] sm:$0xff]  ;;  %v16633_v22 = vld [vmem:[#allocation7 + $0x91] sm:$0xff] }
 0xe0e   : > { %24037 = vmatprep.subr.bf16.mxu0 %v26138_v26 }
 0xe10   : > { %24006 = vmatmul.mubr.msk.bf16.gmra.mrb[92].mxu0 %vm822_vm13, %v29381_v14 }
 0xe11   : > { %24009 = vmatprep.mubr.msk.bf16.mxu0 %vm822_vm13, %v29383_v19  ;;  %24038 = vmatpush3.bf16.msra.mxu0 %v26138_v26  ;;  %v29415_v26 = vpack.c.bf16 %v15040_v42, %v15039_v46  ;;  %v16634_v46 = vld [vmem:[#allocation7 + $0x99] sm:$0xff] }
 0xe12   : > { %24039 = vmatprep.subr.bf16.mxu0 %v26139_v13 }
 0xe15   : > { %24040 = vmatpush3.bf16.msra.mxu0 %v26139_v13  ;;  %v29421_v13 = vpack.c.bf16 %v15042_v48, %v15041_v23  ;;  %v26159_v23 = vld [vmem:[#allocation14 + $0x118] sm:$0xff]   ;;  %v16661_v48 = vpack.c.bf16 %v16634_v46, %v16633_v22 }
 0xe16   : > { %24073 = vmatprep.subr.bf16.mxu0 %v26140_v55 }
 0xe18   : > { %24010 = vmatmul.mubr.msk.bf16.gmra.mrb[96].mxu0 %vm822_vm13, %v29389_v8 }
 0xe19   : > { %24013 = vmatprep.mubr.msk.bf16.mxu0 %vm822_vm13, %v29391_v3 }
 0xe20   : > { %24014 = vmatmul.mubr.msk.bf16.gmra.mrb[100].mxu0 %vm822_vm13, %v29397_v10 }
 0xe21   : > { %24017 = vmatprep.mubr.msk.bf16.mxu0 %vm822_vm13, %v29399_v40 }
 0xe28   : > { %24018 = vmatmul.mubr.msk.bf16.gmra.mrb[104].mxu0 %vm822_vm13, %v29405_v27 }
 0xe29   : > { %24021 = vmatprep.mubr.msk.bf16.mxu0 %vm822_vm13, %v29407_v62 }
 0xe30   : > { %24022 = vmatmul.mubr.msk.bf16.gmra.mrb[108].mxu0 %vm822_vm13, %v29413_v63 }
 0xe31   : > { %24025 = vmatprep.mubr.msk.bf16.mxu0 %vm822_vm13, %v29415_v26 }
 0xe38   : > { %24026 = vmatmul.mubr.msk.bf16.gmra.mrb[112].mxu0 %vm822_vm13, %v29421_v13 }
 0xe39   : > { %24029 = vmatprep.mubr.msk.bf16.mxu0 %vm822_vm13, %v29423_v11 }
 0xe40   : > { %24030 = vmatmul.mubr.msk.bf16.gmra.mrb[116].mxu0 %vm822_vm13, %v29429_v61 }
 0xe41   : > { %24041 = vmatprep.mubr.msk.bf16.mxu0 %vm822_vm13, %v29305_v16  ;;  %v26144_v16 = vld [vmem:[#allocation14 + $0xa0] sm:$0xff]  }
 0xe48   : > { %24042 = vmatmul.mubr.msk.bf16.vlgmr.msra.gmra.mrb[88].mxu0 %vm822_vm13, %v29307_v1 }
 0xe49   : > { %24045 = vmatprep.mubr.msk.bf16.mxu0 %vm822_vm13, %v29314_v52  ;;  %24074 = vmatpush3.bf16.msra.mxu0 %v26140_v55  ;;  %v15367_v55 = vld [vmem:[#allocation7 + $0x180] sm:$0xff] }
 0xe4a   : > { %24075 = vmatprep.subr.bf16.mxu0 %v26141_v12  ;;  %v29463_v38 = vpack.c.bf16 %v15368_v54, %v15367_v55  ;;  %v16641_v55 = vld [vmem:[#allocation7 + $0xf1] sm:$0xff]  ;;  %v16642_v54 = vld [vmem:[#allocation7 + $0xf9] sm:$0xff] }
 0xe4d   : > { %24076 = vmatpush3.bf16.msra.mxu0 %v26141_v12  ;;  %v16662_v12 = vpack.c.bf16 %v16636_v58, %v16635_v2 }
 0xe4e   : > { %24077 = vmatprep.subr.bf16.mxu0 %v26142_v31 }
 0xe50   : > { %24046 = vmatmul.mubr.msk.bf16.gmra.mrb[92].mxu0 %vm822_vm13, %v29316_v36 }
 0xe51   : > { %24049 = vmatprep.mubr.msk.bf16.mxu0 %vm822_vm13, %v29324_v37  ;;  %24078 = vmatpush3.bf16.msra.mxu0 %v26142_v31  ;;  %v16663_v31 = vpack.c.bf16 %v16638_v51, %v16637_v41 }
 0xe52   : > { %24079 = vmatprep.subr.bf16.mxu0 %v26143_v43 }
 0xe55   : > { %24080 = vmatpush3.bf16.msra.mxu0 %v26143_v43  ;;  %v16639_v43 = vld [vmem:[#allocation7 + $0xd9] sm:$0xff] }
 0xe56   : > { %24113 = vmatprep.subr.bf16.mxu0 %v26144_v16 }
 0xe58   : > { %24050 = vmatmul.mubr.msk.bf16.gmra.mrb[96].mxu0 %vm822_vm13, %v29327_v24 }
 0xe59   : > { %24053 = vmatprep.mubr.msk.bf16.mxu0 %vm822_vm13, %v29333_v28 }
 0xe60   : > { %24054 = vmatmul.mubr.msk.bf16.gmra.mrb[100].mxu0 %vm822_vm13, %v29335_v32 }
 0xe61   : > { %24057 = vmatprep.mubr.msk.bf16.mxu0 %vm822_vm13, %v29341_v4 }
 0xe68   : > { %24058 = vmatmul.mubr.msk.bf16.gmra.mrb[104].mxu0 %vm822_vm13, %v29343_v33 }
 0xe69   : > { %24061 = vmatprep.mubr.msk.bf16.mxu0 %vm822_vm13, %v29349_v20 }
 0xe70   : > { %24062 = vmatmul.mubr.msk.bf16.gmra.mrb[108].mxu0 %vm822_vm13, %v29352_v5 }
 0xe71   : > { %24065 = vmatprep.mubr.msk.bf16.mxu0 %vm822_vm13, %v29359_v6 }
 0xe78   : > { %24066 = vmatmul.mubr.msk.bf16.gmra.mrb[112].mxu0 %vm822_vm13, %v29361_v47 }
 0xe79   : > { %24069 = vmatprep.mubr.msk.bf16.mxu0 %vm822_vm13, %v29367_v50 }
 0xe80   : > { %24070 = vmatmul.mubr.msk.bf16.gmra.mrb[116].mxu0 %vm822_vm13, %v29463_v38 }
 0xe81   : > { %24081 = vmatprep.mubr.msk.bf16.mxu0 %vm822_vm13, %v29227_v29  ;;  %v26148_v29 = vld [vmem:[#allocation14 + $0xc0] sm:$0xff]  }
 0xe88   : > { %24082 = vmatmul.mubr.msk.bf16.vlgmr.msra.gmra.mrb[88].mxu0 %vm822_vm13, %v29238_v25  ;;  %v15689_v25 = vld [vmem:[#allocation7 + $0x181] sm:$0xff] }
 0xe89   : > { %24085 = vmatprep.mubr.msk.bf16.mxu0 %vm822_vm13, %v29240_v59  ;;  %24114 = vmatpush3.bf16.msra.mxu0 %v26144_v16  ;;  %v15690_v59 = vld [vmem:[#allocation7 + $0x189] sm:$0xff]  ;;  %v16640_v16 = vld [vmem:[#allocation7 + $0xe1] sm:$0xff] }
 0xe8a   : > { %24115 = vmatprep.subr.bf16.mxu0 %v26145_v21 }
 0xe8d   : > { %24116 = vmatpush3.bf16.msra.mxu0 %v26145_v21  ;;  %v16665_v21 = vpack.c.bf16 %v16642_v54, %v16641_v55 }
 0xe8e   : > { %24117 = vmatprep.subr.bf16.mxu0 %v26146_v44 }
 0xe90   : > { %24086 = vmatmul.mubr.msk.bf16.gmra.mrb[92].mxu0 %vm822_vm13, %v29247_v39  ;;  %v29497_v39 = vpack.c.bf16 %v15690_v59, %v15689_v25  ;;  %v16646_v25 = vld [vmem:[#allocation7 + $0x129] sm:$0xff] }
 0xe91   : > { %24089 = vmatprep.mubr.msk.bf16.mxu0 %vm822_vm13, %v29254_v17  ;;  %24118 = vmatpush3.bf16.msra.mxu0 %v26146_v44  ;;  %v26149_v17 = vld [vmem:[#allocation14 + $0xc8] sm:$0xff]  }
 0xe92   : > { %24119 = vmatprep.subr.bf16.mxu0 %v26147_v30  ;;  %v16643_v44 = vld [vmem:[#allocation7 + $0x109] sm:$0xff] }
 0xe95   : > { %24120 = vmatpush3.bf16.msra.mxu0 %v26147_v30  ;;  %v16644_v30 = vld [vmem:[#allocation7 + $0x111] sm:$0xff] }
 0xe96   : > { %24153 = vmatprep.subr.bf16.mxu0 %v26148_v29  ;;  %v16666_v59 = vpack.c.bf16 %v16644_v30, %v16643_v44 }
 0xe98   : > { %24090 = vmatmul.mubr.msk.bf16.gmra.mrb[96].mxu0 %vm822_vm13, %v29258_v18  ;;  %v26150_v18 = vld [vmem:[#allocation14 + $0xd0] sm:$0xff]  }
 0xe99   : > { %24093 = vmatprep.mubr.msk.bf16.mxu0 %vm822_vm13, %v29264_v57  ;;  %v26151_v57 = vld [vmem:[#allocation14 + $0xd8] sm:$0xff]  }
 0xea0   : > { %24094 = vmatmul.mubr.msk.bf16.gmra.mrb[100].mxu0 %vm822_vm13, %v29266_v7  ;;  %v26152_v7 = vld [vmem:[#allocation14 + $0xe0] sm:$0xff]  }
 0xea1   : > { %24097 = vmatprep.mubr.msk.bf16.mxu0 %vm822_vm13, %v29274_v35  ;;  %v16011_v35 = vld [vmem:[#allocation7 + $0x182] sm:$0xff] }
 0xea8   : > { %24098 = vmatmul.mubr.msk.bf16.gmra.mrb[104].mxu0 %vm822_vm13, %v29276_v34  ;;  %v16012_v34 = vld [vmem:[#allocation7 + $0x18a] sm:$0xff] }
 0xea9   : > { %24101 = vmatprep.mubr.msk.bf16.mxu0 %vm822_vm13, %v29284_v53  ;;  %v29531_v53 = vpack.c.bf16 %v16012_v34, %v16011_v35  ;;  %v16650_v35 = vld [vmem:[#allocation7 + $0x159] sm:$0xff] }
 0xeb0   : > { %24102 = vmatmul.mubr.msk.bf16.gmra.mrb[108].mxu0 %vm822_vm13, %v29286_v45  ;;  %v26153_v45 = vld [vmem:[#allocation14 + $0xe8] sm:$0xff]  }
 0xeb1   : > { %24105 = vmatprep.mubr.msk.bf16.mxu0 %vm822_vm13, %v29292_v56  ;;  %v26154_v56 = vld [vmem:[#allocation14 + $0xf0] sm:$0xff]  }
 0xeb8   : > { %24106 = vmatmul.mubr.msk.bf16.gmra.mrb[112].mxu0 %vm822_vm13, %v29294_v60  ;;  %v26155_v60 = vld [vmem:[#allocation14 + $0xf8] sm:$0xff]  }
 0xeb9   : > { %24109 = vmatprep.mubr.msk.bf16.mxu0 %vm822_vm13, %v29300_v9  ;;  %v26156_v9 = vld [vmem:[#allocation14 + $0x100] sm:$0xff]  }
 0xec0   : > { %24110 = vmatmul.mubr.msk.bf16.gmra.mrb[116].mxu0 %vm822_vm13, %v29497_v39 }
 0xec1   : > { %24121 = vmatprep.mubr.msk.bf16.mxu0 %vm822_vm13, %v29372_v49  ;;  %v16631_v49 = vld [vmem:[#allocation7 + $0x79] sm:$0xff] }
 0xec2   : > { %v16660_v42 = vpack.c.bf16 %v16632_v0, %v16631_v49 }
 0xec8   : > { %24122 = vmatmul.mubr.msk.bf16.vlgmr.msra.gmra.mrb[88].mxu0 %vm822_vm13, %v29374_v15 }
 0xec9   : > { %24125 = vmatprep.mubr.msk.bf16.mxu0 %vm822_vm13, %v29381_v14  ;;  %24154 = vmatpush3.bf16.msra.mxu0 %v26148_v29  ;;  %v16645_v29 = vld [vmem:[#allocation7 + $0x121] sm:$0xff] }
 0xeca   : > { %24155 = vmatprep.subr.bf16.mxu0 %v26149_v17 }
 0xecd   : > { %24156 = vmatpush3.bf16.msra.mxu0 %v26149_v17  ;;  %v16667_v17 = vpack.c.bf16 %v16646_v25, %v16645_v29 }
 0xece   : > { %24157 = vmatprep.subr.bf16.mxu0 %v26150_v18 }
 0xed0   : > { %24126 = vmatmul.mubr.msk.bf16.gmra.mrb[92].mxu0 %vm822_vm13, %v29383_v19 }
 0xed1   : > { %24129 = vmatprep.mubr.msk.bf16.mxu0 %vm822_vm13, %v29389_v8  ;;  %24158 = vmatpush3.bf16.msra.mxu0 %v26150_v18  ;;  %v16647_v18 = vld [vmem:[#allocation7 + $0x139] sm:$0xff] }
 0xed2   : > { %24159 = vmatprep.subr.bf16.mxu0 %v26151_v57 }
 0xed5   : > { %24160 = vmatpush3.bf16.msra.mxu0 %v26151_v57  ;;  %v16648_v57 = vld [vmem:[#allocation7 + $0x141] sm:$0xff] }
 0xed6   : > { %24193 = vmatprep.subr.bf16.mxu0 %v26152_v7  ;;  %v16668_v34 = vpack.c.bf16 %v16648_v57, %v16647_v18  ;;  %v26163_v57 = vld [vmem:[%s30319_s4 + $0x8] sm:$0xff]  }
 0xed8   : > { %24130 = vmatmul.mubr.msk.bf16.gmra.mrb[96].mxu0 %vm822_vm13, %v29391_v3 }
 0xed9   : > { %24133 = vmatprep.mubr.msk.bf16.mxu0 %vm822_vm13, %v29397_v10 }
 0xee0   : > { %24134 = vmatmul.mubr.msk.bf16.gmra.mrb[100].mxu0 %vm822_vm13, %v29399_v40 }
 0xee1   : > { %24137 = vmatprep.mubr.msk.bf16.mxu0 %vm822_vm13, %v29405_v27 }
 0xee8   : > { %24138 = vmatmul.mubr.msk.bf16.gmra.mrb[104].mxu0 %vm822_vm13, %v29407_v62 }
 0xee9   : > { %24141 = vmatprep.mubr.msk.bf16.mxu0 %vm822_vm13, %v29413_v63 }
 0xef0   : > { %24142 = vmatmul.mubr.msk.bf16.gmra.mrb[108].mxu0 %vm822_vm13, %v29415_v26 }
 0xef1   : > { %24145 = vmatprep.mubr.msk.bf16.mxu0 %vm822_vm13, %v29421_v13 }
 0xef8   : > { %24146 = vmatmul.mubr.msk.bf16.gmra.mrb[112].mxu0 %vm822_vm13, %v29423_v11 }
 0xef9   : > { %24149 = vmatprep.mubr.msk.bf16.mxu0 %vm822_vm13, %v29429_v61 }
 0xf00   : > { %24150 = vmatmul.mubr.msk.bf16.gmra.mrb[116].mxu0 %vm822_vm13, %v29531_v53 }
 0xf01   : > { %24161 = vmatprep.mubr.msk.bf16.mxu0 %vm822_vm13, %v29307_v1  ;;  %v16333_v1 = vld [vmem:[#allocation7 + $0x198] sm:$0xff] }
 0xf08   : > { %24162 = vmatmul.mubr.msk.bf16.vlgmr.msra.gmra.mrb[88].mxu0 %vm822_vm13, %v29314_v52  ;;  %v16334_v52 = vld [vmem:[#allocation7 + $0x1a0] sm:$0xff] }
 0xf09   : > { %24165 = vmatprep.mubr.msk.bf16.mxu0 %vm822_vm13, %v29316_v36  ;;  %24194 = vmatpush3.bf16.msra.mxu0 %v26152_v7  ;;  %v16350_v36 = vpack.c.bf16 %v16334_v52, %v16333_v1  ;;  %v16649_v7 = vld [vmem:[#allocation7 + $0x151] sm:$0xff]  ;;  %v16655_v1 = vld [vmem:[#allocation7 + $0x199] sm:$0xff]  ;;  %v16656_v52 = vld [vmem:[#allocation7 + $0x1a1] sm:$0xff] }
 0xf0a   : > { %24195 = vmatprep.subr.bf16.mxu0 %v26153_v45 }
 0xf0d   : > { %24196 = vmatpush3.bf16.msra.mxu0 %v26153_v45  ;;  %v16669_v45 = vpack.c.bf16 %v16650_v35, %v16649_v7 }
 0xf0e   : > { %24197 = vmatprep.subr.bf16.mxu0 %v26154_v56 }
 0xf10   : > { %24166 = vmatmul.mubr.msk.bf16.gmra.mrb[92].mxu0 %vm822_vm13, %v29324_v37  ;;  %v16625_v37 = vld [vmem:[#allocation7 + $0x31] sm:$0xff] }
 0xf11   : > { %24169 = vmatprep.mubr.msk.bf16.mxu0 %vm822_vm13, %v29327_v24  ;;  %24198 = vmatpush3.bf16.msra.mxu0 %v26154_v56  ;;  %v16626_v24 = vld [vmem:[#allocation7 + $0x39] sm:$0xff]  ;;  %v16651_v56 = vld [vmem:[#allocation7 + $0x169] sm:$0xff] }
 0xf12   : > { %24199 = vmatprep.subr.bf16.mxu0 %v26155_v60 }
 0xf15   : > { %24200 = vmatpush3.bf16.msra.mxu0 %v26155_v60  ;;  %v16652_v60 = vld [vmem:[#allocation7 + $0x171] sm:$0xff] }
 0xf16   : > { %24233 = vmatprep.subr.bf16.mxu0 %v26156_v9 }
 0xf18   : > { %24170 = vmatmul.mubr.msk.bf16.gmra.mrb[96].mxu0 %vm822_vm13, %v29333_v28  ;;  %v16657_v28 = vpack.c.bf16 %v16626_v24, %v16625_v37 }
 0xf19   : > { %24173 = vmatprep.mubr.msk.bf16.mxu0 %vm822_vm13, %v29335_v32  ;;  %v16627_v32 = vld [vmem:[#allocation7 + $0x49] sm:$0xff] }
 0xf20   : > { %24174 = vmatmul.mubr.msk.bf16.gmra.mrb[100].mxu0 %vm822_vm13, %v29341_v4  ;;  %v16628_v4 = vld [vmem:[#allocation7 + $0x51] sm:$0xff] }
 0xf21   : > { %24177 = vmatprep.mubr.msk.bf16.mxu0 %vm822_vm13, %v29343_v33  ;;  %v16629_v33 = vld [vmem:[#allocation7 + $0x61] sm:$0xff] }
 0xf28   : > { %24178 = vmatmul.mubr.msk.bf16.gmra.mrb[104].mxu0 %vm822_vm13, %v29349_v20  ;;  %v16630_v20 = vld [vmem:[#allocation7 + $0x69] sm:$0xff] }
 0xf29   : > { %24181 = vmatprep.mubr.msk.bf16.mxu0 %vm822_vm13, %v29352_v5  ;;  %v16658_v5 = vpack.c.bf16 %v16628_v4, %v16627_v32 }
 0xf30   : > { %24182 = vmatmul.mubr.msk.bf16.gmra.mrb[108].mxu0 %vm822_vm13, %v29359_v6  ;;  %v26157_v6 = vld [vmem:[#allocation14 + $0x108] sm:$0xff]  }
 0xf31   : > { %24185 = vmatprep.mubr.msk.bf16.mxu0 %vm822_vm13, %v29361_v47  ;;  %v16659_v47 = vpack.c.bf16 %v16630_v20, %v16629_v33 }
 0xf38   : > { %24186 = vmatmul.mubr.msk.bf16.gmra.mrb[112].mxu0 %vm822_vm13, %v29367_v50  ;;  %v26158_v50 = vld [vmem:[#allocation14 + $0x110] sm:$0xff]  }
 0xf39   : > { %24189 = vmatprep.mubr.msk.bf16.mxu0 %vm822_vm13, %v29463_v38  ;;  %v16664_v38 = vpack.c.bf16 %v16640_v16, %v16639_v43 }
 0xf40   : > { %24190 = vmatmul.mubr.msk.bf16.gmra.mrb[116].mxu0 %vm822_vm13, %v16350_v36  ;;  %v16672_v36 = vpack.c.bf16 %v16656_v52, %v16655_v1 }
 0xf41   : > { %24201 = vmatprep.mubr.msk.bf16.mxu0 %vm822_vm13, %v16657_v28 }
 0xf48   : > { %24202 = vmatmul.mubr.msk.bf16.vlgmr.msra.gmra.mrb[88].mxu0 %vm822_vm13, %v16658_v5 }
 0xf49   : > { %24205 = vmatprep.mubr.msk.bf16.mxu0 %vm822_vm13, %v16659_v47  ;;  %24234 = vmatpush3.bf16.msra.mxu0 %v26156_v9  ;;  %v16670_v9 = vpack.c.bf16 %v16652_v60, %v16651_v56 }
 0xf4a   : > { %24235 = vmatprep.subr.bf16.mxu0 %v26157_v6 }
 0xf4d   : > { %24236 = vmatpush3.bf16.msra.mxu0 %v26157_v6 }
 0xf4e   : > { %24237 = vmatprep.subr.bf16.mxu0 %v26158_v50 }
 0xf50   : > { %24206 = vmatmul.mubr.msk.bf16.gmra.mrb[92].mxu0 %vm822_vm13, %v16660_v42 }
 0xf51   : > { %24209 = vmatprep.mubr.msk.bf16.mxu0 %vm822_vm13, %v16661_v48  ;;  %24238 = vmatpush3.bf16.msra.mxu0 %v26158_v50 }
 0xf52   : > { %24239 = vmatprep.subr.bf16.mxu0 %v26159_v23 }
 0xf55   : > { %24240 = vmatpush3.bf16.msra.mxu0 %v26159_v23 }
 0xf58   : > { %24210 = vmatmul.mubr.msk.bf16.gmra.mrb[96].mxu0 %vm822_vm13, %v16662_v12 }
 0xf59   : > { %24213 = vmatprep.mubr.msk.bf16.mxu0 %vm822_vm13, %v16663_v31 }
 0xf60   : > { %24214 = vmatmul.mubr.msk.bf16.gmra.mrb[100].mxu0 %vm822_vm13, %v16664_v38 }
 0xf61   : > { %24217 = vmatprep.mubr.msk.bf16.mxu0 %vm822_vm13, %v16665_v21 }
 0xf68   : > { %24218 = vmatmul.mubr.msk.bf16.gmra.mrb[104].mxu0 %vm822_vm13, %v16666_v59 }
 0xf69   : > { %24221 = vmatprep.mubr.msk.bf16.mxu0 %vm822_vm13, %v16667_v17 }
 0xf70   : > { %24222 = vmatmul.mubr.msk.bf16.gmra.mrb[108].mxu0 %vm822_vm13, %v16668_v34 }
 0xf71   : > { %24225 = vmatprep.mubr.msk.bf16.mxu0 %vm822_vm13, %v16669_v45 }
 0xf78   : > { %24226 = vmatmul.mubr.msk.bf16.gmra.mrb[112].mxu0 %vm822_vm13, %v16670_v9 }
 0xf79   : > { %24229 = vmatprep.mubr.msk.bf16.mxu0 %vm822_vm13, %v29497_v39 }
 0xf80   : > { %24230 = vmatmul.mubr.msk.bf16.gmra.mrb[116].mxu0 %vm822_vm13, %v16672_v36 }
 0xf81   : > { %24241 = vmatprep.mubr.msk.bf16.mxu0 %vm822_vm13, %v29374_v15  ;;  %v16977_v15 = vld [vmem:[#allocation7 + $0x19a] sm:$0xff] }
 0xf88   : > { %24242 = vmatmul.mubr.msk.bf16.vlgmr.msra.gmra.mrb[88].mxu0 %vm822_vm13, %v29381_v14  ;;  %v16978_v14 = vld [vmem:[#allocation7 + $0x1a2] sm:$0xff] }
 0xf89   : > { %24245 = vmatprep.mubr.msk.bf16.mxu0 %vm822_vm13, %v29383_v19  ;;  %v16994_v19 = vpack.c.bf16 %v16978_v14, %v16977_v15  ;;  %v29684_v15 = vld [vmem:[%s30319_s4 + $0x20] sm:$0xff]  }
 0xf90   : > { %24246 = vmatmul.mubr.msk.bf16.gmra.mrb[92].mxu0 %vm822_vm13, %v29389_v8  ;;  %v26160_v8 = vld [vmem:[%s30319_s4 + $0x10] sm:$0xff]  }
 0xf91   : > { %24249 = vmatprep.mubr.msk.bf16.mxu0 %vm822_vm13, %v29391_v3  ;;  %24273 = vmatprep.subr.bf16.mxu1 %v26160_v8  ;;  %v26161_v3 = vld [vmem:[%s30319_s4 + $0x18] sm:$0xff]  }
 0xf92   : > { %24274 = vmatpush3.bf16.msra.mxu1 %v26160_v8 }
 0xf93   : > { %24275 = vmatprep.subr.bf16.mxu1 %v26161_v3 }
 0xf96   : > { %24276 = vmatpush3.bf16.msra.mxu1 %v26161_v3 }
 0xf98   : > { %24250 = vmatmul.mubr.msk.bf16.gmra.mrb[96].mxu0 %vm822_vm13, %v29397_v10  ;;  %v17463_v10 = vld [vmem:[#allocation8 + $0x1] sm:$0xff] }
 0xf99   : > { %24253 = vmatprep.mubr.msk.bf16.mxu0 %vm822_vm13, %v29399_v40  ;;  %v17464_v40 = vld [vmem:[#allocation8 + $0x9] sm:$0xff] }
 0xfa0   : > { %24254 = vmatmul.mubr.msk.bf16.gmra.mrb[100].mxu0 %vm822_vm13, %v29405_v27  ;;  %v17495_v27 = vpack.c.bf16 %v17464_v40, %v17463_v10 }
 0xfa1   : > { %24257 = vmatprep.mubr.msk.bf16.mxu0 %vm822_vm13, %v29407_v62  ;;  %v29624_v62 = vld [vmem:[%s30319_s4] sm:$0xff]  }
 0xfa2   : > { %24277 = vmatprep.mubr.msk.bf16.mxu1 %vm746_vm3, %v17495_v27  ;;  %24309 = vmatprep.subr.bf16.mxu1 %v29624_v62 }
 0xfa8   : > { %24258 = vmatmul.mubr.msk.bf16.gmra.mrb[104].mxu0 %vm822_vm13, %v29413_v63  ;;  %v29630_v63 = vld [vmem:[%s30320_s0] ss:$0 sm:$0xff] }
 0xfa9   : > { %24261 = vmatprep.mubr.msk.bf16.mxu0 %vm822_vm13, %v29415_v26  ;;  %v29635_v26 = vld [vmem:[%s30321_s17] ss:$0 sm:$0xff] }
 0xfb0   : > { %24262 = vmatmul.mubr.msk.bf16.gmra.mrb[108].mxu0 %vm822_vm13, %v29421_v13 }
 0xfb1   : > { %24265 = vmatprep.mubr.msk.bf16.mxu0 %vm822_vm13, %v29423_v11 }
 0xfb8   : > { %24266 = vmatmul.mubr.msk.bf16.gmra.mrb[112].mxu0 %vm822_vm13, %v29429_v61 }
 0xfb9   : > { %24269 = vmatprep.mubr.msk.bf16.mxu0 %vm822_vm13, %v29531_v53 }
 0xfc0   : > { %24270 = vmatmul.mubr.msk.bf16.gmra.mrb[116].mxu0 %vm822_vm13, %v16994_v19 }
0x105b   : > { %v24243_v13 = vpop.f32.mrb[88].mxu0 }
0x105c   : > { %v17277_v11 = vmul.f32 %v24243_v13, %v29630_v63  ;;  %v17110_v61 = vpop.f32.mrb[89].mxu0 }
0x105d   : > { %v17275_v39 = vmul.f32 %v29630_v63, %v17110_v61  ;;  %v24244_v53 = vpop.f32.mrb[90].mxu0 }
0x105e   : > { %v17315_v37 = vadd.f32 %v29635_v26, %v17277_v11  ;;  %v17278_v24 = vmul.f32 %v24244_v53, %v29630_v63  ;;  %v17113_v28 = vpop.f32.mrb[91].mxu0 }
0x105f   : > { %v17313_v32 = vadd.f32 %v29635_v26, %v17275_v39  ;;  %v17276_v4 = vmul.f32 %v29630_v63, %v17113_v28 }
0x1060   : > { %v17347_v33 = vmax.f32 %v17315_v37, 0.0  ;;  %v17316_v20 = vadd.f32 %v29635_v26, %v17278_v24 }
0x1061   : > { %v17345_v5 = vmax.f32 %v17313_v32, 0.0  ;;  %v17314_v6 = vadd.f32 %v29635_v26, %v17276_v4 }
0x1062   : > { %17380 = vst.msk [vmem:[#allocation8 + $0x31] sm:$0xff] %vm746_vm3, %v17347_v33  ;;  %v17348_v47 = vmax.f32 %v17316_v20, 0.0 }
0x1063   : > { %17378 = vst.msk [vmem:[#allocation8 + $0x19] sm:$0xff] %vm746_vm3, %v17345_v5  ;;  %v17346_v50 = vmax.f32 %v17314_v6, 0.0  ;;  %v24247_v49 = vpop.f32.mrb[92].mxu0 }
0x1064   : > { %17381 = vst.msk [vmem:[#allocation8 + $0x39] sm:$0xff] %vm746_vm3, %v17348_v47  ;;  %v17281_v0 = vmul.f32 %v24247_v49, %v29630_v63  ;;  %v17126_v22 = vpop.f32.mrb[93].mxu0 }
0x1065   : > { %17379 = vst.msk [vmem:[#allocation8 + $0x21] sm:$0xff] %vm746_vm3, %v17346_v50  ;;  %v17279_v46 = vmul.f32 %v29630_v63, %v17126_v22  ;;  %v24248_v42 = vpop.f32.mrb[94].mxu0 }
0x1066   : > { %v17319_v23 = vadd.f32 %v29635_v26, %v17281_v0  ;;  %v17282_v48 = vmul.f32 %v24248_v42, %v29630_v63  ;;  %v17129_v2 = vpop.f32.mrb[95].mxu0 }
0x1067   : > { %v17317_v58 = vadd.f32 %v29635_v26, %v17279_v46  ;;  %v17280_v41 = vmul.f32 %v29630_v63, %v17129_v2 }
0x1068   : > { %v17351_v51 = vmax.f32 %v17319_v23, 0.0  ;;  %v17320_v12 = vadd.f32 %v29635_v26, %v17282_v48 }
0x1069   : > { %v17349_v31 = vmax.f32 %v17317_v58, 0.0  ;;  %v17318_v43 = vadd.f32 %v29635_v26, %v17280_v41  ;;  %v17467_v18 = vld [vmem:[#allocation8 + $0x31] sm:$0xff] }
0x106a   : > { %17384 = vst.msk [vmem:[#allocation8 + $0x61] sm:$0xff] %vm746_vm3, %v17351_v51  ;;  %v17352_v16 = vmax.f32 %v17320_v12, 0.0  ;;  %v17465_v30 = vld [vmem:[#allocation8 + $0x19] sm:$0xff] }
0x106b   : > { %17382 = vst.msk [vmem:[#allocation8 + $0x49] sm:$0xff] %vm746_vm3, %v17349_v31  ;;  %v17350_v55 = vmax.f32 %v17318_v43, 0.0  ;;  %v24251_v54 = vpop.f32.mrb[96].mxu0  ;;  %v17468_v38 = vld [vmem:[#allocation8 + $0x39] sm:$0xff] }
0x106c   : > { %17385 = vst.msk [vmem:[#allocation8 + $0x69] sm:$0xff] %vm746_vm3, %v17352_v16  ;;  %v17285_v21 = vmul.f32 %v24251_v54, %v29630_v63  ;;  %v17142_v44 = vpop.f32.mrb[97].mxu0  ;;  %v17466_v29 = vld [vmem:[#allocation8 + $0x21] sm:$0xff]  ;;  %v29670_v45 = vpack.c.bf16 %v17468_v38, %v17467_v18 }
0x106d   : > { %17383 = vst.msk [vmem:[#allocation8 + $0x51] sm:$0xff] %vm746_vm3, %v17350_v55  ;;  %v17283_v25 = vmul.f32 %v29630_v63, %v17142_v44  ;;  %v24252_v59 = vpop.f32.mrb[98].mxu0  ;;  %v29663_v17 = vpack.c.bf16 %v17466_v29, %v17465_v30 }
0x106e   : > { %v17323_v7 = vadd.f32 %v29635_v26, %v17285_v21  ;;  %v17286_v35 = vmul.f32 %v24252_v59, %v29630_v63  ;;  %v17145_v34 = vpop.f32.mrb[99].mxu0 }
0x106f   : > { %v17321_v56 = vadd.f32 %v29635_v26, %v17283_v25  ;;  %v17284_v60 = vmul.f32 %v29630_v63, %v17145_v34  ;;  %24278 = vmatmul.mubr.msk.bf16.vlgmr.msra.gmra.mrb[88].mxu1 %vm746_vm3, %v29663_v17 }
0x1070   : > { %v17355_v9 = vmax.f32 %v17323_v7, 0.0  ;;  %v17324_v1 = vadd.f32 %v29635_v26, %v17286_v35  ;;  %24281 = vmatprep.mubr.msk.bf16.mxu1 %vm746_vm3, %v29670_v45  ;;  %24310 = vmatpush3.bf16.msra.mxu1 %v29624_v62 }
0x1071   : > { %v17353_v52 = vmax.f32 %v17321_v56, 0.0  ;;  %v17322_v36 = vadd.f32 %v29635_v26, %v17284_v60  ;;  %24311 = vmatprep.subr.bf16.mxu1 %v26163_v57  ;;  %v17471_v39 = vld [vmem:[#allocation8 + $0x61] sm:$0xff] }
0x1072   : > { %17388 = vst.msk [vmem:[#allocation8 + $0x91] sm:$0xff] %vm746_vm3, %v17355_v9  ;;  %v17356_v14 = vmax.f32 %v17324_v1, 0.0  ;;  %v17469_v27 = vld [vmem:[#allocation8 + $0x49] sm:$0xff] }
0x1073   : > { %17386 = vst.msk [vmem:[#allocation8 + $0x79] sm:$0xff] %vm746_vm3, %v17353_v52  ;;  %v17354_v19 = vmax.f32 %v17322_v36, 0.0  ;;  %v24255_v8 = vpop.f32.mrb[100].mxu0  ;;  %v17472_v3 = vld [vmem:[#allocation8 + $0x69] sm:$0xff] }
0x1074   : > { %17389 = vst.msk [vmem:[#allocation8 + $0x99] sm:$0xff] %vm746_vm3, %v17356_v14  ;;  %v17289_v10 = vmul.f32 %v24255_v8, %v29630_v63  ;;  %v17158_v40 = vpop.f32.mrb[101].mxu0  ;;  %v17470_v62 = vld [vmem:[#allocation8 + $0x51] sm:$0xff]  ;;  %24312 = vmatpush3.bf16.msra.mxu1 %v26163_v57  ;;  %v29697_v28 = vpack.c.bf16 %v17472_v3, %v17471_v39 }
0x1075   : > { %17387 = vst.msk [vmem:[#allocation8 + $0x81] sm:$0xff] %vm746_vm3, %v17354_v19  ;;  %v17287_v13 = vmul.f32 %v29630_v63, %v17158_v40  ;;  %v24256_v11 = vpop.f32.mrb[102].mxu0  ;;  %v29692_v61 = vpack.c.bf16 %v17470_v62, %v17469_v27  ;;  %24345 = vmatprep.subr.bf16.mxu1 %v29684_v15 }
0x1076   : > { %v17327_v53 = vadd.f32 %v29635_v26, %v17289_v10  ;;  %v17290_v37 = vmul.f32 %v24256_v11, %v29630_v63  ;;  %v17161_v24 = vpop.f32.mrb[103].mxu0 }
0x1077   : > { %v17325_v32 = vadd.f32 %v29635_v26, %v17287_v13  ;;  %v17288_v4 = vmul.f32 %v29630_v63, %v17161_v24  ;;  %24282 = vmatmul.mubr.msk.bf16.gmra.mrb[92].mxu1 %vm746_vm3, %v29692_v61 }
0x1078   : > { %v17359_v33 = vmax.f32 %v17327_v53, 0.0  ;;  %v17328_v20 = vadd.f32 %v29635_v26, %v17290_v37  ;;  %24285 = vmatprep.mubr.msk.bf16.mxu1 %vm746_vm3, %v29697_v28 }
0x1079   : > { %v17357_v5 = vmax.f32 %v17325_v32, 0.0  ;;  %v17326_v6 = vadd.f32 %v29635_v26, %v17288_v4  ;;  %v17475_v41 = vld [vmem:[#allocation8 + $0x91] sm:$0xff] }
0x107a   : > { %17392 = vst.msk [vmem:[#allocation8 + $0xc1] sm:$0xff] %vm746_vm3, %v17359_v33  ;;  %v17360_v47 = vmax.f32 %v17328_v20, 0.0  ;;  %v17473_v42 = vld [vmem:[#allocation8 + $0x79] sm:$0xff] }
0x107b   : > { %17390 = vst.msk [vmem:[#allocation8 + $0xa9] sm:$0xff] %vm746_vm3, %v17357_v5  ;;  %v17358_v50 = vmax.f32 %v17326_v6, 0.0  ;;  %v24259_v49 = vpop.f32.mrb[104].mxu0  ;;  %v17476_v0 = vld [vmem:[#allocation8 + $0x99] sm:$0xff] }
0x107c   : > { %17393 = vst.msk [vmem:[#allocation8 + $0xc9] sm:$0xff] %vm746_vm3, %v17360_v47  ;;  %v17293_v22 = vmul.f32 %v24259_v49, %v29630_v63  ;;  %v17174_v46 = vpop.f32.mrb[105].mxu0  ;;  %v17474_v23 = vld [vmem:[#allocation8 + $0x81] sm:$0xff]  ;;  %v29717_v43 = vpack.c.bf16 %v17476_v0, %v17475_v41 }
0x107d   : > { %17391 = vst.msk [vmem:[#allocation8 + $0xb1] sm:$0xff] %vm746_vm3, %v17358_v50  ;;  %v17291_v48 = vmul.f32 %v29630_v63, %v17174_v46  ;;  %v24260_v2 = vpop.f32.mrb[106].mxu0  ;;  %v29713_v58 = vpack.c.bf16 %v17474_v23, %v17473_v42 }
0x107e   : > { %v17331_v51 = vadd.f32 %v29635_v26, %v17293_v22  ;;  %v17294_v12 = vmul.f32 %v24260_v2, %v29630_v63  ;;  %v17177_v31 = vpop.f32.mrb[107].mxu0 }
0x107f   : > { %v17329_v16 = vadd.f32 %v29635_v26, %v17291_v48  ;;  %v17292_v55 = vmul.f32 %v29630_v63, %v17177_v31  ;;  %24286 = vmatmul.mubr.msk.bf16.gmra.mrb[96].mxu1 %vm746_vm3, %v29713_v58 }
0x1080   : > { %v17363_v54 = vmax.f32 %v17331_v51, 0.0  ;;  %v17332_v38 = vadd.f32 %v29635_v26, %v17294_v12  ;;  %24289 = vmatprep.mubr.msk.bf16.mxu1 %vm746_vm3, %v29717_v43 }
0x1081   : > { %v17361_v21 = vmax.f32 %v17329_v16, 0.0  ;;  %v17330_v44 = vadd.f32 %v29635_v26, %v17292_v55  ;;  %v17479_v9 = vld [vmem:[#allocation8 + $0xc1] sm:$0xff] }
0x1082   : > { %17396 = vst.msk [vmem:[#allocation8 + $0xf1] sm:$0xff] %vm746_vm3, %v17363_v54  ;;  %v17364_v30 = vmax.f32 %v17332_v38, 0.0  ;;  %v17477_v7 = vld [vmem:[#allocation8 + $0xa9] sm:$0xff] }
0x1083   : > { %17394 = vst.msk [vmem:[#allocation8 + $0xd9] sm:$0xff] %vm746_vm3, %v17361_v21  ;;  %v17362_v29 = vmax.f32 %v17330_v44, 0.0  ;;  %v24263_v25 = vpop.f32.mrb[108].mxu0  ;;  %v17480_v59 = vld [vmem:[#allocation8 + $0xc9] sm:$0xff] }
0x1084   : > { %17397 = vst.msk [vmem:[#allocation8 + $0xf9] sm:$0xff] %vm746_vm3, %v17364_v30  ;;  %v17297_v18 = vmul.f32 %v24263_v25, %v29630_v63  ;;  %v17190_v57 = vpop.f32.mrb[109].mxu0  ;;  %v17478_v35 = vld [vmem:[#allocation8 + $0xb1] sm:$0xff]  ;;  %v29737_v14 = vpack.c.bf16 %v17480_v59, %v17479_v9 }
0x1085   : > { %17395 = vst.msk [vmem:[#allocation8 + $0xe1] sm:$0xff] %vm746_vm3, %v17362_v29  ;;  %v17295_v34 = vmul.f32 %v29630_v63, %v17190_v57  ;;  %v24264_v56 = vpop.f32.mrb[110].mxu0  ;;  %v29733_v60 = vpack.c.bf16 %v17478_v35, %v17477_v7 }
0x1086   : > { %v17335_v1 = vadd.f32 %v29635_v26, %v17297_v18  ;;  %v17298_v52 = vmul.f32 %v24264_v56, %v29630_v63  ;;  %v17193_v36 = vpop.f32.mrb[111].mxu0 }
0x1087   : > { %v17333_v19 = vadd.f32 %v29635_v26, %v17295_v34  ;;  %v17296_v8 = vmul.f32 %v29630_v63, %v17193_v36  ;;  %24290 = vmatmul.mubr.msk.bf16.gmra.mrb[100].mxu1 %vm746_vm3, %v29733_v60 }
0x1088   : > { %v17367_v3 = vmax.f32 %v17335_v1, 0.0  ;;  %v17336_v10 = vadd.f32 %v29635_v26, %v17298_v52  ;;  %24293 = vmatprep.mubr.msk.bf16.mxu1 %vm746_vm3, %v29737_v14 }
0x1089   : > { %v17365_v40 = vmax.f32 %v17333_v19, 0.0  ;;  %v17334_v27 = vadd.f32 %v29635_v26, %v17296_v8  ;;  %v17483_v5 = vld [vmem:[#allocation8 + $0xf1] sm:$0xff] }
0x108a   : > { %17400 = vst.msk [vmem:[#allocation8 + $0x121] sm:$0xff] %vm746_vm3, %v17367_v3  ;;  %v17368_v62 = vmax.f32 %v17336_v10, 0.0  ;;  %v17481_v24 = vld [vmem:[#allocation8 + $0xd9] sm:$0xff] }
0x108b   : > { %17398 = vst.msk [vmem:[#allocation8 + $0x109] sm:$0xff] %vm746_vm3, %v17365_v40  ;;  %v17366_v13 = vmax.f32 %v17334_v27, 0.0  ;;  %v24267_v11 = vpop.f32.mrb[112].mxu0  ;;  %v17484_v39 = vld [vmem:[#allocation8 + $0xf9] sm:$0xff]  ;;  %v17412_v40 = vld [vmem:[#allocation8 + $0x8] sm:$0xff] }
0x108c   : > { %17401 = vst.msk [vmem:[#allocation8 + $0x129] sm:$0xff] %vm746_vm3, %v17368_v62  ;;  %v17301_v53 = vmul.f32 %v24267_v11, %v29630_v63  ;;  %v17206_v37 = vpop.f32.mrb[113].mxu0  ;;  %v17482_v32 = vld [vmem:[#allocation8 + $0xe1] sm:$0xff]  ;;  %v29757_v49 = vpack.c.bf16 %v17484_v39, %v17483_v5 }
0x108d   : > { %17399 = vst.msk [vmem:[#allocation8 + $0x111] sm:$0xff] %vm746_vm3, %v17366_v13  ;;  %v17299_v4 = vmul.f32 %v29630_v63, %v17206_v37  ;;  %v24268_v33 = vpop.f32.mrb[114].mxu0  ;;  %v29753_v20 = vpack.c.bf16 %v17482_v32, %v17481_v24  ;;  %v17414_v39 = vld [vmem:[#allocation8 + $0x20] sm:$0xff]  ;;  %v17413_v37 = vld [vmem:[#allocation8 + $0x18] sm:$0xff]  ;;  %v17415_v32 = vld [vmem:[#allocation8 + $0x30] sm:$0xff] }
0x108e   : > { %v17339_v6 = vadd.f32 %v29635_v26, %v17301_v53  ;;  %v17302_v47 = vmul.f32 %v24268_v33, %v29630_v63  ;;  %v17209_v50 = vpop.f32.mrb[115].mxu0  ;;  %v17416_v53 = vld [vmem:[#allocation8 + $0x38] sm:$0xff]  ;;  %v29804_v24 = vpack.c.bf16 %v17414_v39, %v17413_v37  ;;  %v29819_v5 = vld [vmem:[%s30319_s4 + $0x30] sm:$0xff]  }
0x108f   : > { %v17337_v0 = vadd.f32 %v29635_v26, %v17299_v4  ;;  %v17300_v22 = vmul.f32 %v29630_v63, %v17209_v50  ;;  %24294 = vmatmul.mubr.msk.bf16.gmra.mrb[104].mxu1 %vm746_vm3, %v29753_v20  ;;  %v26165_v4 = vld [vmem:[%s30319_s4 + $0x28] sm:$0xff]   ;;  %v29809_v33 = vpack.c.bf16 %v17416_v53, %v17415_v32  ;;  %v17417_v50 = vld [vmem:[#allocation8 + $0x48] sm:$0xff] }
0x1090   : > { %v17371_v46 = vmax.f32 %v17339_v6, 0.0  ;;  %v17340_v42 = vadd.f32 %v29635_v26, %v17302_v47  ;;  %24297 = vmatprep.mubr.msk.bf16.mxu1 %vm746_vm3, %v29757_v49  ;;  %v17418_v6 = vld [vmem:[#allocation8 + $0x50] sm:$0xff]  ;;  %v17420_v47 = vld [vmem:[#allocation8 + $0x68] sm:$0xff]  ;;  %v17960_v53 = vld [vmem:[#allocation8 + $0x1a] sm:$0xff] }
0x1091   : > { %v17369_v23 = vmax.f32 %v17337_v0, 0.0  ;;  %v17338_v48 = vadd.f32 %v29635_v26, %v17300_v22  ;;  %v17487_v30 = vld [vmem:[#allocation8 + $0x121] sm:$0xff]  ;;  %v29821_v0 = vpack.c.bf16 %v17418_v6, %v17417_v50  ;;  %v17962_v32 = vld [vmem:[#allocation8 + $0x32] sm:$0xff] }
0x1092   : > { %17404 = vst.msk [vmem:[#allocation8 + $0x151] sm:$0xff] %vm746_vm3, %v17371_v46  ;;  %v17372_v2 = vmax.f32 %v17340_v42, 0.0  ;;  %v17485_v55 = vld [vmem:[#allocation8 + $0x109] sm:$0xff]  ;;  %v17419_v22 = vld [vmem:[#allocation8 + $0x60] sm:$0xff]  ;;  %v17424_v42 = vld [vmem:[#allocation8 + $0x98] sm:$0xff] }
0x1093   : > { %17402 = vst.msk [vmem:[#allocation8 + $0x139] sm:$0xff] %vm746_vm3, %v17369_v23  ;;  %v17370_v41 = vmax.f32 %v17338_v48, 0.0  ;;  %v24271_v51 = vpop.f32.mrb[116].mxu0  ;;  %v17488_v12 = vld [vmem:[#allocation8 + $0x129] sm:$0xff]  ;;  %v29824_v46 = vpack.c.bf16 %v17420_v47, %v17419_v22  ;;  %v17421_v23 = vld [vmem:[#allocation8 + $0x78] sm:$0xff] }
0x1094   : > { %17405 = vst.msk [vmem:[#allocation8 + $0x159] sm:$0xff] %vm746_vm3, %v17372_v2  ;;  %v17305_v31 = vmul.f32 %v24271_v51, %v29630_v63  ;;  %v17222_v16 = vpop.f32.mrb[117].mxu0  ;;  %v17486_v54 = vld [vmem:[#allocation8 + $0x111] sm:$0xff]  ;;  %v29777_v18 = vpack.c.bf16 %v17488_v12, %v17487_v30  ;;  %v17428_v12 = vld [vmem:[#allocation8 + $0xc8] sm:$0xff] }
0x1095   : > { %17403 = vst.msk [vmem:[#allocation8 + $0x141] sm:$0xff] %vm746_vm3, %v17370_v41  ;;  %v17303_v38 = vmul.f32 %v29630_v63, %v17222_v16  ;;  %v24272_v21 = vpop.f32.mrb[118].mxu0  ;;  %v29773_v44 = vpack.c.bf16 %v17486_v54, %v17485_v55  ;;  %v17423_v2 = vld [vmem:[#allocation8 + $0x90] sm:$0xff]  ;;  %v17427_v55 = vld [vmem:[#allocation8 + $0xc0] sm:$0xff]  ;;  %v17429_v30 = vld [vmem:[#allocation8 + $0xd8] sm:$0xff] }
0x1096   : > { %v17343_v29 = vadd.f32 %v29635_v26, %v17305_v31  ;;  %v17306_v25 = vmul.f32 %v24272_v21, %v29630_v63  ;;  %v17225_v59 = vpop.f32.mrb[119].mxu0  ;;  %v29832_v41 = vpack.c.bf16 %v17424_v42, %v17423_v2  ;;  %v17426_v51 = vld [vmem:[#allocation8 + $0xb0] sm:$0xff]  ;;  %v17425_v31 = vld [vmem:[#allocation8 + $0xa8] sm:$0xff]  ;;  %v29840_v54 = vpack.c.bf16 %v17428_v12, %v17427_v55  ;;  %v17432_v21 = vld [vmem:[#allocation8 + $0xf8] sm:$0xff] }
0x1097   : > { %v17341_v57 = vadd.f32 %v29635_v26, %v17303_v38  ;;  %v17304_v7 = vmul.f32 %v29630_v63, %v17225_v59  ;;  %24298 = vmatmul.mubr.msk.bf16.gmra.mrb[108].mxu1 %vm746_vm3, %v29773_v44  ;;  %v29838_v16 = vpack.c.bf16 %v17426_v51, %v17425_v31  ;;  %v17430_v38 = vld [vmem:[#allocation8 + $0xe0] sm:$0xff]  ;;  %v26167_v47 = vld [vmem:[%s30319_s4 + $0x38] sm:$0xff]   ;;  %v26168_v22 = vld [vmem:[%s30319_s4 + $0x40] sm:$0xff]  }
0x1098   : > { %v17375_v35 = vmax.f32 %v17343_v29, 0.0  ;;  %v17344_v34 = vadd.f32 %v29635_v26, %v17306_v25  ;;  %24301 = vmatprep.mubr.msk.bf16.mxu1 %vm746_vm3, %v29777_v18  ;;  %v29846_v29 = vpack.c.bf16 %v17430_v38, %v17429_v30  ;;  %v17431_v25 = vld [vmem:[#allocation8 + $0xf0] sm:$0xff]  ;;  %v17961_v37 = vld [vmem:[#allocation8 + $0x22] sm:$0xff]  ;;  %v17971_v38 = vld [vmem:[#allocation8 + $0x9a] sm:$0xff] }
0x1099   : > { %v17373_v56 = vmax.f32 %v17341_v57, 0.0  ;;  %v17342_v9 = vadd.f32 %v29635_v26, %v17304_v7  ;;  %v17491_v3 = vld [vmem:[#allocation8 + $0x151] sm:$0xff]  ;;  %v17411_v26 = vld [vmem:[#allocation8] sm:$0xff]  ;;  %v29848_v59 = vpack.c.bf16 %v17432_v21, %v17431_v25  ;;  %v17436_v7 = vld [vmem:[#allocation8 + $0x128] sm:$0xff]  ;;  %v29875_v6 = vpack.c.bf16 %v17961_v37, %v17960_v53 }
0x109a   : > { %17408 = vst.msk [vmem:[#allocation8 + $0x181] sm:$0xff] %vm746_vm3, %v17375_v35  ;;  %v17376_v1 = vmax.f32 %v17344_v34, 0.0  ;;  %v17489_v63 = vld [vmem:[#allocation8 + $0x139] sm:$0xff]  ;;  %v17443_v13 = vpack.c.bf16 %v17412_v40, %v17411_v26  ;;  %v17434_v57 = vld [vmem:[#allocation8 + $0x110] sm:$0xff]  ;;  %v17433_v35 = vld [vmem:[#allocation8 + $0x108] sm:$0xff] }
0x109b   : > { %17406 = vst.msk [vmem:[#allocation8 + $0x169] sm:$0xff] %vm746_vm3, %v17373_v56  ;;  %v17374_v52 = vmax.f32 %v17342_v9, 0.0  ;;  %v17492_v36 = vld [vmem:[#allocation8 + $0x159] sm:$0xff]  ;;  %v29854_v34 = vpack.c.bf16 %v17434_v57, %v17433_v35  ;;  %v17958_v26 = vld [vmem:[#allocation8 + $0x2] sm:$0xff]  ;;  %v17959_v40 = vld [vmem:[#allocation8 + $0xa] sm:$0xff] }
0x109c   : > { %17409 = vst.msk [vmem:[#allocation8 + $0x189] sm:$0xff] %vm746_vm3, %v17376_v1  ;;  %v17490_v19 = vld [vmem:[#allocation8 + $0x141] sm:$0xff]  ;;  %v29793_v10 = vpack.c.bf16 %v17492_v36, %v17491_v3  ;;  %v17437_v36 = vld [vmem:[#allocation8 + $0x138] sm:$0xff]  ;;  %v17967_v2 = vld [vmem:[#allocation8 + $0x6a] sm:$0xff] }
0x109d   : > { %17407 = vst.msk [vmem:[#allocation8 + $0x171] sm:$0xff] %vm746_vm3, %v17374_v52  ;;  %v29791_v8 = vpack.c.bf16 %v17490_v19, %v17489_v63  ;;  %v17435_v56 = vld [vmem:[#allocation8 + $0x120] sm:$0xff]  ;;  %v17440_v52 = vld [vmem:[#allocation8 + $0x158] sm:$0xff]  ;;  %v17439_v19 = vld [vmem:[#allocation8 + $0x150] sm:$0xff] }
0x109e   : > { %v29856_v9 = vpack.c.bf16 %v17436_v7, %v17435_v56  ;;  %v17438_v1 = vld [vmem:[#allocation8 + $0x140] sm:$0xff]  ;;  %v29864_v3 = vpack.c.bf16 %v17440_v52, %v17439_v19  ;;  %v17965_v42 = vld [vmem:[#allocation8 + $0x52] sm:$0xff]  ;;  %v17972_v25 = vld [vmem:[#allocation8 + $0xaa] sm:$0xff] }
0x109f   : > { %24302 = vmatmul.mubr.msk.bf16.gmra.mrb[112].mxu1 %vm746_vm3, %v29791_v8  ;;  %v29862_v63 = vpack.c.bf16 %v17438_v1, %v17437_v36  ;;  %v17969_v31 = vld [vmem:[#allocation8 + $0x82] sm:$0xff]  ;;  %v17970_v55 = vld [vmem:[#allocation8 + $0x92] sm:$0xff]  ;;  %v17975_v35 = vld [vmem:[#allocation8 + $0xca] sm:$0xff] }
0x10a0   : > { %24305 = vmatprep.mubr.msk.bf16.mxu1 %vm746_vm3, %v29793_v10  ;;  %v29900_v30 = vpack.c.bf16 %v17971_v38, %v17970_v55  ;;  %v17973_v57 = vld [vmem:[#allocation8 + $0xb2] sm:$0xff]  ;;  %v17974_v7 = vld [vmem:[#allocation8 + $0xc2] sm:$0xff]  ;;  %v17976_v52 = vld [vmem:[#allocation8 + $0xda] sm:$0xff] }
0x10a1   : > { %v29906_v56 = vpack.c.bf16 %v17973_v57, %v17972_v25  ;;  %v29908_v1 = vpack.c.bf16 %v17975_v35, %v17974_v7  ;;  %v17977_v36 = vld [vmem:[#allocation8 + $0xe2] sm:$0xff]  ;;  %v17978_v19 = vld [vmem:[#allocation8 + $0xf2] sm:$0xff]  ;;  %v17983_v37 = vld [vmem:[#allocation8 + $0x12a] sm:$0xff] }
0x10a2   : > { %v17493_v27 = vld [vmem:[#allocation8 + $0x169] sm:$0xff]  ;;  %v26169_v25 = vld [vmem:[%s30319_s4 + $0x48] sm:$0xff]   ;;  %v26170_v57 = vld [vmem:[%s30319_s4 + $0x50] sm:$0xff]  }
0x10a3   : > { %v17982_v53 = vld [vmem:[#allocation8 + $0x122] sm:$0xff] }
0x10a4   : > { %v17494_v62 = vld [vmem:[#allocation8 + $0x171] sm:$0xff]  ;;  %v26171_v35 = vld [vmem:[%s30319_s4 + $0x58] sm:$0xff]  }
0x10a5   : > { %v29799_v11 = vpack.c.bf16 %v17494_v62, %v17493_v27  ;;  %v17442_v27 = vld [vmem:[#allocation8 + $0x170] sm:$0xff]  ;;  %v17441_v62 = vld [vmem:[#allocation8 + $0x168] sm:$0xff] }
0x10a6   : > { %v29870_v39 = vpack.c.bf16 %v17442_v27, %v17441_v62  ;;  %v17980_v62 = vld [vmem:[#allocation8 + $0x10a] sm:$0xff]  ;;  %v17989_v55 = vld [vmem:[#allocation8 + $0x172] sm:$0xff] }
0x10a7   : > { %24306 = vmatmul.mubr.msk.bf16.gmra.mrb[116].mxu1 %vm746_vm3, %v29799_v11 }
0x10a8   : > { %24313 = vmatprep.mubr.msk.bf16.mxu1 %vm746_vm3, %v17443_v13  ;;  %v17990_v13 = vpack.c.bf16 %v17959_v40, %v17958_v26  ;;  %v17979_v26 = vld [vmem:[#allocation8 + $0xfa] sm:$0xff]  ;;  %v29914_v40 = vpack.c.bf16 %v17977_v36, %v17976_v52  ;;  %v26172_v52 = vld [vmem:[%s30319_s4 + $0x60] sm:$0xff]  }
0x10a9   : > { %v29916_v27 = vpack.c.bf16 %v17979_v26, %v17978_v19  ;;  %v19495_v36 = vld [vmem:[#allocation8 + $0x79] sm:$0xff]  ;;  %v19497_v26 = vld [vmem:[#allocation8 + $0x91] sm:$0xff] }
0x10af   : > { %24314 = vmatmul.mubr.msk.bf16.vlgmr.msra.gmra.mrb[88].mxu1 %vm746_vm3, %v29804_v24 }
0x10b0   : > { %24317 = vmatprep.mubr.msk.bf16.mxu1 %vm746_vm3, %v29809_v33  ;;  %24346 = vmatpush3.bf16.msra.mxu1 %v29684_v15  ;;  %v17422_v15 = vld [vmem:[#allocation8 + $0x80] sm:$0xff] }
0x10b1   : > { %24347 = vmatprep.subr.bf16.mxu1 %v26165_v4  ;;  %v29830_v48 = vpack.c.bf16 %v17422_v15, %v17421_v23  ;;  %v17964_v15 = vld [vmem:[#allocation8 + $0x4a] sm:$0xff]  ;;  %v17966_v23 = vld [vmem:[#allocation8 + $0x62] sm:$0xff] }
0x10b2   : > { %v29890_v51 = vpack.c.bf16 %v17965_v42, %v17964_v15  ;;  %v29892_v12 = vpack.c.bf16 %v17967_v2, %v17966_v23  ;;  %v17985_v15 = vld [vmem:[#allocation8 + $0x142] sm:$0xff]  ;;  %v17986_v42 = vld [vmem:[#allocation8 + $0x152] sm:$0xff]  ;;  %v17987_v23 = vld [vmem:[#allocation8 + $0x15a] sm:$0xff] }
0x10b4   : > { %24348 = vmatpush3.bf16.msra.mxu1 %v26165_v4  ;;  %v17963_v4 = vld [vmem:[#allocation8 + $0x3a] sm:$0xff] }
0x10b5   : > { %24381 = vmatprep.subr.bf16.mxu1 %v29819_v5  ;;  %v29880_v50 = vpack.c.bf16 %v17963_v4, %v17962_v32  ;;  %v29924_v4 = vpack.c.bf16 %v17983_v37, %v17982_v53  ;;  %v19502_v53 = vld [vmem:[#allocation8 + $0xc9] sm:$0xff] }
0x10b6   : > { %v19499_v37 = vld [vmem:[#allocation8 + $0xa9] sm:$0xff] }
0x10b7   : > { %24318 = vmatmul.mubr.msk.bf16.gmra.mrb[92].mxu1 %vm746_vm3, %v29821_v0 }
0x10b8   : > { %24321 = vmatprep.mubr.msk.bf16.mxu1 %vm746_vm3, %v29824_v46 }
0x10bf   : > { %24322 = vmatmul.mubr.msk.bf16.gmra.mrb[96].mxu1 %vm746_vm3, %v29830_v48 }
0x10c0   : > { %24325 = vmatprep.mubr.msk.bf16.mxu1 %vm746_vm3, %v29832_v41 }
0x10c7   : > { %24326 = vmatmul.mubr.msk.bf16.gmra.mrb[100].mxu1 %vm746_vm3, %v29838_v16 }
0x10c8   : > { %24329 = vmatprep.mubr.msk.bf16.mxu1 %vm746_vm3, %v29840_v54 }
0x10cf   : > { %24330 = vmatmul.mubr.msk.bf16.gmra.mrb[104].mxu1 %vm746_vm3, %v29846_v29 }
0x10d0   : > { %24333 = vmatprep.mubr.msk.bf16.mxu1 %vm746_vm3, %v29848_v59 }
0x10d7   : > { %24334 = vmatmul.mubr.msk.bf16.gmra.mrb[108].mxu1 %vm746_vm3, %v29854_v34 }
0x10d8   : > { %24337 = vmatprep.mubr.msk.bf16.mxu1 %vm746_vm3, %v29856_v9 }
0x10df   : > { %24338 = vmatmul.mubr.msk.bf16.gmra.mrb[112].mxu1 %vm746_vm3, %v29862_v63 }
0x10e0   : > { %24341 = vmatprep.mubr.msk.bf16.mxu1 %vm746_vm3, %v29864_v3 }
0x10e7   : > { %24342 = vmatmul.mubr.msk.bf16.gmra.mrb[116].mxu1 %vm746_vm3, %v29870_v39 }
0x10e8   : > { %24349 = vmatprep.mubr.msk.bf16.mxu1 %vm746_vm3, %v17990_v13  ;;  %v17981_v13 = vld [vmem:[#allocation8 + $0x112] sm:$0xff] }
0x10e9   : > { %v29922_v32 = vpack.c.bf16 %v17981_v13, %v17980_v62  ;;  %v19500_v13 = vld [vmem:[#allocation8 + $0xb1] sm:$0xff] }
0x10ef   : > { %24350 = vmatmul.mubr.msk.bf16.vlgmr.msra.gmra.mrb[88].mxu1 %vm746_vm3, %v29875_v6 }
0x10f0   : > { %24353 = vmatprep.mubr.msk.bf16.mxu1 %vm746_vm3, %v29880_v50  ;;  %24382 = vmatpush3.bf16.msra.mxu1 %v29819_v5  ;;  %v17968_v5 = vld [vmem:[#allocation8 + $0x7a] sm:$0xff] }
0x10f1   : > { %24383 = vmatprep.subr.bf16.mxu1 %v26167_v47  ;;  %v29898_v21 = vpack.c.bf16 %v17969_v31, %v17968_v5  ;;  %v29932_v5 = vpack.c.bf16 %v17987_v23, %v17986_v42  ;;  %v17988_v31 = vld [vmem:[#allocation8 + $0x16a] sm:$0xff]  ;;  %v19504_v23 = vld [vmem:[#allocation8 + $0xe1] sm:$0xff] }
0x10f2   : > { %v29938_v38 = vpack.c.bf16 %v17989_v55, %v17988_v31  ;;  %v19506_v31 = vld [vmem:[#allocation8 + $0xf9] sm:$0xff] }
0x10f3   : > { %v19503_v55 = vld [vmem:[#allocation8 + $0xd9] sm:$0xff] }
0x10f4   : > { %24384 = vmatpush3.bf16.msra.mxu1 %v26167_v47  ;;  %v17984_v47 = vld [vmem:[#allocation8 + $0x13a] sm:$0xff] }
0x10f5   : > { %24417 = vmatprep.subr.bf16.mxu1 %v26168_v22  ;;  %v29930_v2 = vpack.c.bf16 %v17985_v15, %v17984_v47  ;;  %v19526_v47 = vpack.c.bf16 %v19500_v13, %v19499_v37  ;;  %v19501_v15 = vld [vmem:[#allocation8 + $0xc1] sm:$0xff] }
0x10f6   : > { %v19527_v42 = vpack.c.bf16 %v19502_v53, %v19501_v15 }
0x10f7   : > { %24354 = vmatmul.mubr.msk.bf16.gmra.mrb[92].mxu1 %vm746_vm3, %v29890_v51 }
0x10f8   : > { %24357 = vmatprep.mubr.msk.bf16.mxu1 %vm746_vm3, %v29892_v12 }
0x10ff   : > { %24358 = vmatmul.mubr.msk.bf16.gmra.mrb[96].mxu1 %vm746_vm3, %v29898_v21 }
0x1100   : > { %24361 = vmatprep.mubr.msk.bf16.mxu1 %vm746_vm3, %v29900_v30 }
0x1107   : > { %24362 = vmatmul.mubr.msk.bf16.gmra.mrb[100].mxu1 %vm746_vm3, %v29906_v56 }
0x1108   : > { %24365 = vmatprep.mubr.msk.bf16.mxu1 %vm746_vm3, %v29908_v1 }
0x110f   : > { %24366 = vmatmul.mubr.msk.bf16.gmra.mrb[104].mxu1 %vm746_vm3, %v29914_v40 }
0x1110   : > { %24369 = vmatprep.mubr.msk.bf16.mxu1 %vm746_vm3, %v29916_v27 }
0x1117   : > { %24370 = vmatmul.mubr.msk.bf16.gmra.mrb[108].mxu1 %vm746_vm3, %v29922_v32 }
0x1118   : > { %24373 = vmatprep.mubr.msk.bf16.mxu1 %vm746_vm3, %v29924_v4 }
0x111f   : > { %24374 = vmatmul.mubr.msk.bf16.gmra.mrb[112].mxu1 %vm746_vm3, %v29930_v2 }
0x1120   : > { %24377 = vmatprep.mubr.msk.bf16.mxu1 %vm746_vm3, %v29932_v5 }
0x1127   : > { %24378 = vmatmul.mubr.msk.bf16.gmra.mrb[116].mxu1 %vm746_vm3, %v29938_v38 }
0x1128   : > { %24385 = vmatprep.mubr.msk.bf16.mxu1 %vm746_vm3, %v29804_v24  ;;  %v18295_v24 = vld [vmem:[#allocation8 + $0x188] sm:$0xff] }
0x112f   : > { %24386 = vmatmul.mubr.msk.bf16.vlgmr.msra.gmra.mrb[88].mxu1 %vm746_vm3, %v29809_v33 }
0x1130   : > { %24389 = vmatprep.mubr.msk.bf16.mxu1 %vm746_vm3, %v29821_v0  ;;  %24418 = vmatpush3.bf16.msra.mxu1 %v26168_v22  ;;  %v18294_v22 = vld [vmem:[#allocation8 + $0x180] sm:$0xff] }
0x1131   : > { %24419 = vmatprep.subr.bf16.mxu1 %v26169_v25  ;;  %v29978_v7 = vpack.c.bf16 %v18295_v24, %v18294_v22  ;;  %v19519_v22 = vld [vmem:[#allocation8 + $0x199] sm:$0xff] }
0x1134   : > { %24420 = vmatpush3.bf16.msra.mxu1 %v26169_v25  ;;  %v19528_v25 = vpack.c.bf16 %v19504_v23, %v19503_v55 }
0x1135   : > { %24453 = vmatprep.subr.bf16.mxu1 %v26170_v57 }
0x1137   : > { %24390 = vmatmul.mubr.msk.bf16.gmra.mrb[92].mxu1 %vm746_vm3, %v29824_v46 }
0x1138   : > { %24393 = vmatprep.mubr.msk.bf16.mxu1 %vm746_vm3, %v29830_v48 }
0x113f   : > { %24394 = vmatmul.mubr.msk.bf16.gmra.mrb[96].mxu1 %vm746_vm3, %v29832_v41 }
0x1140   : > { %24397 = vmatprep.mubr.msk.bf16.mxu1 %vm746_vm3, %v29838_v16 }
0x1147   : > { %24398 = vmatmul.mubr.msk.bf16.gmra.mrb[100].mxu1 %vm746_vm3, %v29840_v54 }
0x1148   : > { %24401 = vmatprep.mubr.msk.bf16.mxu1 %vm746_vm3, %v29846_v29 }
0x114f   : > { %24402 = vmatmul.mubr.msk.bf16.gmra.mrb[104].mxu1 %vm746_vm3, %v29848_v59 }
0x1150   : > { %24405 = vmatprep.mubr.msk.bf16.mxu1 %vm746_vm3, %v29854_v34 }
0x1157   : > { %24406 = vmatmul.mubr.msk.bf16.gmra.mrb[108].mxu1 %vm746_vm3, %v29856_v9 }
0x1158   : > { %24409 = vmatprep.mubr.msk.bf16.mxu1 %vm746_vm3, %v29862_v63 }
0x115f   : > { %24410 = vmatmul.mubr.msk.bf16.gmra.mrb[112].mxu1 %vm746_vm3, %v29864_v3 }
0x1160   : > { %24413 = vmatprep.mubr.msk.bf16.mxu1 %vm746_vm3, %v29870_v39 }
0x1167   : > { %24414 = vmatmul.mubr.msk.bf16.gmra.mrb[116].mxu1 %vm746_vm3, %v29978_v7 }
0x1168   : > { %24421 = vmatprep.mubr.msk.bf16.mxu1 %vm746_vm3, %v29663_v17  ;;  %v18601_v17 = vld [vmem:[#allocation8 + $0x189] sm:$0xff] }
0x116f   : > { %24422 = vmatmul.mubr.msk.bf16.vlgmr.msra.gmra.mrb[88].mxu1 %vm746_vm3, %v29670_v45  ;;  %v18600_v45 = vld [vmem:[#allocation8 + $0x181] sm:$0xff] }
0x1170   : > { %24425 = vmatprep.mubr.msk.bf16.mxu1 %vm746_vm3, %v29692_v61  ;;  %24454 = vmatpush3.bf16.msra.mxu1 %v26170_v57  ;;  %v30018_v61 = vpack.c.bf16 %v18601_v17, %v18600_v45  ;;  %v19505_v57 = vld [vmem:[#allocation8 + $0xf1] sm:$0xff] }
0x1171   : > { %24455 = vmatprep.subr.bf16.mxu1 %v26171_v35  ;;  %v19529_v24 = vpack.c.bf16 %v19506_v31, %v19505_v57 }
0x1174   : > { %24456 = vmatpush3.bf16.msra.mxu1 %v26171_v35 }
0x1175   : > { %24489 = vmatprep.subr.bf16.mxu1 %v26172_v52 }
0x1177   : > { %24426 = vmatmul.mubr.msk.bf16.gmra.mrb[92].mxu1 %vm746_vm3, %v29697_v28  ;;  %v26173_v28 = vld [vmem:[%s30319_s4 + $0x68] sm:$0xff]  }
0x1178   : > { %24429 = vmatprep.mubr.msk.bf16.mxu1 %vm746_vm3, %v29713_v58  ;;  %v26174_v58 = vld [vmem:[%s30319_s4 + $0x70] sm:$0xff]  }
0x117f   : > { %24430 = vmatmul.mubr.msk.bf16.gmra.mrb[96].mxu1 %vm746_vm3, %v29717_v43  ;;  %v18906_v43 = vld [vmem:[#allocation8 + $0x182] sm:$0xff] }
0x1180   : > { %24433 = vmatprep.mubr.msk.bf16.mxu1 %vm746_vm3, %v29733_v60  ;;  %v18907_v60 = vld [vmem:[#allocation8 + $0x18a] sm:$0xff] }
0x1187   : > { %24434 = vmatmul.mubr.msk.bf16.gmra.mrb[100].mxu1 %vm746_vm3, %v29737_v14  ;;  %v30058_v14 = vpack.c.bf16 %v18907_v60, %v18906_v43 }
0x1188   : > { %24437 = vmatprep.mubr.msk.bf16.mxu1 %vm746_vm3, %v29753_v20  ;;  %v26175_v20 = vld [vmem:[%s30319_s4 + $0x78] sm:$0xff]  }
0x118f   : > { %24438 = vmatmul.mubr.msk.bf16.gmra.mrb[104].mxu1 %vm746_vm3, %v29757_v49  ;;  %v26176_v49 = vld [vmem:[%s30319_s4 + $0x80] sm:$0xff]  }
0x1190   : > { %24441 = vmatprep.mubr.msk.bf16.mxu1 %vm746_vm3, %v29773_v44 }
0x1197   : > { %24442 = vmatmul.mubr.msk.bf16.gmra.mrb[108].mxu1 %vm746_vm3, %v29777_v18 }
0x1198   : > { %24445 = vmatprep.mubr.msk.bf16.mxu1 %vm746_vm3, %v29791_v8 }
0x119f   : > { %24446 = vmatmul.mubr.msk.bf16.gmra.mrb[112].mxu1 %vm746_vm3, %v29793_v10 }
0x11a0   : > { %24449 = vmatprep.mubr.msk.bf16.mxu1 %vm746_vm3, %v29799_v11 }
0x11a7   : > { %24450 = vmatmul.mubr.msk.bf16.gmra.mrb[116].mxu1 %vm746_vm3, %v30018_v61 }
0x11a8   : > { %24457 = vmatprep.mubr.msk.bf16.mxu1 %vm746_vm3, %v29875_v6  ;;  %v19498_v6 = vld [vmem:[#allocation8 + $0x99] sm:$0xff] }
0x11a9   : > { %v19525_v62 = vpack.c.bf16 %v19498_v6, %v19497_v26 }
0x11af   : > { %24458 = vmatmul.mubr.msk.bf16.vlgmr.msra.gmra.mrb[88].mxu1 %vm746_vm3, %v29880_v50 }
0x11b0   : > { %24461 = vmatprep.mubr.msk.bf16.mxu1 %vm746_vm3, %v29890_v51  ;;  %24490 = vmatpush3.bf16.msra.mxu1 %v26172_v52 }
0x11b1   : > { %24491 = vmatprep.subr.bf16.mxu1 %v26173_v28 }
0x11b4   : > { %24492 = vmatpush3.bf16.msra.mxu1 %v26173_v28 }
0x11b5   : > { %24525 = vmatprep.subr.bf16.mxu1 %v26174_v58 }
0x11b7   : > { %24462 = vmatmul.mubr.msk.bf16.gmra.mrb[92].mxu1 %vm746_vm3, %v29892_v12 }
0x11b8   : > { %24465 = vmatprep.mubr.msk.bf16.mxu1 %vm746_vm3, %v29898_v21 }
0x11bf   : > { %24466 = vmatmul.mubr.msk.bf16.gmra.mrb[96].mxu1 %vm746_vm3, %v29900_v30 }
0x11c0   : > { %24469 = vmatprep.mubr.msk.bf16.mxu1 %vm746_vm3, %v29906_v56 }
0x11c7   : > { %24470 = vmatmul.mubr.msk.bf16.gmra.mrb[100].mxu1 %vm746_vm3, %v29908_v1 }
0x11c8   : > { %24473 = vmatprep.mubr.msk.bf16.mxu1 %vm746_vm3, %v29914_v40 }
0x11cf   : > { %24474 = vmatmul.mubr.msk.bf16.gmra.mrb[104].mxu1 %vm746_vm3, %v29916_v27 }
0x11d0   : > { %24477 = vmatprep.mubr.msk.bf16.mxu1 %vm746_vm3, %v29922_v32 }
0x11d7   : > { %24478 = vmatmul.mubr.msk.bf16.gmra.mrb[108].mxu1 %vm746_vm3, %v29924_v4 }
0x11d8   : > { %24481 = vmatprep.mubr.msk.bf16.mxu1 %vm746_vm3, %v29930_v2 }
0x11df   : > { %24482 = vmatmul.mubr.msk.bf16.gmra.mrb[112].mxu1 %vm746_vm3, %v29932_v5 }
0x11e0   : > { %24485 = vmatprep.mubr.msk.bf16.mxu1 %vm746_vm3, %v29938_v38 }
0x11e7   : > { %24486 = vmatmul.mubr.msk.bf16.gmra.mrb[116].mxu1 %vm746_vm3, %v30058_v14 }
0x11e8   : > { %24493 = vmatprep.mubr.msk.bf16.mxu1 %vm746_vm3, %v29809_v33  ;;  %v19213_v33 = vld [vmem:[#allocation8 + $0x198] sm:$0xff] }
0x11ef   : > { %24494 = vmatmul.mubr.msk.bf16.vlgmr.msra.gmra.mrb[88].mxu1 %vm746_vm3, %v29821_v0  ;;  %v19214_v0 = vld [vmem:[#allocation8 + $0x1a0] sm:$0xff] }
0x11f0   : > { %24497 = vmatprep.mubr.msk.bf16.mxu1 %vm746_vm3, %v29824_v46  ;;  %24526 = vmatpush3.bf16.msra.mxu1 %v26174_v58  ;;  %v19230_v46 = vpack.c.bf16 %v19214_v0, %v19213_v33 }
0x11f1   : > { %24527 = vmatprep.subr.bf16.mxu1 %v26175_v20 }
0x11f4   : > { %24528 = vmatpush3.bf16.msra.mxu1 %v26175_v20 }
0x11f5   : > { %24561 = vmatprep.subr.bf16.mxu1 %v26176_v49 }
0x11f7   : > { %24498 = vmatmul.mubr.msk.bf16.gmra.mrb[92].mxu1 %vm746_vm3, %v29830_v48  ;;  %v19490_v48 = vld [vmem:[#allocation8 + $0x39] sm:$0xff] }
0x11f8   : > { %24501 = vmatprep.mubr.msk.bf16.mxu1 %vm746_vm3, %v29832_v41  ;;  %v19489_v41 = vld [vmem:[#allocation8 + $0x31] sm:$0xff] }
0x11ff   : > { %24502 = vmatmul.mubr.msk.bf16.gmra.mrb[96].mxu1 %vm746_vm3, %v29838_v16  ;;  %v19521_v16 = vpack.c.bf16 %v19490_v48, %v19489_v41 }
0x1200   : > { %24505 = vmatprep.mubr.msk.bf16.mxu1 %vm746_vm3, %v29840_v54  ;;  %v19492_v54 = vld [vmem:[#allocation8 + $0x51] sm:$0xff] }
0x1207   : > { %24506 = vmatmul.mubr.msk.bf16.gmra.mrb[100].mxu1 %vm746_vm3, %v29846_v29  ;;  %v19494_v29 = vld [vmem:[#allocation8 + $0x69] sm:$0xff] }
0x1208   : > { %24509 = vmatprep.mubr.msk.bf16.mxu1 %vm746_vm3, %v29848_v59  ;;  %v19491_v59 = vld [vmem:[#allocation8 + $0x49] sm:$0xff] }
0x120f   : > { %24510 = vmatmul.mubr.msk.bf16.gmra.mrb[104].mxu1 %vm746_vm3, %v29854_v34  ;;  %v19522_v34 = vpack.c.bf16 %v19492_v54, %v19491_v59 }
0x1210   : > { %24513 = vmatprep.mubr.msk.bf16.mxu1 %vm746_vm3, %v29856_v9  ;;  %v19493_v9 = vld [vmem:[#allocation8 + $0x61] sm:$0xff] }
0x1217   : > { %24514 = vmatmul.mubr.msk.bf16.gmra.mrb[108].mxu1 %vm746_vm3, %v29862_v63  ;;  %v26177_v63 = vld [vmem:[%s30319_s4 + $0x88] sm:$0xff]  }
0x1218   : > { %24517 = vmatprep.mubr.msk.bf16.mxu1 %vm746_vm3, %v29864_v3  ;;  %v19523_v3 = vpack.c.bf16 %v19494_v29, %v19493_v9 }
0x121f   : > { %24518 = vmatmul.mubr.msk.bf16.gmra.mrb[112].mxu1 %vm746_vm3, %v29870_v39  ;;  %v19496_v39 = vld [vmem:[#allocation8 + $0x81] sm:$0xff] }
0x1220   : > { %24521 = vmatprep.mubr.msk.bf16.mxu1 %vm746_vm3, %v29978_v7  ;;  %v19524_v19 = vpack.c.bf16 %v19496_v39, %v19495_v36  ;;  %v19520_v7 = vld [vmem:[#allocation8 + $0x1a1] sm:$0xff] }
0x1221   : > { %v19536_v35 = vpack.c.bf16 %v19520_v7, %v19519_v22 }
0x1227   : > { %24522 = vmatmul.mubr.msk.bf16.gmra.mrb[116].mxu1 %vm746_vm3, %v19230_v46 }
0x1228   : > { %24529 = vmatprep.mubr.msk.bf16.mxu1 %vm746_vm3, %v19521_v16 }
0x122f   : > { %24530 = vmatmul.mubr.msk.bf16.vlgmr.msra.gmra.mrb[88].mxu1 %vm746_vm3, %v19522_v34 }
0x1230   : > { %24533 = vmatprep.mubr.msk.bf16.mxu1 %vm746_vm3, %v19523_v3  ;;  %24562 = vmatpush3.bf16.msra.mxu1 %v26176_v49 }
0x1231   : > { %24563 = vmatprep.subr.bf16.mxu1 %v26177_v63 }
0x1234   : > { %24564 = vmatpush3.bf16.msra.mxu1 %v26177_v63 }
0x1237   : > { %24534 = vmatmul.mubr.msk.bf16.gmra.mrb[92].mxu1 %vm746_vm3, %v19524_v19 }
0x1238   : > { %24537 = vmatprep.mubr.msk.bf16.mxu1 %vm746_vm3, %v19525_v62 }
0x123f   : > { %24538 = vmatmul.mubr.msk.bf16.gmra.mrb[96].mxu1 %vm746_vm3, %v19526_v47 }
0x1240   : > { %24541 = vmatprep.mubr.msk.bf16.mxu1 %vm746_vm3, %v19527_v42 }
0x1247   : > { %24542 = vmatmul.mubr.msk.bf16.gmra.mrb[100].mxu1 %vm746_vm3, %v19528_v25 }
0x1248   : > { %24545 = vmatprep.mubr.msk.bf16.mxu1 %vm746_vm3, %v19529_v24 }
0x124f   : > { %24546 = vmatmul.mubr.msk.bf16.gmra.mrb[104].mxu1 %vm746_vm3, %v29773_v44  ;;  %v19825_v44 = vld [vmem:[#allocation8 + $0x19a] sm:$0xff] }
0x1250   : > { %24549 = vmatprep.mubr.msk.bf16.mxu1 %vm746_vm3, %v29777_v18  ;;  %v19826_v18 = vld [vmem:[#allocation8 + $0x1a2] sm:$0xff] }
0x1257   : > { %24550 = vmatmul.mubr.msk.bf16.gmra.mrb[108].mxu1 %vm746_vm3, %v29791_v8  ;;  %v19842_v8 = vpack.c.bf16 %v19826_v18, %v19825_v44 }
0x1258   : > { %24553 = vmatprep.mubr.msk.bf16.mxu1 %vm746_vm3, %v29793_v10  ;;  %v30158_v10 = vld [vmem:[%s30322_s24] ss:$0 sm:$0xff] }
0x125f   : > { %24554 = vmatmul.mubr.msk.bf16.gmra.mrb[112].mxu1 %vm746_vm3, %v29799_v11 }
0x1260   : > { %24557 = vmatprep.mubr.msk.bf16.mxu1 %vm746_vm3, %v30018_v61 }
0x1267   : > { %24558 = vmatmul.mubr.msk.bf16.gmra.mrb[116].mxu1 %vm746_vm3, %v19536_v35 }
0x1268   : > { %24565 = vmatprep.mubr.msk.bf16.mxu1 %vm746_vm3, %v29880_v50 }
0x126f   : > { %24566 = vmatmul.mubr.msk.bf16.vlgmr.msra.gmra.mrb[88].mxu1 %vm746_vm3, %v29890_v51 }
0x1270   : > { %24569 = vmatprep.mubr.msk.bf16.mxu1 %vm746_vm3, %v29892_v12 }
0x1277   : > { %24570 = vmatmul.mubr.msk.bf16.gmra.mrb[92].mxu1 %vm746_vm3, %v29898_v21 }
0x1278   : > { %24573 = vmatprep.mubr.msk.bf16.mxu1 %vm746_vm3, %v29900_v30 }
0x127f   : > { %24574 = vmatmul.mubr.msk.bf16.gmra.mrb[96].mxu1 %vm746_vm3, %v29906_v56 }
0x1280   : > { %24577 = vmatprep.mubr.msk.bf16.mxu1 %vm746_vm3, %v29908_v1 }
0x1287   : > { %24578 = vmatmul.mubr.msk.bf16.gmra.mrb[100].mxu1 %vm746_vm3, %v29914_v40 }
0x1288   : > { %24581 = vmatprep.mubr.msk.bf16.mxu1 %vm746_vm3, %v29916_v27 }
0x128f   : > { %24582 = vmatmul.mubr.msk.bf16.gmra.mrb[104].mxu1 %vm746_vm3, %v29922_v32 }
0x1290   : > { %24585 = vmatprep.mubr.msk.bf16.mxu1 %vm746_vm3, %v29924_v4 }
0x1297   : > { %24586 = vmatmul.mubr.msk.bf16.gmra.mrb[108].mxu1 %vm746_vm3, %v29930_v2 }
0x1298   : > { %24589 = vmatprep.mubr.msk.bf16.mxu1 %vm746_vm3, %v29932_v5 }
0x129f   : > { %24590 = vmatmul.mubr.msk.bf16.gmra.mrb[112].mxu1 %vm746_vm3, %v29938_v38 }
0x12a0   : > { %24593 = vmatprep.mubr.msk.bf16.mxu1 %vm746_vm3, %v30058_v14 }
0x12a7   : > { %24594 = vmatmul.mubr.msk.bf16.gmra.mrb[116].mxu1 %vm746_vm3, %v19842_v8 }
0x1342   : > { %v24567_v11 = vpop.f32.mrb[88].mxu1 }
0x1343   : > { %v20109_v50 = vadd.f32 %v24567_v11, %v30158_v10  ;;  %v19942_v51 = vpop.f32.mrb[89].mxu1 }
0x1344   : > { %v20107_v12 = vadd.f32 %v30158_v10, %v19942_v51  ;;  %v24568_v21 = vpop.f32.mrb[90].mxu1 }
0x1345   : > { %20141 = vst.msk [vmem:[%s30165_s28 + $0x10] sm:$0xff] %vm690_vm0, %v20109_v50  ;;  %v20110_v30 = vadd.f32 %v24568_v21, %v30158_v10  ;;  %v19945_v56 = vpop.f32.mrb[91].mxu1 }
0x1346   : > { %20139 = vst.msk [vmem:[%s30165_s28] sm:$0xff] %vm690_vm0, %v20107_v12  ;;  %v20108_v1 = vadd.f32 %v30158_v10, %v19945_v56 }
0x1347   : > { %20142 = vst.msk [vmem:[%s30165_s28 + $0x18] sm:$0xff] %vm690_vm0, %v20110_v30 }
0x1348   : > { %20140 = vst.msk [vmem:[%s30165_s28 + $0x8] sm:$0xff] %vm690_vm0, %v20108_v1 }
0x134a   : > { %v24571_v40 = vpop.f32.mrb[92].mxu1 }
0x134b   : > { %v20113_v27 = vadd.f32 %v24571_v40, %v30158_v10  ;;  %v19958_v32 = vpop.f32.mrb[93].mxu1 }
0x134c   : > { %v20111_v4 = vadd.f32 %v30158_v10, %v19958_v32  ;;  %v24572_v2 = vpop.f32.mrb[94].mxu1 }
0x134d   : > { %20145 = vst.msk [vmem:[%s30165_s28 + $0x30] sm:$0xff] %vm690_vm0, %v20113_v27  ;;  %v20114_v5 = vadd.f32 %v24572_v2, %v30158_v10  ;;  %v19961_v38 = vpop.f32.mrb[95].mxu1 }
0x134e   : > { %20143 = vst.msk [vmem:[%s30165_s28 + $0x20] sm:$0xff] %vm690_vm0, %v20111_v4  ;;  %v20112_v52 = vadd.f32 %v30158_v10, %v19961_v38 }
0x134f   : > { %20146 = vst.msk [vmem:[%s30165_s28 + $0x38] sm:$0xff] %vm690_vm0, %v20114_v5 }
0x1350   : > { %20144 = vst.msk [vmem:[%s30165_s28 + $0x28] sm:$0xff] %vm690_vm0, %v20112_v52 }
0x1352   : > { %v24575_v17 = vpop.f32.mrb[96].mxu1 }
0x1353   : > { %v20117_v45 = vadd.f32 %v24575_v17, %v30158_v10  ;;  %v19974_v61 = vpop.f32.mrb[97].mxu1 }
0x1354   : > { %v20115_v28 = vadd.f32 %v30158_v10, %v19974_v61  ;;  %v24576_v58 = vpop.f32.mrb[98].mxu1 }
0x1355   : > { %20149 = vst.msk [vmem:[%s30165_s28 + $0x50] sm:$0xff] %vm690_vm0, %v20117_v45  ;;  %v20118_v43 = vadd.f32 %v24576_v58, %v30158_v10  ;;  %v19977_v60 = vpop.f32.mrb[99].mxu1 }
0x1356   : > { %20147 = vst.msk [vmem:[%s30165_s28 + $0x40] sm:$0xff] %vm690_vm0, %v20115_v28  ;;  %v20116_v14 = vadd.f32 %v30158_v10, %v19977_v60 }
0x1357   : > { %20150 = vst.msk [vmem:[%s30165_s28 + $0x58] sm:$0xff] %vm690_vm0, %v20118_v43 }
0x1358   : > { %20148 = vst.msk [vmem:[%s30165_s28 + $0x48] sm:$0xff] %vm690_vm0, %v20116_v14 }
0x135a   : > { %v24579_v20 = vpop.f32.mrb[100].mxu1 }
0x135b   : > { %v20121_v49 = vadd.f32 %v24579_v20, %v30158_v10  ;;  %v19990_v33 = vpop.f32.mrb[101].mxu1 }
0x135c   : > { %v20119_v0 = vadd.f32 %v30158_v10, %v19990_v33  ;;  %v24580_v46 = vpop.f32.mrb[102].mxu1 }
0x135d   : > { %20153 = vst.msk [vmem:[%s30165_s28 + $0x70] sm:$0xff] %vm690_vm0, %v20121_v49  ;;  %v20122_v48 = vadd.f32 %v24580_v46, %v30158_v10  ;;  %v19993_v41 = vpop.f32.mrb[103].mxu1 }
0x135e   : > { %20151 = vst.msk [vmem:[%s30165_s28 + $0x60] sm:$0xff] %vm690_vm0, %v20119_v0  ;;  %v20120_v16 = vadd.f32 %v30158_v10, %v19993_v41 }
0x135f   : > { %20154 = vst.msk [vmem:[%s30165_s28 + $0x78] sm:$0xff] %vm690_vm0, %v20122_v48 }
0x1360   : > { %20152 = vst.msk [vmem:[%s30165_s28 + $0x68] sm:$0xff] %vm690_vm0, %v20120_v16 }
0x1362   : > { %v24583_v54 = vpop.f32.mrb[104].mxu1 }
0x1363   : > { %v20125_v29 = vadd.f32 %v24583_v54, %v30158_v10  ;;  %v20006_v59 = vpop.f32.mrb[105].mxu1 }
0x1364   : > { %v20123_v34 = vadd.f32 %v30158_v10, %v20006_v59  ;;  %v24584_v9 = vpop.f32.mrb[106].mxu1 }
0x1365   : > { %20157 = vst.msk [vmem:[%s30165_s28 + $0x90] sm:$0xff] %vm690_vm0, %v20125_v29  ;;  %v20126_v63 = vadd.f32 %v24584_v9, %v30158_v10  ;;  %v20009_v3 = vpop.f32.mrb[107].mxu1 }
0x1366   : > { %20155 = vst.msk [vmem:[%s30165_s28 + $0x80] sm:$0xff] %vm690_vm0, %v20123_v34  ;;  %v20124_v39 = vadd.f32 %v30158_v10, %v20009_v3 }
0x1367   : > { %20158 = vst.msk [vmem:[%s30165_s28 + $0x98] sm:$0xff] %vm690_vm0, %v20126_v63 }
0x1368   : > { %20156 = vst.msk [vmem:[%s30165_s28 + $0x88] sm:$0xff] %vm690_vm0, %v20124_v39 }
0x136a   : > { %v24587_v6 = vpop.f32.mrb[108].mxu1 }
0x136b   : > { %v20129_v36 = vadd.f32 %v24587_v6, %v30158_v10  ;;  %v20022_v19 = vpop.f32.mrb[109].mxu1 }
0x136c   : > { %v20127_v26 = vadd.f32 %v30158_v10, %v20022_v19  ;;  %v24588_v62 = vpop.f32.mrb[110].mxu1 }
0x136d   : > { %20161 = vst.msk [vmem:[%s30165_s28 + $0xb0] sm:$0xff] %vm690_vm0, %v20129_v36  ;;  %v20130_v13 = vadd.f32 %v24588_v62, %v30158_v10  ;;  %v20025_v53 = vpop.f32.mrb[111].mxu1 }
0x136e   : > { %20159 = vst.msk [vmem:[%s30165_s28 + $0xa0] sm:$0xff] %vm690_vm0, %v20127_v26  ;;  %v20128_v37 = vadd.f32 %v30158_v10, %v20025_v53 }
0x136f   : > { %20162 = vst.msk [vmem:[%s30165_s28 + $0xb8] sm:$0xff] %vm690_vm0, %v20130_v13 }
0x1370   : > { %20160 = vst.msk [vmem:[%s30165_s28 + $0xa8] sm:$0xff] %vm690_vm0, %v20128_v37 }
0x1372   : > { %v24591_v47 = vpop.f32.mrb[112].mxu1 }
0x1373   : > { %v20133_v15 = vadd.f32 %v24591_v47, %v30158_v10  ;;  %v20038_v42 = vpop.f32.mrb[113].mxu1 }
0x1374   : > { %v20131_v23 = vadd.f32 %v30158_v10, %v20038_v42  ;;  %v24592_v31 = vpop.f32.mrb[114].mxu1 }
0x1375   : > { %20165 = vst.msk [vmem:[%s30165_s28 + $0xd0] sm:$0xff] %vm690_vm0, %v20133_v15  ;;  %v20134_v55 = vadd.f32 %v24592_v31, %v30158_v10  ;;  %v20041_v25 = vpop.f32.mrb[115].mxu1 }
0x1376   : > { %20163 = vst.msk [vmem:[%s30165_s28 + $0xc0] sm:$0xff] %vm690_vm0, %v20131_v23  ;;  %v20132_v57 = vadd.f32 %v30158_v10, %v20041_v25 }
0x1377   : > { %20166 = vst.msk [vmem:[%s30165_s28 + $0xd8] sm:$0xff] %vm690_vm0, %v20134_v55 }
0x1378   : > { %20164 = vst.msk [vmem:[%s30165_s28 + $0xc8] sm:$0xff] %vm690_vm0, %v20132_v57 }
0x137a   : > { %v24595_v24 = vpop.f32.mrb[116].mxu1 }
0x137b   : > { %v20137_v22 = vadd.f32 %v24595_v24, %v30158_v10  ;;  %v20054_v7 = vpop.f32.mrb[117].mxu1 }
0x137c   : > { %v20135_v35 = vadd.f32 %v30158_v10, %v20054_v7  ;;  %v24596_v44 = vpop.f32.mrb[118].mxu1 }
0x137d   : > { %20169 = vst.msk [vmem:[%s30165_s28 + $0xf0] sm:$0xff] %vm690_vm0, %v20137_v22  ;;  %v20138_v18 = vadd.f32 %v24596_v44, %v30158_v10  ;;  %v20057_v8 = vpop.f32.mrb[119].mxu1 }
0x137e   : > { %20167 = vst.msk [vmem:[%s30165_s28 + $0xe0] sm:$0xff] %vm690_vm0, %v20135_v35  ;;  %v20136_v11 = vadd.f32 %v30158_v10, %v20057_v8 }
0x137f   : > { %20170 = vst.msk [vmem:[%s30165_s28 + $0xf8] sm:$0xff] %vm690_vm0, %v20138_v18 }
0x1380   : > { %20168 = vst.msk [vmem:[%s30165_s28 + $0xe8] sm:$0xff] %vm690_vm0, %v20136_v11 }
0x1381 PF: > { %s30324_s22 = sld [smem:[#allocation19_spill]] }
0x1387   : > { %s33_s1 = sadd.s32 1, %s30324_s22  }
0x1388   : > { %p30_p6 = scmp.ge.s32.totalorder %s33_s1, 4  }
0x138a   :  { %32 = sbr.rel (!%p30_p6) target bundleno = 14 (0xe), region = 244 }
0x1391   :  { %20192 = vsyncpa [#allocation10], 1 }
0x1392   :  { %20194 = vsyncpa [#allocation10 + $0x1], 1 }
0x1393   :  { %20195 = vsyncpa [#allocation12], 1 }
0x1394   :  { %20196 = vsyncpa [#allocation15], 1 }

</bundles_post_ra>
